<compile_context>
chip_gen: v5e
topology: v5e:2x2
jax: 0.10.0
libtpu: 0.0.40
codegen_flags: <defaults>
</compile_context>

<pallas_src>
import functools

import jax
import jax.numpy as jnp
from jax.experimental import pallas as pl
from jax.experimental.pallas import tpu as pltpu


# --------------------------------------------------------------------------
# In-kernel helpers (operate on VMEM-resident values, no HBM traffic)
# --------------------------------------------------------------------------
def _pad1_hw(t):
    """Zero-pad a (B, H, W, C) value by 1 on both spatial dims, in VMEM (same dtype)."""
    Bb, H, W, C = t.shape
    zrow = jnp.zeros((Bb, 1, W, C), t.dtype)
    t = jnp.concatenate([zrow, t, zrow], axis=1)          # (Bb, H+2, W,   C)
    zcol = jnp.zeros((Bb, H + 2, 1, C), t.dtype)
    return jnp.concatenate([zcol, t, zcol], axis=2)       # (Bb, H+2, W+2, C)


# --------------------------------------------------------------------------
# Fused forward kernel: one grid step == one batch block of Bblk images
# --------------------------------------------------------------------------
def fused_forward_kernel(x_ref, base_w_ref, base_b_ref,
                         w1_ref, b1_ref, v2_ref, c2_ref,
                         out_ref, logit_ref, *, H, W):
    x = x_ref[...]                                        # (Bblk, H, W, Cin) f32
    Bblk, _, _, Cin = x.shape
    hidden = w1_ref.shape[-1]

    # ---- synthetic base_net head: GAP + Linear (tiny, pure f32) ----
    px = jnp.mean(x, axis=(1, 2))                         # (Bblk, Cin)
    x_out = jnp.dot(px, base_w_ref[...], preferred_element_type=jnp.float32)
    out_ref[0] = (x_out + base_b_ref[...]).astype(out_ref.dtype)

    # ---- grl_layer: identity in the forward pass ----
    # TODO(synk): WarmStartGradientReverseLayer only scales the backward grad
    #             (and auto-steps an iteration counter); forward is identity.

    # ---- conv1 (3x3 SAME) + ReLU: one im2col MXU matmul, M = Bblk*H*W ----
    # bf16 BEFORE pad/concat so the halo + patch buffers are half the bytes.
    xb = x.astype(jnp.bfloat16)
    xp = _pad1_hw(xb)                                     # (Bblk, H+2, W+2, Cin) bf16
    taps = []
    for dy in range(3):                                   # (dy, dx, cin) order matches
        for dx in range(3):                               # w1.reshape(9*Cin, hidden)
            taps.append(xp[:, dy:dy + H, dx:dx + W, :])
    patches = jnp.concatenate(taps, axis=-1)              # (Bblk, H, W, 9*Cin) bf16
    patches = patches.reshape(Bblk * H * W, 9 * Cin)      # sublane-dense M
    h1 = jnp.dot(patches, w1_ref[...],
                 preferred_element_type=jnp.float32)      # (M, hidden) f32 acc
    h1 = jnp.maximum(h1 + b1_ref[...], 0.0)
    h1 = h1.reshape(Bblk, H, W, hidden)
    # TODO(synk): alternative for Cin=4 is 36 shifted VPU multiply-adds (no
    #             im2col concat at all); measure both on real shapes.

    # ---- conv2 + GAP + Linear, algebraically fused (exact in forward) ----
    # mean_hw(conv2(h1)) @ dw + db
    #   = sum_{taps} windowed_sum(h1)[tap] . v2[tap]  +  (b2 . dw + db)
    # with v2 = (w2.reshape(9*hidden, hidden) @ dw) / (H*W), precomputed.
    tap_sums = []
    for dy in range(3):
        r0, r1 = max(0, dy - 1), min(H, H - 1 + dy)
        for dx in range(3):
            c0, c1 = max(0, dx - 1), min(W, W - 1 + dx)
            tap_sums.append(jnp.sum(h1[:, r0:r1, c0:c1, :], axis=(1, 2)))
    sums = jnp.concatenate(tap_sums, axis=-1)             # (Bblk, 9*hidden) f32
    logit = jnp.sum(sums * v2_ref[...], axis=-1, keepdims=True) + c2_ref[...]
    logit_ref[0] = logit.astype(logit_ref.dtype)


# --------------------------------------------------------------------------
# Wrapper: one pallas_call for the whole forward
# --------------------------------------------------------------------------
def _pick_block_b(B, max_bb=32):
    """Largest divisor of B (<= max_bb) that still leaves >= 2 grid steps (v7x)."""
    for bb in range(min(B, max_bb), 0, -1):
        if B % bb == 0 and B // bb >= 2:
            return bb
    return B  # B == 1: single step


def _vmem_estimate_bytes(bb, H, W, Cin, hidden, ncls):
    m = bb * H * W
    est = 0
    est += 2 * bb * H * W * Cin * 4                # x block, double-buffered, f32
    est += bb * (H + 2) * (W + 2) * Cin * 2        # padded halo, bf16
    est += m * 9 * Cin * 2                         # im2col patches, bf16
    est += m * hidden * 4                          # h1, f32
    est += bb * 9 * hidden * 4                     # windowed tap sums, f32
    est += 2 * (9 * Cin * hidden * 2 + hidden * 4 + Cin * ncls * 4
                + ncls * 4 + 9 * hidden * 4 + 4)   # weights (double-buffered)
    est += 2 * 2 * bb * (ncls + 1) * 4             # output blocks
    return est


def adversarial_net_forward(x_nchw, params, *, block_b=None):
    # TODO(synk): for production-size inputs accept NHWC directly (or fold the
    #             relayout into the kernel) to skip this extra HBM pass.
    x = jnp.transpose(x_nchw, (0, 2, 3, 1)).astype(jnp.float32)   # NCHW -> NHWC
    B, H, W, Cin = x.shape
    hidden = params["enc_w1"].shape[-1]
    ncls = params["base_w"].shape[-1]

    bb = block_b if block_b is not None else _pick_block_b(B)
    assert B % bb == 0
    G = B // bb

    # (3,3,Cin,hidden) -> (9*Cin, hidden), bf16 operand (f32 accumulation in-kernel)
    w1 = params["enc_w1"].reshape(9 * Cin, hidden).astype(jnp.bfloat16)
    b1 = params["enc_b1"].reshape(1, hidden).astype(jnp.float32)
    base_w = params["base_w"].astype(jnp.float32)                 # (Cin, ncls)
    base_b = params["base_b"].reshape(1, ncls).astype(jnp.float32)

    # conv2 + GAP + Linear fold (exact in forward, f32):
    dw = params["disc_w"].reshape(hidden, 1).astype(jnp.float32)
    w2f = params["enc_w2"].reshape(9 * hidden, hidden).astype(jnp.float32)
    v2 = ((w2f @ dw).reshape(1, 9 * hidden) / float(H * W)).astype(jnp.float32)
    c2 = (params["enc_b2"].reshape(1, hidden) @ dw
          + params["disc_b"].reshape(1, 1)).astype(jnp.float32)   # (1, 1)

    vmem_limit = int(min(64 * 2**20,
                         max(32 * 2**20,
                             4 * _vmem_estimate_bytes(bb, H, W, Cin, hidden, ncls))))

    kern = functools.partial(fused_forward_kernel, H=H, W=W)

    out3, logit3 = pl.pallas_call(
        kern,
        out_shape=(jax.ShapeDtypeStruct((G, bb, ncls), jnp.float32),
                   jax.ShapeDtypeStruct((G, bb, 1), jnp.float32)),
        grid=(G,),
        in_specs=[
            pl.BlockSpec((bb, H, W, Cin), lambda g: (g, 0, 0, 0)),    # x block
            pl.BlockSpec((Cin, ncls), lambda g: (0, 0)),              # base_w
            pl.BlockSpec((1, ncls), lambda g: (0, 0)),                # base_b
            pl.BlockSpec((9 * Cin, hidden), lambda g: (0, 0)),        # enc_w1 (im2col)
            pl.BlockSpec((1, hidden), lambda g: (0, 0)),              # enc_b1
            pl.BlockSpec((1, 9 * hidden), lambda g: (0, 0)),          # v2 = (w2@dw)/(HW)
            pl.BlockSpec((1, 1), lambda g: (0, 0)),                   # c2 = b2@dw + db
        ],
        out_specs=(
            pl.BlockSpec((1, bb, ncls), lambda g: (g, 0, 0)),
            pl.BlockSpec((1, bb, 1), lambda g: (g, 0, 0)),
        ),
        compiler_params=pltpu.CompilerParams(
            dimension_semantics=("parallel",),        # >=2 steps -> both v7x TCs busy
            vmem_limit_bytes=vmem_limit),
    )(x, base_w, base_b, w1, b1, v2, c2)

    return out3.reshape(B, ncls), logit3.reshape(B, 1)


# --------------------------------------------------------------------------
# Plain-JAX reference (f32) for verification
# --------------------------------------------------------------------------
def ref_forward(x_nchw, params):
    x = jnp.transpose(x_nchw, (0, 2, 3, 1))

    def pool_linear(z, w, b):
        return jnp.mean(z, axis=(1, 2)) @ w + b

    def conv_ref(z, w, b, relu):
        y = jax.lax.conv_general_dilated(
            z, w, (1, 1), "SAME",
            dimension_numbers=("NHWC", "HWIO", "NHWC"))
        y = y + b.reshape(1, 1, 1, -1)
        return jnp.maximum(y, 0.0) if relu else y

    x_out = pool_linear(x, params["base_w"], params["base_b"])
    h = conv_ref(x, params["enc_w1"], params["enc_b1"], True)
    h = conv_ref(h, params["enc_w2"], params["enc_b2"], False)
    x_logit = pool_linear(h, params["disc_w"], params["disc_b"])
    return x_out, x_logit


if __name__ == "__main__":
    # Small shapes consistent with the module; B=8 exercises the batched
    # (Bblk=4, grid=2) path while staying tiny.
    B, in_channel, H, W = 8, 4, 16, 16
    hidden_dim = 32
    num_classes = 10  # synthetic base_net head width

    key = jax.random.PRNGKey(0)
    ks = jax.random.split(key, 9)
    params = {
        "base_w": jax.random.normal(ks[0], (in_channel, num_classes), jnp.float32) * 0.1,
        "base_b": jax.random.normal(ks[1], (num_classes,), jnp.float32) * 0.1,
        "enc_w1": jax.random.normal(ks[2], (3, 3, in_channel, hidden_dim), jnp.float32) * 0.1,
        "enc_b1": jax.random.normal(ks[3], (hidden_dim,), jnp.float32) * 0.1,
        "enc_w2": jax.random.normal(ks[4], (3, 3, hidden_dim, hidden_dim), jnp.float32) * 0.1,
        "enc_b2": jax.random.normal(ks[5], (hidden_dim,), jnp.float32) * 0.1,
        "disc_w": jax.random.normal(ks[6], (hidden_dim, 1), jnp.float32) * 0.1,
        "disc_b": jax.random.normal(ks[7], (1,), jnp.float32) * 0.1,
    }
    x = jax.random.normal(ks[8], (B, in_channel, H, W), jnp.float32)

    x_out, x_logit = adversarial_net_forward(x, params)
    jax.block_until_ready((x_out, x_logit))

    r_out, r_logit = ref_forward(x, params)
    assert x_out.shape == (B, num_classes)
    assert x_logit.shape == (B, 1)
    # base head is computed in pure f32 -> tight tolerance
    assert jnp.allclose(x_out, r_out, atol=1e-4, rtol=1e-4)
    # conv path uses bf16 MXU operands (f32 accumulation) -> looser tolerance
    assert jnp.allclose(x_logit, r_logit, atol=2e-2, rtol=2e-2)

    print("KERNEL_OK")
</pallas_src>

<mosaic_0001>
module attributes {stable_mosaic.version = 11 : i64} {
  func.func @fused_forward_kernel(%arg0: i32, %arg1: memref<4x16x16x4xf32, #tpu.memory_space<vmem>>, %arg2: memref<4x10xf32, #tpu.memory_space<vmem>>, %arg3: memref<1x10xf32, #tpu.memory_space<vmem>>, %arg4: memref<36x32xbf16, #tpu.memory_space<vmem>>, %arg5: memref<1x32xf32, #tpu.memory_space<vmem>>, %arg6: memref<1x288xf32, #tpu.memory_space<vmem>>, %arg7: memref<1x1xf32, #tpu.memory_space<vmem>>, %arg8: memref<1x4x10xf32, #tpu.memory_space<vmem>>, %arg9: memref<1x4x1xf32, #tpu.memory_space<vmem>>) attributes {dimension_semantics = [#tpu.dimension_semantics<parallel>], iteration_bounds = array<i64: 2>, scalar_prefetch = 0 : i64, scratch_operands = 0 : i64, tpu.core_type = #tpu.core_type<tc>, window_params = [{transform_indices = @transform_0, window_bounds = array<i64: 4, 16, 16, 4>}, {pipeline_mode = #tpu.pipeline_mode<synchronous>, transform_indices = @transform_1, window_bounds = array<i64: 4, 10>}, {pipeline_mode = #tpu.pipeline_mode<synchronous>, transform_indices = @transform_2, window_bounds = array<i64: 1, 10>}, {pipeline_mode = #tpu.pipeline_mode<synchronous>, transform_indices = @transform_3, window_bounds = array<i64: 36, 32>}, {pipeline_mode = #tpu.pipeline_mode<synchronous>, transform_indices = @transform_4, window_bounds = array<i64: 1, 32>}, {pipeline_mode = #tpu.pipeline_mode<synchronous>, transform_indices = @transform_5, window_bounds = array<i64: 1, 288>}, {pipeline_mode = #tpu.pipeline_mode<synchronous>, transform_indices = @transform_6, window_bounds = array<i64: 1, 1>}, {transform_indices = @transform_7, window_bounds = array<i64: 1, 4, 10>}, {transform_indices = @transform_8, window_bounds = array<i64: 1, 4, 1>}]} {
    %c0 = arith.constant 0 : index
    %c0_0 = arith.constant 0 : index
    %c0_1 = arith.constant 0 : index
    %c0_2 = arith.constant 0 : index
    %0 = vector.load %arg1[%c0, %c0_0, %c0_1, %c0_2] : memref<4x16x16x4xf32, #tpu.memory_space<vmem>>, vector<4x16x16x4xf32>
    %cst = arith.constant dense<0.000000e+00> : vector<4x4xf32>
    %1 = vector.multi_reduction <add>, %0, %cst [1, 2] : vector<4x16x16x4xf32> to vector<4x4xf32>
    %cst_3 = arith.constant 2.560000e+02 : f32
    %2 = vector.broadcast %cst_3 : f32 to vector<4x4xf32>
    %3 = arith.divf %1, %2 : vector<4x4xf32>
    %c0_4 = arith.constant 0 : index
    %c0_5 = arith.constant 0 : index
    %4 = vector.load %arg2[%c0_4, %c0_5] : memref<4x10xf32, #tpu.memory_space<vmem>>, vector<4x10xf32>
    %cst_6 = arith.constant dense<0.000000e+00> : vector<4x10xf32>
    %5 = tpu.matmul %3, %4, %cst_6 {dimension_numbers = #tpu.dot_dimension_numbers<[1], [0], [0], [1], [0, 0, 1, 1], [], []>} : vector<4x4xf32>, vector<4x10xf32>, vector<4x10xf32> -> vector<4x10xf32>
    %c0_7 = arith.constant 0 : index
    %c0_8 = arith.constant 0 : index
    %6 = vector.load %arg3[%c0_7, %c0_8] : memref<1x10xf32, #tpu.memory_space<vmem>>, vector<1x10xf32>
    %7 = vector.broadcast %6 : vector<1x10xf32> to vector<4x10xf32>
    %8 = arith.addf %5, %7 : vector<4x10xf32>
    %c0_9 = arith.constant 0 : index
    %c0_10 = arith.constant 0 : index
    %c0_11 = arith.constant 0 : index
    %9 = vector.load %arg8[%c0_9, %c0_10, %c0_11] : memref<1x4x10xf32, #tpu.memory_space<vmem>>, vector<1x4x10xf32>
    %10 = vector.shape_cast %9 : vector<1x4x10xf32> to vector<4x10xf32>
    %11 = vector.shape_cast %8 : vector<4x10xf32> to vector<1x4x10xf32>
    tpu.vector_store %arg8[%c0_9, %c0_10, %c0_11], %11 {strides = array<i32>} : memref<1x4x10xf32, #tpu.memory_space<vmem>>, vector<1x4x10xf32>,
    %12 = arith.truncf %0 : vector<4x16x16x4xf32> to vector<4x16x16x4xbf16>
    %cst_12 = arith.constant 0.000000e+00 : bf16
    %13 = vector.broadcast %cst_12 : bf16 to vector<4x1x16x4xbf16>
    %14 = tpu.concatenate %13, %12, %13 in 1 : vector<4x1x16x4xbf16>, vector<4x16x16x4xbf16>, vector<4x1x16x4xbf16> -> vector<4x18x16x4xbf16>
    %cst_13 = arith.constant 0.000000e+00 : bf16
    %15 = vector.broadcast %cst_13 : bf16 to vector<4x18x1x4xbf16>
    %16 = tpu.concatenate %15, %14, %15 in 2 : vector<4x18x1x4xbf16>, vector<4x18x16x4xbf16>, vector<4x18x1x4xbf16> -> vector<4x18x18x4xbf16>
    %17 = vector.extract_strided_slice %16 {offsets = [0, 0, 0, 0], sizes = [4, 16, 16, 4], strides = [1, 1, 1, 1]} : vector<4x18x18x4xbf16> to vector<4x16x16x4xbf16>
    %18 = vector.extract_strided_slice %16 {offsets = [0, 0, 1, 0], sizes = [4, 16, 16, 4], strides = [1, 1, 1, 1]} : vector<4x18x18x4xbf16> to vector<4x16x16x4xbf16>
    %19 = vector.extract_strided_slice %16 {offsets = [0, 0, 2, 0], sizes = [4, 16, 16, 4], strides = [1, 1, 1, 1]} : vector<4x18x18x4xbf16> to vector<4x16x16x4xbf16>
    %20 = vector.extract_strided_slice %16 {offsets = [0, 1, 0, 0], sizes = [4, 16, 16, 4], strides = [1, 1, 1, 1]} : vector<4x18x18x4xbf16> to vector<4x16x16x4xbf16>
    %21 = vector.extract_strided_slice %16 {offsets = [0, 1, 1, 0], sizes = [4, 16, 16, 4], strides = [1, 1, 1, 1]} : vector<4x18x18x4xbf16> to vector<4x16x16x4xbf16>
    %22 = vector.extract_strided_slice %16 {offsets = [0, 1, 2, 0], sizes = [4, 16, 16, 4], strides = [1, 1, 1, 1]} : vector<4x18x18x4xbf16> to vector<4x16x16x4xbf16>
    %23 = vector.extract_strided_slice %16 {offsets = [0, 2, 0, 0], sizes = [4, 16, 16, 4], strides = [1, 1, 1, 1]} : vector<4x18x18x4xbf16> to vector<4x16x16x4xbf16>
    %24 = vector.extract_strided_slice %16 {offsets = [0, 2, 1, 0], sizes = [4, 16, 16, 4], strides = [1, 1, 1, 1]} : vector<4x18x18x4xbf16> to vector<4x16x16x4xbf16>
    %25 = vector.extract_strided_slice %16 {offsets = [0, 2, 2, 0], sizes = [4, 16, 16, 4], strides = [1, 1, 1, 1]} : vector<4x18x18x4xbf16> to vector<4x16x16x4xbf16>
    %26 = tpu.concatenate %17, %18, %19, %20, %21, %22, %23, %24, %25 in 3 : vector<4x16x16x4xbf16>, vector<4x16x16x4xbf16>, vector<4x16x16x4xbf16>, vector<4x16x16x4xbf16>, vector<4x16x16x4xbf16>, vector<4x16x16x4xbf16>, vector<4x16x16x4xbf16>, vector<4x16x16x4xbf16>, vector<4x16x16x4xbf16> -> vector<4x16x16x36xbf16>
    %27 = vector.shape_cast %26 : vector<4x16x16x36xbf16> to vector<1024x36xbf16>
    %c0_14 = arith.constant 0 : index
    %c0_15 = arith.constant 0 : index
    %28 = vector.load %arg4[%c0_14, %c0_15] : memref<36x32xbf16, #tpu.memory_space<vmem>>, vector<36x32xbf16>
    %cst_16 = arith.constant dense<0.000000e+00> : vector<1024x32xf32>
    %29 = tpu.matmul %27, %28, %cst_16 {dimension_numbers = #tpu.dot_dimension_numbers<[1], [0], [0], [1], [0, 0, 1, 1], [], []>} : vector<1024x36xbf16>, vector<36x32xbf16>, vector<1024x32xf32> -> vector<1024x32xf32>
    %c0_17 = arith.constant 0 : index
    %c0_18 = arith.constant 0 : index
    %30 = vector.load %arg5[%c0_17, %c0_18] : memref<1x32xf32, #tpu.memory_space<vmem>>, vector<1x32xf32>
    %31 = vector.broadcast %30 : vector<1x32xf32> to vector<1024x32xf32>
    %32 = arith.addf %29, %31 : vector<1024x32xf32>
    %cst_19 = arith.constant 0.000000e+00 : f32
    %33 = vector.broadcast %cst_19 : f32 to vector<1024x32xf32>
    %34 = arith.maximumf %32, %33 : vector<1024x32xf32>
    %35 = vector.shape_cast %34 : vector<1024x32xf32> to vector<4x16x16x32xf32>
    %36 = vector.extract_strided_slice %35 {offsets = [0, 0, 0, 0], sizes = [4, 15, 15, 32], strides = [1, 1, 1, 1]} : vector<4x16x16x32xf32> to vector<4x15x15x32xf32>
    %cst_20 = arith.constant dense<0.000000e+00> : vector<4x32xf32>
    %37 = vector.multi_reduction <add>, %36, %cst_20 [1, 2] : vector<4x15x15x32xf32> to vector<4x32xf32>
    %38 = vector.extract_strided_slice %35 {offsets = [0, 0, 0, 0], sizes = [4, 15, 16, 32], strides = [1, 1, 1, 1]} : vector<4x16x16x32xf32> to vector<4x15x16x32xf32>
    %cst_21 = arith.constant dense<0.000000e+00> : vector<4x32xf32>
    %39 = vector.multi_reduction <add>, %38, %cst_21 [1, 2] : vector<4x15x16x32xf32> to vector<4x32xf32>
    %40 = vector.extract_strided_slice %35 {offsets = [0, 0, 1, 0], sizes = [4, 15, 15, 32], strides = [1, 1, 1, 1]} : vector<4x16x16x32xf32> to vector<4x15x15x32xf32>
    %cst_22 = arith.constant dense<0.000000e+00> : vector<4x32xf32>
    %41 = vector.multi_reduction <add>, %40, %cst_22 [1, 2] : vector<4x15x15x32xf32> to vector<4x32xf32>
    %42 = vector.extract_strided_slice %35 {offsets = [0, 0, 0, 0], sizes = [4, 16, 15, 32], strides = [1, 1, 1, 1]} : vector<4x16x16x32xf32> to vector<4x16x15x32xf32>
    %cst_23 = arith.constant dense<0.000000e+00> : vector<4x32xf32>
    %43 = vector.multi_reduction <add>, %42, %cst_23 [1, 2] : vector<4x16x15x32xf32> to vector<4x32xf32>
    %cst_24 = arith.constant dense<0.000000e+00> : vector<4x32xf32>
    %44 = vector.multi_reduction <add>, %35, %cst_24 [1, 2] : vector<4x16x16x32xf32> to vector<4x32xf32>
    %45 = vector.extract_strided_slice %35 {offsets = [0, 0, 1, 0], sizes = [4, 16, 15, 32], strides = [1, 1, 1, 1]} : vector<4x16x16x32xf32> to vector<4x16x15x32xf32>
    %cst_25 = arith.constant dense<0.000000e+00> : vector<4x32xf32>
    %46 = vector.multi_reduction <add>, %45, %cst_25 [1, 2] : vector<4x16x15x32xf32> to vector<4x32xf32>
    %47 = vector.extract_strided_slice %35 {offsets = [0, 1, 0, 0], sizes = [4, 15, 15, 32], strides = [1, 1, 1, 1]} : vector<4x16x16x32xf32> to vector<4x15x15x32xf32>
    %cst_26 = arith.constant dense<0.000000e+00> : vector<4x32xf32>
    %48 = vector.multi_reduction <add>, %47, %cst_26 [1, 2] : vector<4x15x15x32xf32> to vector<4x32xf32>
    %49 = vector.extract_strided_slice %35 {offsets = [0, 1, 0, 0], sizes = [4, 15, 16, 32], strides = [1, 1, 1, 1]} : vector<4x16x16x32xf32> to vector<4x15x16x32xf32>
    %cst_27 = arith.constant dense<0.000000e+00> : vector<4x32xf32>
    %50 = vector.multi_reduction <add>, %49, %cst_27 [1, 2] : vector<4x15x16x32xf32> to vector<4x32xf32>
    %51 = vector.extract_strided_slice %35 {offsets = [0, 1, 1, 0], sizes = [4, 15, 15, 32], strides = [1, 1, 1, 1]} : vector<4x16x16x32xf32> to vector<4x15x15x32xf32>
    %cst_28 = arith.constant dense<0.000000e+00> : vector<4x32xf32>
    %52 = vector.multi_reduction <add>, %51, %cst_28 [1, 2] : vector<4x15x15x32xf32> to vector<4x32xf32>
    %53 = tpu.concatenate %37, %39, %41, %43, %44, %46, %48, %50, %52 in 1 : vector<4x32xf32>, vector<4x32xf32>, vector<4x32xf32>, vector<4x32xf32>, vector<4x32xf32>, vector<4x32xf32>, vector<4x32xf32>, vector<4x32xf32>, vector<4x32xf32> -> vector<4x288xf32>
    %c0_29 = arith.constant 0 : index
    %c0_30 = arith.constant 0 : index
    %54 = vector.load %arg6[%c0_29, %c0_30] : memref<1x288xf32, #tpu.memory_space<vmem>>, vector<1x288xf32>
    %55 = vector.broadcast %54 : vector<1x288xf32> to vector<4x288xf32>
    %56 = arith.mulf %53, %55 : vector<4x288xf32>
    %cst_31 = arith.constant dense<0.000000e+00> : vector<4xf32>
    %57 = vector.multi_reduction <add>, %56, %cst_31 [1] : vector<4x288xf32> to vector<4xf32>
    %58 = vector.shape_cast %57 : vector<4xf32> to vector<4x1xf32>
    %c0_32 = arith.constant 0 : index
    %c0_33 = arith.constant 0 : index
    %59 = vector.load %arg7[%c0_32, %c0_33] : memref<1x1xf32, #tpu.memory_space<vmem>>, vector<1x1xf32>
    %60 = vector.broadcast %59 : vector<1x1xf32> to vector<4x1xf32>
    %61 = arith.addf %58, %60 : vector<4x1xf32>
    %c0_34 = arith.constant 0 : index
    %c0_35 = arith.constant 0 : index
    %c0_36 = arith.constant 0 : index
    %62 = vector.load %arg9[%c0_34, %c0_35, %c0_36] : memref<1x4x1xf32, #tpu.memory_space<vmem>>, vector<1x4x1xf32>
    %63 = vector.shape_cast %62 : vector<1x4x1xf32> to vector<4x1xf32>
    %64 = vector.shape_cast %61 : vector<4x1xf32> to vector<1x4x1xf32>
    tpu.vector_store %arg9[%c0_34, %c0_35, %c0_36], %64 {strides = array<i32>} : memref<1x4x1xf32, #tpu.memory_space<vmem>>, vector<1x4x1xf32>,
    return
  }
  func.func @transform_0(%arg0: i32) -> (i32, i32, i32, i32) {
    %c0_i32 = arith.constant 0 : i32
    %c0_i32_0 = arith.constant 0 : i32
    %c0_i32_1 = arith.constant 0 : i32
    %c0_i32_2 = arith.constant 0 : i32
    return %arg0, %c0_i32, %c0_i32_0, %c0_i32_1 : i32, i32, i32, i32
  }
  func.func @transform_1(%arg0: i32) -> (i32, i32) {
    %c0_i32 = arith.constant 0 : i32
    %c0_i32_0 = arith.constant 0 : i32
    %c0_i32_1 = arith.constant 0 : i32
    return %c0_i32, %c0_i32_0 : i32, i32
  }
  func.func @transform_2(%arg0: i32) -> (i32, i32) {
    %c0_i32 = arith.constant 0 : i32
    %c0_i32_0 = arith.constant 0 : i32
    %c0_i32_1 = arith.constant 0 : i32
    return %c0_i32, %c0_i32_0 : i32, i32
  }
  func.func @transform_3(%arg0: i32) -> (i32, i32) {
    %c0_i32 = arith.constant 0 : i32
    %c0_i32_0 = arith.constant 0 : i32
    %c0_i32_1 = arith.constant 0 : i32
    return %c0_i32, %c0_i32_0 : i32, i32
  }
  func.func @transform_4(%arg0: i32) -> (i32, i32) {
    %c0_i32 = arith.constant 0 : i32
    %c0_i32_0 = arith.constant 0 : i32
    %c0_i32_1 = arith.constant 0 : i32
    return %c0_i32, %c0_i32_0 : i32, i32
  }
  func.func @transform_5(%arg0: i32) -> (i32, i32) {
    %c0_i32 = arith.constant 0 : i32
    %c0_i32_0 = arith.constant 0 : i32
    %c0_i32_1 = arith.constant 0 : i32
    return %c0_i32, %c0_i32_0 : i32, i32
  }
  func.func @transform_6(%arg0: i32) -> (i32, i32) {
    %c0_i32 = arith.constant 0 : i32
    %c0_i32_0 = arith.constant 0 : i32
    %c0_i32_1 = arith.constant 0 : i32
    return %c0_i32, %c0_i32_0 : i32, i32
  }
  func.func @transform_7(%arg0: i32) -> (i32, i32, i32) {
    %c0_i32 = arith.constant 0 : i32
    %c0_i32_0 = arith.constant 0 : i32
    %c0_i32_1 = arith.constant 0 : i32
    return %arg0, %c0_i32, %c0_i32_0 : i32, i32, i32
  }
  func.func @transform_8(%arg0: i32) -> (i32, i32, i32) {
    %c0_i32 = arith.constant 0 : i32
    %c0_i32_0 = arith.constant 0 : i32
    %c0_i32_1 = arith.constant 0 : i32
    return %arg0, %c0_i32, %c0_i32_0 : i32, i32, i32
  }
}

</mosaic_0001>

<bundles_post_ra>
// kernel: tpu_custom_call.1
= control target key start
LH: loop header
LB: loop body
LE: loop exit
PB: predicated region body
PF: predicated region fallthrough
CT: control target
= control target key end

     0   :  { %s14804_s0 = inlined_call_operand.vmem [shape: f32[8,16,16,4], index: 0, kind: input, shape index: {}]   ;;  %s14805_s1 = inlined_call_operand.vmem [shape: f32[4,10], index: 1, kind: input, shape index: {}]   ;;  %s14806_s2 = inlined_call_operand.vmem [shape: f32[1,10], index: 2, kind: input, shape index: {}]   ;;  %s14807_s3 = inlined_call_operand.vmem [shape: bf16[36,32], index: 3, kind: input, shape index: {}]   ;;  %s14808_s4 = inlined_call_operand.vmem [shape: f32[1,32], index: 4, kind: input, shape index: {}]   ;;  %s14809_s5 = inlined_call_operand.vmem [shape: f32[1,288], index: 5, kind: input, shape index: {}]   ;;  %s14810_s6 = inlined_call_operand.<no memory space> [shape: f32[1,1], index: 6, kind: input, shape index: {}]   ;;  %s14811_s7 = inlined_call_operand.hbm [shape: f32[2,4,10], index: 7, kind: output, shape index: {0}]   ;;  %s14812_s8 = inlined_call_operand.vmem [shape: f32[2,4,1], index: 8, kind: output, shape index: {1}]  }
   0x1   :  { %v14_v0 = vstv %s14810_s6 }
   0x2   :  { %15 = vst [vmem:[#allocation2] sm:$0x1] %v14_v0 }
   0x3   :  { %16 = vsyncpa [#allocation4], 0 }
   0x4   :  { %18 = vsyncpa [#allocation4 + $0x1], 0  ;;  %s7885_s29 = smov 0   ;;  %s7887_s30 = smov 0  }
   0x5   :  { %s7889_s9 = smov 0   ;;  %s7891_s10 = smov 0  }
   0x6 LB: > { %s7906_s6 = sadd.s32 4294967295, %s7823_s10   ;;  %s7603_s11 = sadd.s32 4294967294, %s7823_s10   ;;  %s7823_s10 = sphi %s7891_s10, %s16555_s10   ;;  %s7819_s9 = sphi %s7889_s9, %s16554_s9   ;;  %s7815_s30 = sphi %s7887_s30, %s16553_s30   ;;  %s7811_s29 = sphi %s7885_s29, %s16552_s29  }
   0x7   : > { %s7910_s12 = sadd.s32 1, %s7823_s10   ;;  %s183_s13 = sadd.s32 1, %s7819_s9 }
   0x8   : > { %s180_s14 = ssub.s32 %s7823_s10, %s7910_s12  ;;  %p193_p0 = scmp.ne.s32.totalorder %s7819_s9, %s7815_s30 }
   0x9   : > { %p181_p1 = scmp.eq.s32.totalorder %s180_s14, 0  ;;  %p194_p2 = scmp.eq.s32.totalorder %s7906_s6, 1 }
   0xa   : > { %p199_p3 = scmp.ne.s32.totalorder %s7815_s30, %s7811_s29  ;;  %p200_p4 = scmp.eq.s32.totalorder %s7603_s11, 1 }
   0xb   : > { %s7921_s15 = scalar_select %p181_p1, %s7819_s9, %s183_s13  }
   0xc   : > { %p7923_p5 = por %p194_p2, %p193_p0  ;;  %p7927_p6 = por %p200_p4, %p199_p3 }
   0xd   : > { %p7606_p7 = scmp.ge.s32.totalorder %s7823_s10, 1  ;;  %p272_p8 = scmp.lt.s32.totalorder %s7823_s10, 3 }
   0xf   : > { %p273_p9 = pnand %p7606_p7, %p272_p8 }
  0x11   : > { %276 = sbr.rel (%p273_p9) target bundleno = 2126 (0x84e), region = 48 }
  0x16   : > { %vm1815_vm0 = vcmask 1040384   ;;  %vm1816_vm1 = vsmask.f32 256  ;;  %v7825_v1 = vmov 0   ;;  %s7938_s18 = sshll.u32 %s7906_s6, 2  ;;  %vm451_vm4 = vcmask 31744  }
  0x17   : > { %v1233_v2 = vrot.slane %v7825_v1, 7  ;;  %vm7933_vm2 = vmand %vm1815_vm0, %vm1816_vm1  ;;  %p312_p10 = scmp.lt.s32.totalorder %s7938_s18, 7  ;;  %vm1948_vm3 = vsmask.f32 7424  ;;  %s7826_s24 = smov 4   ;;  %vm2925_vm5 = vcmask 1046528  }
  0x18   : > { %s7827_s25 = smov 8   ;;  %s7828_s26 = smov 12   ;;  %vm5212_vm6 = vcmask 1041408   ;;  %vm756_vm7 = vcmask 1043456   ;;  %vm748_vm9 = vcmask 1041409   ;;  %vm750_vm10 = vcmask 1042434  }
  0x19   : > { %v7943_v4 = vsel %vm7933_vm2, 0, %v1233_v2  ;;  %v7947_v5 = vsel %vm7933_vm2, %v1233_v2, 0  ;;  %s313_s19 = scalar_select %p312_p10, %s7938_s18, 7  ;;  %vm752_vm11 = vcmask 1043459   ;;  %vm4171_vm12 = vcmask 64512  }
  0x1a   : > { %15245 = vst [vmem:[#allocation6_spill] sm:$0xff] %v7943_v4  ;;  %v1950_v6 = vshrl.u32 %v7943_v4, 16  ;;  %v1952_v7 = vshll.u32 %v7943_v4, 16  ;;  %v1957_v8 = vshll.u32 %v7947_v5, 16  ;;  %s7829_s27 = smov 16   ;;  %s7830_s28 = smov 20  }
  0x1b   : > { %s7690_s20 = sshll.u32 %s313_s19, 8  ;;  %s7831_s11 = smov 24   ;;  %vm4294_vm13 = vcmask 97280   ;;  %vm4423_vm14 = vcmask 130048   ;;  %vm4552_vm15 = vcmask 162816   ;;  %vm4681_vm0 = vcmask 195584  }
  0x1c   : > { %v1954_v9 = vrot.slane %v1952_v7, 1  ;;  %v1959_v10 = vrot.slane %v1957_v8, 1  ;;  %s7956_s23 = scalar_lea.vmem %s14804_s0, %s7690_s20  ;;  %s7832_s13 = smov 32   ;;  %vm4933_vm1 = vcmask 261120  }
  0x1d   : > { %v329_v12 = vld [vmem:[%s7956_s23 + $0x30] sm:$0xff]  ;;  %v330_v13 = vld [vmem:[%s7956_s23 + $0x38] sm:$0xff]  ;;  %v323_v20 = vld [vmem:[%s7956_s23] sm:$0xff]  ;;  %s7833_s14 = smov 28   ;;  %s7836_s19 = smov 96  }
  0x1e   : > { %v1955_v11 = vor.u32 %v1954_v9, %v1950_v6  ;;  %v325_v14 = vld [vmem:[%s7956_s23 + $0x10] sm:$0xff]  ;;  %v7962_v15 = vsel %vm451_vm4, %v330_v13, 0.0  ;;  %v788_v16 = vpack.c.bf16 %v329_v12, %v329_v12  ;;  %v789_v17 = vpack.c.bf16 %v330_v13, %v330_v13  ;;  %v326_v19 = vld [vmem:[%s7956_s23 + $0x18] sm:$0xff]  ;;  %v324_v21 = vld [vmem:[%s7956_s23 + $0x8] sm:$0xff]  ;;  %s7512_s21 = scalar_lea.hbm %s14811_s7, %s7938_s18 }
  0x1f   : > { %v7965_v18 = vsel %vm451_vm4, %v329_v12, 0.0  ;;  %v7974_v23 = vsel %vm451_vm4, %v326_v19, 0.0  ;;  %v784_v24 = vpack.c.bf16 %v325_v14, %v325_v14  ;;  %v785_v25 = vpack.c.bf16 %v326_v19, %v326_v19  ;;  %v331_v34 = vld [vmem:[%s7956_s23 + $0x40] sm:$0xff]  ;;  %v332_v35 = vld [vmem:[%s7956_s23 + $0x48] sm:$0xff] }
  0x20   : > { %v7971_v22 = vsel %vm1948_vm3, %v1955_v11, %v1959_v10  ;;  %v1044_v26 = vunpack.c.l.b16 %v788_v16  ;;  %v1045_v27 = vunpack.c.l.b16 %v789_v17  ;;  %v455_v28 = vsel %vm451_vm4, %v325_v14, 0.0  ;;  %v327_v52 = vld [vmem:[%s7956_s23 + $0x20] sm:$0xff]  ;;  %v328_v56 = vld [vmem:[%s7956_s23 + $0x28] sm:$0xff] }
  0x21   : > { %15246 = vst [vmem:[#allocation7_spill] sm:$0xff] %v7971_v22  ;;  %2681 = vrot.lane.b32.xlu0 %v7971_v22, %s7826_s24  ;;  %v453_v29 = vsel %vm451_vm4, %v324_v21, 0.0  ;;  %v1040_v30 = vunpack.c.l.b16 %v784_v24  ;;  %v1041_v31 = vunpack.c.l.b16 %v785_v25  ;;  %v782_v32 = vpack.c.bf16 %v323_v20, %v323_v20 }
  0x22   : > { %v783_v33 = vpack.c.bf16 %v324_v21, %v324_v21  ;;  %v1169_v36 = vpack.c.b16 %v1045_v27, %v1044_v26  ;;  %v452_v37 = vsel %vm451_vm4, %v323_v20, 0.0  ;;  %v7984_v38 = vsel %vm451_vm4, %v331_v34, 0.0 }
  0x23   : > { %v7987_v39 = vsel %vm451_vm4, %v332_v35, 0.0  ;;  %v1167_v40 = vpack.c.b16 %v1041_v31, %v1040_v30  ;;  %v1038_v41 = vunpack.c.l.b16 %v782_v32  ;;  %v454_v43 = vadd.f32 %v453_v29, %v452_v37 }
  0x24   : > { %v1039_v42 = vunpack.c.l.b16 %v783_v33  ;;  %v1259_v44 = vshrl.u32 %v1169_v36, 16  ;;  %v1262_v45 = vshll.u32 %v1169_v36, 16  ;;  %v790_v46 = vpack.c.bf16 %v331_v34, %v331_v34 }
  0x25   : > { %v791_v47 = vpack.c.bf16 %v332_v35, %v332_v35  ;;  %v1245_v48 = vshrl.u32 %v1167_v40, 16  ;;  %v1248_v49 = vshll.u32 %v1167_v40, 16  ;;  %v456_v51 = vadd.f32 %v455_v28, %v454_v43 }
  0x26   : > { %v1166_v50 = vpack.c.b16 %v1039_v42, %v1038_v41  ;;  %v1261_v53 = vrot.slane %v1259_v44, 7  ;;  %v1046_v54 = vunpack.c.l.b16 %v790_v46  ;;  %v7992_v57 = vsel %vm451_vm4, %v327_v52, 0.0 }
  0x27   : > { %v1047_v55 = vunpack.c.l.b16 %v791_v47  ;;  %v1247_v58 = vrot.slane %v1245_v48, 7  ;;  %v7995_v61 = vsel %vm451_vm4, %v328_v56, 0.0  ;;  %v786_v1 = vpack.c.bf16 %v327_v52, %v327_v52  ;;  %v333_v52 = vld [vmem:[%s7956_s23 + $0x50] sm:$0xff] }
  0x28   : > { %v1238_v59 = vshrl.u32 %v1166_v50, 16  ;;  %v1241_v60 = vshll.u32 %v1166_v50, 16  ;;  %v1264_v62 = vor.u32 %v1262_v45, %v1261_v53  ;;  %v7999_v63 = vsel %vm7933_vm2, %v1261_v53, 0  ;;  %v334_v53 = vld [vmem:[%s7956_s23 + $0x58] sm:$0xff] }
  0x29   : > { %v1170_v0 = vpack.c.b16 %v1047_v55, %v1046_v54  ;;  %v2005_v2 = vshll.u32 %v7999_v63, 16  ;;  %v1250_v6 = vor.u32 %v1248_v49, %v1247_v58  ;;  %v8004_v7 = vsel %vm7933_vm2, %v1247_v58, 0 }
  0x2a   : > { %v1240_v8 = vrot.slane %v1238_v59, 7  ;;  %v8008_v9 = vsel %vm7933_vm2, 0, %v1264_v62  ;;  %v1981_v10 = vshll.u32 %v8004_v7, 16  ;;  %v787_v28 = vpack.c.bf16 %v328_v56, %v328_v56 }
  0x2b   : > { %15247 = vst [vmem:[#allocation8_spill] sm:$0xff] %v8008_v9  ;;  %v1266_v11 = vshrl.u32 %v1170_v0, 16  ;;  %v1269_v12 = vshll.u32 %v1170_v0, 16  ;;  %v1998_v13 = vshrl.u32 %v8008_v9, 16  ;;  %v2000_v14 = vshll.u32 %v8008_v9, 16 }
  0x2c   : > { %v2007_v16 = vrot.slane %v2005_v2, 1  ;;  %v8015_v17 = vsel %vm7933_vm2, 0, %v1250_v6  ;;  %v1983_v21 = vrot.slane %v1981_v10, 1  ;;  %v1243_v24 = vor.u32 %v1241_v60, %v1240_v8 }
  0x2d   : > { %v1974_v19 = vshrl.u32 %v8015_v17, 16  ;;  %v1976_v20 = vshll.u32 %v8015_v17, 16  ;;  %v2002_v25 = vrot.slane %v2000_v14, 1  ;;  %v8021_v26 = vsel %vm7933_vm2, %v1240_v8, 0 }
  0x2e   : > { %v1268_v27 = vrot.slane %v1266_v11, 7  ;;  %v8025_v30 = vsel %vm7933_vm2, 0, %v1243_v24  ;;  %v1969_v31 = vshll.u32 %v8021_v26, 16  ;;  %v1042_v32 = vunpack.c.l.b16 %v786_v1  ;;  %v337_v1 = vld [vmem:[%s7956_s23 + $0x70] sm:$0xff]  ;;  %v338_v11 = vld [vmem:[%s7956_s23 + $0x78] sm:$0xff] }
  0x2f   : > { %v1978_v29 = vrot.slane %v1976_v20, 1  ;;  %15248 = vst [vmem:[#allocation9_spill] sm:$0xff] %v8025_v30  ;;  %v2003_v33 = vor.u32 %v2002_v25, %v1998_v13  ;;  %v1962_v34 = vshrl.u32 %v8025_v30, 16  ;;  %v1964_v35 = vshll.u32 %v8025_v30, 16 }
  0x30   : > { %v1271_v36 = vor.u32 %v1269_v12, %v1268_v27  ;;  %v1971_v40 = vrot.slane %v1969_v31, 1  ;;  %v8032_v41 = vsel %vm7933_vm2, %v1268_v27, 0  ;;  %v1043_v42 = vunpack.c.l.b16 %v787_v28 }
  0x31   : > { %v1979_v37 = vor.u32 %v1978_v29, %v1974_v19  ;;  %v8035_v43 = vsel %vm1948_vm3, %v2003_v33, %v2007_v16  ;;  %v1966_v44 = vrot.slane %v1964_v35, 1  ;;  %v2017_v46 = vshll.u32 %v8032_v41, 16 }
  0x32   : > { %15249 = vst [vmem:[#allocation10_spill] sm:$0xff] %v8035_v43  ;;  %v8039_v45 = vsel %vm7933_vm2, 0, %v1271_v36  ;;  %2689 = vrot.lane.b32.xlu2 %v8035_v43, %s7826_s24  ;;  %v1168_v50 = vpack.c.b16 %v1043_v42, %v1042_v32  ;;  %v458_v56 = vadd.f32 %v7974_v23, %v456_v51  ;;  %v8055_v58 = vsel %vm451_vm4, %v333_v52, 0.0  ;;  %v336_v32 = vld [vmem:[%s7956_s23 + $0x68] sm:$0xff] }
  0x33   : > { %v8045_v47 = vsel %vm1948_vm3, %v1979_v37, %v1983_v21  ;;  %v2010_v48 = vshrl.u32 %v8039_v45, 16  ;;  %v2012_v49 = vshll.u32 %v8039_v45, 16  ;;  %v1967_v54 = vor.u32 %v1966_v44, %v1962_v34 }
  0x34   : > { %15250 = vst [vmem:[#allocation11_spill] sm:$0xff] %v8045_v47  ;;  %2685 = vrot.lane.b32.xlu1 %v8045_v47, %s7826_s24  ;;  %v2019_v55 = vrot.slane %v2017_v46, 1  ;;  %v1252_v60 = vshrl.u32 %v1168_v50, 16  ;;  %v1255_v62 = vshll.u32 %v1168_v50, 16  ;;  %v8058_v0 = vsel %vm451_vm4, %v334_v53, 0.0  ;;  %v339_v50 = vld [vmem:[%s7956_s23 + $0x80] sm:$0xff] }
  0x35   : > { %v2014_v59 = vrot.slane %v2012_v49, 1  ;;  %v8062_v2 = vsel %vm1948_vm3, %v1967_v54, %v1971_v40  ;;  %v460_v6 = vadd.f32 %v7992_v57, %v458_v56  ;;  %v792_v8 = vpack.c.bf16 %v333_v52, %v333_v52 }
  0x36   : > { %15251 = vst [vmem:[#allocation12_spill] sm:$0xff] %v8062_v2  ;;  %v793_v10 = vpack.c.bf16 %v334_v53, %v334_v53  ;;  %2683 = vrot.lane.b32.xlu0 %v8062_v2, %s7826_s24  ;;  %v1254_v51 = vrot.slane %v1252_v60, 7  ;;  %v8069_v12 = vsel %vm451_vm4, %v337_v1, 0.0  ;;  %v8072_v13 = vsel %vm451_vm4, %v338_v11, 0.0 }
  0x37   : > { %v2015_v23 = vor.u32 %v2014_v59, %v2010_v48  ;;  %v462_v14 = vadd.f32 %v7995_v61, %v460_v6  ;;  %v1048_v16 = vunpack.c.l.b16 %v792_v8  ;;  %v796_v19 = vpack.c.bf16 %v337_v1, %v337_v1  ;;  %v335_v61 = vld [vmem:[%s7956_s23 + $0x60] sm:$0xff]  ;;  %v340_v1 = vld [vmem:[%s7956_s23 + $0x88] sm:$0xff] }
  0x38   : > { %v1049_v57 = vunpack.c.l.b16 %v793_v10  ;;  %v1257_v21 = vor.u32 %v1255_v62, %v1254_v51  ;;  %v8080_v24 = vsel %vm7933_vm2, %v1254_v51, 0  ;;  %v797_v25 = vpack.c.bf16 %v338_v11, %v338_v11 }
  0x39   : > { %v8076_v20 = vsel %vm1948_vm3, %v2015_v23, %v2019_v55  ;;  %v1993_v27 = vshll.u32 %v8080_v24, 16  ;;  %v464_v28 = vadd.f32 %v7965_v18, %v462_v14  ;;  %v1052_v31 = vunpack.c.l.b16 %v796_v19 }
  0x3a   : > { %15252 = vst [vmem:[#allocation13_spill] sm:$0xff] %v8076_v20  ;;  %v1171_v29 = vpack.c.b16 %v1049_v57, %v1048_v16  ;;  %2691 = vrot.lane.b32.xlu2 %v8076_v20, %s7826_s24  ;;  %v8090_v33 = vsel %vm7933_vm2, 0, %v1257_v21  ;;  %v1053_v34 = vunpack.c.l.b16 %v797_v25  ;;  %v475_v35 = vsel %vm451_vm4, %v335_v61, 0.0 }
  0x3b   : > { %15253 = vst [vmem:[#allocation14_spill] sm:$0xff] %v8090_v33  ;;  %v477_v36 = vsel %vm451_vm4, %v336_v32, 0.0  ;;  %v1986_v37 = vshrl.u32 %v8090_v33, 16  ;;  %v1988_v18 = vshll.u32 %v8090_v33, 16  ;;  %v1995_v40 = vrot.slane %v1993_v27, 1 }
  0x3c   : > { %v466_v42 = vadd.f32 %v7962_v15, %v464_v28  ;;  %v1273_v44 = vshrl.u32 %v1171_v29, 16  ;;  %v1276_v46 = vshll.u32 %v1171_v29, 16  ;;  %v1173_v48 = vpack.c.b16 %v1053_v34, %v1052_v31 }
  0x3d   : > { %v794_v49 = vpack.c.bf16 %v335_v61, %v335_v61  ;;  %v1990_v52 = vrot.slane %v1988_v18, 1  ;;  %v795_v54 = vpack.c.bf16 %v336_v32, %v336_v32  ;;  %v8100_v55 = vsel %vm451_vm4, %v339_v50, 0.0 }
  0x3e   : > { %v468_v53 = vadd.f32 %v7984_v38, %v466_v42  ;;  %v1275_v56 = vrot.slane %v1273_v44, 7  ;;  %v1287_v59 = vshrl.u32 %v1173_v48, 16  ;;  %v1290_v60 = vshll.u32 %v1173_v48, 16 }
  0x3f   : > { %v1050_v62 = vunpack.c.l.b16 %v794_v49  ;;  %v1991_v6 = vor.u32 %v1990_v52, %v1986_v37  ;;  %v1051_v8 = vunpack.c.l.b16 %v795_v54  ;;  %v8105_v10 = vsel %vm451_vm4, %v340_v1, 0.0 }
  0x40   : > { %v470_v15 = vadd.f32 %v7987_v39, %v468_v53  ;;  %v1278_v11 = vor.u32 %v1276_v46, %v1275_v56  ;;  %v8109_v38 = vsel %vm7933_vm2, %v1275_v56, 0  ;;  %v1289_v23 = vrot.slane %v1287_v59, 7  ;;  %v344_v56 = vld [vmem:[%s7956_s23 + $0xa8] sm:$0xff] }
  0x41   : > { %v798_v51 = vpack.c.bf16 %v339_v50, %v339_v50  ;;  %v8112_v14 = vsel %vm1948_vm3, %v1991_v6, %v1995_v40  ;;  %v2029_v16 = vshll.u32 %v8109_v38, 16  ;;  %v1172_v19 = vpack.c.b16 %v1051_v8, %v1050_v62 }
  0x42   : > { %15254 = vst [vmem:[#allocation15_spill] sm:$0xff] %v8112_v14  ;;  %v472_v57 = vadd.f32 %v8055_v58, %v470_v15  ;;  %2687 = vrot.lane.b32.xlu1 %v8112_v14, %s7826_s24  ;;  %v8120_v39 = vsel %vm7933_vm2, 0, %v1278_v11  ;;  %v1292_v21 = vor.u32 %v1290_v60, %v1289_v23  ;;  %v8124_v25 = vsel %vm7933_vm2, %v1289_v23, 0 }
  0x43   : > { %v799_v27 = vpack.c.bf16 %v340_v1, %v340_v1  ;;  %v2022_v28 = vshrl.u32 %v8120_v39, 16  ;;  %v2024_v29 = vshll.u32 %v8120_v39, 16  ;;  %v2031_v58 = vrot.slane %v2029_v16, 1 }
  0x44   : > { %v474_v31 = vadd.f32 %v8058_v0, %v472_v57  ;;  %v8131_v61 = vsel %vm7933_vm2, 0, %v1292_v21  ;;  %v2053_v32 = vshll.u32 %v8124_v25, 16  ;;  %v1280_v34 = vshrl.u32 %v1172_v19, 16  ;;  %v343_v0 = vld [vmem:[%s7956_s23 + $0xa0] sm:$0xff]  ;;  %v341_v57 = vld [vmem:[%s7956_s23 + $0x90] sm:$0xff] }
  0x45   : > { %v1283_v37 = vshll.u32 %v1172_v19, 16  ;;  %v2026_v18 = vrot.slane %v2024_v29, 1  ;;  %v2046_v40 = vshrl.u32 %v8131_v61, 16  ;;  %v2048_v42 = vshll.u32 %v8131_v61, 16 }
  0x46   : > { %v476_v44 = vadd.f32 %v475_v35, %v474_v31  ;;  %v2055_v46 = vrot.slane %v2053_v32, 1  ;;  %v1282_v48 = vrot.slane %v1280_v34, 7  ;;  %v1054_v49 = vunpack.c.l.b16 %v798_v51  ;;  %v342_v32 = vld [vmem:[%s7956_s23 + $0x98] sm:$0xff] }
  0x47   : > { %v1055_v50 = vunpack.c.l.b16 %v799_v27  ;;  %v2027_v52 = vor.u32 %v2026_v18, %v2022_v28  ;;  %v2050_v53 = vrot.slane %v2048_v42, 1  ;;  %v8139_v59 = vsel %vm451_vm4, %v343_v0, 0.0 }
  0x48   : > { %v478_v54 = vadd.f32 %v477_v36, %v476_v44  ;;  %v1285_v60 = vor.u32 %v1283_v37, %v1282_v48  ;;  %v8143_v62 = vsel %vm7933_vm2, %v1282_v48, 0  ;;  %v8146_v35 = vsel %vm451_vm4, %v344_v56, 0.0 }
  0x49   : > { %v1174_v1 = vpack.c.b16 %v1055_v50, %v1054_v49  ;;  %v8149_v6 = vsel %vm1948_vm3, %v2027_v52, %v2031_v58  ;;  %v2051_v15 = vor.u32 %v2050_v53, %v2046_v40  ;;  %v2041_v36 = vshll.u32 %v8143_v62, 16  ;;  %v345_v52 = vld [vmem:[%s7956_s23 + $0xb0] sm:$0xff] }
  0x4a   : > { %15255 = vst [vmem:[#allocation16_spill] sm:$0xff] %v8149_v6  ;;  %v480_v8 = vadd.f32 %v8069_v12, %v478_v54  ;;  %2693 = vrot.lane.b32.xlu0 %v8149_v6, %s7826_s24  ;;  %v8157_v11 = vsel %vm7933_vm2, 0, %v1285_v60  ;;  %v802_v16 = vpack.c.bf16 %v343_v0, %v343_v0  ;;  %v803_v58 = vpack.c.bf16 %v344_v56, %v344_v56  ;;  %v346_v60 = vld [vmem:[%s7956_s23 + $0xb8] sm:$0xff] }
  0x4b   : > { %v1294_v23 = vshrl.u32 %v1174_v1, 16  ;;  %v1297_v51 = vshll.u32 %v1174_v1, 16  ;;  %v8161_v19 = vsel %vm1948_vm3, %v2051_v15, %v2055_v46  ;;  %v2034_v21 = vshrl.u32 %v8157_v11, 16 }
  0x4c   : > { %15256 = vst [vmem:[#allocation17_spill] sm:$0xff] %v8161_v19  ;;  %v2036_v27 = vshll.u32 %v8157_v11, 16  ;;  %v2043_v12 = vrot.slane %v2041_v36, 1  ;;  %2697 = vrot.lane.b32.xlu2 %v8161_v19, %s7826_s24  ;;  %v482_v29 = vadd.f32 %v8072_v13, %v480_v8  ;;  %v1058_v31 = vunpack.c.l.b16 %v802_v16 }
  0x4d   : > { %v1296_v28 = vrot.slane %v1294_v23, 7  ;;  %v487_v37 = vsel %vm451_vm4, %v341_v57, 0.0  ;;  %v489_v18 = vsel %vm451_vm4, %v342_v32, 0.0  ;;  %v800_v40 = vpack.c.bf16 %v341_v57, %v341_v57 }
  0x4e   : > { %v2038_v34 = vrot.slane %v2036_v27, 1  ;;  %v484_v46 = vadd.f32 %v8100_v55, %v482_v29  ;;  %v1059_v48 = vunpack.c.l.b16 %v803_v58  ;;  %v801_v50 = vpack.c.bf16 %v342_v32, %v342_v32  ;;  %v350_v32 = vld [vmem:[%s7956_s23 + $0xd8] sm:$0xff] }
  0x4f   : > { %v1299_v42 = vor.u32 %v1297_v51, %v1296_v28  ;;  %v8173_v44 = vsel %vm7933_vm2, %v1296_v28, 0  ;;  %v1056_v0 = vunpack.c.l.b16 %v800_v40  ;;  %v495_v1 = vsel %vm451_vm4, %v345_v52, 0.0 }
  0x50   : > { %v2039_v13 = vor.u32 %v2038_v34, %v2034_v21  ;;  %v2065_v49 = vshll.u32 %v8173_v44, 16  ;;  %v486_v54 = vadd.f32 %v8105_v10, %v484_v46  ;;  %v1176_v56 = vpack.c.b16 %v1059_v48, %v1058_v31 }
  0x51   : > { %v8180_v53 = vsel %vm7933_vm2, 0, %v1299_v42  ;;  %v1057_v10 = vunpack.c.l.b16 %v801_v50  ;;  %v497_v21 = vsel %vm451_vm4, %v346_v60, 0.0  ;;  %v804_v27 = vpack.c.bf16 %v345_v52, %v345_v52 }
  0x52   : > { %15257 = vst [vmem:[#allocation18_spill] sm:$0xff] %v8180_v53  ;;  %v8186_v55 = vsel %vm1948_vm3, %v2039_v13, %v2043_v12  ;;  %v2058_v15 = vshrl.u32 %v8180_v53, 16  ;;  %v2060_v36 = vshll.u32 %v8180_v53, 16  ;;  %v2067_v8 = vrot.slane %v2065_v49, 1  ;;  %v349_v12 = vld [vmem:[%s7956_s23 + $0xd0] sm:$0xff] }
  0x53   : > { %15258 = vst [vmem:[#allocation19_spill] sm:$0xff] %v8186_v55  ;;  %2695 = vrot.lane.b32.xlu1 %v8186_v55, %s7826_s24  ;;  %v1308_v23 = vshrl.u32 %v1176_v56, 16  ;;  %v1311_v51 = vshll.u32 %v1176_v56, 16  ;;  %v488_v16 = vadd.f32 %v487_v37, %v486_v54  ;;  %v805_v28 = vpack.c.bf16 %v346_v60, %v346_v60  ;;  %v356_v55 = vld [vmem:[%s7956_s23 + $0x108] sm:$0xff] }
  0x54   : > { %v2062_v57 = vrot.slane %v2060_v36, 1  ;;  %v1175_v58 = vpack.c.b16 %v1057_v10, %v1056_v0  ;;  %v8196_v34 = vsel %vm451_vm4, %v349_v12, 0.0  ;;  %v1060_v42 = vunpack.c.l.b16 %v804_v27 }
  0x55   : > { %v1310_v29 = vrot.slane %v1308_v23, 7  ;;  %v490_v31 = vadd.f32 %v489_v18, %v488_v16  ;;  %v1061_v46 = vunpack.c.l.b16 %v805_v28  ;;  %v8199_v48 = vsel %vm451_vm4, %v350_v32, 0.0 }
  0x56   : > { %v2063_v40 = vor.u32 %v2062_v57, %v2058_v15  ;;  %v1301_v49 = vshrl.u32 %v1175_v58, 16  ;;  %v1304_v50 = vshll.u32 %v1175_v58, 16  ;;  %v808_v15 = vpack.c.bf16 %v349_v12, %v349_v12 }
  0x57   : > { %v1313_v37 = vor.u32 %v1311_v51, %v1310_v29  ;;  %v8203_v13 = vsel %vm7933_vm2, %v1310_v29, 0  ;;  %v492_v52 = vadd.f32 %v8139_v59, %v490_v31  ;;  %v1177_v54 = vpack.c.b16 %v1061_v46, %v1060_v42  ;;  %v347_v31 = vld [vmem:[%s7956_s23 + $0xc0] sm:$0xff] }
  0x58   : > { %v8206_v0 = vsel %vm1948_vm3, %v2063_v40, %v2067_v8  ;;  %v2089_v18 = vshll.u32 %v8203_v13, 16  ;;  %v1303_v60 = vrot.slane %v1301_v49, 7  ;;  %v809_v36 = vpack.c.bf16 %v350_v32, %v350_v32 }
  0x59   : > { %15259 = vst [vmem:[#allocation20_spill] sm:$0xff] %v8206_v0  ;;  %2699 = vrot.lane.b32.xlu0 %v8206_v0, %s7826_s24  ;;  %v8214_v56 = vsel %vm7933_vm2, 0, %v1313_v37  ;;  %v1315_v10 = vshrl.u32 %v1177_v54, 16  ;;  %v1318_v57 = vshll.u32 %v1177_v54, 16  ;;  %v494_v27 = vadd.f32 %v8146_v35, %v492_v52 }
  0x5a   : > { %v2082_v23 = vshrl.u32 %v8214_v56, 16  ;;  %v2084_v8 = vshll.u32 %v8214_v56, 16  ;;  %v2091_v51 = vrot.slane %v2089_v18, 1  ;;  %v1306_v16 = vor.u32 %v1304_v50, %v1303_v60 }
  0x5b   : > { %v8220_v59 = vsel %vm7933_vm2, %v1303_v60, 0  ;;  %v1317_v12 = vrot.slane %v1315_v10, 7  ;;  %v1064_v58 = vunpack.c.l.b16 %v808_v15  ;;  %v496_v40 = vadd.f32 %v495_v1, %v494_v27  ;;  %v348_v15 = vld [vmem:[%s7956_s23 + $0xc8] sm:$0xff] }
  0x5c   : > { %v2086_v28 = vrot.slane %v2084_v8, 1  ;;  %v2077_v29 = vshll.u32 %v8220_v59, 16  ;;  %v8227_v32 = vsel %vm7933_vm2, 0, %v1306_v16  ;;  %v1065_v42 = vunpack.c.l.b16 %v809_v36 }
  0x5d   : > { %15260 = vst [vmem:[#allocation21_spill] sm:$0xff] %v8227_v32  ;;  %v499_v46 = vsel %vm451_vm4, %v347_v31, 0.0  ;;  %v2070_v49 = vshrl.u32 %v8227_v32, 16  ;;  %v2072_v35 = vshll.u32 %v8227_v32, 16  ;;  %v1320_v18 = vor.u32 %v1318_v57, %v1317_v12 }
  0x5e   : > { %v2087_v37 = vor.u32 %v2086_v28, %v2082_v23  ;;  %v2079_v50 = vrot.slane %v2077_v29, 1  ;;  %v8234_v52 = vsel %vm7933_vm2, %v1317_v12, 0  ;;  %v498_v54 = vadd.f32 %v497_v21, %v496_v40 }
  0x5f   : > { %v1179_v60 = vpack.c.b16 %v1065_v42, %v1064_v58  ;;  %v2074_v1 = vrot.slane %v2072_v35, 1  ;;  %v2101_v36 = vshll.u32 %v8234_v52, 16  ;;  %v501_v23 = vsel %vm451_vm4, %v348_v15, 0.0  ;;  %v352_v35 = vld [vmem:[%s7956_s23 + $0xe8] sm:$0xff] }
  0x60   : > { %v8238_v8 = vsel %vm1948_vm3, %v2087_v37, %v2091_v51  ;;  %v8246_v10 = vsel %vm7933_vm2, 0, %v1320_v18  ;;  %v806_v57 = vpack.c.bf16 %v347_v31, %v347_v31  ;;  %v807_v58 = vpack.c.bf16 %v348_v15, %v348_v15  ;;  %v351_v37 = vld [vmem:[%s7956_s23 + $0xe0] sm:$0xff] }
  0x61   : > { %15261 = vst [vmem:[#allocation22_spill] sm:$0xff] %v8238_v8  ;;  %2703 = vrot.lane.b32.xlu2 %v8238_v8, %s7826_s24  ;;  %v1329_v21 = vshrl.u32 %v1179_v60, 16  ;;  %v1332_v16 = vshll.u32 %v1179_v60, 16  ;;  %v2075_v27 = vor.u32 %v2074_v1, %v2070_v49  ;;  %v2094_v51 = vshrl.u32 %v8246_v10, 16 }
  0x62   : > { %15262 = vst [vmem:[#allocation23_spill] sm:$0xff] %v8246_v10  ;;  %v2096_v28 = vshll.u32 %v8246_v10, 16  ;;  %v2103_v29 = vrot.slane %v2101_v36, 1  ;;  %v1062_v40 = vunpack.c.l.b16 %v806_v57  ;;  %v500_v42 = vadd.f32 %v499_v46, %v498_v54  ;;  %v357_v57 = vld [vmem:[%s7956_s23 + $0x110] sm:$0xff] }
  0x63   : > { %v1331_v12 = vrot.slane %v1329_v21, 7  ;;  %v8253_v22 = vsel %vm1948_vm3, %v2075_v27, %v2079_v50  ;;  %v507_v60 = vsel %vm451_vm4, %v351_v37, 0.0  ;;  %v509_v31 = vsel %vm451_vm4, %v352_v35, 0.0 }
  0x64   : > { %15263 = vst [vmem:[#allocation24_spill] sm:$0xff] %v8253_v22  ;;  %v2098_v18 = vrot.slane %v2096_v28, 1  ;;  %2701 = vrot.lane.b32.xlu1 %v8253_v22, %s7826_s24  ;;  %v1063_v46 = vunpack.c.l.b16 %v807_v58  ;;  %v502_v54 = vadd.f32 %v501_v23, %v500_v42  ;;  %v810_v36 = vpack.c.bf16 %v351_v37, %v351_v37  ;;  %v358_v42 = vld [vmem:[%s7956_s23 + $0x118] sm:$0xff] }
  0x65   : > { %v1334_v49 = vor.u32 %v1332_v16, %v1331_v12  ;;  %v8261_v15 = vsel %vm7933_vm2, %v1331_v12, 0  ;;  %v811_v21 = vpack.c.bf16 %v352_v35, %v352_v35  ;;  %v524_v12 = vsel %vm451_vm4, %v357_v57, 0.0 }
  0x66   : > { %v2099_v1 = vor.u32 %v2098_v18, %v2094_v51  ;;  %v2125_v50 = vshll.u32 %v8261_v15, 16  ;;  %v1178_v28 = vpack.c.b16 %v1063_v46, %v1062_v40  ;;  %v504_v16 = vadd.f32 %v8196_v34, %v502_v54  ;;  %v355_v54 = vld [vmem:[%s7956_s23 + $0x100] sm:$0xff] }
  0x67   : > { %v8267_v27 = vsel %vm7933_vm2, 0, %v1334_v49  ;;  %v1066_v35 = vunpack.c.l.b16 %v810_v36  ;;  %v1067_v34 = vunpack.c.l.b16 %v811_v21  ;;  %v816_v46 = vpack.c.bf16 %v357_v57, %v357_v57 }
  0x68   : > { %v8272_v8 = vsel %vm1948_vm3, %v2099_v1, %v2103_v29  ;;  %v2118_v23 = vshrl.u32 %v8267_v27, 16  ;;  %v2120_v51 = vshll.u32 %v8267_v27, 16  ;;  %v2127_v58 = vrot.slane %v2125_v50, 1 }
  0x69   : > { %15264 = vst [vmem:[#allocation25_spill] sm:$0xff] %v8272_v8  ;;  %2705 = vrot.lane.b32.xlu0 %v8272_v8, %s7826_s24  ;;  %v1322_v37 = vshrl.u32 %v1178_v28, 16  ;;  %v1325_v40 = vshll.u32 %v1178_v28, 16  ;;  %v506_v49 = vadd.f32 %v8199_v48, %v504_v16  ;;  %v526_v29 = vsel %vm451_vm4, %v358_v42, 0.0 }
  0x6a   : > { %v2122_v18 = vrot.slane %v2120_v51, 1  ;;  %v1180_v22 = vpack.c.b16 %v1067_v34, %v1066_v35  ;;  %v817_v19 = vpack.c.bf16 %v358_v42, %v358_v42  ;;  %v521_v50 = vsel %vm451_vm4, %v355_v54, 0.0 }
  0x6b   : > { %v1324_v1 = vrot.slane %v1322_v37, 7  ;;  %v508_v20 = vadd.f32 %v507_v60, %v506_v49  ;;  %v1072_v8 = vunpack.c.l.b16 %v816_v46  ;;  %v522_v28 = vsel %vm451_vm4, %v356_v55, 0.0 }
  0x6c   : > { %v2123_v0 = vor.u32 %v2122_v18, %v2118_v23  ;;  %v1336_v48 = vshrl.u32 %v1180_v22, 16  ;;  %v1339_v16 = vshll.u32 %v1180_v22, 16  ;;  %v1073_v37 = vunpack.c.l.b16 %v817_v19 }
  0x6d   : > { %v1327_v36 = vor.u32 %v1325_v40, %v1324_v1  ;;  %v8287_v21 = vsel %vm7933_vm2, %v1324_v1, 0  ;;  %v8293_v42 = vadd.f32 %v509_v31, %v508_v20  ;;  %v523_v40 = vadd.f32 %v522_v28, %v521_v50 }
  0x6e   : > { %v8290_v57 = vsel %vm1948_vm3, %v2123_v0, %v2127_v58  ;;  %v2113_v51 = vshll.u32 %v8287_v21, 16  ;;  %v1338_v23 = vrot.slane %v1336_v48, 7  ;;  %v814_v35 = vpack.c.bf16 %v355_v54, %v355_v54 }
  0x6f   : > { %15265 = vst [vmem:[#allocation26_spill] sm:$0xff] %v8290_v57  ;;  %2709 = vrot.lane.b32.xlu2 %v8290_v57, %s7826_s24  ;;  %v8299_v60 = vsel %vm7933_vm2, 0, %v1327_v36  ;;  %v1183_v34 = vpack.c.b16 %v1073_v37, %v1072_v8  ;;  %v525_v31 = vadd.f32 %v524_v12, %v523_v40  ;;  %v815_v18 = vpack.c.bf16 %v356_v55, %v356_v55  ;;  %v359_v8 = vld [vmem:[%s7956_s23 + $0x120] sm:$0xff]  ;;  %v360_v55 = vld [vmem:[%s7956_s23 + $0x128] sm:$0xff]  ;;  %v361_v57 = vld [vmem:[%s7956_s23 + $0x130] sm:$0xff] }
  0x70   : > { %15266 = vst [vmem:[#allocation27_spill] sm:$0xff] %v8293_v42  ;;  %v2106_v22 = vshrl.u32 %v8299_v60, 16  ;;  %v2108_v0 = vshll.u32 %v8299_v60, 16  ;;  %v2115_v58 = vrot.slane %v2113_v51, 1  ;;  %v1341_v20 = vor.u32 %v1339_v16, %v1338_v23  ;;  %v365_v42 = vld [vmem:[%s7956_s23 + $0x150] sm:$0xff] }
  0x71   : > { %15267 = vst [vmem:[#allocation28_spill] sm:$0xff] %v8299_v60  ;;  %v8305_v19 = vsel %vm7933_vm2, %v1338_v23, 0  ;;  %v1357_v1 = vshrl.u32 %v1183_v34, 16  ;;  %v1360_v54 = vshll.u32 %v1183_v34, 16  ;;  %v1070_v28 = vunpack.c.l.b16 %v814_v35 }
  0x72   : > { %15268 = vst [vmem:[#allocation29_spill] sm:$0xff] %v8305_v19  ;;  %v2110_v49 = vrot.slane %v2108_v0, 1  ;;  %v2137_v46 = vshll.u32 %v8305_v19, 16  ;;  %v8310_v50 = vsel %vm7933_vm2, 0, %v1341_v20  ;;  %v1071_v36 = vunpack.c.l.b16 %v815_v18 }
  0x73   : > { %15269 = vst [vmem:[#allocation30_spill] sm:$0xff] %v8310_v50  ;;  %v527_v48 = vadd.f32 %v526_v29, %v525_v31  ;;  %v2130_v51 = vshrl.u32 %v8310_v50, 16  ;;  %v2132_v37 = vshll.u32 %v8310_v50, 16  ;;  %v1359_v23 = vrot.slane %v1357_v1, 7 }
  0x74   : > { %v2111_v16 = vor.u32 %v2110_v49, %v2106_v22  ;;  %v2139_v12 = vrot.slane %v2137_v46, 1  ;;  %v1182_v40 = vpack.c.b16 %v1071_v36, %v1070_v28  ;;  %v528_v0 = vsel %vm451_vm4, %v359_v8, 0.0 }
  0x75   : > { %v530_v34 = vsel %vm451_vm4, %v360_v55, 0.0  ;;  %v2134_v35 = vrot.slane %v2132_v37, 1  ;;  %v529_v29 = vadd.f32 %v528_v0, %v527_v48  ;;  %v818_v22 = vpack.c.bf16 %v359_v8, %v359_v8 }
  0x76   : > { %v8319_v20 = vsel %vm1948_vm3, %v2111_v16, %v2115_v58  ;;  %v1362_v31 = vor.u32 %v1360_v54, %v1359_v23  ;;  %v8325_v18 = vsel %vm7933_vm2, %v1359_v23, 0  ;;  %v1350_v49 = vshrl.u32 %v1182_v40, 16  ;;  %v363_v16 = vld [vmem:[%s7956_s23 + $0x140] sm:$0xff]  ;;  %v364_v54 = vld [vmem:[%s7956_s23 + $0x148] sm:$0xff] }
  0x77   : > { %15270 = vst [vmem:[#allocation31_spill] sm:$0xff] %v8319_v20  ;;  %2707 = vrot.lane.b32.xlu1 %v8319_v20, %s7826_s24  ;;  %v1353_v46 = vshll.u32 %v1182_v40, 16  ;;  %v2135_v1 = vor.u32 %v2134_v35, %v2130_v51  ;;  %v2161_v28 = vshll.u32 %v8325_v18, 16  ;;  %v531_v36 = vadd.f32 %v530_v34, %v529_v29  ;;  %v362_v20 = vld [vmem:[%s7956_s23 + $0x138] sm:$0xff] }
  0x78   : > { %15271 = vst [vmem:[#allocation32_spill] sm:$0xff] %v8325_v18  ;;  %v819_v58 = vpack.c.bf16 %v360_v55, %v360_v55  ;;  %v8331_v48 = vsel %vm7933_vm2, 0, %v1362_v31  ;;  %v1352_v8 = vrot.slane %v1350_v49, 7  ;;  %v1074_v37 = vunpack.c.l.b16 %v818_v22 }
  0x79   : > { %15272 = vst [vmem:[#allocation33_spill] sm:$0xff] %v8331_v48  ;;  %v536_v23 = vsel %vm451_vm4, %v363_v16, 0.0  ;;  %v8336_v0 = vsel %vm1948_vm3, %v2135_v1, %v2139_v12  ;;  %v2154_v51 = vshrl.u32 %v8331_v48, 16  ;;  %v2156_v40 = vshll.u32 %v8331_v48, 16  ;;  %v366_v48 = vld [vmem:[%s7956_s23 + $0x158] sm:$0xff] }
  0x7a   : > { %15273 = vst [vmem:[#allocation34_spill] sm:$0xff] %v8336_v0  ;;  %v2163_v55 = vrot.slane %v2161_v28, 1  ;;  %2711 = vrot.lane.b32.xlu0 %v8336_v0, %s7826_s24  ;;  %v1355_v34 = vor.u32 %v1353_v46, %v1352_v8  ;;  %v8344_v35 = vsel %vm7933_vm2, %v1352_v8, 0  ;;  %v1075_v29 = vunpack.c.l.b16 %v819_v58 }
  0x7b   : > { %v538_v22 = vsel %vm451_vm4, %v364_v54, 0.0  ;;  %v2158_v31 = vrot.slane %v2156_v40, 1  ;;  %v2149_v12 = vshll.u32 %v8344_v35, 16  ;;  %v822_v49 = vpack.c.bf16 %v363_v16, %v363_v16 }
  0x7c   : > { %v823_v1 = vpack.c.bf16 %v364_v54, %v364_v54  ;;  %v8352_v28 = vsel %vm7933_vm2, 0, %v1355_v34  ;;  %v1184_v46 = vpack.c.b16 %v1075_v29, %v1074_v37  ;;  %v532_v0 = vsel %vm451_vm4, %v361_v57, 0.0 }
  0x7d   : > { %15274 = vst [vmem:[#allocation35_spill] sm:$0xff] %v8352_v28  ;;  %v534_v8 = vsel %vm451_vm4, %v362_v20, 0.0  ;;  %v2159_v58 = vor.u32 %v2158_v31, %v2154_v51  ;;  %v2142_v43 = vshrl.u32 %v8352_v28, 16  ;;  %v2144_v40 = vshll.u32 %v8352_v28, 16 }
  0x7e   : > { %v2151_v16 = vrot.slane %v2149_v12, 1  ;;  %v1364_v54 = vshrl.u32 %v1184_v46, 16  ;;  %v1367_v6 = vshll.u32 %v1184_v46, 16  ;;  %v1078_v47 = vunpack.c.l.b16 %v822_v49 }
  0x7f   : > { %v1079_v2 = vunpack.c.l.b16 %v823_v1  ;;  %v8359_v34 = vsel %vm1948_vm3, %v2159_v58, %v2163_v55  ;;  %v2146_v14 = vrot.slane %v2144_v40, 1  ;;  %v533_v37 = vadd.f32 %v532_v0, %v531_v36 }
  0x80   : > { %15275 = vst [vmem:[#allocation36_spill] sm:$0xff] %v8359_v34  ;;  %v820_v29 = vpack.c.bf16 %v361_v57, %v361_v57  ;;  %2715 = vrot.lane.b32.xlu2 %v8359_v34, %s7826_s24  ;;  %v1366_v51 = vrot.slane %v1364_v54, 7  ;;  %v821_v18 = vpack.c.bf16 %v362_v20, %v362_v20  ;;  %v540_v12 = vsel %vm451_vm4, %v365_v42, 0.0 }
  0x81   : > { %v1186_v31 = vpack.c.b16 %v1079_v2, %v1078_v47  ;;  %v2147_v19 = vor.u32 %v2146_v14, %v2142_v43  ;;  %v535_v46 = vadd.f32 %v534_v8, %v533_v37  ;;  %v542_v1 = vsel %vm451_vm4, %v366_v48, 0.0 }
  0x82   : > { %v1076_v49 = vunpack.c.l.b16 %v820_v29  ;;  %v1369_v55 = vor.u32 %v1367_v6, %v1366_v51  ;;  %v8369_v36 = vsel %vm7933_vm2, %v1366_v51, 0  ;;  %v1077_v20 = vunpack.c.l.b16 %v821_v18 }
  0x83   : > { %15276 = vst [vmem:[#allocation37_spill] sm:$0xff] %v8369_v36  ;;  %v1378_v57 = vshrl.u32 %v1186_v31, 16  ;;  %v1381_v0 = vshll.u32 %v1186_v31, 16  ;;  %v8372_v58 = vsel %vm1948_vm3, %v2147_v19, %v2151_v16  ;;  %v2173_v47 = vshll.u32 %v8369_v36, 16  ;;  %v371_v36 = vld [vmem:[%s7956_s23 + $0x180] sm:$0xff] }
  0x84   : > { %15277 = vst [vmem:[#allocation38_spill] sm:$0xff] %v8372_v58  ;;  %v537_v2 = vadd.f32 %v536_v23, %v535_v46  ;;  %2713 = vrot.lane.b32.xlu1 %v8372_v58, %s7826_s24  ;;  %v8379_v43 = vsel %vm7933_vm2, 0, %v1369_v55  ;;  %v824_v6 = vpack.c.bf16 %v365_v42, %v365_v42  ;;  %v825_v8 = vpack.c.bf16 %v366_v48, %v366_v48  ;;  %v369_v48 = vld [vmem:[%s7956_s23 + $0x170] sm:$0xff] }
  0x85   : > { %15278 = vst [vmem:[#allocation39_spill] sm:$0xff] %v8379_v43  ;;  %v1380_v14 = vrot.slane %v1378_v57, 7  ;;  %v2166_v40 = vshrl.u32 %v8379_v43, 16  ;;  %v2168_v19 = vshll.u32 %v8379_v43, 16  ;;  %v2175_v16 = vrot.slane %v2173_v47, 1 }
  0x86   : > { %v1185_v54 = vpack.c.b16 %v1077_v20, %v1076_v49  ;;  %v539_v37 = vadd.f32 %v538_v22, %v537_v2  ;;  %v1080_v29 = vunpack.c.l.b16 %v824_v6  ;;  %v1081_v47 = vunpack.c.l.b16 %v825_v8  ;;  %v370_v49 = vld [vmem:[%s7956_s23 + $0x178] sm:$0xff] }
  0x87   : > { %v1383_v23 = vor.u32 %v1381_v0, %v1380_v14  ;;  %v8385_v18 = vsel %vm7933_vm2, %v1380_v14, 0  ;;  %v2170_v51 = vrot.slane %v2168_v19, 1  ;;  %v548_v0 = vsel %vm451_vm4, %v369_v48, 0.0 }
  0x88   : > { %15279 = vst [vmem:[#allocation40_spill] sm:$0xff] %v8385_v18  ;;  %v2197_v31 = vshll.u32 %v8385_v18, 16  ;;  %v1371_v46 = vshrl.u32 %v1185_v54, 16  ;;  %v1374_v42 = vshll.u32 %v1185_v54, 16  ;;  %v541_v57 = vadd.f32 %v540_v12, %v539_v37 }
  0x89   : > { %v8391_v55 = vsel %vm7933_vm2, 0, %v1383_v23  ;;  %v2171_v20 = vor.u32 %v2170_v51, %v2166_v40  ;;  %v1187_v54 = vpack.c.b16 %v1081_v47, %v1080_v29  ;;  %v550_v58 = vsel %vm451_vm4, %v370_v49, 0.0 }
  0x8a   : > { %15280 = vst [vmem:[#allocation41_spill] sm:$0xff] %v8391_v55  ;;  %v2190_v14 = vshrl.u32 %v8391_v55, 16  ;;  %v2192_v22 = vshll.u32 %v8391_v55, 16  ;;  %v2199_v2 = vrot.slane %v2197_v31, 1  ;;  %v1373_v6 = vrot.slane %v1371_v46, 7 }
  0x8b   : > { %v543_v19 = vadd.f32 %v542_v1, %v541_v57  ;;  %v8399_v23 = vsel %vm1948_vm3, %v2171_v20, %v2175_v16  ;;  %v828_v8 = vpack.c.bf16 %v369_v48, %v369_v48  ;;  %v829_v37 = vpack.c.bf16 %v370_v49, %v370_v49  ;;  %v367_v16 = vld [vmem:[%s7956_s23 + $0x160] sm:$0xff]  ;;  %v368_v20 = vld [vmem:[%s7956_s23 + $0x168] sm:$0xff] }
  0x8c   : > { %15281 = vst [vmem:[#allocation42_spill] sm:$0xff] %v8399_v23  ;;  %v2194_v12 = vrot.slane %v2192_v22, 1  ;;  %2717 = vrot.lane.b32.xlu0 %v8399_v23, %s7826_s24  ;;  %v1376_v40 = vor.u32 %v1374_v42, %v1373_v6  ;;  %v8405_v51 = vsel %vm7933_vm2, %v1373_v6, 0  ;;  %v1385_v1 = vshrl.u32 %v1187_v54, 16 }
  0x8d   : > { %15282 = vst [vmem:[#allocation43_spill] sm:$0xff] %v8405_v51  ;;  %v1388_v31 = vshll.u32 %v1187_v54, 16  ;;  %v2185_v46 = vshll.u32 %v8405_v51, 16  ;;  %v1084_v57 = vunpack.c.l.b16 %v828_v8  ;;  %v1085_v47 = vunpack.c.l.b16 %v829_v37 }
  0x8e   : > { %v2195_v29 = vor.u32 %v2194_v12, %v2190_v14  ;;  %v8412_v48 = vsel %vm7933_vm2, 0, %v1376_v40  ;;  %v1387_v49 = vrot.slane %v1385_v1, 7  ;;  %v544_v42 = vsel %vm451_vm4, %v367_v16, 0.0 }
  0x8f   : > { %15283 = vst [vmem:[#allocation44_spill] sm:$0xff] %v8412_v48  ;;  %v546_v22 = vsel %vm451_vm4, %v368_v20, 0.0  ;;  %v2178_v14 = vshrl.u32 %v8412_v48, 16  ;;  %v2180_v54 = vshll.u32 %v8412_v48, 16  ;;  %v2187_v12 = vrot.slane %v2185_v46, 1 }
  0x90   : > { %v8417_v6 = vsel %vm1948_vm3, %v2195_v29, %v2199_v2  ;;  %v1390_v8 = vor.u32 %v1388_v31, %v1387_v49  ;;  %v8425_v37 = vsel %vm7933_vm2, %v1387_v49, 0  ;;  %v1189_v40 = vpack.c.b16 %v1085_v47, %v1084_v57 }
  0x91   : > { %15284 = vst [vmem:[#allocation45_spill] sm:$0xff] %v8417_v6  ;;  %2721 = vrot.lane.b32.xlu2 %v8417_v6, %s7826_s24  ;;  %v545_v1 = vadd.f32 %v544_v42, %v543_v19  ;;  %v2182_v23 = vrot.slane %v2180_v54, 1  ;;  %v2209_v2 = vshll.u32 %v8425_v37, 16  ;;  %v826_v29 = vpack.c.bf16 %v367_v16, %v367_v16  ;;  %v372_v16 = vld [vmem:[%s7956_s23 + $0x188] sm:$0xff] }
  0x92   : > { %15285 = vst [vmem:[#allocation46_spill] sm:$0xff] %v8425_v37  ;;  %v827_v34 = vpack.c.bf16 %v368_v20, %v368_v20  ;;  %v8430_v46 = vsel %vm7933_vm2, 0, %v1390_v8  ;;  %v1399_v18 = vshrl.u32 %v1189_v40, 16  ;;  %v1402_v6 = vshll.u32 %v1189_v40, 16 }
  0x93   : > { %15286 = vst [vmem:[#allocation47_spill] sm:$0xff] %v8430_v46  ;;  %v547_v31 = vadd.f32 %v546_v22, %v545_v1  ;;  %v2183_v55 = vor.u32 %v2182_v23, %v2178_v14  ;;  %v2202_v49 = vshrl.u32 %v8430_v46, 16  ;;  %v2204_v57 = vshll.u32 %v8430_v46, 16 }
  0x94   : > { %v2211_v19 = vrot.slane %v2209_v2, 1  ;;  %v1401_v47 = vrot.slane %v1399_v18, 7  ;;  %v1082_v54 = vunpack.c.l.b16 %v826_v29  ;;  %v1083_v37 = vunpack.c.l.b16 %v827_v34 }
  0x95   : > { %v549_v42 = vadd.f32 %v548_v0, %v547_v31  ;;  %v8437_v20 = vsel %vm1948_vm3, %v2183_v55, %v2187_v12  ;;  %v2206_v8 = vrot.slane %v2204_v57, 1  ;;  %v552_v40 = vsel %vm451_vm4, %v371_v36, 0.0 }
  0x96   : > { %15287 = vst [vmem:[#allocation48_spill] sm:$0xff] %v8437_v20  ;;  %v554_v23 = vsel %vm451_vm4, %v372_v16, 0.0  ;;  %2719 = vrot.lane.b32.xlu1 %v8437_v20, %s7826_s24  ;;  %v1404_v22 = vor.u32 %v1402_v6, %v1401_v47  ;;  %v8445_v18 = vsel %vm7933_vm2, %v1401_v47, 0  ;;  %v1188_v34 = vpack.c.b16 %v1083_v37, %v1082_v54  ;;  %v375_v6 = vld [vmem:[%s7956_s23 + $0x1a0] sm:$0xff] }
  0x97   : > { %15288 = vst [vmem:[#allocation49_spill] sm:$0xff] %v8445_v18  ;;  %v551_v0 = vadd.f32 %v550_v58, %v549_v42  ;;  %v2207_v14 = vor.u32 %v2206_v8, %v2202_v49  ;;  %v2233_v55 = vshll.u32 %v8445_v18, 16  ;;  %v830_v12 = vpack.c.bf16 %v371_v36, %v371_v36  ;;  %v376_v49 = vld [vmem:[%s7956_s23 + $0x1a8] sm:$0xff]  ;;  %v373_v18 = vld [vmem:[%s7956_s23 + $0x190] sm:$0xff] }
  0x98   : > { %v831_v1 = vpack.c.bf16 %v372_v16, %v372_v16  ;;  %v8450_v2 = vsel %vm7933_vm2, 0, %v1404_v22  ;;  %v1392_v29 = vshrl.u32 %v1188_v34, 16  ;;  %v1395_v31 = vshll.u32 %v1188_v34, 16 }
  0x99   : > { %15289 = vst [vmem:[#allocation50_spill] sm:$0xff] %v8450_v2  ;;  %v553_v57 = vadd.f32 %v552_v40, %v551_v0  ;;  %v8454_v20 = vsel %vm1948_vm3, %v2207_v14, %v2211_v19  ;;  %v2226_v47 = vshrl.u32 %v8450_v2, 16  ;;  %v2228_v58 = vshll.u32 %v8450_v2, 16 }
  0x9a   : > { %15290 = vst [vmem:[#allocation51_spill] sm:$0xff] %v8454_v20  ;;  %v2235_v37 = vrot.slane %v2233_v55, 1  ;;  %2723 = vrot.lane.b32.xlu0 %v8454_v20, %s7826_s24  ;;  %v1394_v36 = vrot.slane %v1392_v29, 7  ;;  %v1086_v54 = vunpack.c.l.b16 %v830_v12  ;;  %v1087_v16 = vunpack.c.l.b16 %v831_v1 }
  0x9b   : > { %v555_v42 = vadd.f32 %v554_v23, %v553_v57  ;;  %v2230_v8 = vrot.slane %v2228_v58, 1  ;;  %v560_v40 = vsel %vm451_vm4, %v375_v6, 0.0  ;;  %v562_v19 = vsel %vm451_vm4, %v376_v49, 0.0  ;;  %v374_v58 = vld [vmem:[%s7956_s23 + $0x198] sm:$0xff] }
  0x9c   : > { %v834_v22 = vpack.c.bf16 %v375_v6, %v375_v6  ;;  %v1397_v34 = vor.u32 %v1395_v31, %v1394_v36  ;;  %v8465_v0 = vsel %vm7933_vm2, %v1394_v36, 0  ;;  %v1190_v14 = vpack.c.b16 %v1087_v16, %v1086_v54 }
  0x9d   : > { %15291 = vst [vmem:[#allocation52_spill] sm:$0xff] %v8465_v0  ;;  %v835_v55 = vpack.c.bf16 %v376_v49, %v376_v49  ;;  %v2231_v20 = vor.u32 %v2230_v8, %v2226_v47  ;;  %v2221_v23 = vshll.u32 %v8465_v0, 16  ;;  %v556_v1 = vsel %vm451_vm4, %v373_v18, 0.0 }
  0x9e   : > { %v1090_v12 = vunpack.c.l.b16 %v834_v22  ;;  %v8472_v29 = vsel %vm7933_vm2, 0, %v1397_v34  ;;  %v1406_v57 = vshrl.u32 %v1190_v14, 16  ;;  %v1409_v31 = vshll.u32 %v1190_v14, 16  ;;  %v377_v14 = vld [vmem:[%s7956_s23 + $0x1b0] sm:$0xff] }
  0x9f   : > { %15292 = vst [vmem:[#allocation53_spill] sm:$0xff] %v8472_v29  ;;  %v1091_v6 = vunpack.c.l.b16 %v835_v55  ;;  %v8476_v36 = vsel %vm1948_vm3, %v2231_v20, %v2235_v37  ;;  %v2214_v49 = vshrl.u32 %v8472_v29, 16  ;;  %v2216_v47 = vshll.u32 %v8472_v29, 16 }
  0xa0   : > { %15293 = vst [vmem:[#allocation54_spill] sm:$0xff] %v8476_v36  ;;  %v2223_v54 = vrot.slane %v2221_v23, 1  ;;  %2727 = vrot.lane.b32.xlu2 %v8476_v36, %s7826_s24  ;;  %v1408_v16 = vrot.slane %v1406_v57, 7  ;;  %v557_v22 = vadd.f32 %v556_v1, %v555_v42  ;;  %v558_v34 = vsel %vm451_vm4, %v374_v58, 0.0  ;;  %v378_v1 = vld [vmem:[%s7956_s23 + $0x1b8] sm:$0xff] }
  0xa1   : > { %v1192_v8 = vpack.c.b16 %v1091_v6, %v1090_v12  ;;  %v2218_v55 = vrot.slane %v2216_v47, 1  ;;  %v832_v2 = vpack.c.bf16 %v373_v18, %v373_v18  ;;  %v833_v46 = vpack.c.bf16 %v374_v58, %v374_v58 }
  0xa2   : > { %v564_v20 = vsel %vm451_vm4, %v377_v14, 0.0  ;;  %v1411_v37 = vor.u32 %v1409_v31, %v1408_v16  ;;  %v8487_v0 = vsel %vm7933_vm2, %v1408_v16, 0  ;;  %v559_v57 = vadd.f32 %v558_v34, %v557_v22 }
  0xa3   : > { %15294 = vst [vmem:[#allocation55_spill] sm:$0xff] %v8487_v0  ;;  %v1420_v23 = vshrl.u32 %v1192_v8, 16  ;;  %v1423_v29 = vshll.u32 %v1192_v8, 16  ;;  %v2219_v36 = vor.u32 %v2218_v55, %v2214_v49  ;;  %v2245_v12 = vshll.u32 %v8487_v0, 16 }
  0xa4   : > { %v1088_v42 = vunpack.c.l.b16 %v832_v2  ;;  %v8493_v6 = vsel %vm7933_vm2, 0, %v1411_v37  ;;  %v1089_v58 = vunpack.c.l.b16 %v833_v46  ;;  %v566_v31 = vsel %vm451_vm4, %v378_v1, 0.0 }
  0xa5   : > { %15295 = vst [vmem:[#allocation56_spill] sm:$0xff] %v8493_v6  ;;  %v1422_v18 = vrot.slane %v1420_v23, 7  ;;  %v8497_v47 = vsel %vm1948_vm3, %v2219_v36, %v2223_v54  ;;  %v2238_v16 = vshrl.u32 %v8493_v6, 16  ;;  %v2240_v49 = vshll.u32 %v8493_v6, 16 }
  0xa6   : > { %15296 = vst [vmem:[#allocation57_spill] sm:$0xff] %v8497_v47  ;;  %v2247_v8 = vrot.slane %v2245_v12, 1  ;;  %2725 = vrot.lane.b32.xlu1 %v8497_v47, %s7826_s24  ;;  %v561_v34 = vadd.f32 %v560_v40, %v559_v57  ;;  %v1191_v46 = vpack.c.b16 %v1089_v58, %v1088_v42  ;;  %v836_v54 = vpack.c.bf16 %v377_v14, %v377_v14  ;;  %v381_v14 = vld [vmem:[%s7956_s23 + $0x1d0] sm:$0xff] }
  0xa7   : > { %v1425_v2 = vor.u32 %v1423_v29, %v1422_v18  ;;  %v8505_v22 = vsel %vm7933_vm2, %v1422_v18, 0  ;;  %v2242_v55 = vrot.slane %v2240_v49, 1  ;;  %v837_v37 = vpack.c.bf16 %v378_v1, %v378_v1  ;;  %v382_v1 = vld [vmem:[%s7956_s23 + $0x1d8] sm:$0xff] }
  0xa8   : > { %15297 = vst [vmem:[#allocation58_spill] sm:$0xff] %v8505_v22  ;;  %v2269_v36 = vshll.u32 %v8505_v22, 16  ;;  %v1413_v12 = vshrl.u32 %v1191_v46, 16  ;;  %v1416_v47 = vshll.u32 %v1191_v46, 16  ;;  %v563_v29 = vadd.f32 %v562_v19, %v561_v34 }
  0xa9   : > { %v8510_v23 = vsel %vm7933_vm2, 0, %v1425_v2  ;;  %v2243_v0 = vor.u32 %v2242_v55, %v2238_v16  ;;  %v1092_v49 = vunpack.c.l.b16 %v836_v54  ;;  %v1093_v22 = vunpack.c.l.b16 %v837_v37  ;;  %v379_v37 = vld [vmem:[%s7956_s23 + $0x1c0] sm:$0xff] }
  0xaa   : > { %15298 = vst [vmem:[#allocation59_spill] sm:$0xff] %v8510_v23  ;;  %v2262_v18 = vshrl.u32 %v8510_v23, 16  ;;  %v2264_v40 = vshll.u32 %v8510_v23, 16  ;;  %v2271_v57 = vrot.slane %v2269_v36, 1  ;;  %v1415_v42 = vrot.slane %v1413_v12, 7 }
  0xab   : > { %v565_v58 = vadd.f32 %v564_v20, %v563_v29  ;;  %v8517_v6 = vsel %vm1948_vm3, %v2243_v0, %v2247_v8  ;;  %v572_v19 = vsel %vm451_vm4, %v381_v14, 0.0  ;;  %v574_v16 = vsel %vm451_vm4, %v382_v1, 0.0 }
  0xac   : > { %15299 = vst [vmem:[#allocation60_spill] sm:$0xff] %v8517_v6  ;;  %v2266_v2 = vrot.slane %v2264_v40, 1  ;;  %2729 = vrot.lane.b32.xlu0 %v8517_v6, %s7826_s24  ;;  %v1418_v34 = vor.u32 %v1416_v47, %v1415_v42  ;;  %v8525_v20 = vsel %vm7933_vm2, %v1415_v42, 0  ;;  %v1193_v55 = vpack.c.b16 %v1093_v22, %v1092_v49  ;;  %v380_v6 = vld [vmem:[%s7956_s23 + $0x1c8] sm:$0xff] }
  0xad   : > { %15300 = vst [vmem:[#allocation61_spill] sm:$0xff] %v8525_v20  ;;  %v567_v46 = vadd.f32 %v566_v31, %v565_v58  ;;  %v2257_v0 = vshll.u32 %v8525_v20, 16  ;;  %v840_v8 = vpack.c.bf16 %v381_v14, %v381_v14  ;;  %v841_v54 = vpack.c.bf16 %v382_v1, %v382_v1 }
  0xae   : > { %v2267_v36 = vor.u32 %v2266_v2, %v2262_v18  ;;  %v8531_v12 = vsel %vm7933_vm2, 0, %v1418_v34  ;;  %v1427_v29 = vshrl.u32 %v1193_v55, 16  ;;  %v1430_v40 = vshll.u32 %v1193_v55, 16 }
  0xaf   : > { %15301 = vst [vmem:[#allocation62_spill] sm:$0xff] %v8531_v12  ;;  %v568_v47 = vsel %vm451_vm4, %v379_v37, 0.0  ;;  %v2250_v31 = vshrl.u32 %v8531_v12, 16  ;;  %v2252_v22 = vshll.u32 %v8531_v12, 16  ;;  %v2259_v18 = vrot.slane %v2257_v0, 1 }
  0xb0   : > { %v8536_v42 = vsel %vm1948_vm3, %v2267_v36, %v2271_v57  ;;  %v1429_v58 = vrot.slane %v1427_v29, 7  ;;  %v1096_v49 = vunpack.c.l.b16 %v840_v8  ;;  %v1097_v14 = vunpack.c.l.b16 %v841_v54 }
  0xb1   : > { %15302 = vst [vmem:[#allocation63_spill] sm:$0xff] %v8536_v42  ;;  %2733 = vrot.lane.b32.xlu2 %v8536_v42, %s7826_s24  ;;  %v569_v1 = vadd.f32 %v568_v47, %v567_v46  ;;  %v2254_v2 = vrot.slane %v2252_v22, 1  ;;  %v570_v34 = vsel %vm451_vm4, %v380_v6, 0.0  ;;  %v838_v55 = vpack.c.bf16 %v379_v37, %v379_v37 }
  0xb2   : > { %v839_v57 = vpack.c.bf16 %v380_v6, %v380_v6  ;;  %v1432_v36 = vor.u32 %v1430_v40, %v1429_v58  ;;  %v8545_v23 = vsel %vm7933_vm2, %v1429_v58, 0  ;;  %v1195_v0 = vpack.c.b16 %v1097_v14, %v1096_v49  ;;  %v383_v6 = vld [vmem:[%s7956_s23 + $0x1e0] sm:$0xff]  ;;  %v384_v40 = vld [vmem:[%s7956_s23 + $0x1e8] sm:$0xff] }
  0xb3   : > { %15303 = vst [vmem:[#allocation64_spill] sm:$0xff] %v8545_v23  ;;  %v571_v20 = vadd.f32 %v570_v34, %v569_v1  ;;  %v2255_v12 = vor.u32 %v2254_v2, %v2250_v31  ;;  %v2281_v29 = vshll.u32 %v8545_v23, 16  ;;  %v1094_v8 = vunpack.c.l.b16 %v838_v55 }
  0xb4   : > { %v1095_v54 = vunpack.c.l.b16 %v839_v57  ;;  %v8550_v46 = vsel %vm7933_vm2, 0, %v1432_v36  ;;  %v1441_v47 = vshrl.u32 %v1195_v0, 16  ;;  %v1444_v22 = vshll.u32 %v1195_v0, 16 }
  0xb5   : > { %15304 = vst [vmem:[#allocation65_spill] sm:$0xff] %v8550_v46  ;;  %v573_v37 = vadd.f32 %v572_v19, %v571_v20  ;;  %v8555_v42 = vsel %vm1948_vm3, %v2255_v12, %v2259_v18  ;;  %v2274_v58 = vshrl.u32 %v8550_v46, 16  ;;  %v2276_v31 = vshll.u32 %v8550_v46, 16 }
  0xb6   : > { %15305 = vst [vmem:[#allocation66_spill] sm:$0xff] %v8555_v42  ;;  %v2283_v49 = vrot.slane %v2281_v29, 1  ;;  %2731 = vrot.lane.b32.xlu1 %v8555_v42, %s7826_s24  ;;  %v1443_v14 = vrot.slane %v1441_v47, 7  ;;  %v1194_v1 = vpack.c.b16 %v1095_v54, %v1094_v8  ;;  %v576_v34 = vsel %vm451_vm4, %v383_v6, 0.0  ;;  %v389_v54 = vld [vmem:[%s7956_s23 + $0x210] sm:$0xff] }
  0xb7   : > { %v575_v2 = vadd.f32 %v574_v16, %v573_v37  ;;  %v2278_v19 = vrot.slane %v2276_v31, 1  ;;  %v578_v20 = vsel %vm451_vm4, %v384_v40, 0.0  ;;  %v842_v55 = vpack.c.bf16 %v383_v6, %v383_v6 }
  0xb8   : > { %v843_v12 = vpack.c.bf16 %v384_v40, %v384_v40  ;;  %v1446_v18 = vor.u32 %v1444_v22, %v1443_v14  ;;  %v8565_v57 = vsel %vm7933_vm2, %v1443_v14, 0  ;;  %v1434_v36 = vshrl.u32 %v1194_v1, 16 }
  0xb9   : > { %15306 = vst [vmem:[#allocation67_spill] sm:$0xff] %v8565_v57  ;;  %v1437_v0 = vshll.u32 %v1194_v1, 16  ;;  %v2279_v29 = vor.u32 %v2278_v19, %v2274_v58  ;;  %v2305_v47 = vshll.u32 %v8565_v57, 16  ;;  %v577_v8 = vadd.f32 %v576_v34, %v575_v2  ;;  %v390_v2 = vld [vmem:[%s7956_s23 + $0x218] sm:$0xff]  ;;  %v387_v57 = vld [vmem:[%s7956_s23 + $0x200] sm:$0xff] }
  0xba   : > { %v1098_v16 = vunpack.c.l.b16 %v842_v55  ;;  %v8571_v37 = vsel %vm7933_vm2, 0, %v1446_v18  ;;  %v1436_v6 = vrot.slane %v1434_v36, 7  ;;  %v1099_v40 = vunpack.c.l.b16 %v843_v12 }
  0xbb   : > { %15307 = vst [vmem:[#allocation68_spill] sm:$0xff] %v8571_v37  ;;  %v593_v22 = vsel %vm451_vm4, %v389_v54, 0.0  ;;  %v8575_v31 = vsel %vm1948_vm3, %v2279_v29, %v2283_v49  ;;  %v2298_v14 = vshrl.u32 %v8571_v37, 16  ;;  %v2300_v58 = vshll.u32 %v8571_v37, 16  ;;  %v388_v37 = vld [vmem:[%s7956_s23 + $0x208] sm:$0xff] }
  0xbc   : > { %15308 = vst [vmem:[#allocation69_spill] sm:$0xff] %v8575_v31  ;;  %v2307_v1 = vrot.slane %v2305_v47, 1  ;;  %2735 = vrot.lane.b32.xlu0 %v8575_v31, %s7826_s24  ;;  %v1439_v34 = vor.u32 %v1437_v0, %v1436_v6  ;;  %v8584_v19 = vsel %vm7933_vm2, %v1436_v6, 0  ;;  %v8586_v55 = vadd.f32 %v578_v20, %v577_v8 }
  0xbd   : > { %15309 = vst [vmem:[#allocation70_spill] sm:$0xff] %v8584_v19  ;;  %v1196_v12 = vpack.c.b16 %v1099_v40, %v1098_v16  ;;  %v2302_v49 = vrot.slane %v2300_v58, 1  ;;  %v2293_v18 = vshll.u32 %v8584_v19, 16  ;;  %v595_v36 = vsel %vm451_vm4, %v390_v2, 0.0 }
  0xbe   : > { %15310 = vst [vmem:[#allocation71_spill] sm:$0xff] %v8586_v55  ;;  %v848_v29 = vpack.c.bf16 %v389_v54, %v389_v54  ;;  %v8592_v47 = vsel %vm7933_vm2, 0, %v1439_v34  ;;  %v849_v42 = vpack.c.bf16 %v390_v2, %v390_v2  ;;  %v590_v54 = vsel %vm451_vm4, %v387_v57, 0.0 }
  0xbf   : > { %15311 = vst [vmem:[#allocation72_spill] sm:$0xff] %v8592_v47  ;;  %v1448_v31 = vshrl.u32 %v1196_v12, 16  ;;  %v1451_v0 = vshll.u32 %v1196_v12, 16  ;;  %v2303_v6 = vor.u32 %v2302_v49, %v2298_v14  ;;  %v2286_v20 = vshrl.u32 %v8592_v47, 16 }
  0xc0   : > { %v2288_v8 = vshll.u32 %v8592_v47, 16  ;;  %v2295_v16 = vrot.slane %v2293_v18, 1  ;;  %v1104_v58 = vunpack.c.l.b16 %v848_v29  ;;  %v1105_v55 = vunpack.c.l.b16 %v849_v42 }
  0xc1   : > { %v1450_v40 = vrot.slane %v1448_v31, 7  ;;  %v8600_v23 = vsel %vm1948_vm3, %v2303_v6, %v2307_v1  ;;  %v591_v2 = vsel %vm451_vm4, %v388_v37, 0.0  ;;  %v846_v14 = vpack.c.bf16 %v387_v57, %v387_v57 }
  0xc2   : > { %15312 = vst [vmem:[#allocation73_spill] sm:$0xff] %v8600_v23  ;;  %v2290_v34 = vrot.slane %v2288_v8, 1  ;;  %2739 = vrot.lane.b32.xlu2 %v8600_v23, %s7826_s24  ;;  %v1199_v42 = vpack.c.b16 %v1105_v55, %v1104_v58  ;;  %v592_v49 = vadd.f32 %v591_v2, %v590_v54  ;;  %v847_v29 = vpack.c.bf16 %v388_v37, %v388_v37  ;;  %v391_v23 = vld [vmem:[%s7956_s23 + $0x220] sm:$0xff] }
  0xc3   : > { %v1453_v12 = vor.u32 %v1451_v0, %v1450_v40  ;;  %v8607_v31 = vsel %vm7933_vm2, %v1450_v40, 0  ;;  %v1102_v6 = vunpack.c.l.b16 %v846_v14  ;;  %v392_v0 = vld [vmem:[%s7956_s23 + $0x228] sm:$0xff] }
  0xc4   : > { %15313 = vst [vmem:[#allocation74_spill] sm:$0xff] %v8607_v31  ;;  %v2291_v18 = vor.u32 %v2290_v34, %v2286_v20  ;;  %v2317_v1 = vshll.u32 %v8607_v31, 16  ;;  %v1469_v57 = vshrl.u32 %v1199_v42, 16  ;;  %v1472_v46 = vshll.u32 %v1199_v42, 16 }
  0xc5   : > { %v8612_v8 = vsel %vm7933_vm2, 0, %v1453_v12  ;;  %v594_v19 = vadd.f32 %v593_v22, %v592_v49  ;;  %v1103_v58 = vunpack.c.l.b16 %v847_v29  ;;  %v597_v34 = vsel %vm451_vm4, %v391_v23, 0.0 }
  0xc6   : > { %15314 = vst [vmem:[#allocation75_spill] sm:$0xff] %v8612_v8  ;;  %v8617_v47 = vsel %vm1948_vm3, %v2291_v18, %v2295_v16  ;;  %v2310_v55 = vshrl.u32 %v8612_v8, 16  ;;  %v2312_v20 = vshll.u32 %v8612_v8, 16  ;;  %v2319_v40 = vrot.slane %v2317_v1, 1 }
  0xc7   : > { %15315 = vst [vmem:[#allocation76_spill] sm:$0xff] %v8617_v47  ;;  %2737 = vrot.lane.b32.xlu1 %v8617_v47, %s7826_s24  ;;  %v1471_v37 = vrot.slane %v1469_v57, 7  ;;  %v596_v54 = vadd.f32 %v595_v36, %v594_v19  ;;  %v599_v22 = vsel %vm451_vm4, %v392_v0, 0.0  ;;  %v850_v16 = vpack.c.bf16 %v391_v23, %v391_v23  ;;  %v396_v47 = vld [vmem:[%s7956_s23 + $0x248] sm:$0xff] }
  0xc8   : > { %v2314_v2 = vrot.slane %v2312_v20, 1  ;;  %v851_v14 = vpack.c.bf16 %v392_v0, %v392_v0  ;;  %v1198_v49 = vpack.c.b16 %v1103_v58, %v1102_v6 }
  0xc9   : > { %v1474_v12 = vor.u32 %v1472_v46, %v1471_v37  ;;  %v8627_v42 = vsel %vm7933_vm2, %v1471_v37, 0  ;;  %v598_v18 = vadd.f32 %v597_v34, %v596_v54  ;;  %v1106_v19 = vunpack.c.l.b16 %v850_v16  ;;  %v395_v46 = vld [vmem:[%s7956_s23 + $0x240] sm:$0xff]  ;;  %v393_v16 = vld [vmem:[%s7956_s23 + $0x230] sm:$0xff] }
  0xca   : > { %15316 = vst [vmem:[#allocation77_spill] sm:$0xff] %v8627_v42  ;;  %v2315_v1 = vor.u32 %v2314_v2, %v2310_v55  ;;  %v2341_v29 = vshll.u32 %v8627_v42, 16  ;;  %v1107_v36 = vunpack.c.l.b16 %v851_v14  ;;  %v1462_v20 = vshrl.u32 %v1198_v49, 16 }
  0xcb   : > { %v8632_v57 = vsel %vm7933_vm2, 0, %v1474_v12  ;;  %v1465_v23 = vshll.u32 %v1198_v49, 16  ;;  %v600_v0 = vadd.f32 %v599_v22, %v598_v18  ;;  %v605_v2 = vsel %vm451_vm4, %v395_v46, 0.0 }
  0xcc   : > { %15317 = vst [vmem:[#allocation78_spill] sm:$0xff] %v8632_v57  ;;  %v8637_v37 = vsel %vm1948_vm3, %v2315_v1, %v2319_v40  ;;  %v2334_v6 = vshrl.u32 %v8632_v57, 16  ;;  %v2336_v55 = vshll.u32 %v8632_v57, 16  ;;  %v2343_v58 = vrot.slane %v2341_v29, 1  ;;  %v394_v57 = vld [vmem:[%s7956_s23 + $0x238] sm:$0xff] }
  0xcd   : > { %15318 = vst [vmem:[#allocation79_spill] sm:$0xff] %v8637_v37  ;;  %2741 = vrot.lane.b32.xlu0 %v8637_v37, %s7826_s24  ;;  %v1464_v54 = vrot.slane %v1462_v20, 7  ;;  %v1200_v34 = vpack.c.b16 %v1107_v36, %v1106_v19  ;;  %v607_v22 = vsel %vm451_vm4, %v396_v47, 0.0  ;;  %v854_v12 = vpack.c.bf16 %v395_v46, %v395_v46 }
  0xce   : > { %v2338_v14 = vrot.slane %v2336_v55, 1  ;;  %v855_v40 = vpack.c.bf16 %v396_v47, %v396_v47  ;;  %v601_v49 = vsel %vm451_vm4, %v393_v16, 0.0 }
  0xcf   : > { %v1467_v18 = vor.u32 %v1465_v23, %v1464_v54  ;;  %v8649_v1 = vsel %vm7933_vm2, %v1464_v54, 0  ;;  %v1476_v29 = vshrl.u32 %v1200_v34, 16  ;;  %v1479_v37 = vshll.u32 %v1200_v34, 16 }
  0xd0   : > { %15319 = vst [vmem:[#allocation80_spill] sm:$0xff] %v8649_v1  ;;  %v2339_v20 = vor.u32 %v2338_v14, %v2334_v6  ;;  %v2329_v19 = vshll.u32 %v8649_v1, 16  ;;  %v1110_v36 = vunpack.c.l.b16 %v854_v12  ;;  %v1111_v42 = vunpack.c.l.b16 %v855_v40  ;;  %v397_v1 = vld [vmem:[%s7956_s23 + $0x250] sm:$0xff] }
  0xd1   : > { %v8655_v55 = vsel %vm7933_vm2, 0, %v1467_v18  ;;  %v1478_v47 = vrot.slane %v1476_v29, 7  ;;  %v602_v46 = vadd.f32 %v601_v49, %v600_v0  ;;  %v603_v23 = vsel %vm451_vm4, %v394_v57, 0.0 }
  0xd2   : > { %15320 = vst [vmem:[#allocation81_spill] sm:$0xff] %v8655_v55  ;;  %v8659_v31 = vsel %vm1948_vm3, %v2339_v20, %v2343_v58  ;;  %v2322_v54 = vshrl.u32 %v8655_v55, 16  ;;  %v2324_v6 = vshll.u32 %v8655_v55, 16  ;;  %v2331_v34 = vrot.slane %v2329_v19, 1 }
  0xd3   : > { %15321 = vst [vmem:[#allocation82_spill] sm:$0xff] %v8659_v31  ;;  %2745 = vrot.lane.b32.xlu2 %v8659_v31, %s7826_s24  ;;  %v1481_v14 = vor.u32 %v1479_v37, %v1478_v47  ;;  %v8667_v12 = vsel %vm7933_vm2, %v1478_v47, 0  ;;  %v1202_v40 = vpack.c.b16 %v1111_v42, %v1110_v36  ;;  %v604_v0 = vadd.f32 %v603_v23, %v602_v46 }
  0xd4   : > { %15322 = vst [vmem:[#allocation83_spill] sm:$0xff] %v8667_v12  ;;  %v2326_v49 = vrot.slane %v2324_v6, 1  ;;  %v2353_v58 = vshll.u32 %v8667_v12, 16  ;;  %v852_v18 = vpack.c.bf16 %v393_v16, %v393_v16  ;;  %v853_v29 = vpack.c.bf16 %v394_v57, %v394_v57  ;;  %v398_v12 = vld [vmem:[%s7956_s23 + $0x258] sm:$0xff] }
  0xd5   : > { %v8672_v20 = vsel %vm7933_vm2, 0, %v1481_v14  ;;  %v1490_v19 = vshrl.u32 %v1202_v40, 16  ;;  %v1493_v31 = vshll.u32 %v1202_v40, 16  ;;  %v606_v37 = vadd.f32 %v605_v2, %v604_v0 }
  0xd6   : > { %15323 = vst [vmem:[#allocation84_spill] sm:$0xff] %v8672_v20  ;;  %v2327_v8 = vor.u32 %v2326_v49, %v2322_v54  ;;  %v2346_v47 = vshrl.u32 %v8672_v20, 16  ;;  %v2348_v42 = vshll.u32 %v8672_v20, 16  ;;  %v2355_v36 = vrot.slane %v2353_v58, 1 }
  0xd7   : > { %v1492_v46 = vrot.slane %v1490_v19, 7  ;;  %v1108_v23 = vunpack.c.l.b16 %v852_v18  ;;  %v1109_v6 = vunpack.c.l.b16 %v853_v29  ;;  %v608_v16 = vadd.f32 %v607_v22, %v606_v37 }
  0xd8   : > { %v8679_v57 = vsel %vm1948_vm3, %v2327_v8, %v2331_v34  ;;  %v2350_v14 = vrot.slane %v2348_v42, 1  ;;  %v609_v40 = vsel %vm451_vm4, %v397_v1, 0.0  ;;  %v611_v2 = vsel %vm451_vm4, %v398_v12, 0.0 }
  0xd9   : > { %15324 = vst [vmem:[#allocation85_spill] sm:$0xff] %v8679_v57  ;;  %2743 = vrot.lane.b32.xlu1 %v8679_v57, %s7826_s24  ;;  %v1495_v54 = vor.u32 %v1493_v31, %v1492_v46  ;;  %v8687_v0 = vsel %vm7933_vm2, %v1492_v46, 0  ;;  %v1201_v49 = vpack.c.b16 %v1109_v6, %v1108_v23  ;;  %v610_v22 = vadd.f32 %v609_v40, %v608_v16  ;;  %v401_v31 = vld [vmem:[%s7956_s23 + $0x270] sm:$0xff]  ;;  %v402_v23 = vld [vmem:[%s7956_s23 + $0x278] sm:$0xff] }
  0xda   : > { %15325 = vst [vmem:[#allocation86_spill] sm:$0xff] %v8687_v0  ;;  %v2351_v58 = vor.u32 %v2350_v14, %v2346_v47  ;;  %v2377_v8 = vshll.u32 %v8687_v0, 16  ;;  %v856_v34 = vpack.c.bf16 %v397_v1, %v397_v1  ;;  %v857_v18 = vpack.c.bf16 %v398_v12, %v398_v12 }
  0xdb   : > { %v8692_v29 = vsel %vm7933_vm2, 0, %v1495_v54  ;;  %v1483_v19 = vshrl.u32 %v1201_v49, 16  ;;  %v1486_v37 = vshll.u32 %v1201_v49, 16  ;;  %v612_v42 = vadd.f32 %v611_v2, %v610_v22 }
  0xdc   : > { %15326 = vst [vmem:[#allocation87_spill] sm:$0xff] %v8692_v29  ;;  %v8696_v57 = vsel %vm1948_vm3, %v2351_v58, %v2355_v36  ;;  %v2370_v46 = vshrl.u32 %v8692_v29, 16  ;;  %v2372_v47 = vshll.u32 %v8692_v29, 16  ;;  %v1112_v12 = vunpack.c.l.b16 %v856_v34  ;;  %v399_v58 = vld [vmem:[%s7956_s23 + $0x260] sm:$0xff] }
  0xdd   : > { %15327 = vst [vmem:[#allocation88_spill] sm:$0xff] %v8696_v57  ;;  %2747 = vrot.lane.b32.xlu0 %v8696_v57, %s7826_s24  ;;  %v1485_v1 = vrot.slane %v1483_v19, 7  ;;  %v1113_v6 = vunpack.c.l.b16 %v857_v18  ;;  %v2379_v14 = vrot.slane %v2377_v8, 1  ;;  %v617_v40 = vsel %vm451_vm4, %v401_v31, 0.0 }
  0xde   : > { %v2374_v16 = vrot.slane %v2372_v47, 1  ;;  %v860_v2 = vpack.c.bf16 %v401_v31, %v401_v31  ;;  %v861_v22 = vpack.c.bf16 %v402_v23, %v402_v23  ;;  %v613_v34 = vsel %vm451_vm4, %v399_v58, 0.0  ;;  %v400_v47 = vld [vmem:[%s7956_s23 + $0x268] sm:$0xff] }
  0xdf   : > { %v1488_v36 = vor.u32 %v1486_v37, %v1485_v1  ;;  %v8706_v54 = vsel %vm7933_vm2, %v1485_v1, 0  ;;  %v1203_v49 = vpack.c.b16 %v1113_v6, %v1112_v12  ;;  %v619_v6 = vsel %vm451_vm4, %v402_v23, 0.0 }
  0xe0   : > { %15328 = vst [vmem:[#allocation89_spill] sm:$0xff] %v8706_v54  ;;  %v2375_v0 = vor.u32 %v2374_v16, %v2370_v46  ;;  %v2365_v57 = vshll.u32 %v8706_v54, 16  ;;  %v1116_v19 = vunpack.c.l.b16 %v860_v2  ;;  %v1117_v37 = vunpack.c.l.b16 %v861_v22 }
  0xe1   : > { %v8713_v8 = vsel %vm7933_vm2, 0, %v1488_v36  ;;  %v1497_v18 = vshrl.u32 %v1203_v49, 16  ;;  %v1500_v31 = vshll.u32 %v1203_v49, 16  ;;  %v614_v36 = vadd.f32 %v613_v34, %v612_v42  ;;  %v403_v42 = vld [vmem:[%s7956_s23 + $0x280] sm:$0xff] }
  0xe2   : > { %15329 = vst [vmem:[#allocation90_spill] sm:$0xff] %v8713_v8  ;;  %v8717_v1 = vsel %vm1948_vm3, %v2375_v0, %v2379_v14  ;;  %v2358_v12 = vshrl.u32 %v8713_v8, 16  ;;  %v2360_v46 = vshll.u32 %v8713_v8, 16  ;;  %v1205_v2 = vpack.c.b16 %v1117_v37, %v1116_v19  ;;  %v404_v37 = vld [vmem:[%s7956_s23 + $0x288] sm:$0xff] }
  0xe3   : > { %15330 = vst [vmem:[#allocation91_spill] sm:$0xff] %v8717_v1  ;;  %2751 = vrot.lane.b32.xlu2 %v8717_v1, %s7826_s24  ;;  %v1499_v16 = vrot.slane %v1497_v18, 7  ;;  %v615_v49 = vsel %vm451_vm4, %v400_v47, 0.0  ;;  %v2367_v29 = vrot.slane %v2365_v57, 1  ;;  %v858_v0 = vpack.c.bf16 %v399_v58, %v399_v58 }
  0xe4   : > { %v2362_v22 = vrot.slane %v2360_v46, 1  ;;  %v859_v14 = vpack.c.bf16 %v400_v47, %v400_v47  ;;  %v1511_v23 = vshrl.u32 %v1205_v2, 16  ;;  %v1514_v8 = vshll.u32 %v1205_v2, 16 }
  0xe5   : > { %v1502_v20 = vor.u32 %v1500_v31, %v1499_v16  ;;  %v8727_v54 = vsel %vm7933_vm2, %v1499_v16, 0  ;;  %v616_v1 = vadd.f32 %v615_v49, %v614_v36  ;;  %v1114_v19 = vunpack.c.l.b16 %v858_v0 }
  0xe6   : > { %15331 = vst [vmem:[#allocation92_spill] sm:$0xff] %v8727_v54  ;;  %v2363_v55 = vor.u32 %v2362_v22, %v2358_v12  ;;  %v2389_v18 = vshll.u32 %v8727_v54, 16  ;;  %v1513_v57 = vrot.slane %v1511_v23, 7  ;;  %v1115_v58 = vunpack.c.l.b16 %v859_v14 }
  0xe7   : > { %v8733_v34 = vsel %vm7933_vm2, 0, %v1502_v20  ;;  %v621_v31 = vsel %vm451_vm4, %v403_v42, 0.0  ;;  %v618_v36 = vadd.f32 %v617_v40, %v616_v1  ;;  %v863_v0 = vpack.c.bf16 %v404_v37, %v404_v37 }
  0xe8   : > { %15332 = vst [vmem:[#allocation93_spill] sm:$0xff] %v8733_v34  ;;  %v8738_v47 = vsel %vm1948_vm3, %v2363_v55, %v2367_v29  ;;  %v2382_v46 = vshrl.u32 %v8733_v34, 16  ;;  %v2384_v12 = vshll.u32 %v8733_v34, 16  ;;  %v2391_v16 = vrot.slane %v2389_v18, 1 }
  0xe9   : > { %15333 = vst [vmem:[#allocation94_spill] sm:$0xff] %v8738_v47  ;;  %2749 = vrot.lane.b32.xlu1 %v8738_v47, %s7826_s24  ;;  %v1516_v2 = vor.u32 %v1514_v8, %v1513_v57  ;;  %v8746_v20 = vsel %vm7933_vm2, %v1513_v57, 0  ;;  %v1204_v49 = vpack.c.b16 %v1115_v58, %v1114_v19  ;;  %v862_v29 = vpack.c.bf16 %v403_v42, %v403_v42 }
  0xea   : > { %15334 = vst [vmem:[#allocation95_spill] sm:$0xff] %v8746_v20  ;;  %v2386_v22 = vrot.slane %v2384_v12, 1  ;;  %v2413_v55 = vshll.u32 %v8746_v20, 16  ;;  %v620_v8 = vadd.f32 %v619_v6, %v618_v36  ;;  %v623_v1 = vsel %vm451_vm4, %v404_v37, 0.0  ;;  %v407_v20 = vld [vmem:[%s7956_s23 + $0x2a0] sm:$0xff] }
  0xeb   : > { %v8751_v14 = vsel %vm7933_vm2, 0, %v1516_v2  ;;  %v1504_v23 = vshrl.u32 %v1204_v49, 16  ;;  %v1507_v18 = vshll.u32 %v1204_v49, 16  ;;  %v1118_v12 = vunpack.c.l.b16 %v862_v29  ;;  %v408_v49 = vld [vmem:[%s7956_s23 + $0x2a8] sm:$0xff] }
  0xec   : > { %15335 = vst [vmem:[#allocation96_spill] sm:$0xff] %v8751_v14  ;;  %v2387_v47 = vor.u32 %v2386_v22, %v2382_v46  ;;  %v2406_v57 = vshrl.u32 %v8751_v14, 16  ;;  %v2408_v40 = vshll.u32 %v8751_v14, 16  ;;  %v622_v58 = vadd.f32 %v621_v31, %v620_v8 }
  0xed   : > { %v1506_v19 = vrot.slane %v1504_v23, 7  ;;  %v1119_v42 = vunpack.c.l.b16 %v863_v0  ;;  %v2415_v34 = vrot.slane %v2413_v55, 1  ;;  %v867_v23 = vpack.c.bf16 %v408_v49, %v408_v49 }
  0xee   : > { %v8758_v54 = vsel %vm1948_vm3, %v2387_v47, %v2391_v16  ;;  %v2410_v2 = vrot.slane %v2408_v40, 1  ;;  %v624_v37 = vadd.f32 %v623_v1, %v622_v58  ;;  %v629_v47 = vsel %vm451_vm4, %v407_v20, 0.0 }
  0xef   : > { %15336 = vst [vmem:[#allocation97_spill] sm:$0xff] %v8758_v54  ;;  %2753 = vrot.lane.b32.xlu0 %v8758_v54, %s7826_s24  ;;  %v1509_v6 = vor.u32 %v1507_v18, %v1506_v19  ;;  %v8765_v46 = vsel %vm7933_vm2, %v1506_v19, 0  ;;  %v1206_v31 = vpack.c.b16 %v1119_v42, %v1118_v12  ;;  %v866_v16 = vpack.c.bf16 %v407_v20, %v407_v20  ;;  %v405_v18 = vld [vmem:[%s7956_s23 + $0x290] sm:$0xff]  ;;  %v406_v19 = vld [vmem:[%s7956_s23 + $0x298] sm:$0xff] }
  0xf0   : > { %15337 = vst [vmem:[#allocation98_spill] sm:$0xff] %v8765_v46  ;;  %v2411_v36 = vor.u32 %v2410_v2, %v2406_v57  ;;  %v2401_v22 = vshll.u32 %v8765_v46, 16  ;;  %v1123_v12 = vunpack.c.l.b16 %v867_v23  ;;  %v625_v42 = vsel %vm451_vm4, %v405_v18, 0.0 }
  0xf1   : > { %v8771_v55 = vsel %vm7933_vm2, 0, %v1509_v6  ;;  %v1518_v29 = vshrl.u32 %v1206_v31, 16  ;;  %v1521_v0 = vshll.u32 %v1206_v31, 16  ;;  %v1122_v58 = vunpack.c.l.b16 %v866_v16 }
  0xf2   : > { %15338 = vst [vmem:[#allocation99_spill] sm:$0xff] %v8771_v55  ;;  %v8775_v8 = vsel %vm1948_vm3, %v2411_v36, %v2415_v34  ;;  %v2394_v40 = vshrl.u32 %v8771_v55, 16  ;;  %v2396_v57 = vshll.u32 %v8771_v55, 16  ;;  %v2403_v1 = vrot.slane %v2401_v22, 1 }
  0xf3   : > { %15339 = vst [vmem:[#allocation100_spill] sm:$0xff] %v8775_v8  ;;  %2757 = vrot.lane.b32.xlu2 %v8775_v8, %s7826_s24  ;;  %v1520_v20 = vrot.slane %v1518_v29, 7  ;;  %v626_v6 = vadd.f32 %v625_v42, %v624_v37  ;;  %v627_v34 = vsel %vm451_vm4, %v406_v19, 0.0  ;;  %v864_v31 = vpack.c.bf16 %v405_v18, %v405_v18  ;;  %v409_v18 = vld [vmem:[%s7956_s23 + $0x2b0] sm:$0xff] }
  0xf4   : > { %v2398_v2 = vrot.slane %v2396_v57, 1  ;;  %v1208_v54 = vpack.c.b16 %v1123_v12, %v1122_v58  ;;  %v865_v14 = vpack.c.bf16 %v406_v19, %v406_v19  ;;  %v631_v19 = vsel %vm451_vm4, %v408_v49, 0.0 }
  0xf5   : > { %v1523_v36 = vor.u32 %v1521_v0, %v1520_v20  ;;  %v8786_v22 = vsel %vm7933_vm2, %v1520_v20, 0  ;;  %v628_v29 = vadd.f32 %v627_v34, %v626_v6  ;;  %v1120_v23 = vunpack.c.l.b16 %v864_v31  ;;  %v410_v0 = vld [vmem:[%s7956_s23 + $0x2b8] sm:$0xff] }
  0xf6   : > { %15340 = vst [vmem:[#allocation101_spill] sm:$0xff] %v8786_v22  ;;  %v2399_v8 = vor.u32 %v2398_v2, %v2394_v40  ;;  %v2425_v16 = vshll.u32 %v8786_v22, 16  ;;  %v1532_v37 = vshrl.u32 %v1208_v54, 16  ;;  %v1535_v42 = vshll.u32 %v1208_v54, 16 }
  0xf7   : > { %v8791_v57 = vsel %vm7933_vm2, 0, %v1523_v36  ;;  %v1121_v46 = vunpack.c.l.b16 %v865_v14  ;;  %v630_v2 = vadd.f32 %v629_v47, %v628_v29  ;;  %v633_v14 = vsel %vm451_vm4, %v409_v18, 0.0 }
  0xf8   : > { %15341 = vst [vmem:[#allocation102_spill] sm:$0xff] %v8791_v57  ;;  %v8796_v55 = vsel %vm1948_vm3, %v2399_v8, %v2403_v1  ;;  %v2418_v20 = vshrl.u32 %v8791_v57, 16  ;;  %v2420_v40 = vshll.u32 %v8791_v57, 16  ;;  %v2427_v58 = vrot.slane %v2425_v16, 1 }
  0xf9   : > { %15342 = vst [vmem:[#allocation103_spill] sm:$0xff] %v8796_v55  ;;  %2755 = vrot.lane.b32.xlu1 %v8796_v55, %s7826_s24  ;;  %v1534_v12 = vrot.slane %v1532_v37, 7  ;;  %v1207_v6 = vpack.c.b16 %v1121_v46, %v1120_v23  ;;  %v868_v34 = vpack.c.bf16 %v409_v18, %v409_v18  ;;  %v869_v31 = vpack.c.bf16 %v410_v0, %v410_v0 }
  0xfa   : > { %v2422_v54 = vrot.slane %v2420_v40, 1  ;;  %v632_v55 = vadd.f32 %v631_v19, %v630_v2  ;;  %v635_v18 = vsel %vm451_vm4, %v410_v0, 0.0 }
  0xfb   : > { %v1537_v8 = vor.u32 %v1535_v42, %v1534_v12  ;;  %v8806_v1 = vsel %vm7933_vm2, %v1534_v12, 0  ;;  %v1525_v36 = vshrl.u32 %v1207_v6, 16  ;;  %v1528_v22 = vshll.u32 %v1207_v6, 16 }
  0xfc   : > { %15343 = vst [vmem:[#allocation104_spill] sm:$0xff] %v8806_v1  ;;  %v2423_v49 = vor.u32 %v2422_v54, %v2418_v20  ;;  %v2449_v57 = vshll.u32 %v8806_v1, 16  ;;  %v1124_v16 = vunpack.c.l.b16 %v868_v34  ;;  %v1125_v29 = vunpack.c.l.b16 %v869_v31  ;;  %v413_v54 = vld [vmem:[%s7956_s23 + $0x2d0] sm:$0xff]  ;;  %v414_v34 = vld [vmem:[%s7956_s23 + $0x2d8] sm:$0xff] }
  0xfd   : > { %v8811_v46 = vsel %vm7933_vm2, 0, %v1537_v8  ;;  %v1527_v47 = vrot.slane %v1525_v36, 7  ;;  %v634_v19 = vadd.f32 %v633_v14, %v632_v55 }
  0xfe   : > { %15344 = vst [vmem:[#allocation105_spill] sm:$0xff] %v8811_v46  ;;  %v8814_v23 = vsel %vm1948_vm3, %v2423_v49, %v2427_v58  ;;  %v2442_v37 = vshrl.u32 %v8811_v46, 16  ;;  %v2444_v42 = vshll.u32 %v8811_v46, 16  ;;  %v1209_v12 = vpack.c.b16 %v1125_v29, %v1124_v16  ;;  %v411_v29 = vld [vmem:[%s7956_s23 + $0x2c0] sm:$0xff] }
  0xff   : > { %15345 = vst [vmem:[#allocation106_spill] sm:$0xff] %v8814_v23  ;;  %2759 = vrot.lane.b32.xlu0 %v8814_v23, %s7826_s24  ;;  %v1530_v20 = vor.u32 %v1528_v22, %v1527_v47  ;;  %v8823_v40 = vsel %vm7933_vm2, %v1527_v47, 0  ;;  %v2451_v58 = vrot.slane %v2449_v57, 1  ;;  %v636_v31 = vadd.f32 %v635_v18, %v634_v19 }
 0x100   : > { %15346 = vst [vmem:[#allocation107_spill] sm:$0xff] %v8823_v40  ;;  %v2446_v2 = vrot.slane %v2444_v42, 1  ;;  %v2437_v6 = vshll.u32 %v8823_v40, 16  ;;  %v1539_v22 = vshrl.u32 %v1209_v12, 16  ;;  %v1542_v8 = vshll.u32 %v1209_v12, 16  ;;  %v412_v42 = vld [vmem:[%s7956_s23 + $0x2c8] sm:$0xff] }
 0x101   : > { %v8830_v0 = vsel %vm7933_vm2, 0, %v1530_v20  ;;  %v872_v57 = vpack.c.bf16 %v413_v54, %v413_v54  ;;  %v873_v47 = vpack.c.bf16 %v414_v34, %v414_v34  ;;  %v637_v18 = vsel %vm451_vm4, %v411_v29, 0.0  ;;  %v415_v40 = vld [vmem:[%s7956_s23 + $0x2e0] sm:$0xff] }
 0x102   : > { %15347 = vst [vmem:[#allocation108_spill] sm:$0xff] %v8830_v0  ;;  %v2447_v36 = vor.u32 %v2446_v2, %v2442_v37  ;;  %v2430_v49 = vshrl.u32 %v8830_v0, 16  ;;  %v2432_v55 = vshll.u32 %v8830_v0, 16  ;;  %v2439_v14 = vrot.slane %v2437_v6, 1 }
 0x103   : > { %v1541_v16 = vrot.slane %v1539_v22, 7  ;;  %v639_v20 = vsel %vm451_vm4, %v412_v42, 0.0  ;;  %v1128_v12 = vunpack.c.l.b16 %v872_v57  ;;  %v1129_v2 = vunpack.c.l.b16 %v873_v47  ;;  %v8861_v47 = vpop.permute.xlu2 %2689 }
 0x104   : > { %v8837_v23 = vsel %vm1948_vm3, %v2447_v36, %v2451_v58  ;;  %v2434_v1 = vrot.slane %v2432_v55, 1  ;;  %v638_v22 = vadd.f32 %v637_v18, %v636_v31  ;;  %v870_v36 = vpack.c.bf16 %v411_v29, %v411_v29  ;;  %v416_v31 = vld [vmem:[%s7956_s23 + $0x2e8] sm:$0xff]  ;;  %15352 = vst [vmem:[#allocation113_spill] sm:$0xff] %v8861_v47 }
 0x105   : > { %15348 = vst [vmem:[#allocation109_spill] sm:$0xff] %v8837_v23  ;;  %2763 = vrot.lane.b32.xlu2 %v8837_v23, %s7826_s24  ;;  %v1544_v37 = vor.u32 %v1542_v8, %v1541_v16  ;;  %v8845_v19 = vsel %vm7933_vm2, %v1541_v16, 0  ;;  %v641_v46 = vsel %vm451_vm4, %v413_v54, 0.0  ;;  %v1211_v23 = vpack.c.b16 %v1129_v2, %v1128_v12 }
 0x106   : > { %15349 = vst [vmem:[#allocation110_spill] sm:$0xff] %v8845_v19  ;;  %v2435_v6 = vor.u32 %v2434_v1, %v2430_v49  ;;  %v2461_v58 = vshll.u32 %v8845_v19, 16  ;;  %v871_v8 = vpack.c.bf16 %v412_v42, %v412_v42  ;;  %v643_v49 = vsel %vm451_vm4, %v414_v34, 0.0 }
 0x107   : > { %v8850_v55 = vsel %vm7933_vm2, 0, %v1544_v37  ;;  %v1553_v29 = vshrl.u32 %v1211_v23, 16  ;;  %v1556_v54 = vshll.u32 %v1211_v23, 16  ;;  %v640_v18 = vadd.f32 %v639_v20, %v638_v22 }
 0x108   : > { %15350 = vst [vmem:[#allocation111_spill] sm:$0xff] %v8850_v55  ;;  %v8855_v16 = vsel %vm1948_vm3, %v2435_v6, %v2439_v14  ;;  %v2454_v57 = vshrl.u32 %v8850_v55, 16  ;;  %v2456_v1 = vshll.u32 %v8850_v55, 16  ;;  %v1126_v42 = vunpack.c.l.b16 %v870_v36 }
 0x109   : > { %15351 = vst [vmem:[#allocation112_spill] sm:$0xff] %v8855_v16  ;;  %2761 = vrot.lane.b32.xlu1 %v8855_v16, %s7826_s24  ;;  %v2463_v12 = vrot.slane %v2461_v58, 1  ;;  %v1127_v14 = vunpack.c.l.b16 %v871_v8  ;;  %v874_v2 = vpack.c.bf16 %v415_v40, %v415_v40  ;;  %v1555_v6 = vrot.slane %v1553_v29, 7  ;;  %v421_v29 = vld [vmem:[%s7956_s23 + $0x310] sm:$0xff] }
 0x10a   : > { %v2458_v37 = vrot.slane %v2456_v1, 1  ;;  %v642_v19 = vadd.f32 %v641_v46, %v640_v18  ;;  %v645_v55 = vsel %vm451_vm4, %v415_v40, 0.0  ;;  %v875_v0 = vpack.c.bf16 %v416_v31, %v416_v31 }
 0x10b   : > { %v1210_v43 = vpack.c.b16 %v1127_v14, %v1126_v42  ;;  %v647_v47 = vsel %vm451_vm4, %v416_v31, 0.0  ;;  %v1130_v51 = vunpack.c.l.b16 %v874_v2  ;;  %v1558_v48 = vor.u32 %v1556_v54, %v1555_v6  ;;  %v422_v54 = vld [vmem:[%s7956_s23 + $0x318] sm:$0xff]  ;;  %v8893_v14 = vpop.permute.xlu2 %2691 }
 0x10c   : > { %v2459_v34 = vor.u32 %v2458_v37, %v2454_v57  ;;  %v8869_v23 = vsel %vm7933_vm2, %v1555_v6, 0  ;;  %v644_v20 = vadd.f32 %v643_v49, %v642_v19  ;;  %v1131_v58 = vunpack.c.l.b16 %v875_v0  ;;  %15358 = vst [vmem:[#allocation119_spill] sm:$0xff] %v8893_v14 }
 0x10d   : > { %15353 = vst [vmem:[#allocation114_spill] sm:$0xff] %v8869_v23  ;;  %v2485_v46 = vshll.u32 %v8869_v23, 16  ;;  %v1546_v40 = vshrl.u32 %v1210_v43, 16  ;;  %v1549_v36 = vshll.u32 %v1210_v43, 16  ;;  %v8879_v8 = vsel %vm7933_vm2, 0, %v1558_v48 }
 0x10e   : > { %v8872_v22 = vsel %vm1948_vm3, %v2459_v34, %v2463_v12  ;;  %15355 = vst [vmem:[#allocation116_spill] sm:$0xff] %v8879_v8  ;;  %v646_v57 = vadd.f32 %v645_v55, %v644_v20  ;;  %v1212_v1 = vpack.c.b16 %v1131_v58, %v1130_v51  ;;  %v2478_v31 = vshrl.u32 %v8879_v8, 16  ;;  %v419_v20 = vld [vmem:[%s7956_s23 + $0x300] sm:$0xff]  ;;  %v420_v58 = vld [vmem:[%s7956_s23 + $0x308] sm:$0xff] }
 0x10f   : > { %15354 = vst [vmem:[#allocation115_spill] sm:$0xff] %v8872_v22  ;;  %2765 = vrot.lane.b32.xlu0 %v8872_v22, %s7826_s24  ;;  %v2480_v0 = vshll.u32 %v8879_v8, 16  ;;  %v2487_v19 = vrot.slane %v2485_v46, 1  ;;  %v1548_v49 = vrot.slane %v1546_v40, 7  ;;  %v662_v37 = vsel %vm451_vm4, %v421_v29, 0.0 }
 0x110   : > { %v8885_v43 = vadd.f32 %v647_v47, %v646_v57  ;;  %v1560_v18 = vshrl.u32 %v1212_v1, 16  ;;  %v1563_v42 = vshll.u32 %v1212_v1, 16  ;;  %v664_v55 = vsel %vm451_vm4, %v422_v54, 0.0 }
 0x111   : > { %v2482_v48 = vrot.slane %v2480_v0, 1  ;;  %v1551_v12 = vor.u32 %v1549_v36, %v1548_v49  ;;  %v8890_v51 = vsel %vm7933_vm2, %v1548_v49, 0  ;;  %v880_v34 = vpack.c.bf16 %v421_v29, %v421_v29 }
 0x112   : > { %15356 = vst [vmem:[#allocation117_spill] sm:$0xff] %v8885_v43  ;;  %v2473_v2 = vshll.u32 %v8890_v51, 16  ;;  %v1562_v6 = vrot.slane %v1560_v18, 7  ;;  %v881_v47 = vpack.c.bf16 %v422_v54, %v422_v54  ;;  %v659_v36 = vsel %vm451_vm4, %v419_v20, 0.0 }
 0x113   : > { %15357 = vst [vmem:[#allocation118_spill] sm:$0xff] %v8890_v51  ;;  %v2483_v46 = vor.u32 %v2482_v48, %v2478_v31  ;;  %v8900_v40 = vsel %vm7933_vm2, 0, %v1551_v12  ;;  %v660_v57 = vsel %vm451_vm4, %v420_v58, 0.0  ;;  %v1136_v54 = vunpack.c.l.b16 %v880_v34  ;;  %v424_v51 = vld [vmem:[%s7956_s23 + $0x328] sm:$0xff] }
 0x114   : > { %15359 = vst [vmem:[#allocation120_spill] sm:$0xff] %v8900_v40  ;;  %v2466_v1 = vshrl.u32 %v8900_v40, 16  ;;  %v2468_v0 = vshll.u32 %v8900_v40, 16  ;;  %v2475_v49 = vrot.slane %v2473_v2, 1  ;;  %v1565_v14 = vor.u32 %v1563_v42, %v1562_v6 }
 0x115   : > { %v8907_v29 = vsel %vm1948_vm3, %v2483_v46, %v2487_v19  ;;  %v8911_v31 = vsel %vm7933_vm2, %v1562_v6, 0  ;;  %v1137_v18 = vunpack.c.l.b16 %v881_v47  ;;  %v661_v19 = vadd.f32 %v660_v57, %v659_v36 }
 0x116   : > { %15360 = vst [vmem:[#allocation121_spill] sm:$0xff] %v8907_v29  ;;  %2769 = vrot.lane.b32.xlu2 %v8907_v29, %s7826_s24  ;;  %v2470_v48 = vrot.slane %v2468_v0, 1  ;;  %v8917_v12 = vsel %vm7933_vm2, 0, %v1565_v14  ;;  %v2497_v42 = vshll.u32 %v8911_v31, 16  ;;  %v878_v22 = vpack.c.bf16 %v419_v20, %v419_v20  ;;  %v423_v29 = vld [vmem:[%s7956_s23 + $0x320] sm:$0xff] }
 0x117   : > { %15361 = vst [vmem:[#allocation122_spill] sm:$0xff] %v8911_v31  ;;  %v2490_v2 = vshrl.u32 %v8917_v12, 16  ;;  %v2492_v6 = vshll.u32 %v8917_v12, 16  ;;  %v1215_v46 = vpack.c.b16 %v1137_v18, %v1136_v54  ;;  %v663_v16 = vadd.f32 %v662_v37, %v661_v19  ;;  %v8931_v54 = vpop.permute.xlu2 %2697 }
 0x118   : > { %15362 = vst [vmem:[#allocation123_spill] sm:$0xff] %v8917_v12  ;;  %v2471_v34 = vor.u32 %v2470_v48, %v2466_v1  ;;  %v2499_v47 = vrot.slane %v2497_v42, 1  ;;  %v879_v43 = vpack.c.bf16 %v420_v58, %v420_v58  ;;  %v1134_v14 = vunpack.c.l.b16 %v878_v22 }
 0x119   : > { %v2494_v0 = vrot.slane %v2492_v6, 1  ;;  %v1581_v23 = vshrl.u32 %v1215_v46, 16  ;;  %v1584_v8 = vshll.u32 %v1215_v46, 16  ;;  %v665_v57 = vadd.f32 %v664_v55, %v663_v16  ;;  %15364 = vst [vmem:[#allocation125_spill] sm:$0xff] %v8931_v54  ;;  %v8949_v6 = vpop.permute.xlu0 %2681  ;;  %v425_v54 = vld [vmem:[%s7956_s23 + $0x330] sm:$0xff] }
 0x11a   : > { %v8925_v40 = vsel %vm1948_vm3, %v2471_v34, %v2475_v49  ;;  %v1135_v36 = vunpack.c.l.b16 %v879_v43  ;;  %v666_v31 = vsel %vm451_vm4, %v423_v29, 0.0  ;;  %v668_v37 = vsel %vm451_vm4, %v424_v51, 0.0  ;;  %15368 = vst [vmem:[#allocation129_spill] sm:$0xff] %v8949_v6 }
 0x11b   : > { %15363 = vst [vmem:[#allocation124_spill] sm:$0xff] %v8925_v40  ;;  %2767 = vrot.lane.b32.xlu1 %v8925_v40, %s7826_s24  ;;  %v2495_v20 = vor.u32 %v2494_v0, %v2490_v2  ;;  %v1583_v1 = vrot.slane %v1581_v23, 7  ;;  %v882_v58 = vpack.c.bf16 %v423_v29, %v423_v29  ;;  %v667_v18 = vadd.f32 %v666_v31, %v665_v57  ;;  %v427_v2 = vld [vmem:[%s7956_s23 + $0x340] sm:$0xff] }
 0x11c   : > { %v1214_v22 = vpack.c.b16 %v1135_v36, %v1134_v14  ;;  %v883_v49 = vpack.c.bf16 %v424_v51, %v424_v51  ;;  %v674_v36 = vsel %vm451_vm4, %v427_v2, 0.0  ;;  %v886_v57 = vpack.c.bf16 %v427_v2, %v427_v2  ;;  %v8965_v2 = vpop.permute.xlu1 %2685 }
 0x11d   : > { %v8934_v43 = vsel %vm1948_vm3, %v2495_v20, %v2499_v47  ;;  %v1586_v16 = vor.u32 %v1584_v8, %v1583_v1  ;;  %v8938_v55 = vsel %vm7933_vm2, %v1583_v1, 0  ;;  %v1138_v48 = vunpack.c.l.b16 %v882_v58  ;;  %v428_v8 = vld [vmem:[%s7956_s23 + $0x348] sm:$0xff]  ;;  %15371 = vst [vmem:[#allocation132_spill] sm:$0xff] %v8965_v2 }
 0x11e   : > { %15365 = vst [vmem:[#allocation126_spill] sm:$0xff] %v8934_v43  ;;  %2771 = vrot.lane.b32.xlu0 %v8934_v43, %s7826_s24  ;;  %v2521_v23 = vshll.u32 %v8938_v55, 16  ;;  %v1574_v29 = vshrl.u32 %v1214_v22, 16  ;;  %v1577_v42 = vshll.u32 %v1214_v22, 16  ;;  %v669_v19 = vadd.f32 %v668_v37, %v667_v18  ;;  %v426_v43 = vld [vmem:[%s7956_s23 + $0x338] sm:$0xff] }
 0x11f   : > { %15366 = vst [vmem:[#allocation127_spill] sm:$0xff] %v8938_v55  ;;  %v8946_v51 = vsel %vm7933_vm2, 0, %v1586_v16  ;;  %v1139_v31 = vunpack.c.l.b16 %v883_v49  ;;  %v887_v58 = vpack.c.bf16 %v428_v8, %v428_v8  ;;  %v1142_v16 = vunpack.c.l.b16 %v886_v57 }
 0x120   : > { %15367 = vst [vmem:[#allocation128_spill] sm:$0xff] %v8946_v51  ;;  %v2514_v46 = vshrl.u32 %v8946_v51, 16  ;;  %v2516_v34 = vshll.u32 %v8946_v51, 16  ;;  %v1576_v47 = vrot.slane %v1574_v29, 7  ;;  %v2523_v0 = vrot.slane %v2521_v23, 1 }
 0x121   : > { %v1216_v14 = vpack.c.b16 %v1139_v31, %v1138_v48  ;;  %v1143_v23 = vunpack.c.l.b16 %v887_v58 }
 0x122   : > { %v2518_v20 = vrot.slane %v2516_v34, 1  ;;  %v1579_v1 = vor.u32 %v1577_v42, %v1576_v47  ;;  %v8956_v37 = vsel %vm7933_vm2, %v1576_v47, 0  ;;  %v670_v42 = vsel %vm451_vm4, %v425_v54, 0.0 }
 0x123   : > { %15369 = vst [vmem:[#allocation130_spill] sm:$0xff] %v8956_v37  ;;  %v2509_v22 = vshll.u32 %v8956_v37, 16  ;;  %v1588_v18 = vshrl.u32 %v1216_v14, 16  ;;  %v1591_v49 = vshll.u32 %v1216_v14, 16  ;;  %v8970_v14 = vpop.permute.xlu2 %2703  ;;  %v1218_v57 = vpack.c.b16 %v1143_v23, %v1142_v16 }
 0x124   : > { %v2519_v29 = vor.u32 %v2518_v20, %v2514_v46  ;;  %v8962_v48 = vsel %vm7933_vm2, 0, %v1579_v1  ;;  %15372 = vst [vmem:[#allocation133_spill] sm:$0xff] %v8970_v14  ;;  %v671_v20 = vadd.f32 %v670_v42, %v669_v19  ;;  %v672_v1 = vsel %vm451_vm4, %v426_v43, 0.0 }
 0x125   : > { %15370 = vst [vmem:[#allocation131_spill] sm:$0xff] %v8962_v48  ;;  %v2502_v31 = vshrl.u32 %v8962_v48, 16  ;;  %v2504_v34 = vshll.u32 %v8962_v48, 16  ;;  %v2511_v47 = vrot.slane %v2509_v22, 1  ;;  %v1590_v6 = vrot.slane %v1588_v18, 7 }
 0x126   : > { %v8973_v46 = vsel %vm1948_vm3, %v2519_v29, %v2523_v0  ;;  %v884_v18 = vpack.c.bf16 %v425_v54, %v425_v54  ;;  %v1602_v40 = vshrl.u32 %v1218_v57, 16  ;;  %v1605_v0 = vshll.u32 %v1218_v57, 16 }
 0x127   : > { %15373 = vst [vmem:[#allocation134_spill] sm:$0xff] %v8973_v46  ;;  %2775 = vrot.lane.b32.xlu2 %v8973_v46, %s7826_s24  ;;  %v2506_v58 = vrot.slane %v2504_v34, 1  ;;  %v1593_v2 = vor.u32 %v1591_v49, %v1590_v6  ;;  %v8980_v22 = vsel %vm7933_vm2, %v1590_v6, 0  ;;  %v673_v16 = vadd.f32 %v672_v1, %v671_v20  ;;  %v8987_v49 = vpop.permute.xlu0 %2683 }
 0x128   : > { %15374 = vst [vmem:[#allocation135_spill] sm:$0xff] %v8980_v22  ;;  %v2533_v14 = vshll.u32 %v8980_v22, 16  ;;  %v885_v23 = vpack.c.bf16 %v426_v43, %v426_v43  ;;  %v1140_v42 = vunpack.c.l.b16 %v884_v18  ;;  %v676_v54 = vsel %vm451_vm4, %v428_v8, 0.0  ;;  %v429_v22 = vld [vmem:[%s7956_s23 + $0x350] sm:$0xff] }
 0x129   : > { %v2507_v19 = vor.u32 %v2506_v58, %v2502_v31  ;;  %v8985_v29 = vsel %vm7933_vm2, 0, %v1593_v2  ;;  %15376 = vst [vmem:[#allocation137_spill] sm:$0xff] %v8987_v49  ;;  %v1604_v46 = vrot.slane %v1602_v40, 7  ;;  %v675_v20 = vadd.f32 %v674_v36, %v673_v16  ;;  %v430_v2 = vld [vmem:[%s7956_s23 + $0x358] sm:$0xff] }
 0x12a   : > { %15375 = vst [vmem:[#allocation136_spill] sm:$0xff] %v8985_v29  ;;  %v2526_v34 = vshrl.u32 %v8985_v29, 16  ;;  %v2528_v6 = vshll.u32 %v8985_v29, 16  ;;  %v2535_v31 = vrot.slane %v2533_v14, 1  ;;  %v1141_v1 = vunpack.c.l.b16 %v885_v23  ;;  %v9009_v23 = vpop.permute.xlu1 %2687 }
 0x12b   : > { %v8994_v57 = vsel %vm1948_vm3, %v2507_v19, %v2511_v47  ;;  %v1607_v58 = vor.u32 %v1605_v0, %v1604_v46  ;;  %v9001_v18 = vsel %vm7933_vm2, %v1604_v46, 0  ;;  %v678_v8 = vsel %vm451_vm4, %v429_v22, 0.0  ;;  %15380 = vst [vmem:[#allocation141_spill] sm:$0xff] %v9009_v23 }
 0x12c   : > { %15377 = vst [vmem:[#allocation138_spill] sm:$0xff] %v8994_v57  ;;  %2773 = vrot.lane.b32.xlu1 %v8994_v57, %s7826_s24  ;;  %v2530_v43 = vrot.slane %v2528_v6, 1  ;;  %v2557_v40 = vshll.u32 %v9001_v18, 16  ;;  %v1217_v49 = vpack.c.b16 %v1141_v1, %v1140_v42  ;;  %v677_v47 = vadd.f32 %v676_v54, %v675_v20 }
 0x12d   : > { %15378 = vst [vmem:[#allocation139_spill] sm:$0xff] %v9001_v18  ;;  %v888_v19 = vpack.c.bf16 %v429_v22, %v429_v22  ;;  %v9007_v36 = vsel %vm7933_vm2, 0, %v1607_v58  ;;  %v889_v16 = vpack.c.bf16 %v430_v2, %v430_v2  ;;  %v680_v57 = vsel %vm451_vm4, %v430_v2, 0.0  ;;  %v9017_v22 = vpop.permute.xlu2 %2709  ;;  %v433_v18 = vld [vmem:[%s7956_s23 + $0x370] sm:$0xff] }
 0x12e   : > { %v2531_v14 = vor.u32 %v2530_v43, %v2526_v34  ;;  %15379 = vst [vmem:[#allocation140_spill] sm:$0xff] %v9007_v36  ;;  %v2550_v46 = vshrl.u32 %v9007_v36, 16  ;;  %v2552_v0 = vshll.u32 %v9007_v36, 16  ;;  %v1595_v6 = vshrl.u32 %v1217_v49, 16  ;;  %v434_v36 = vld [vmem:[%s7956_s23 + $0x378] sm:$0xff] }
 0x12f   : > { %15382 = vst [vmem:[#allocation143_spill] sm:$0xff] %v9017_v22  ;;  %v1598_v34 = vshll.u32 %v1217_v49, 16  ;;  %v679_v54 = vadd.f32 %v678_v8, %v677_v47  ;;  %v1144_v20 = vunpack.c.l.b16 %v888_v19  ;;  %v2559_v43 = vrot.slane %v2557_v40, 1  ;;  %v431_v47 = vld [vmem:[%s7956_s23 + $0x360] sm:$0xff]  ;;  %v9029_v19 = vpop.permute.xlu0 %2693 }
 0x130   : > { %v9015_v42 = vsel %vm1948_vm3, %v2531_v14, %v2535_v31  ;;  %v2554_v1 = vrot.slane %v2552_v0, 1  ;;  %v1597_v58 = vrot.slane %v1595_v6, 7  ;;  %v1145_v23 = vunpack.c.l.b16 %v889_v16  ;;  %15384 = vst [vmem:[#allocation145_spill] sm:$0xff] %v9029_v19 }
 0x131   : > { %15381 = vst [vmem:[#allocation142_spill] sm:$0xff] %v9015_v42  ;;  %2777 = vrot.lane.b32.xlu0 %v9015_v42, %s7826_s24  ;;  %v681_v29 = vadd.f32 %v680_v57, %v679_v54  ;;  %v686_v31 = vsel %vm451_vm4, %v433_v18, 0.0  ;;  %v892_v0 = vpack.c.bf16 %v433_v18, %v433_v18  ;;  %v893_v16 = vpack.c.bf16 %v434_v36, %v434_v36 }
 0x132   : > { %v2555_v2 = vor.u32 %v2554_v1, %v2550_v46  ;;  %v1600_v14 = vor.u32 %v1598_v34, %v1597_v58  ;;  %v9026_v49 = vsel %vm7933_vm2, %v1597_v58, 0  ;;  %v1219_v8 = vpack.c.b16 %v1145_v23, %v1144_v20  ;;  %v432_v1 = vld [vmem:[%s7956_s23 + $0x368] sm:$0xff] }
 0x133   : > { %15383 = vst [vmem:[#allocation144_spill] sm:$0xff] %v9026_v49  ;;  %v2545_v40 = vshll.u32 %v9026_v49, 16  ;;  %v682_v6 = vsel %vm451_vm4, %v431_v47, 0.0  ;;  %v688_v20 = vsel %vm451_vm4, %v434_v36, 0.0  ;;  %v1148_v58 = vunpack.c.l.b16 %v892_v0  ;;  %v9051_v49 = vpop.permute.xlu1 %2695 }
 0x134   : > { %v9034_v57 = vsel %vm1948_vm3, %v2555_v2, %v2559_v43  ;;  %v9038_v46 = vsel %vm7933_vm2, 0, %v1600_v14  ;;  %v1609_v34 = vshrl.u32 %v1219_v8, 16  ;;  %v1612_v54 = vshll.u32 %v1219_v8, 16  ;;  %15388 = vst [vmem:[#allocation149_spill] sm:$0xff] %v9051_v49 }
 0x135   : > { %15385 = vst [vmem:[#allocation146_spill] sm:$0xff] %v9034_v57  ;;  %2781 = vrot.lane.b32.xlu2 %v9034_v57, %s7826_s24  ;;  %v2538_v23 = vshrl.u32 %v9038_v46, 16  ;;  %v2540_v18 = vshll.u32 %v9038_v46, 16  ;;  %v1149_v43 = vunpack.c.l.b16 %v893_v16  ;;  %v683_v2 = vadd.f32 %v682_v6, %v681_v29  ;;  %v9054_v16 = vpop.permute.xlu2 %2715 }
 0x136   : > { %15386 = vst [vmem:[#allocation147_spill] sm:$0xff] %v9038_v46  ;;  %v1611_v19 = vrot.slane %v1609_v34, 7  ;;  %v684_v22 = vsel %vm451_vm4, %v432_v1, 0.0  ;;  %v2547_v42 = vrot.slane %v2545_v40, 1  ;;  %v890_v55 = vpack.c.bf16 %v431_v47, %v431_v47  ;;  %v436_v46 = vld [vmem:[%s7956_s23 + $0x388] sm:$0xff] }
 0x137   : > { %v2542_v14 = vrot.slane %v2540_v18, 1  ;;  %v891_v8 = vpack.c.bf16 %v432_v1, %v432_v1  ;;  %v1221_v36 = vpack.c.b16 %v1149_v43, %v1148_v58  ;;  %v685_v0 = vadd.f32 %v684_v22, %v683_v2  ;;  %15389 = vst [vmem:[#allocation150_spill] sm:$0xff] %v9054_v16 }
 0x138   : > { %v1614_v51 = vor.u32 %v1612_v54, %v1611_v19  ;;  %v9049_v57 = vsel %vm7933_vm2, %v1611_v19, 0  ;;  %v1146_v6 = vunpack.c.l.b16 %v890_v55  ;;  %v435_v19 = vld [vmem:[%s7956_s23 + $0x380] sm:$0xff] }
 0x139   : > { %15387 = vst [vmem:[#allocation148_spill] sm:$0xff] %v9049_v57  ;;  %v2543_v34 = vor.u32 %v2542_v14, %v2538_v23  ;;  %v2569_v29 = vshll.u32 %v9049_v57, 16  ;;  %v1147_v40 = vunpack.c.l.b16 %v891_v8  ;;  %v1623_v54 = vshrl.u32 %v1221_v36, 16 }
 0x13a   : > { %v9058_v47 = vsel %vm7933_vm2, 0, %v1614_v51  ;;  %v1626_v1 = vshll.u32 %v1221_v36, 16  ;;  %v687_v18 = vadd.f32 %v686_v31, %v685_v0  ;;  %v690_v58 = vsel %vm451_vm4, %v435_v19, 0.0  ;;  %v9070_v31 = vpop.permute.xlu0 %2699 }
 0x13b   : > { %15390 = vst [vmem:[#allocation151_spill] sm:$0xff] %v9058_v47  ;;  %v9063_v49 = vsel %vm1948_vm3, %v2543_v34, %v2547_v42  ;;  %v2562_v22 = vshrl.u32 %v9058_v47, 16  ;;  %v2564_v23 = vshll.u32 %v9058_v47, 16  ;;  %v2571_v55 = vrot.slane %v2569_v29, 1 }
 0x13c   : > { %15391 = vst [vmem:[#allocation152_spill] sm:$0xff] %v9063_v49  ;;  %2779 = vrot.lane.b32.xlu1 %v9063_v49, %s7826_s24  ;;  %v1625_v51 = vrot.slane %v1623_v54, 7  ;;  %v1220_v43 = vpack.c.b16 %v1147_v40, %v1146_v6  ;;  %v689_v2 = vadd.f32 %v688_v20, %v687_v18  ;;  %v692_v8 = vsel %vm451_vm4, %v436_v46, 0.0 }
 0x13d   : > { %v2566_v14 = vrot.slane %v2564_v23, 1  ;;  %15392 = vst [vmem:[#allocation153_spill] sm:$0xff] %v9070_v31  ;;  %v894_v42 = vpack.c.bf16 %v435_v19, %v435_v19  ;;  %v895_v36 = vpack.c.bf16 %v436_v46, %v436_v46  ;;  %v438_v31 = vld [vmem:[%s7956_s23 + $0x398] sm:$0xff] }
 0x13e   : > { %v1628_v0 = vor.u32 %v1626_v1, %v1625_v51  ;;  %v9075_v34 = vsel %vm7933_vm2, %v1625_v51, 0  ;;  %v1616_v16 = vshrl.u32 %v1220_v43, 16  ;;  %v1619_v57 = vshll.u32 %v1220_v43, 16 }
 0x13f   : > { %15393 = vst [vmem:[#allocation154_spill] sm:$0xff] %v9075_v34  ;;  %v2567_v47 = vor.u32 %v2566_v14, %v2562_v22  ;;  %v2593_v29 = vshll.u32 %v9075_v34, 16  ;;  %v691_v54 = vadd.f32 %v690_v58, %v689_v2  ;;  %v1150_v6 = vunpack.c.l.b16 %v894_v42  ;;  %v9096_v2 = vpop.permute.xlu2 %2721  ;;  %v439_v14 = vld [vmem:[%s7956_s23 + $0x3a0] sm:$0xff]  ;;  %v440_v42 = vld [vmem:[%s7956_s23 + $0x3a8] sm:$0xff] }
 0x140   : > { %v9080_v20 = vsel %vm7933_vm2, 0, %v1628_v0  ;;  %v1618_v40 = vrot.slane %v1616_v16, 7  ;;  %v1151_v46 = vunpack.c.l.b16 %v895_v36  ;;  %v9093_v16 = vpop.permute.xlu1 %2701  ;;  %15398 = vst [vmem:[#allocation159_spill] sm:$0xff] %v9096_v2  ;;  %v899_v2 = vpack.c.bf16 %v440_v42, %v440_v42 }
 0x141   : > { %15394 = vst [vmem:[#allocation155_spill] sm:$0xff] %v9080_v20  ;;  %v9083_v1 = vsel %vm1948_vm3, %v2567_v47, %v2571_v55  ;;  %v2586_v18 = vshrl.u32 %v9080_v20, 16  ;;  %v2588_v19 = vshll.u32 %v9080_v20, 16  ;;  %v693_v58 = vadd.f32 %v692_v8, %v691_v54  ;;  %v441_v20 = vld [vmem:[%s7956_s23 + $0x3b0] sm:$0xff] }
 0x142   : > { %15395 = vst [vmem:[#allocation156_spill] sm:$0xff] %v9083_v1  ;;  %2783 = vrot.lane.b32.xlu0 %v9083_v1, %s7826_s24  ;;  %v1621_v22 = vor.u32 %v1619_v57, %v1618_v40  ;;  %v9091_v23 = vsel %vm7933_vm2, %v1618_v40, 0  ;;  %v1222_v51 = vpack.c.b16 %v1151_v46, %v1150_v6  ;;  %v2595_v47 = vrot.slane %v2593_v29, 1  ;;  %v437_v46 = vld [vmem:[%s7956_s23 + $0x390] sm:$0xff] }
 0x143   : > { %15396 = vst [vmem:[#allocation157_spill] sm:$0xff] %v9091_v23  ;;  %v2590_v43 = vrot.slane %v2588_v19, 1  ;;  %v2581_v55 = vshll.u32 %v9091_v23, 16  ;;  %v698_v8 = vsel %vm451_vm4, %v439_v14, 0.0  ;;  %v694_v49 = vsel %vm451_vm4, %v437_v46, 0.0 }
 0x144   : > { %15397 = vst [vmem:[#allocation158_spill] sm:$0xff] %v9093_v16  ;;  %v9102_v57 = vsel %vm7933_vm2, 0, %v1621_v22  ;;  %v1630_v36 = vshrl.u32 %v1222_v51, 16  ;;  %v1633_v0 = vshll.u32 %v1222_v51, 16  ;;  %v898_v16 = vpack.c.bf16 %v439_v14, %v439_v14  ;;  %v9113_v51 = vpop.permute.xlu0 %2705 }
 0x145   : > { %15399 = vst [vmem:[#allocation160_spill] sm:$0xff] %v9102_v57  ;;  %v2591_v54 = vor.u32 %v2590_v43, %v2586_v18  ;;  %v2574_v6 = vshrl.u32 %v9102_v57, 16  ;;  %v2576_v29 = vshll.u32 %v9102_v57, 16  ;;  %v2583_v40 = vrot.slane %v2581_v55, 1 }
 0x146   : > { %v1632_v19 = vrot.slane %v1630_v36, 7  ;;  %15401 = vst [vmem:[#allocation162_spill] sm:$0xff] %v9113_v51  ;;  %v695_v18 = vadd.f32 %v694_v49, %v693_v58  ;;  %v696_v43 = vsel %vm451_vm4, %v438_v31, 0.0  ;;  %v1154_v36 = vunpack.c.l.b16 %v898_v16 }
 0x147   : > { %v9111_v22 = vsel %vm1948_vm3, %v2591_v54, %v2595_v47  ;;  %v2578_v1 = vrot.slane %v2576_v29, 1  ;;  %v1155_v34 = vunpack.c.l.b16 %v899_v2  ;;  %v896_v51 = vpack.c.bf16 %v437_v46, %v437_v46  ;;  %v442_v2 = vld [vmem:[%s7956_s23 + $0x3b8] sm:$0xff] }
 0x148   : > { %15400 = vst [vmem:[#allocation161_spill] sm:$0xff] %v9111_v22  ;;  %2787 = vrot.lane.b32.xlu2 %v9111_v22, %s7826_s24  ;;  %v1635_v55 = vor.u32 %v1633_v0, %v1632_v19  ;;  %v9120_v14 = vsel %vm7933_vm2, %v1632_v19, 0  ;;  %v697_v29 = vadd.f32 %v696_v43, %v695_v18  ;;  %v700_v58 = vsel %vm451_vm4, %v440_v42, 0.0 }
 0x149   : > { %15402 = vst [vmem:[#allocation163_spill] sm:$0xff] %v9120_v14  ;;  %v2579_v47 = vor.u32 %v2578_v1, %v2574_v6  ;;  %v2605_v54 = vshll.u32 %v9120_v14, 16  ;;  %v1224_v22 = vpack.c.b16 %v1155_v34, %v1154_v36  ;;  %v897_v0 = vpack.c.bf16 %v438_v31, %v438_v31  ;;  %v9138_v34 = vpop.permute.xlu1 %2707  ;;  %v9140_v36 = vpop.permute.xlu2 %2727 }
 0x14a   : > { %v9125_v49 = vsel %vm7933_vm2, 0, %v1635_v55  ;;  %v702_v6 = vsel %vm451_vm4, %v441_v20, 0.0  ;;  %v699_v18 = vadd.f32 %v698_v8, %v697_v29  ;;  %v1152_v42 = vunpack.c.l.b16 %v896_v51  ;;  %15405 = vst [vmem:[#allocation166_spill] sm:$0xff] %v9138_v34 }
 0x14b   : > { %15403 = vst [vmem:[#allocation164_spill] sm:$0xff] %v9125_v49  ;;  %v9130_v23 = vsel %vm1948_vm3, %v2579_v47, %v2583_v40  ;;  %v2598_v16 = vshrl.u32 %v9125_v49, 16  ;;  %v2600_v1 = vshll.u32 %v9125_v49, 16  ;;  %v1644_v46 = vshrl.u32 %v1224_v22, 16 }
 0x14c   : > { %15404 = vst [vmem:[#allocation165_spill] sm:$0xff] %v9130_v23  ;;  %2785 = vrot.lane.b32.xlu1 %v9130_v23, %s7826_s24  ;;  %v1647_v19 = vshll.u32 %v1224_v22, 16  ;;  %v2607_v43 = vrot.slane %v2605_v54, 1  ;;  %v1153_v40 = vunpack.c.l.b16 %v897_v0  ;;  %v900_v55 = vpack.c.bf16 %v441_v20, %v441_v20 }
 0x14d   : > { %v2602_v31 = vrot.slane %v2600_v1, 1  ;;  %15406 = vst [vmem:[#allocation167_spill] sm:$0xff] %v9140_v36  ;;  %v1646_v47 = vrot.slane %v1644_v46, 7  ;;  %v701_v14 = vadd.f32 %v700_v58, %v699_v18  ;;  %v901_v49 = vpack.c.bf16 %v442_v2, %v442_v2 }
 0x14e   : > { %v1223_v12 = vpack.c.b16 %v1153_v40, %v1152_v42  ;;  %v704_v23 = vsel %vm451_vm4, %v442_v2, 0.0  ;;  %v1156_v37 = vunpack.c.l.b16 %v900_v55 }
 0x14f   : > { %v2603_v57 = vor.u32 %v2602_v31, %v2598_v16  ;;  %v1649_v22 = vor.u32 %v1647_v19, %v1646_v47  ;;  %v9145_v8 = vsel %vm7933_vm2, %v1646_v47, 0  ;;  %v703_v51 = vadd.f32 %v702_v6, %v701_v14  ;;  %v9151_v16 = vpop.permute.xlu0 %2711  ;;  %v443_v47 = vld [vmem:[%s7956_s23 + $0x3c0] sm:$0xff] }
 0x150   : > { %15407 = vst [vmem:[#allocation168_spill] sm:$0xff] %v9145_v8  ;;  %v1157_v54 = vunpack.c.l.b16 %v901_v49  ;;  %v2629_v29 = vshll.u32 %v9145_v8, 16  ;;  %v1637_v58 = vshrl.u32 %v1223_v12, 16  ;;  %v1640_v0 = vshll.u32 %v1223_v12, 16  ;;  %v445_v49 = vld [vmem:[%s7956_s23 + $0x3d0] sm:$0xff]  ;;  %v446_v12 = vld [vmem:[%s7956_s23 + $0x3d8] sm:$0xff] }
 0x151   : > { %v9148_v20 = vsel %vm1948_vm3, %v2603_v57, %v2607_v43  ;;  %15409 = vst [vmem:[#allocation170_spill] sm:$0xff] %v9151_v16  ;;  %v9157_v1 = vsel %vm7933_vm2, 0, %v1649_v22  ;;  %v705_v2 = vadd.f32 %v704_v23, %v703_v51  ;;  %v710_v31 = vsel %vm451_vm4, %v445_v49, 0.0  ;;  %v447_v8 = vld [vmem:[%s7956_s23 + $0x3e0] sm:$0xff] }
 0x152   : > { %15408 = vst [vmem:[#allocation169_spill] sm:$0xff] %v9148_v20  ;;  %2789 = vrot.lane.b32.xlu0 %v9148_v20, %s7826_s24  ;;  %v1225_v14 = vpack.c.b16 %v1157_v54, %v1156_v37  ;;  %v2622_v57 = vshrl.u32 %v9157_v1, 16  ;;  %v2624_v6 = vshll.u32 %v9157_v1, 16  ;;  %v2631_v46 = vrot.slane %v2629_v29, 1 }
 0x153   : > { %15410 = vst [vmem:[#allocation171_spill] sm:$0xff] %v9157_v1  ;;  %v1639_v19 = vrot.slane %v1637_v58, 7  ;;  %v712_v43 = vsel %vm451_vm4, %v446_v12, 0.0  ;;  %v904_v37 = vpack.c.bf16 %v445_v49, %v445_v49  ;;  %v905_v54 = vpack.c.bf16 %v446_v12, %v446_v12  ;;  %v9172_v58 = vpop.permute.xlu1 %2713  ;;  %v444_v12 = vld [vmem:[%s7956_s23 + $0x3c8] sm:$0xff] }
 0x154   : > { %v1651_v18 = vshrl.u32 %v1225_v14, 16  ;;  %v1654_v42 = vshll.u32 %v1225_v14, 16  ;;  %v2626_v40 = vrot.slane %v2624_v6, 1  ;;  %v706_v29 = vsel %vm451_vm4, %v443_v47, 0.0  ;;  %15412 = vst [vmem:[#allocation173_spill] sm:$0xff] %v9172_v58 }
 0x155   : > { %v1642_v55 = vor.u32 %v1640_v0, %v1639_v19  ;;  %v9167_v23 = vsel %vm7933_vm2, %v1639_v19, 0  ;;  %v1160_v0 = vunpack.c.l.b16 %v904_v37  ;;  %v707_v16 = vadd.f32 %v706_v29, %v705_v2  ;;  %v9178_v19 = vpop.permute.xlu2 %2733 }
 0x156   : > { %15411 = vst [vmem:[#allocation172_spill] sm:$0xff] %v9167_v23  ;;  %v2617_v22 = vshll.u32 %v9167_v23, 16  ;;  %v1653_v51 = vrot.slane %v1651_v18, 7  ;;  %v2627_v14 = vor.u32 %v2626_v40, %v2622_v57  ;;  %v1161_v40 = vunpack.c.l.b16 %v905_v54 }
 0x157   : > { %v9176_v6 = vsel %vm7933_vm2, 0, %v1642_v55  ;;  %15414 = vst [vmem:[#allocation175_spill] sm:$0xff] %v9178_v19  ;;  %v708_v2 = vsel %vm451_vm4, %v444_v12, 0.0  ;;  %v902_v29 = vpack.c.bf16 %v443_v47, %v443_v47 }
 0x158   : > { %15413 = vst [vmem:[#allocation174_spill] sm:$0xff] %v9176_v6  ;;  %v2610_v49 = vshrl.u32 %v9176_v6, 16  ;;  %v2612_v34 = vshll.u32 %v9176_v6, 16  ;;  %v2619_v36 = vrot.slane %v2617_v22, 1  ;;  %v1656_v18 = vor.u32 %v1654_v42, %v1653_v51 }
 0x159   : > { %v9184_v20 = vsel %vm1948_vm3, %v2627_v14, %v2631_v46  ;;  %v9188_v57 = vsel %vm7933_vm2, %v1653_v51, 0  ;;  %v709_v46 = vadd.f32 %v708_v2, %v707_v16  ;;  %v1227_v54 = vpack.c.b16 %v1161_v40, %v1160_v0  ;;  %v9200_v14 = vpop.permute.xlu0 %2717 }
 0x15a   : > { %15415 = vst [vmem:[#allocation176_spill] sm:$0xff] %v9184_v20  ;;  %2793 = vrot.lane.b32.xlu2 %v9184_v20, %s7826_s24  ;;  %v2614_v55 = vrot.slane %v2612_v34, 1  ;;  %v9195_v37 = vsel %vm7933_vm2, 0, %v1656_v18  ;;  %v2641_v42 = vshll.u32 %v9188_v57, 16  ;;  %v903_v34 = vpack.c.bf16 %v444_v12, %v444_v12 }
 0x15b   : > { %15416 = vst [vmem:[#allocation177_spill] sm:$0xff] %v9188_v57  ;;  %v2634_v22 = vshrl.u32 %v9195_v37, 16  ;;  %v2636_v51 = vshll.u32 %v9195_v37, 16  ;;  %v711_v20 = vadd.f32 %v710_v31, %v709_v46  ;;  %v1665_v18 = vshrl.u32 %v1227_v54, 16  ;;  %v448_v57 = vld [vmem:[%s7956_s23 + $0x3e8] sm:$0xff]  ;;  %v9211_v46 = vpop.permute.xlu1 %2719 }
 0x15c   : > { %15417 = vst [vmem:[#allocation178_spill] sm:$0xff] %v9195_v37  ;;  %v2615_v19 = vor.u32 %v2614_v55, %v2610_v49  ;;  %v2643_v58 = vrot.slane %v2641_v42, 1  ;;  %v1668_v23 = vshll.u32 %v1227_v54, 16  ;;  %v1158_v6 = vunpack.c.l.b16 %v902_v29 }
 0x15d   : > { %15418 = vst [vmem:[#allocation179_spill] sm:$0xff] %v9200_v14  ;;  %v2638_v1 = vrot.slane %v2636_v51, 1  ;;  %v1159_v2 = vunpack.c.l.b16 %v903_v34  ;;  %v713_v48 = vadd.f32 %v712_v43, %v711_v20  ;;  %v714_v0 = vsel %vm451_vm4, %v447_v8, 0.0  ;;  %v9220_v51 = vpop.permute.xlu2 %2739  ;;  %v15472_v14 = vld [vmem:[#allocation37_spill] sm:$0xff] }
 0x15e   : > { %v9205_v16 = vsel %vm1948_vm3, %v2615_v19, %v2619_v36  ;;  %v1667_v49 = vrot.slane %v1665_v18, 7  ;;  %v716_v31 = vsel %vm451_vm4, %v448_v57, 0.0  ;;  %v906_v12 = vpack.c.bf16 %v447_v8, %v447_v8  ;;  %15420 = vst [vmem:[#allocation181_spill] sm:$0xff] %v9211_v46 }
 0x15f   : > { %15419 = vst [vmem:[#allocation180_spill] sm:$0xff] %v9205_v16  ;;  %2791 = vrot.lane.b32.xlu1 %v9205_v16, %s7826_s24  ;;  %v2639_v47 = vor.u32 %v2638_v1, %v2634_v22  ;;  %v1226_v40 = vpack.c.b16 %v1159_v2, %v1158_v6  ;;  %v715_v55 = vadd.f32 %v714_v0, %v713_v48 }
 0x160   : > { %v907_v42 = vpack.c.bf16 %v448_v57, %v448_v57  ;;  %v1670_v19 = vor.u32 %v1668_v23, %v1667_v49  ;;  %v9218_v20 = vsel %vm7933_vm2, %v1667_v49, 0  ;;  %v1162_v43 = vunpack.c.l.b16 %v906_v12  ;;  %15422 = vst [vmem:[#allocation183_spill] sm:$0xff] %v9220_v51 }
 0x161   : > { %v9214_v36 = vsel %vm1948_vm3, %v2639_v47, %v2643_v58  ;;  %v2665_v8 = vshll.u32 %v9218_v20, 16  ;;  %v1658_v48 = vshrl.u32 %v1226_v40, 16  ;;  %v1661_v1 = vshll.u32 %v1226_v40, 16  ;;  %v9233_v34 = vpop.permute.xlu0 %2723 }
 0x162   : > { %15421 = vst [vmem:[#allocation182_spill] sm:$0xff] %v9214_v36  ;;  %2795 = vrot.lane.b32.xlu0 %v9214_v36, %s7826_s24  ;;  %v9225_v6 = vadd.f32 %v716_v31, %v715_v55  ;;  %v9229_v58 = vsel %vm7933_vm2, 0, %v1670_v19  ;;  %v1163_v23 = vunpack.c.l.b16 %v907_v42 }
 0x163   : > { %15424 = vst [vmem:[#allocation185_spill] sm:$0xff] %v9229_v58  ;;  %v2658_v57 = vshrl.u32 %v9229_v58, 16  ;;  %v2660_v22 = vshll.u32 %v9229_v58, 16  ;;  %v1660_v54 = vrot.slane %v1658_v48, 7  ;;  %v2667_v2 = vrot.slane %v2665_v8, 1  ;;  %v9249_v48 = vpop.permute.xlu1 %2725 }
 0x164   : > { %15423 = vst [vmem:[#allocation184_spill] sm:$0xff] %v9225_v6  ;;  %v1228_v29 = vpack.c.b16 %v1163_v23, %v1162_v43 }
 0x165   : > { %15425 = vst [vmem:[#allocation186_spill] sm:$0xff] %v9233_v34  ;;  %v2662_v18 = vrot.slane %v2660_v22, 1  ;;  %v1663_v0 = vor.u32 %v1661_v1, %v1660_v54  ;;  %v9237_v47 = vsel %vm7933_vm2, %v1660_v54, 0  ;;  %v9257_v54 = vpop.permute.xlu2 %2745 }
 0x166   : > { %v2653_v49 = vshll.u32 %v9237_v47, 16  ;;  %v1672_v31 = vshrl.u32 %v1228_v29, 16  ;;  %v1675_v12 = vshll.u32 %v1228_v29, 16  ;;  %15428 = vst [vmem:[#allocation189_spill] sm:$0xff] %v9249_v48 }
 0x167   : > { %v2663_v40 = vor.u32 %v2662_v18, %v2658_v57  ;;  %v9242_v55 = vsel %vm7933_vm2, 0, %v1663_v0  ;;  %15429 = vst [vmem:[#allocation190_spill] sm:$0xff] %v9257_v54  ;;  %v2929_v18 = vrot.slane %v8025_v30, 1 }
 0x168   : > { %15426 = vst [vmem:[#allocation187_spill] sm:$0xff] %v9242_v55  ;;  %v2646_v42 = vshrl.u32 %v9242_v55, 16  ;;  %v2648_v19 = vshll.u32 %v9242_v55, 16  ;;  %v1674_v43 = vrot.slane %v1672_v31, 7  ;;  %v2655_v23 = vrot.slane %v2653_v49, 1 }
 0x169   : > { %v9247_v8 = vsel %vm1948_vm3, %v2663_v40, %v2667_v2  ;;  %v2930_v2 = vrot.slane %v8021_v26, 1 }
 0x16a   : > { %15427 = vst [vmem:[#allocation188_spill] sm:$0xff] %v9247_v8  ;;  %2799 = vrot.lane.b32.xlu2 %v9247_v8, %s7826_s24  ;;  %v2650_v1 = vrot.slane %v2648_v19, 1  ;;  %v1677_v57 = vor.u32 %v1675_v12, %v1674_v43  ;;  %v9255_v22 = vsel %vm7933_vm2, %v1674_v43, 0  ;;  %v9271_v19 = vpop.permute.xlu0 %2729 }
 0x16b   : > { %v2677_v29 = vshll.u32 %v9255_v22, 16  ;;  %15432 = vst [vmem:[#allocation193_spill] sm:$0xff] %v9271_v19 }
 0x16c   : > { %v2651_v0 = vor.u32 %v2650_v1, %v2646_v42  ;;  %v9264_v31 = vsel %vm7933_vm2, 0, %v1677_v57  ;;  %v9276_v42 = vsel %vm2925_vm5, %v2929_v18, %v2930_v2  ;;  %v2926_v1 = vrot.slane %v7943_v4, 1  ;;  %v15479_v4 = vld [vmem:[#allocation40_spill] sm:$0xff] }
 0x16d   : > { %15430 = vst [vmem:[#allocation191_spill] sm:$0xff] %v9264_v31  ;;  %v2670_v49 = vshrl.u32 %v9264_v31, 16  ;;  %v2672_v12 = vshll.u32 %v9264_v31, 16  ;;  %v2679_v26 = vrot.slane %v2677_v29, 1  ;;  %v2927_v57 = vrot.slane %v7947_v5, 1  ;;  %v9287_v29 = vpop.permute.xlu1 %2731  ;;  %v9294_v5 = vpop.permute.xlu2 %2751 }
 0x16e   : > { %v9269_v40 = vsel %vm1948_vm3, %v2651_v0, %v2655_v23  ;;  %15433 = vst [vmem:[#allocation194_spill] sm:$0xff] %v9276_v42  ;;  %v2938_v0 = vrot.slane %v8008_v9, 1  ;;  %v2932_v2 = vrot.slane %v8015_v17, 1 }
 0x16f   : > { %15431 = vst [vmem:[#allocation192_spill] sm:$0xff] %v9269_v40  ;;  %2797 = vrot.lane.b32.xlu1 %v9269_v40, %s7826_s24  ;;  %v2674_v43 = vrot.slane %v2672_v12, 1  ;;  %v2939_v12 = vrot.slane %v7999_v63, 1  ;;  %v9292_v18 = vsel %vm2925_vm5, %v2926_v1, %v2927_v57  ;;  %v2935_v63 = vrot.slane %v8090_v33, 1 }
 0x170   : > { %15435 = vst [vmem:[#allocation196_spill] sm:$0xff] %v9287_v29  ;;  %v2948_v57 = vrot.slane %v8143_v62, 1  ;;  %v2944_v62 = vrot.slane %v8120_v39, 1 }
 0x171   : > { %v2675_v48 = vor.u32 %v2674_v43, %v2670_v49  ;;  %15436 = vst [vmem:[#allocation197_spill] sm:$0xff] %v9292_v18  ;;  %v2933_v49 = vrot.slane %v8004_v7, 1  ;;  %v2936_v43 = vrot.slane %v8080_v24, 1  ;;  %v2947_v7 = vrot.slane %v8157_v11, 1 }
 0x172   : > { %3111 = vrot.lane.b32.xlu2 %v9276_v42, %s7827_s25  ;;  %15437 = vst [vmem:[#allocation198_spill] sm:$0xff] %v9294_v5  ;;  %v2941_v24 = vrot.slane %v8039_v45, 1  ;;  %v2975_v5 = vrot.slane %v8344_v35, 1  ;;  %v2971_v35 = vrot.slane %v8310_v50, 1 }
 0x173   : > { %v9283_v23 = vsel %vm1948_vm3, %v2675_v48, %v2679_v26  ;;  %v9301_v48 = vsel %vm2925_vm5, %v2938_v0, %v2939_v12  ;;  %v9305_v26 = vpop.permute.xlu0 %2735  ;;  %v9308_v1 = vsel %vm2925_vm5, %v2932_v2, %v2933_v49  ;;  %v9317_v0 = vsel %vm2925_vm5, %v2935_v63, %v2936_v43 }
 0x174   : > { %15434 = vst [vmem:[#allocation195_spill] sm:$0xff] %v9283_v23  ;;  %2801 = vrot.lane.b32.xlu0 %v9283_v23, %s7826_s24  ;;  %v2942_v12 = vrot.slane %v8032_v41, 1  ;;  %v9328_v49 = vsel %vm2925_vm5, %v2947_v7, %v2948_v57  ;;  %v2956_v43 = vrot.slane %v8227_v32, 1  ;;  %v2951_v57 = vrot.slane %v8124_v25, 1 }
 0x175   : > { %15438 = vst [vmem:[#allocation199_spill] sm:$0xff] %v9301_v48  ;;  %v9323_v2 = vpop.permute.xlu2 %2757  ;;  %v2965_v25 = vrot.slane %v8299_v60, 1 }
 0x176   : > { %15439 = vst [vmem:[#allocation200_spill] sm:$0xff] %v9305_v26  ;;  %v2945_v26 = vrot.slane %v8109_v38, 1  ;;  %v9333_v63 = vsel %vm2925_vm5, %v2941_v24, %v2942_v12  ;;  %v2950_v38 = vrot.slane %v8131_v61, 1 }
 0x177   : > { %3109 = vrot.lane.b32.xlu1 %v9292_v18, %s7827_s25  ;;  %15440 = vst [vmem:[#allocation201_spill] sm:$0xff] %v9308_v1  ;;  %v9321_v18 = vpop.permute.xlu1 %2737 }
 0x178   : > { %15441 = vst [vmem:[#allocation202_spill] sm:$0xff] %v9317_v0  ;;  %v9344_v7 = vsel %vm2925_vm5, %v2944_v62, %v2945_v26  ;;  %v9360_v26 = vsel %vm2925_vm5, %v2950_v38, %v2951_v57  ;;  %v2966_v62 = vrot.slane %v8287_v21, 1  ;;  %v2960_v38 = vrot.slane %v8203_v13, 1 }
 0x179   : > { %15442 = vst [vmem:[#allocation203_spill] sm:$0xff] %v9321_v18  ;;  %v2957_v18 = vrot.slane %v8220_v59, 1  ;;  %v2953_v59 = vrot.slane %v8180_v53, 1  ;;  %v2962_v21 = vrot.slane %v8246_v10, 1  ;;  %v2974_v13 = vrot.slane %v8352_v28, 1 }
 0x17a   : > { %3117 = vrot.lane.b32.xlu2 %v9301_v48, %s7827_s25  ;;  %15443 = vst [vmem:[#allocation204_spill] sm:$0xff] %v9323_v2  ;;  %v9378_v57 = vsel %vm2925_vm5, %v2965_v25, %v2966_v62  ;;  %v2969_v62 = vrot.slane %v8261_v15, 1 }
 0x17b   : > { %15444 = vst [vmem:[#allocation205_spill] sm:$0xff] %v9328_v49  ;;  %v9337_v41 = vpop.permute.xlu0 %2741  ;;  %v9351_v24 = vsel %vm2925_vm5, %v2956_v43, %v2957_v18 }
 0x17c   : > { %3113 = vrot.lane.b32.xlu0 %v9308_v1, %s7827_s25  ;;  %15445 = vst [vmem:[#allocation206_spill] sm:$0xff] %v9333_v63 }
 0x17d   : > { %15446 = vst [vmem:[#allocation207_spill] sm:$0xff] %v9337_v41  ;;  %v2954_v41 = vrot.slane %v8173_v44, 1  ;;  %v9357_v2 = vpop.permute.xlu2 %2763  ;;  %v2959_v44 = vrot.slane %v8214_v56, 1 }
 0x17e   : > { %15447 = vst [vmem:[#allocation208_spill] sm:$0xff] %v9344_v7 }
 0x17f   : > { %3115 = vrot.lane.b32.xlu1 %v9317_v0, %s7827_s25  ;;  %15448 = vst [vmem:[#allocation209_spill] sm:$0xff] %v9351_v24  ;;  %v9353_v12 = vpop.permute.xlu1 %2743  ;;  %v9369_v18 = vsel %vm2925_vm5, %v2953_v59, %v2954_v41  ;;  %v9383_v29 = vsel %vm2925_vm5, %v2959_v44, %v2960_v38  ;;  %v9405_v38 = vsel %vm2925_vm5, %v2974_v13, %v2975_v5 }
 0x180   : > { %15449 = vst [vmem:[#allocation210_spill] sm:$0xff] %v9353_v12 }
 0x181   : > { %15450 = vst [vmem:[#allocation211_spill] sm:$0xff] %v9357_v2  ;;  %v2963_v2 = vrot.slane %v8234_v52, 1  ;;  %v2968_v52 = vrot.slane %v8267_v27, 1 }
 0x182   : > { %3123 = vrot.lane.b32.xlu2 %v9328_v49, %s7827_s25  ;;  %15451 = vst [vmem:[#allocation212_spill] sm:$0xff] %v9360_v26  ;;  %v15518_v49 = vld [vmem:[#allocation74_spill] sm:$0xff] }
 0x183   : > { %15452 = vst [vmem:[#allocation213_spill] sm:$0xff] %v9369_v18  ;;  %v9371_v43 = vpop.permute.xlu0 %2747  ;;  %v9396_v25 = vsel %vm2925_vm5, %v2962_v21, %v2963_v2  ;;  %v9410_v34 = vsel %vm2925_vm5, %v2968_v52, %v2969_v62  ;;  %v15463_v2 = vld [vmem:[#allocation44_spill] sm:$0xff]  ;;  %v15464_v21 = vld [vmem:[#allocation43_spill] sm:$0xff] }
 0x184   : > { %3119 = vrot.lane.b32.xlu0 %v9333_v63, %s7827_s25  ;;  %15453 = vst [vmem:[#allocation214_spill] sm:$0xff] %v9371_v43  ;;  %v2983_v15 = vrot.slane %v15463_v2, 1  ;;  %v15469_v62 = vld [vmem:[#allocation32_spill] sm:$0xff]  ;;  %v2981_v43 = vrot.slane %v15472_v14, 1 }
 0x185   : > { %15454 = vst [vmem:[#allocation215_spill] sm:$0xff] %v9378_v57  ;;  %v9389_v59 = vpop.permute.xlu2 %2769  ;;  %v2978_v51 = vrot.slane %v15469_v62, 1 }
 0x186   : > { %15455 = vst [vmem:[#allocation216_spill] sm:$0xff] %v9383_v29 }
 0x187   : > { %3121 = vrot.lane.b32.xlu1 %v9344_v7, %s7827_s25  ;;  %v9385_v41 = vpop.permute.xlu1 %2749  ;;  %15457 = vst [vmem:[#allocation218_spill] sm:$0xff] %v9389_v59  ;;  %v15461_v59 = vld [vmem:[#allocation29_spill] sm:$0xff]  ;;  %v3017_v7 = vrot.slane %v15518_v49, 1  ;;  %v15525_v49 = vld [vmem:[#allocation78_spill] sm:$0xff] }
 0x188   : > { %15456 = vst [vmem:[#allocation217_spill] sm:$0xff] %v9385_v41  ;;  %v2972_v19 = vrot.slane %v15461_v59, 1  ;;  %v15468_v59 = vld [vmem:[#allocation33_spill] sm:$0xff] }
 0x189   : > { %15458 = vst [vmem:[#allocation219_spill] sm:$0xff] %v9396_v25  ;;  %v2977_v52 = vrot.slane %v15468_v59, 1 }
 0x18a   : > { %3129 = vrot.lane.b32.xlu2 %v9351_v24, %s7827_s25  ;;  %15460 = vst [vmem:[#allocation221_spill] sm:$0xff] %v9405_v38  ;;  %v9421_v5 = vsel %vm2925_vm5, %v2971_v35, %v2972_v19  ;;  %v15475_v35 = vld [vmem:[#allocation53_spill] sm:$0xff]  ;;  %v15506_v24 = vld [vmem:[#allocation64_spill] sm:$0xff] }
 0x18b   : > { %v9400_v44 = vpop.permute.xlu0 %2753  ;;  %15462 = vst [vmem:[#allocation29_spill] sm:$0xff] %v9410_v34  ;;  %v9437_v19 = vsel %vm2925_vm5, %v2977_v52, %v2978_v51  ;;  %v2992_v62 = vrot.slane %v15475_v35, 1 }
 0x18c   : > { %3125 = vrot.lane.b32.xlu0 %v9360_v26, %s7827_s25  ;;  %15459 = vst [vmem:[#allocation220_spill] sm:$0xff] %v9400_v44  ;;  %v2984_v44 = vrot.slane %v15464_v21, 1  ;;  %v15471_v21 = vld [vmem:[#allocation39_spill] sm:$0xff] }
 0x18d   : > { %15466 = vst [vmem:[#allocation222_spill] sm:$0xff] %v9421_v5  ;;  %v9423_v13 = vpop.permute.xlu2 %2775 }
 0x18e   : > { %15467 = vst [vmem:[#allocation223_spill] sm:$0xff] %v9423_v13  ;;  %v9430_v41 = vsel %vm2925_vm5, %v2983_v15, %v2984_v44  ;;  %v15476_v13 = vld [vmem:[#allocation52_spill] sm:$0xff]  ;;  %v15478_v15 = vld [vmem:[#allocation41_spill] sm:$0xff] }
 0x18f   : > { %3127 = vrot.lane.b32.xlu1 %v9369_v18, %s7827_s25  ;;  %v9416_v46 = vpop.permute.xlu1 %2755  ;;  %15470 = vst [vmem:[#allocation33_spill] sm:$0xff] %v9430_v41  ;;  %v2993_v12 = vrot.slane %v15476_v13, 1  ;;  %v2986_v14 = vrot.slane %v15478_v15, 1  ;;  %v15483_v13 = vld [vmem:[#allocation47_spill] sm:$0xff]  ;;  %v3008_v18 = vrot.slane %v15506_v24, 1  ;;  %v15513_v24 = vld [vmem:[#allocation68_spill] sm:$0xff] }
 0x190   : > { %15465 = vst [vmem:[#allocation43_spill] sm:$0xff] %v9416_v46  ;;  %v2980_v46 = vrot.slane %v15471_v21, 1 }
 0x191   : > { %15474 = vst [vmem:[#allocation39_spill] sm:$0xff] %v9437_v19  ;;  %v9457_v52 = vsel %vm2925_vm5, %v2992_v62, %v2993_v12  ;;  %v15490_v62 = vld [vmem:[#allocation50_spill] sm:$0xff] }
 0x192   : > { %3135 = vrot.lane.b32.xlu2 %v9378_v57, %s7827_s25  ;;  %v9446_v44 = vsel %vm2925_vm5, %v2980_v46, %v2981_v43  ;;  %15482 = vst [vmem:[#allocation224_spill] sm:$0xff] %v9457_v52  ;;  %v15487_v43 = vld [vmem:[#allocation62_spill] sm:$0xff]  ;;  %v15495_v57 = vld [vmem:[#allocation55_spill] sm:$0xff] }
 0x193   : > { %v9434_v54 = vpop.permute.xlu0 %2759  ;;  %15477 = vst [vmem:[#allocation37_spill] sm:$0xff] %v9446_v44 }
 0x194   : > { %3131 = vrot.lane.b32.xlu0 %v9383_v29, %s7827_s25  ;;  %15473 = vst [vmem:[#allocation32_spill] sm:$0xff] %v9434_v54  ;;  %v2987_v54 = vrot.slane %v15479_v4, 1 }
 0x195   : > { %v9452_v51 = vpop.permute.xlu2 %2781 }
 0x196   : > { %15481 = vst [vmem:[#allocation40_spill] sm:$0xff] %v9452_v51  ;;  %v9462_v46 = vsel %vm2925_vm5, %v2986_v14, %v2987_v54  ;;  %v15488_v51 = vld [vmem:[#allocation61_spill] sm:$0xff] }
 0x197   : > { %3133 = vrot.lane.b32.xlu1 %v9396_v25, %s7827_s25  ;;  %v9450_v6 = vpop.permute.xlu1 %2761  ;;  %v2999_v25 = vrot.slane %v15495_v57, 1  ;;  %v15502_v57 = vld [vmem:[#allocation59_spill] sm:$0xff] }
 0x198   : > { %15480 = vst [vmem:[#allocation52_spill] sm:$0xff] %v9450_v6  ;;  %v3001_v6 = vrot.slane %v15487_v43, 1 }
 0x19a   : > { %3141 = vrot.lane.b32.xlu2 %v9405_v38, %s7827_s25  ;;  %v3002_v38 = vrot.slane %v15488_v51, 1 }
 0x19b   : > { %v9466_v4 = vpop.permute.xlu0 %2765 }
 0x19c   : > { %3137 = vrot.lane.b32.xlu0 %v9410_v34, %s7827_s25  ;;  %15486 = vst [vmem:[#allocation225_spill] sm:$0xff] %v9466_v4  ;;  %v9480_v14 = vsel %vm2925_vm5, %v3001_v6, %v3002_v38 }
 0x19f   : > { %3139 = vrot.lane.b32.xlu1 %v9421_v5, %s7827_s25  ;;  %v9482_v4 = vpop.permute.xlu1 %2767 }
 0x1a0   : > { %15493 = vst [vmem:[#allocation226_spill] sm:$0xff] %v9482_v4  ;;  %v3004_v4 = vrot.slane %v15502_v57, 1 }
 0x1a2   : > { %3147 = vrot.lane.b32.xlu2 %v9430_v41, %s7827_s25  ;;  %v2989_v41 = vrot.slane %v15483_v13, 1 }
 0x1a3   : > { %v9500_v38 = vpop.permute.xlu0 %2771 }
 0x1a4   : > { %3143 = vrot.lane.b32.xlu0 %v9437_v19, %s7827_s25  ;;  %v15484_v19 = vld [vmem:[#allocation46_spill] sm:$0xff]  ;;  %15501 = vst [vmem:[#allocation228_spill] sm:$0xff] %v9500_v38 }
 0x1a5   : > { %v2990_v5 = vrot.slane %v15484_v19, 1  ;;  %15485 = vst [vmem:[#allocation46_spill] sm:$0xff] %v9462_v46  ;;  %v2995_v19 = vrot.slane %v15490_v62, 1 }
 0x1a7   : > { %3145 = vrot.lane.b32.xlu1 %v9446_v44, %s7827_s25  ;;  %v9473_v12 = vsel %vm2925_vm5, %v2989_v41, %v2990_v5  ;;  %v15491_v44 = vld [vmem:[#allocation49_spill] sm:$0xff]  ;;  %v15498_v5 = vld [vmem:[#allocation72_spill] sm:$0xff] }
 0x1a8   : > { %15489 = vst [vmem:[#allocation61_spill] sm:$0xff] %v9473_v12  ;;  %v2996_v54 = vrot.slane %v15491_v44, 1  ;;  %v3010_v44 = vrot.slane %v15498_v5, 1 }
 0x1a9   : > { %15492 = vst [vmem:[#allocation49_spill] sm:$0xff] %v9480_v14 }
 0x1aa   : > { %3153 = vrot.lane.b32.xlu2 %v9457_v52, %s7827_s25  ;;  %v15494_v52 = vld [vmem:[#allocation56_spill] sm:$0xff]  ;;  %v9489_v41 = vsel %vm2925_vm5, %v2995_v19, %v2996_v54 }
 0x1ab   : > { %v2998_v51 = vrot.slane %v15494_v52, 1  ;;  %15497 = vst [vmem:[#allocation227_spill] sm:$0xff] %v9489_v41 }
 0x1ac   : > { %3149 = vrot.lane.b32.xlu0 %v9462_v46, %s7827_s25  ;;  %v9486_v46 = vpop.permute.xlu2 %2787 }
 0x1ad   : > { %15496 = vst [vmem:[#allocation55_spill] sm:$0xff] %v9486_v46  ;;  %v9498_v6 = vsel %vm2925_vm5, %v2998_v51, %v2999_v25  ;;  %v15503_v46 = vld [vmem:[#allocation58_spill] sm:$0xff]  ;;  %v9514_v25 = vpop.permute.xlu1 %2773 }
 0x1ae   : > { %v3005_v19 = vrot.slane %v15503_v46, 1  ;;  %15508 = vst [vmem:[#allocation229_spill] sm:$0xff] %v9514_v25  ;;  %v15510_v46 = vld [vmem:[#allocation81_spill] sm:$0xff]  ;;  %v9529_v25 = vpop.permute.xlu0 %2777 }
 0x1af   : > { %3151 = vrot.lane.b32.xlu1 %v9473_v12, %s7827_s25  ;;  %v15499_v12 = vld [vmem:[#allocation70_spill] sm:$0xff]  ;;  %v3019_v38 = vrot.slane %v15510_v46, 1 }
 0x1b0   : > { %v3011_v34 = vrot.slane %v15499_v12, 1  ;;  %15500 = vst [vmem:[#allocation70_spill] sm:$0xff] %v9498_v6 }
 0x1b2   : > { %3159 = vrot.lane.b32.xlu2 %v9480_v14, %s7827_s25  ;;  %v9507_v54 = vsel %vm2925_vm5, %v3010_v44, %v3011_v34  ;;  %v15505_v14 = vld [vmem:[#allocation65_spill] sm:$0xff]  ;;  %v15514_v44 = vld [vmem:[#allocation67_spill] sm:$0xff] }
 0x1b3   : > { %15504 = vst [vmem:[#allocation58_spill] sm:$0xff] %v9507_v54  ;;  %v3007_v12 = vrot.slane %v15505_v14, 1 }
 0x1b4   : > { %3155 = vrot.lane.b32.xlu0 %v9489_v41, %s7827_s25  ;;  %v9512_v41 = vsel %vm2925_vm5, %v3004_v4, %v3005_v19  ;;  %v9518_v51 = vpop.permute.xlu2 %2793  ;;  %v3013_v4 = vrot.slane %v15513_v24, 1  ;;  %v3014_v19 = vrot.slane %v15514_v44, 1  ;;  %15515 = vst [vmem:[#allocation67_spill] sm:$0xff] %v9529_v25  ;;  %v15522_v25 = vld [vmem:[#allocation89_spill] sm:$0xff] }
 0x1b5   : > { %15507 = vst [vmem:[#allocation64_spill] sm:$0xff] %v9512_v41  ;;  %v9525_v34 = vsel %vm2925_vm5, %v3007_v12, %v3008_v18  ;;  %v9543_v18 = vpop.permute.xlu1 %2779  ;;  %v15521_v12 = vld [vmem:[#allocation90_spill] sm:$0xff]  ;;  %v3029_v26 = vrot.slane %v15522_v25, 1  ;;  %v15529_v25 = vld [vmem:[#allocation84_spill] sm:$0xff] }
 0x1b6   : > { %15509 = vst [vmem:[#allocation230_spill] sm:$0xff] %v9518_v51  ;;  %v3028_v44 = vrot.slane %v15521_v12, 1  ;;  %v3025_v48 = vrot.slane %v15529_v25, 1 }
 0x1b7   : > { %3157 = vrot.lane.b32.xlu1 %v9498_v6, %s7827_s25  ;;  %v15511_v6 = vld [vmem:[#allocation80_spill] sm:$0xff]  ;;  %15520 = vst [vmem:[#allocation232_spill] sm:$0xff] %v9543_v18 }
 0x1b8   : > { %v3020_v29 = vrot.slane %v15511_v6, 1  ;;  %15512 = vst [vmem:[#allocation80_spill] sm:$0xff] %v9525_v34  ;;  %v9559_v18 = vsel %vm2925_vm5, %v3028_v44, %v3029_v26 }
 0x1b9   : > { %15527 = vst [vmem:[#allocation78_spill] sm:$0xff] %v9559_v18 }
 0x1ba   : > { %3165 = vrot.lane.b32.xlu2 %v9507_v54, %s7827_s25  ;;  %v9534_v51 = vsel %vm2925_vm5, %v3019_v38, %v3020_v29  ;;  %v15517_v54 = vld [vmem:[#allocation75_spill] sm:$0xff] }
 0x1bb   : > { %15516 = vst [vmem:[#allocation231_spill] sm:$0xff] %v9534_v51  ;;  %v3016_v6 = vrot.slane %v15517_v54, 1 }
 0x1bc   : > { %3161 = vrot.lane.b32.xlu0 %v9512_v41, %s7827_s25  ;;  %v9539_v41 = vsel %vm2925_vm5, %v3013_v4, %v3014_v19  ;;  %v3022_v4 = vrot.slane %v15525_v49, 1  ;;  %v15526_v19 = vld [vmem:[#allocation77_spill] sm:$0xff] }
 0x1bd   : > { %15519 = vst [vmem:[#allocation74_spill] sm:$0xff] %v9539_v41  ;;  %v9550_v29 = vsel %vm2925_vm5, %v3016_v6, %v3017_v7  ;;  %v15532_v6 = vld [vmem:[#allocation99_spill] sm:$0xff] }
 0x1be   : > { %15523 = vst [vmem:[#allocation90_spill] sm:$0xff] %v9550_v29 }
 0x1bf   : > { %3163 = vrot.lane.b32.xlu1 %v9525_v34, %s7827_s25  ;;  %v3023_v34 = vrot.slane %v15526_v19, 1  ;;  %v3037_v19 = vrot.slane %v15532_v6, 1 }
 0x1c1   : > { %v9566_v7 = vsel %vm2925_vm5, %v3022_v4, %v3023_v34  ;;  %v9581_v4 = vpop.permute.xlu1 %2785 }
 0x1c2   : > { %3171 = vrot.lane.b32.xlu2 %v9534_v51, %s7827_s25  ;;  %v9561_v51 = vpop.permute.xlu0 %2783  ;;  %15531 = vst [vmem:[#allocation84_spill] sm:$0xff] %v9566_v7 }
 0x1c3   : > { %15528 = vst [vmem:[#allocation77_spill] sm:$0xff] %v9561_v51  ;;  %v15536_v51 = vld [vmem:[#allocation87_spill] sm:$0xff] }
 0x1c4   : > { %3167 = vrot.lane.b32.xlu0 %v9539_v41, %s7827_s25  ;;  %v9552_v38 = vpop.permute.xlu2 %2799  ;;  %v15530_v41 = vld [vmem:[#allocation83_spill] sm:$0xff] }
 0x1c5   : > { %15524 = vst [vmem:[#allocation89_spill] sm:$0xff] %v9552_v38  ;;  %v3026_v0 = vrot.slane %v15530_v41, 1  ;;  %v15533_v38 = vld [vmem:[#allocation98_spill] sm:$0xff]  ;;  %v3031_v41 = vrot.slane %v15536_v51, 1 }
 0x1c6   : > { %v3038_v63 = vrot.slane %v15533_v38, 1  ;;  %v15540_v38 = vld [vmem:[#allocation93_spill] sm:$0xff] }
 0x1c7   : > { %3169 = vrot.lane.b32.xlu1 %v9550_v29, %s7827_s25  ;;  %v9575_v26 = vsel %vm2925_vm5, %v3025_v48, %v3026_v0  ;;  %v15537_v29 = vld [vmem:[#allocation86_spill] sm:$0xff]  ;;  %v3034_v42 = vrot.slane %v15540_v38, 1 }
 0x1c8   : > { %15534 = vst [vmem:[#allocation83_spill] sm:$0xff] %v9575_v26  ;;  %v3032_v34 = vrot.slane %v15537_v29, 1  ;;  %v15544_v29 = vld [vmem:[#allocation108_spill] sm:$0xff] }
 0x1c9   : > { %15538 = vst [vmem:[#allocation86_spill] sm:$0xff] %v9581_v4  ;;  %v3046_v4 = vrot.slane %v15544_v29, 1 }
 0x1ca   : > { %3177 = vrot.lane.b32.xlu2 %v9559_v18, %s7827_s25  ;;  %v9586_v18 = vsel %vm2925_vm5, %v3037_v19, %v3038_v63  ;;  %v9591_v48 = vsel %vm2925_vm5, %v3031_v41, %v3032_v34  ;;  %v9593_v0 = vpop.permute.xlu0 %2789  ;;  %v15549_v34 = vld [vmem:[#allocation95_spill] sm:$0xff] }
 0x1cb   : > { %15539 = vst [vmem:[#allocation233_spill] sm:$0xff] %v9586_v18 }
 0x1cc   : > { %3173 = vrot.lane.b32.xlu0 %v9566_v7, %s7827_s25  ;;  %v9577_v44 = vpop.permute.xlu2 %3111  ;;  %v15541_v7 = vld [vmem:[#allocation92_spill] sm:$0xff]  ;;  %15543 = vst [vmem:[#allocation234_spill] sm:$0xff] %v9593_v0 }
 0x1cd   : > { %15535 = vst [vmem:[#allocation98_spill] sm:$0xff] %v9577_v44  ;;  %v3035_v1 = vrot.slane %v15541_v7, 1  ;;  %v15545_v44 = vld [vmem:[#allocation107_spill] sm:$0xff]  ;;  %v15548_v7 = vld [vmem:[#allocation96_spill] sm:$0xff] }
 0x1ce   : > { %15542 = vst [vmem:[#allocation92_spill] sm:$0xff] %v9591_v48  ;;  %v3047_v8 = vrot.slane %v15545_v44, 1  ;;  %v3040_v41 = vrot.slane %v15548_v7, 1  ;;  %v15552_v44 = vld [vmem:[#allocation102_spill] sm:$0xff] }
 0x1cf   : > { %3175 = vrot.lane.b32.xlu1 %v9575_v26, %s7827_s25  ;;  %v9602_v63 = vsel %vm2925_vm5, %v3034_v42, %v3035_v1  ;;  %v3041_v26 = vrot.slane %v15549_v34, 1  ;;  %v3043_v40 = vrot.slane %v15552_v44, 1  ;;  %v15555_v1 = vld [vmem:[#allocation120_spill] sm:$0xff] }
 0x1d0   : > { %15546 = vst [vmem:[#allocation107_spill] sm:$0xff] %v9602_v63  ;;  %v3055_v34 = vrot.slane %v15555_v1, 1 }
 0x1d1   : > { %v9610_v0 = vpop.permute.xlu1 %2791  ;;  %v9618_v42 = vsel %vm2925_vm5, %v3040_v41, %v3041_v26  ;;  %v15561_v41 = vld [vmem:[#allocation104_spill] sm:$0xff] }
 0x1d2   : > { %3183 = vrot.lane.b32.xlu2 %v9586_v18, %s7827_s25  ;;  %15550 = vst [vmem:[#allocation95_spill] sm:$0xff] %v9610_v0  ;;  %v9613_v18 = vsel %vm2925_vm5, %v3046_v4, %v3047_v8 }
 0x1d3   : > { %15551 = vst [vmem:[#allocation236_spill] sm:$0xff] %v9613_v18 }
 0x1d4   : > { %3179 = vrot.lane.b32.xlu0 %v9591_v48, %s7827_s25  ;;  %v9604_v19 = vpop.permute.xlu2 %3117  ;;  %v15553_v48 = vld [vmem:[#allocation101_spill] sm:$0xff]  ;;  %v9626_v0 = vpop.permute.xlu0 %2795 }
 0x1d5   : > { %15547 = vst [vmem:[#allocation235_spill] sm:$0xff] %v9604_v19  ;;  %v3044_v23 = vrot.slane %v15553_v48, 1  ;;  %v15556_v19 = vld [vmem:[#allocation118_spill] sm:$0xff]  ;;  %v15560_v48 = vld [vmem:[#allocation105_spill] sm:$0xff] }
 0x1d6   : > { %15554 = vst [vmem:[#allocation101_spill] sm:$0xff] %v9618_v42  ;;  %v3056_v16 = vrot.slane %v15556_v19, 1  ;;  %v3049_v26 = vrot.slane %v15560_v48, 1  ;;  %v15563_v19 = vld [vmem:[#allocation111_spill] sm:$0xff] }
 0x1d7   : > { %3181 = vrot.lane.b32.xlu1 %v9602_v63, %s7827_s25  ;;  %15557 = vst [vmem:[#allocation118_spill] sm:$0xff] %v9626_v0  ;;  %v9629_v8 = vsel %vm2925_vm5, %v3043_v40, %v3044_v23  ;;  %v3050_v63 = vrot.slane %v15561_v41, 1  ;;  %v3052_v36 = vrot.slane %v15563_v19, 1  ;;  %v15567_v23 = vld [vmem:[#allocation131_spill] sm:$0xff] }
 0x1d8   : > { %15558 = vst [vmem:[#allocation237_spill] sm:$0xff] %v9629_v8  ;;  %v3064_v41 = vrot.slane %v15567_v23, 1 }
 0x1d9   : > { %v9643_v0 = vsel %vm2925_vm5, %v3049_v26, %v3050_v63  ;;  %v15572_v26 = vld [vmem:[#allocation114_spill] sm:$0xff] }
 0x1da   : > { %3189 = vrot.lane.b32.xlu2 %v9613_v18, %s7827_s25  ;;  %v9638_v18 = vsel %vm2925_vm5, %v3055_v34, %v3056_v16 }
 0x1db   : > { %15562 = vst [vmem:[#allocation104_spill] sm:$0xff] %v9638_v18 }
 0x1dc   : > { %3185 = vrot.lane.b32.xlu0 %v9618_v42, %s7827_s25  ;;  %v9631_v4 = vpop.permute.xlu2 %3123  ;;  %v15564_v42 = vld [vmem:[#allocation110_spill] sm:$0xff] }
 0x1dd   : > { %15559 = vst [vmem:[#allocation238_spill] sm:$0xff] %v9631_v4  ;;  %v3053_v1 = vrot.slane %v15564_v42, 1  ;;  %v15568_v4 = vld [vmem:[#allocation130_spill] sm:$0xff]  ;;  %v15571_v42 = vld [vmem:[#allocation116_spill] sm:$0xff] }
 0x1de   : > { %15565 = vst [vmem:[#allocation110_spill] sm:$0xff] %v9643_v0  ;;  %v3065_v29 = vrot.slane %v15568_v4, 1  ;;  %v3058_v63 = vrot.slane %v15571_v42, 1  ;;  %v15575_v4 = vld [vmem:[#allocation123_spill] sm:$0xff] }
 0x1df   : > { %3187 = vrot.lane.b32.xlu1 %v9629_v8, %s7827_s25  ;;  %v9654_v16 = vsel %vm2925_vm5, %v3052_v36, %v3053_v1  ;;  %v3059_v8 = vrot.slane %v15572_v26, 1  ;;  %v3061_v23 = vrot.slane %v15575_v4, 1  ;;  %v15579_v26 = vld [vmem:[#allocation147_spill] sm:$0xff] }
 0x1e0   : > { %15569 = vst [vmem:[#allocation130_spill] sm:$0xff] %v9654_v16 }
 0x1e1   : > { %v9645_v40 = vpop.permute.xlu1 %2797  ;;  %v9670_v36 = vsel %vm2925_vm5, %v3058_v63, %v3059_v8  ;;  %v15584_v63 = vld [vmem:[#allocation127_spill] sm:$0xff] }
 0x1e2   : > { %15566 = vst [vmem:[#allocation239_spill] sm:$0xff] %v9645_v40  ;;  %3195 = vrot.lane.b32.xlu2 %v9638_v18, %s7827_s25  ;;  %v9665_v18 = vsel %vm2925_vm5, %v3064_v41, %v3065_v29 }
 0x1e3   : > { %15574 = vst [vmem:[#allocation241_spill] sm:$0xff] %v9665_v18 }
 0x1e4   : > { %3191 = vrot.lane.b32.xlu0 %v9643_v0, %s7827_s25  ;;  %v9656_v34 = vpop.permute.xlu2 %3129  ;;  %v15576_v0 = vld [vmem:[#allocation122_spill] sm:$0xff] }
 0x1e5   : > { %15570 = vst [vmem:[#allocation240_spill] sm:$0xff] %v9656_v34  ;;  %v3062_v19 = vrot.slane %v15576_v0, 1  ;;  %v15580_v34 = vld [vmem:[#allocation144_spill] sm:$0xff] }
 0x1e6   : > { %v9660_v40 = vpop.permute.xlu0 %2801  ;;  %15577 = vst [vmem:[#allocation122_spill] sm:$0xff] %v9670_v36  ;;  %v3074_v42 = vrot.slane %v15580_v34, 1  ;;  %v15583_v0 = vld [vmem:[#allocation128_spill] sm:$0xff] }
 0x1e7   : > { %15573 = vst [vmem:[#allocation114_spill] sm:$0xff] %v9660_v40  ;;  %3193 = vrot.lane.b32.xlu1 %v9654_v16, %s7827_s25  ;;  %v3073_v40 = vrot.slane %v15579_v26, 1  ;;  %v9681_v29 = vsel %vm2925_vm5, %v3061_v23, %v3062_v19  ;;  %v3067_v8 = vrot.slane %v15583_v0, 1  ;;  %v3068_v16 = vrot.slane %v15584_v63, 1  ;;  %v15587_v34 = vld [vmem:[#allocation136_spill] sm:$0xff] }
 0x1e8   : > { %15581 = vst [vmem:[#allocation144_spill] sm:$0xff] %v9681_v29  ;;  %v3070_v26 = vrot.slane %v15587_v34, 1  ;;  %v15591_v63 = vld [vmem:[#allocation160_spill] sm:$0xff] }
 0x1e9   : > { %v9672_v1 = vpop.permute.xlu1 %3109  ;;  %v9697_v19 = vsel %vm2925_vm5, %v3067_v8, %v3068_v16  ;;  %v15596_v8 = vld [vmem:[#allocation139_spill] sm:$0xff] }
 0x1ea   : > { %15578 = vst [vmem:[#allocation242_spill] sm:$0xff] %v9672_v1  ;;  %3201 = vrot.lane.b32.xlu2 %v9665_v18, %s7827_s25  ;;  %v9692_v18 = vsel %vm2925_vm5, %v3073_v40, %v3074_v42 }
 0x1eb   : > { %15586 = vst [vmem:[#allocation244_spill] sm:$0xff] %v9692_v18 }
 0x1ec   : > { %3197 = vrot.lane.b32.xlu0 %v9670_v36, %s7827_s25  ;;  %v9683_v41 = vpop.permute.xlu2 %3135  ;;  %v15588_v36 = vld [vmem:[#allocation135_spill] sm:$0xff] }
 0x1ed   : > { %15582 = vst [vmem:[#allocation243_spill] sm:$0xff] %v9683_v41  ;;  %v3071_v4 = vrot.slane %v15588_v36, 1  ;;  %v3082_v41 = vrot.slane %v15591_v63, 1  ;;  %v15595_v36 = vld [vmem:[#allocation140_spill] sm:$0xff] }
 0x1ee   : > { %v9687_v1 = vpop.permute.xlu0 %3113  ;;  %15589 = vst [vmem:[#allocation135_spill] sm:$0xff] %v9697_v19  ;;  %v3076_v16 = vrot.slane %v15595_v36, 1 }
 0x1ef   : > { %15585 = vst [vmem:[#allocation127_spill] sm:$0xff] %v9687_v1  ;;  %3199 = vrot.lane.b32.xlu1 %v9681_v29, %s7827_s25  ;;  %v15592_v1 = vld [vmem:[#allocation157_spill] sm:$0xff]  ;;  %v9708_v40 = vsel %vm2925_vm5, %v3070_v26, %v3071_v4  ;;  %v3077_v29 = vrot.slane %v15596_v8, 1  ;;  %v15603_v8 = vld [vmem:[#allocation174_spill] sm:$0xff] }
 0x1f0   : > { %v3083_v0 = vrot.slane %v15592_v1, 1  ;;  %15593 = vst [vmem:[#allocation157_spill] sm:$0xff] %v9708_v40  ;;  %v15599_v1 = vld [vmem:[#allocation151_spill] sm:$0xff] }
 0x1f1   : > { %v9699_v23 = vpop.permute.xlu1 %3115  ;;  %v3079_v63 = vrot.slane %v15599_v1, 1  ;;  %v9724_v4 = vsel %vm2925_vm5, %v3076_v16, %v3077_v29  ;;  %v15608_v16 = vld [vmem:[#allocation154_spill] sm:$0xff] }
 0x1f2   : > { %15590 = vst [vmem:[#allocation245_spill] sm:$0xff] %v9699_v23  ;;  %3207 = vrot.lane.b32.xlu2 %v9692_v18, %s7827_s25  ;;  %v9719_v18 = vsel %vm2925_vm5, %v3082_v41, %v3083_v0 }
 0x1f3   : > { %15598 = vst [vmem:[#allocation247_spill] sm:$0xff] %v9719_v18 }
 0x1f4   : > { %3203 = vrot.lane.b32.xlu0 %v9697_v19, %s7827_s25  ;;  %v9710_v42 = vpop.permute.xlu2 %3141  ;;  %v15600_v19 = vld [vmem:[#allocation148_spill] sm:$0xff] }
 0x1f5   : > { %15594 = vst [vmem:[#allocation246_spill] sm:$0xff] %v9710_v42  ;;  %v3080_v34 = vrot.slane %v15600_v19, 1  ;;  %v15604_v42 = vld [vmem:[#allocation172_spill] sm:$0xff]  ;;  %v15607_v19 = vld [vmem:[#allocation155_spill] sm:$0xff] }
 0x1f6   : > { %v9714_v23 = vpop.permute.xlu0 %3119  ;;  %15601 = vst [vmem:[#allocation148_spill] sm:$0xff] %v9724_v4  ;;  %v3092_v36 = vrot.slane %v15604_v42, 1  ;;  %v3085_v29 = vrot.slane %v15607_v19, 1  ;;  %v15611_v42 = vld [vmem:[#allocation164_spill] sm:$0xff] }
 0x1f7   : > { %15597 = vst [vmem:[#allocation139_spill] sm:$0xff] %v9714_v23  ;;  %3205 = vrot.lane.b32.xlu1 %v9708_v40, %s7827_s25  ;;  %v3091_v23 = vrot.slane %v15603_v8, 1  ;;  %v9735_v41 = vsel %vm2925_vm5, %v3079_v63, %v3080_v34  ;;  %v3086_v40 = vrot.slane %v15608_v16, 1  ;;  %v3088_v8 = vrot.slane %v15611_v42, 1 }
 0x1f8   : > { %15605 = vst [vmem:[#allocation172_spill] sm:$0xff] %v9735_v41  ;;  %v3100_v16 = vrot.slane %v9242_v55, 1 }
 0x1f9   : > { %v9726_v26 = vpop.permute.xlu1 %3121  ;;  %v9751_v34 = vsel %vm2925_vm5, %v3085_v29, %v3086_v40  ;;  %v15617_v29 = vld [vmem:[#allocation168_spill] sm:$0xff] }
 0x1fa   : > { %15602 = vst [vmem:[#allocation248_spill] sm:$0xff] %v9726_v26  ;;  %3213 = vrot.lane.b32.xlu2 %v9719_v18, %s7827_s25  ;;  %v9746_v18 = vsel %vm2925_vm5, %v3091_v23, %v3092_v36 }
 0x1fb   : > { %15610 = vst [vmem:[#allocation250_spill] sm:$0xff] %v9746_v18 }
 0x1fc   : > { %3209 = vrot.lane.b32.xlu0 %v9724_v4, %s7827_s25  ;;  %v9737_v0 = vpop.permute.xlu2 %3147  ;;  %v15612_v4 = vld [vmem:[#allocation163_spill] sm:$0xff] }
 0x1fd   : > { %15606 = vst [vmem:[#allocation249_spill] sm:$0xff] %v9737_v0  ;;  %v3089_v1 = vrot.slane %v15612_v4, 1  ;;  %v15616_v4 = vld [vmem:[#allocation171_spill] sm:$0xff]  ;;  %v3095_v0 = vrot.slane %v15617_v29, 1 }
 0x1fe   : > { %v9741_v26 = vpop.permute.xlu0 %3125  ;;  %15613 = vst [vmem:[#allocation163_spill] sm:$0xff] %v9751_v34  ;;  %v3094_v40 = vrot.slane %v15616_v4, 1 }
 0x1ff   : > { %15609 = vst [vmem:[#allocation154_spill] sm:$0xff] %v9741_v26  ;;  %3211 = vrot.lane.b32.xlu1 %v9735_v41, %s7827_s25  ;;  %v3101_v26 = vrot.slane %v9237_v47, 1  ;;  %v9762_v23 = vsel %vm2925_vm5, %v3088_v8, %v3089_v1  ;;  %v3097_v47 = vrot.slane %v9195_v37, 1  ;;  %v15620_v41 = vld [vmem:[#allocation177_spill] sm:$0xff] }
 0x200   : > { %v9778_v1 = vsel %vm2925_vm5, %v3094_v40, %v3095_v0  ;;  %v3106_v0 = vrot.slane %v9264_v31, 1  ;;  %v3107_v40 = vrot.slane %v9255_v22, 1 }
 0x201   : > { %v9753_v63 = vpop.permute.xlu1 %3127  ;;  %15621 = vst [vmem:[#allocation177_spill] sm:$0xff] %v9778_v1 }
 0x202   : > { %15614 = vst [vmem:[#allocation251_spill] sm:$0xff] %v9753_v63  ;;  %3219 = vrot.lane.b32.xlu2 %v9746_v18, %s7827_s25  ;;  %v9773_v18 = vsel %vm2925_vm5, %v3100_v16, %v3101_v26  ;;  %v3103_v16 = vrot.slane %v9229_v58, 1 }
 0x203   : > { %15619 = vst [vmem:[#allocation253_spill] sm:$0xff] %v9773_v18 }
 0x204   : > { %3215 = vrot.lane.b32.xlu0 %v9751_v34, %s7827_s25  ;;  %v9764_v36 = vpop.permute.xlu2 %3153  ;;  %v3098_v34 = vrot.slane %v15620_v41, 1  ;;  %v3104_v41 = vrot.slane %v9218_v20, 1  ;;  %v9809_v20 = vsel %vm2925_vm5, %v3106_v0, %v3107_v40  ;;  %v354_v0 = vld [vmem:[%s7956_s23 + $0xf8] sm:$0xff] }
 0x205   : > { %15615 = vst [vmem:[#allocation252_spill] sm:$0xff] %v9764_v36  ;;  %v813_v36 = vpack.c.bf16 %v354_v0, %v354_v0 }
 0x206   : > { %v9768_v63 = vpop.permute.xlu0 %3131  ;;  %v9787_v29 = vsel %vm2925_vm5, %v3097_v47, %v3098_v34  ;;  %v9800_v34 = vsel %vm2925_vm5, %v3103_v16, %v3104_v41  ;;  %15628 = vst [vmem:[#allocation260_spill] sm:$0xff] %v9809_v20  ;;  %v353_v41 = vld [vmem:[%s7956_s23 + $0xf0] sm:$0xff] }
 0x207   : > { %15618 = vst [vmem:[#allocation168_spill] sm:$0xff] %v9768_v63  ;;  %3217 = vrot.lane.b32.xlu1 %v9762_v23, %s7827_s25 }
 0x208   : > { %15623 = vst [vmem:[#allocation255_spill] sm:$0xff] %v9787_v29 }
 0x209   : > { %v9780_v8 = vpop.permute.xlu1 %3133  ;;  %15626 = vst [vmem:[#allocation258_spill] sm:$0xff] %v9800_v34 }
 0x20a   : > { %15622 = vst [vmem:[#allocation254_spill] sm:$0xff] %v9780_v8  ;;  %3225 = vrot.lane.b32.xlu2 %v9773_v18, %s7827_s25  ;;  %v812_v8 = vpack.c.bf16 %v353_v41, %v353_v41 }
 0x20c   : > { %3221 = vrot.lane.b32.xlu0 %v9778_v1, %s7827_s25  ;;  %v9789_v26 = vpop.permute.xlu2 %3159 }
 0x20d   : > { %15624 = vst [vmem:[#allocation256_spill] sm:$0xff] %v9789_v26 }
 0x20e   : > { %v9793_v63 = vpop.permute.xlu0 %3137 }
 0x20f   : > { %15625 = vst [vmem:[#allocation257_spill] sm:$0xff] %v9793_v63  ;;  %3223 = vrot.lane.b32.xlu1 %v9787_v29, %s7827_s25 }
 0x211   : > { %v9802_v47 = vpop.permute.xlu1 %3139 }
 0x212   : > { %15627 = vst [vmem:[#allocation259_spill] sm:$0xff] %v9802_v47  ;;  %3235 = vrot.lane.b32.xlu2 %v8025_v30, %s7828_s26  ;;  %v511_v47 = vsel %vm451_vm4, %v353_v41, 0.0 }
 0x214   : > { %3227 = vrot.lane.b32.xlu0 %v9800_v34, %s7827_s25  ;;  %v9811_v63 = vpop.permute.xlu2 %3165 }
 0x215   : > { %15629 = vst [vmem:[#allocation261_spill] sm:$0xff] %v9811_v63  ;;  %v513_v63 = vsel %vm451_vm4, %v354_v0, 0.0 }
 0x216   : > { %v9813_v26 = vpop.permute.xlu0 %3143 }
 0x217   : > { %15630 = vst [vmem:[#allocation262_spill] sm:$0xff] %v9813_v26  ;;  %3229 = vrot.lane.b32.xlu1 %v9809_v20, %s7827_s25 }
 0x219   : > { %v9817_v22 = vpop.permute.xlu1 %3145 }
 0x21a   : > { %15631 = vst [vmem:[#allocation263_spill] sm:$0xff] %v9817_v22  ;;  %3241 = vrot.lane.b32.xlu2 %v8008_v9, %s7828_s26  ;;  %v15634_v22 = vld [vmem:[#allocation27_spill] sm:$0xff]  ;;  %v1068_v9 = vunpack.c.l.b16 %v812_v8 }
 0x21b   : > { %v512_v26 = vadd.f32 %v511_v47, %v15634_v22 }
 0x21c   : > { %3237 = vrot.lane.b32.xlu0 %v8015_v17, %s7828_s26  ;;  %v9823_v16 = vpop.permute.xlu2 %3171 }
 0x21d   : > { %15632 = vst [vmem:[#allocation264_spill] sm:$0xff] %v9823_v16  ;;  %v9838_v16 = vadd.f32 %v513_v63, %v512_v26 }
 0x21e   : > { %v9827_v40 = vpop.permute.xlu0 %3149 }
 0x21f   : > { %15633 = vst [vmem:[#allocation265_spill] sm:$0xff] %v9827_v40  ;;  %3239 = vrot.lane.b32.xlu1 %v8090_v33, %s7828_s26  ;;  %v1069_v40 = vunpack.c.l.b16 %v813_v36 }
 0x220   : > { %15636 = vst [vmem:[#allocation266_spill] sm:$0xff] %v9838_v16 }
 0x221   : > { %v9834_v30 = vpop.permute.xlu1 %3151  ;;  %v1181_v47 = vpack.c.b16 %v1069_v40, %v1068_v9 }
 0x222   : > { %15635 = vst [vmem:[#allocation27_spill] sm:$0xff] %v9834_v30  ;;  %3247 = vrot.lane.b32.xlu2 %v8157_v11, %s7828_s26 }
 0x223   : > { %v1343_v63 = vshrl.u32 %v1181_v47, 16  ;;  %v1346_v41 = vshll.u32 %v1181_v47, 16 }
 0x224   : > { %3243 = vrot.lane.b32.xlu0 %v8039_v45, %s7828_s26  ;;  %v9842_v33 = vpop.permute.xlu2 %3177 }
 0x225   : > { %15637 = vst [vmem:[#allocation267_spill] sm:$0xff] %v9842_v33  ;;  %v9860_v26 = vrot.slane %v1343_v63, 7 }
 0x226   : > { %v9844_v20 = vpop.permute.xlu0 %3155 }
 0x227   : > { %15638 = vst [vmem:[#allocation268_spill] sm:$0xff] %v9844_v20  ;;  %3245 = vrot.lane.b32.xlu1 %v8120_v39, %s7828_s26  ;;  %v1348_v0 = vor.u32 %v1346_v41, %v9860_v26  ;;  %v15652_v20 = vld [vmem:[#allocation71_spill] sm:$0xff] }
 0x229   : > { %v9848_v22 = vpop.permute.xlu1 %3157  ;;  %v9877_v47 = vsel %vm7933_vm2, 0, %v1348_v0 }
 0x22a   : > { %15639 = vst [vmem:[#allocation269_spill] sm:$0xff] %v9848_v22  ;;  %3253 = vrot.lane.b32.xlu2 %v8227_v32, %s7828_s26 }
 0x22b   : > { %15645 = vst [vmem:[#allocation275_spill] sm:$0xff] %v9877_v47 }
 0x22c   : > { %3249 = vrot.lane.b32.xlu0 %v8131_v61, %s7828_s26  ;;  %v9854_v36 = vpop.permute.xlu2 %3183 }
 0x22d   : > { %15640 = vst [vmem:[#allocation270_spill] sm:$0xff] %v9854_v36 }
 0x22e   : > { %v9856_v8 = vpop.permute.xlu0 %3161 }
 0x22f   : > { %15641 = vst [vmem:[#allocation271_spill] sm:$0xff] %v9856_v8  ;;  %3251 = vrot.lane.b32.xlu1 %v8180_v53, %s7828_s26  ;;  %v386_v8 = vld [vmem:[%s7956_s23 + $0x1f8] sm:$0xff] }
 0x230   : > { %v582_v22 = vsel %vm451_vm4, %v386_v8, 0.0 }
 0x231   : > { %v9862_v9 = vpop.permute.xlu1 %3163 }
 0x232   : > { %15642 = vst [vmem:[#allocation272_spill] sm:$0xff] %v9862_v9  ;;  %3259 = vrot.lane.b32.xlu2 %v8299_v60, %s7828_s26  ;;  %v385_v9 = vld [vmem:[%s7956_s23 + $0x1f0] sm:$0xff] }
 0x234   : > { %3255 = vrot.lane.b32.xlu0 %v8214_v56, %s7828_s26  ;;  %v9869_v40 = vpop.permute.xlu2 %3189 }
 0x235   : > { %15643 = vst [vmem:[#allocation273_spill] sm:$0xff] %v9869_v40 }
 0x236   : > { %v9871_v36 = vpop.permute.xlu0 %3167 }
 0x237   : > { %15644 = vst [vmem:[#allocation274_spill] sm:$0xff] %v9871_v36  ;;  %3257 = vrot.lane.b32.xlu1 %v8246_v10, %s7828_s26 }
 0x239   : > { %v9879_v63 = vpop.permute.xlu1 %3169 }
 0x23a   : > { %15646 = vst [vmem:[#allocation276_spill] sm:$0xff] %v9879_v63  ;;  %3265 = vrot.lane.b32.xlu2 %v9877_v47, %s7828_s26 }
 0x23c   : > { %3261 = vrot.lane.b32.xlu0 %v8267_v27, %s7828_s26  ;;  %v9885_v41 = vpop.permute.xlu2 %3195 }
 0x23d   : > { %15647 = vst [vmem:[#allocation277_spill] sm:$0xff] %v9885_v41  ;;  %v580_v41 = vsel %vm451_vm4, %v385_v9, 0.0 }
 0x23e   : > { %v9887_v40 = vpop.permute.xlu0 %3173  ;;  %v581_v30 = vadd.f32 %v580_v41, %v15652_v20  ;;  %v844_v20 = vpack.c.bf16 %v385_v9, %v385_v9  ;;  %v845_v41 = vpack.c.bf16 %v386_v8, %v386_v8 }
 0x23f   : > { %15648 = vst [vmem:[#allocation278_spill] sm:$0xff] %v9887_v40  ;;  %3263 = vrot.lane.b32.xlu1 %v8310_v50, %s7828_s26 }
 0x241   : > { %v9891_v36 = vpop.permute.xlu1 %3175 }
 0x242   : > { %15649 = vst [vmem:[#allocation279_spill] sm:$0xff] %v9891_v36  ;;  %3271 = vrot.lane.b32.xlu2 %v15471_v21, %s7828_s26  ;;  %v9912_v36 = vadd.f32 %v582_v22, %v581_v30  ;;  %v1100_v22 = vunpack.c.l.b16 %v844_v20 }
 0x244   : > { %3267 = vrot.lane.b32.xlu0 %v8352_v28, %s7828_s26  ;;  %v9897_v0 = vpop.permute.xlu2 %3201  ;;  %15654 = vst [vmem:[#allocation282_spill] sm:$0xff] %v9912_v36 }
 0x245   : > { %15650 = vst [vmem:[#allocation280_spill] sm:$0xff] %v9897_v0 }
 0x246   : > { %v9899_v63 = vpop.permute.xlu0 %3179 }
 0x247   : > { %15651 = vst [vmem:[#allocation281_spill] sm:$0xff] %v9899_v63  ;;  %3269 = vrot.lane.b32.xlu1 %v15468_v59, %s7828_s26 }
 0x249   : > { %v9908_v33 = vpop.permute.xlu1 %3181 }
 0x24a   : > { %15653 = vst [vmem:[#allocation71_spill] sm:$0xff] %v9908_v33  ;;  %3277 = vrot.lane.b32.xlu2 %v15483_v13, %s7828_s26  ;;  %v1101_v33 = vunpack.c.l.b16 %v845_v41 }
 0x24c   : > { %3273 = vrot.lane.b32.xlu0 %v15463_v2, %s7828_s26  ;;  %v9916_v63 = vpop.permute.xlu2 %3207 }
 0x24d   : > { %15655 = vst [vmem:[#allocation283_spill] sm:$0xff] %v9916_v63 }
 0x24e   : > { %v9918_v40 = vpop.permute.xlu0 %3185 }
 0x24f   : > { %15656 = vst [vmem:[#allocation284_spill] sm:$0xff] %v9918_v40  ;;  %3275 = vrot.lane.b32.xlu1 %v15478_v15, %s7828_s26 }
 0x251   : > { %v9922_v28 = vpop.permute.xlu1 %3187 }
 0x252   : > { %15657 = vst [vmem:[#allocation285_spill] sm:$0xff] %v9922_v28  ;;  %3283 = vrot.lane.b32.xlu2 %v15494_v52, %s7828_s26  ;;  %v1197_v28 = vpack.c.b16 %v1101_v33, %v1100_v22 }
 0x254   : > { %3279 = vrot.lane.b32.xlu0 %v15475_v35, %s7828_s26  ;;  %v9928_v30 = vpop.permute.xlu2 %3213  ;;  %v1455_v9 = vshrl.u32 %v1197_v28, 16 }
 0x255   : > { %15658 = vst [vmem:[#allocation286_spill] sm:$0xff] %v9928_v30 }
 0x256   : > { %v9930_v63 = vpop.permute.xlu0 %3191  ;;  %v9948_v41 = vrot.slane %v1455_v9, 7 }
 0x257   : > { %15659 = vst [vmem:[#allocation287_spill] sm:$0xff] %v9930_v63  ;;  %3281 = vrot.lane.b32.xlu1 %v15490_v62, %s7828_s26  ;;  %v15673_v63 = vld [vmem:[#allocation117_spill] sm:$0xff] }
 0x259   : > { %v9934_v40 = vpop.permute.xlu1 %3193 }
 0x25a   : > { %15660 = vst [vmem:[#allocation288_spill] sm:$0xff] %v9934_v40  ;;  %3289 = vrot.lane.b32.xlu2 %v15505_v14, %s7828_s26  ;;  %v1458_v40 = vshll.u32 %v1197_v28, 16  ;;  %v9997_v14 = vld [vmem:[%s7956_s23 + $0x2f8] sm:$0xff] }
 0x25c   : > { %3285 = vrot.lane.b32.xlu0 %v15487_v43, %s7828_s26  ;;  %v9940_v8 = vpop.permute.xlu2 %3219  ;;  %v1460_v22 = vor.u32 %v1458_v40, %v9948_v41 }
 0x25d   : > { %15661 = vst [vmem:[#allocation289_spill] sm:$0xff] %v9940_v8  ;;  %v417_v8 = vld [vmem:[%s7956_s23 + $0x2f0] sm:$0xff] }
 0x25e   : > { %v9942_v30 = vpop.permute.xlu0 %3197  ;;  %v9963_v9 = vsel %vm7933_vm2, 0, %v1460_v22 }
 0x25f   : > { %15662 = vst [vmem:[#allocation290_spill] sm:$0xff] %v9942_v30  ;;  %3287 = vrot.lane.b32.xlu1 %v15502_v57, %s7828_s26  ;;  %v877_v57 = vpack.c.bf16 %v9997_v14, %v9997_v14 }
 0x260   : > { %15666 = vst [vmem:[#allocation294_spill] sm:$0xff] %v9963_v9 }
 0x261   : > { %v9946_v20 = vpop.permute.xlu1 %3199 }
 0x262   : > { %15663 = vst [vmem:[#allocation291_spill] sm:$0xff] %v9946_v20  ;;  %3295 = vrot.lane.b32.xlu2 %v15517_v54, %s7828_s26 }
 0x264   : > { %3291 = vrot.lane.b32.xlu0 %v15498_v5, %s7828_s26  ;;  %v9954_v33 = vpop.permute.xlu2 %3225 }
 0x265   : > { %15664 = vst [vmem:[#allocation292_spill] sm:$0xff] %v9954_v33 }
 0x266   : > { %v9957_v30 = vpop.permute.xlu0 %3203 }
 0x267   : > { %15665 = vst [vmem:[#allocation293_spill] sm:$0xff] %v9957_v30  ;;  %3293 = vrot.lane.b32.xlu1 %v15513_v24, %s7828_s26  ;;  %v876_v24 = vpack.c.bf16 %v417_v8, %v417_v8  ;;  %v15701_v30 = vld [vmem:[#allocation160_spill] sm:$0xff] }
 0x269   : > { %v9965_v28 = vpop.permute.xlu1 %3205 }
 0x26a   : > { %15667 = vst [vmem:[#allocation295_spill] sm:$0xff] %v9965_v28  ;;  %3301 = vrot.lane.b32.xlu2 %v15525_v49, %s7828_s26 }
 0x26c   : > { %3297 = vrot.lane.b32.xlu0 %v9963_v9, %s7828_s26  ;;  %v9971_v20 = vpop.permute.xlu2 %3235 }
 0x26d   : > { %15668 = vst [vmem:[#allocation296_spill] sm:$0xff] %v9971_v20 }
 0x26e   : > { %v9973_v40 = vpop.permute.xlu0 %3209 }
 0x26f   : > { %15669 = vst [vmem:[#allocation297_spill] sm:$0xff] %v9973_v40  ;;  %3299 = vrot.lane.b32.xlu1 %v15510_v46, %s7828_s26  ;;  %v649_v40 = vsel %vm451_vm4, %v417_v8, 0.0  ;;  %v15705_v46 = vld [vmem:[#allocation151_spill] sm:$0xff] }
 0x270   : > { %v9992_v5 = vadd.f32 %v649_v40, %v15673_v63  ;;  %v1132_v63 = vunpack.c.l.b16 %v876_v24  ;;  %v1133_v40 = vunpack.c.l.b16 %v877_v57  ;;  %v15682_v57 = vld [vmem:[#allocation116_spill] sm:$0xff]  ;;  %v15683_v24 = vld [vmem:[#allocation111_spill] sm:$0xff] }
 0x271   : > { %v9977_v54 = vpop.permute.xlu1 %3211 }
 0x272   : > { %15670 = vst [vmem:[#allocation298_spill] sm:$0xff] %v9977_v54  ;;  %3307 = vrot.lane.b32.xlu2 %v15536_v51, %s7828_s26  ;;  %v1213_v8 = vpack.c.b16 %v1133_v40, %v1132_v63 }
 0x274   : > { %3303 = vrot.lane.b32.xlu0 %v15529_v25, %s7828_s26  ;;  %v9983_v22 = vpop.permute.xlu2 %3241  ;;  %v1567_v52 = vshrl.u32 %v1213_v8, 16  ;;  %v1570_v63 = vshll.u32 %v1213_v8, 16 }
 0x275   : > { %15671 = vst [vmem:[#allocation299_spill] sm:$0xff] %v9983_v22 }
 0x276   : > { %v9985_v33 = vpop.permute.xlu0 %3215 }
 0x277   : > { %15672 = vst [vmem:[#allocation300_spill] sm:$0xff] %v9985_v33  ;;  %3305 = vrot.lane.b32.xlu1 %v15521_v12, %s7828_s26 }
 0x279   : > { %v9994_v54 = vpop.permute.xlu1 %3217 }
 0x27a   : > { %15674 = vst [vmem:[#allocation117_spill] sm:$0xff] %v9994_v54  ;;  %3313 = vrot.lane.b32.xlu2 %v15548_v7, %s7828_s26 }
 0x27c   : > { %3309 = vrot.lane.b32.xlu0 %v15540_v38, %s7828_s26  ;;  %v10003_v33 = vpop.permute.xlu2 %3247 }
 0x27d   : > { %15675 = vst [vmem:[#allocation301_spill] sm:$0xff] %v10003_v33 }
 0x27e   : > { %v10007_v43 = vpop.permute.xlu0 %3221 }
 0x27f   : > { %15676 = vst [vmem:[#allocation302_spill] sm:$0xff] %v10007_v43  ;;  %3311 = vrot.lane.b32.xlu1 %v15532_v6, %s7828_s26  ;;  %v15680_v43 = vld [vmem:[#allocation108_spill] sm:$0xff] }
 0x281   : > { %v10011_v54 = vpop.permute.xlu1 %3223 }
 0x282   : > { %15677 = vst [vmem:[#allocation303_spill] sm:$0xff] %v10011_v54  ;;  %3319 = vrot.lane.b32.xlu2 %v15560_v48, %s7828_s26  ;;  %v10031_v48 = vrot.slane %v1567_v52, 7 }
 0x284   : > { %3315 = vrot.lane.b32.xlu0 %v15552_v44, %s7828_s26  ;;  %v10017_v33 = vpop.permute.xlu2 %3253  ;;  %v10063_v44 = vld [vmem:[%s7956_s23 + $0x3f0] sm:$0xff] }
 0x285   : > { %15678 = vst [vmem:[#allocation304_spill] sm:$0xff] %v10017_v33  ;;  %v15686_v33 = vld [vmem:[#allocation120_spill] sm:$0xff] }
 0x286   : > { %v10019_v22 = vpop.permute.xlu0 %3227 }
 0x287   : > { %15679 = vst [vmem:[#allocation305_spill] sm:$0xff] %v10019_v22  ;;  %3317 = vrot.lane.b32.xlu1 %v15680_v43, %s7828_s26  ;;  %v15695_v43 = vld [vmem:[#allocation128_spill] sm:$0xff] }
 0x289   : > { %v10023_v28 = vpop.permute.xlu1 %3229 }
 0x28a   : > { %15681 = vst [vmem:[#allocation306_spill] sm:$0xff] %v10023_v28  ;;  %3325 = vrot.lane.b32.xlu2 %v15682_v57, %s7828_s26  ;;  %v1572_v28 = vor.u32 %v1570_v63, %v10031_v48  ;;  %v15688_v57 = vld [vmem:[#allocation131_spill] sm:$0xff] }
 0x28c   : > { %3321 = vrot.lane.b32.xlu0 %v15683_v24, %s7828_s26  ;;  %v10029_v54 = vpop.permute.xlu2 %3259  ;;  %v15689_v24 = vld [vmem:[#allocation123_spill] sm:$0xff]  ;;  %v10046_v52 = vsel %vm7933_vm2, 0, %v1572_v28 }
 0x28d   : > { %15684 = vst [vmem:[#allocation307_spill] sm:$0xff] %v10029_v54  ;;  %v10066_v28 = vld [vmem:[%s7956_s23 + $0x3f8] sm:$0xff]  ;;  %s302_s23 = sand.u32 1, %s7815_s30  }
 0x28e   : > { %v10033_v40 = vpop.permute.xlu0 %3237  ;;  %15690 = vst [vmem:[#allocation310_spill] sm:$0xff] %v10046_v52  ;;  %v909_v62 = vpack.c.bf16 %v10066_v28, %v10066_v28  ;;  %s13667_s24 = sshll.u32 %s302_s23, 2 }
 0x28f   : > { %15685 = vst [vmem:[#allocation308_spill] sm:$0xff] %v10033_v40  ;;  %3323 = vrot.lane.b32.xlu1 %v15686_v33, %s7828_s26  ;;  %v15694_v33 = vld [vmem:[#allocation147_spill] sm:$0xff]  ;;  %v15702_v40 = vld [vmem:[#allocation140_spill] sm:$0xff]  ;;  %s304_s25 = scalar_lea.vmem [#allocation3], %s13667_s24  ;;  %s7781_s24 = scalar_lea.hbm %s14811_s7, 8 }
 0x290   : > { %15697 = vst [vmem:[#allocation128_spill] sm:$0xff] %v10066_v28  ;;  %v1165_v7 = vunpack.c.l.b16 %v909_v62  ;;  %v15926_v28 = vld [vmem:[#allocation101_spill] sm:$0xff]  ;;  %s7514_s22 = sshll.u32 %s304_s25, 4  ;;  %s7515_s22 = int_to_ptr.vmem [resolvable:$true] %s7514_s22 }
 0x291   : > { %v10038_v22 = vpop.permute.xlu1 %3239 }
 0x292   : > { %15687 = vst [vmem:[#allocation309_spill] sm:$0xff] %v10038_v22  ;;  %3331 = vrot.lane.b32.xlu2 %v15688_v57, %s7828_s26 }
 0x294   : > { %3327 = vrot.lane.b32.xlu0 %v15689_v24, %s7828_s26  ;;  %v10048_v8 = vpop.permute.xlu2 %3265 }
 0x295   : > { %15691 = vst [vmem:[#allocation311_spill] sm:$0xff] %v10048_v8 }
 0x296   : > { %v10050_v54 = vpop.permute.xlu0 %3243 }
 0x297   : > { %15692 = vst [vmem:[#allocation312_spill] sm:$0xff] %v10050_v54  ;;  %3329 = vrot.lane.b32.xlu1 %v10046_v52, %s7828_s26  ;;  %v15699_v54 = vld [vmem:[#allocation136_spill] sm:$0xff] }
 0x299   : > { %v10054_v63 = vpop.permute.xlu1 %3245 }
 0x29a   : > { %15693 = vst [vmem:[#allocation313_spill] sm:$0xff] %v10054_v63  ;;  %3337 = vrot.lane.b32.xlu2 %v15694_v33, %s7828_s26  ;;  %v908_v63 = vpack.c.bf16 %v10063_v44, %v10063_v44 }
 0x29c   : > { %3333 = vrot.lane.b32.xlu0 %v15695_v43, %s7828_s26  ;;  %v10060_v24 = vpop.permute.xlu2 %3271 }
 0x29d   : > { %15696 = vst [vmem:[#allocation147_spill] sm:$0xff] %v10060_v24  ;;  %v1164_v24 = vunpack.c.l.b16 %v908_v63 }
 0x29e   : > { %v10068_v8 = vpop.permute.xlu0 %3249 }
 0x29f   : > { %15698 = vst [vmem:[#allocation314_spill] sm:$0xff] %v10068_v8  ;;  %3335 = vrot.lane.b32.xlu1 %v15699_v54, %s7828_s26  ;;  %v1229_v0 = vpack.c.b16 %v1165_v7, %v1164_v24 }
 0x2a1   : > { %v10076_v22 = vpop.permute.xlu1 %3251  ;;  %v1679_v6 = vshrl.u32 %v1229_v0, 16 }
 0x2a2   : > { %15700 = vst [vmem:[#allocation136_spill] sm:$0xff] %v10076_v22  ;;  %3343 = vrot.lane.b32.xlu2 %v15701_v30, %s7828_s26  ;;  %v15707_v22 = vld [vmem:[#allocation174_spill] sm:$0xff] }
 0x2a4   : > { %3339 = vrot.lane.b32.xlu0 %v15702_v40, %s7828_s26  ;;  %v10082_v8 = vpop.permute.xlu2 %3277 }
 0x2a5   : > { %15703 = vst [vmem:[#allocation315_spill] sm:$0xff] %v10082_v8  ;;  %v1682_v8 = vshll.u32 %v1229_v0, 16 }
 0x2a6   : > { %v10084_v35 = vpop.permute.xlu0 %3255 }
 0x2a7   : > { %15704 = vst [vmem:[#allocation316_spill] sm:$0xff] %v10084_v35  ;;  %3341 = vrot.lane.b32.xlu1 %v15705_v46, %s7828_s26  ;;  %v10100_v35 = vrot.slane %v1679_v6, 7 }
 0x2a9   : > { %v10088_v57 = vpop.permute.xlu1 %3257  ;;  %v1684_v24 = vor.u32 %v1682_v8, %v10100_v35 }
 0x2aa   : > { %15706 = vst [vmem:[#allocation317_spill] sm:$0xff] %v10088_v57  ;;  %3349 = vrot.lane.b32.xlu2 %v15707_v22, %s7828_s26 }
 0x2ab   : > { %v10117_v6 = vsel %vm7933_vm2, 0, %v1684_v24  ;;  %v15718_v24 = vld [vmem:[#allocation15_spill] sm:$0xff] }
 0x2ac   : > { %3345 = vrot.lane.b32.xlu0 %v15607_v19, %s7828_s26  ;;  %v10094_v62 = vpop.permute.xlu2 %3283  ;;  %15713 = vst [vmem:[#allocation323_spill] sm:$0xff] %v10117_v6 }
 0x2ad   : > { %15708 = vst [vmem:[#allocation318_spill] sm:$0xff] %v10094_v62 }
 0x2ae   : > { %v10096_v63 = vpop.permute.xlu0 %3261 }
 0x2af   : > { %15709 = vst [vmem:[#allocation319_spill] sm:$0xff] %v10096_v63  ;;  %3347 = vrot.lane.b32.xlu1 %v15611_v42, %s7828_s26  ;;  %v15719_v63 = vld [vmem:[#allocation12_spill] sm:$0xff] }
 0x2b1   : > { %v10102_v7 = vpop.permute.xlu1 %3263 }
 0x2b2   : > { %15710 = vst [vmem:[#allocation320_spill] sm:$0xff] %v10102_v7  ;;  %3355 = vrot.lane.b32.xlu2 %v9242_v55, %s7828_s26 }
 0x2b4   : > { %3351 = vrot.lane.b32.xlu0 %v15616_v4, %s7828_s26  ;;  %v10109_v57 = vpop.permute.xlu2 %3289  ;;  %v15725_v4 = vld [vmem:[#allocation10_spill] sm:$0xff] }
 0x2b5   : > { %15711 = vst [vmem:[#allocation321_spill] sm:$0xff] %v10109_v57 }
 0x2b6   : > { %v10111_v62 = vpop.permute.xlu0 %3267 }
 0x2b7   : > { %15712 = vst [vmem:[#allocation322_spill] sm:$0xff] %v10111_v62  ;;  %3353 = vrot.lane.b32.xlu1 %v9195_v37, %s7828_s26  ;;  %v15749_v62 = vld [vmem:[#allocation36_spill] sm:$0xff] }
 0x2b9   : > { %v10119_v0 = vpop.permute.xlu1 %3269 }
 0x2ba   : > { %15714 = vst [vmem:[#allocation324_spill] sm:$0xff] %v10119_v0  ;;  %3361 = vrot.lane.b32.xlu2 %v10117_v6, %s7828_s26  ;;  %v15734_v0 = vld [vmem:[#allocation17_spill] sm:$0xff] }
 0x2bc   : > { %3357 = vrot.lane.b32.xlu0 %v9229_v58, %s7828_s26  ;;  %v10125_v8 = vpop.permute.xlu2 %3295 }
 0x2bd   : > { %15715 = vst [vmem:[#allocation325_spill] sm:$0xff] %v10125_v8  ;;  %v15722_v8 = vld [vmem:[#allocation11_spill] sm:$0xff] }
 0x2be   : > { %v10127_v57 = vpop.permute.xlu0 %3273 }
 0x2bf   : > { %15716 = vst [vmem:[#allocation326_spill] sm:$0xff] %v10127_v57  ;;  %3359 = vrot.lane.b32.xlu1 %v9264_v31, %s7828_s26  ;;  %v15724_v31 = vld [vmem:[#allocation16_spill] sm:$0xff]  ;;  %s7516_s26 = sshll.u32 %s7512_s21, 4  ;;  %s7517_s26 = int_to_ptr.hbm [resolvable:$true] %s7516_s26 }
 0x2c1   : > { %v10131_v7 = vpop.permute.xlu1 %3275 }
 0x2c2   : > { %15717 = vst [vmem:[#allocation327_spill] sm:$0xff] %v10131_v7  ;;  %3415 = vrot.lane.b32.xlu2 %v15718_v24, %s7829_s27 }
 0x2c4   : > { %3411 = vrot.lane.b32.xlu0 %v15719_v63, %s7829_s27  ;;  %v10137_v55 = vpop.permute.xlu2 %3301  ;;  %v15728_v63 = vld [vmem:[#allocation13_spill] sm:$0xff] }
 0x2c5   : > { %15720 = vst [vmem:[#allocation15_spill] sm:$0xff] %v10137_v55 }
 0x2c6   : > { %v10139_v37 = vpop.permute.xlu0 %3279 }
 0x2c7   : > { %15721 = vst [vmem:[#allocation12_spill] sm:$0xff] %v10139_v37  ;;  %3413 = vrot.lane.b32.xlu1 %v15722_v8, %s7829_s27  ;;  %v15730_v37 = vld [vmem:[#allocation20_spill] sm:$0xff] }
 0x2c9   : > { %v10143_v58 = vpop.permute.xlu1 %3281 }
 0x2ca   : > { %15723 = vst [vmem:[#allocation11_spill] sm:$0xff] %v10143_v58  ;;  %3421 = vrot.lane.b32.xlu2 %v15724_v31, %s7829_s27  ;;  %v15731_v58 = vld [vmem:[#allocation19_spill] sm:$0xff] }
 0x2cc   : > { %3417 = vrot.lane.b32.xlu0 %v15725_v4, %s7829_s27  ;;  %v10149_v7 = vpop.permute.xlu2 %3307 }
 0x2cd   : > { %15726 = vst [vmem:[#allocation10_spill] sm:$0xff] %v10149_v7 }
 0x2ce   : > { %v10151_v22 = vpop.permute.xlu0 %3285 }
 0x2cf   : > { %15727 = vst [vmem:[#allocation328_spill] sm:$0xff] %v10151_v22  ;;  %3419 = vrot.lane.b32.xlu1 %v15728_v63, %s7829_s27  ;;  %v15736_v22 = vld [vmem:[#allocation25_spill] sm:$0xff] }
 0x2d1   : > { %v10155_v57 = vpop.permute.xlu1 %3287 }
 0x2d2   : > { %15729 = vst [vmem:[#allocation329_spill] sm:$0xff] %v10155_v57  ;;  %3427 = vrot.lane.b32.xlu2 %v15730_v37, %s7829_s27  ;;  %v15737_v57 = vld [vmem:[#allocation24_spill] sm:$0xff]  ;;  %v3366_v37 = vshll.u32 %v9877_v47, 16 }
 0x2d4   : > { %3423 = vrot.lane.b32.xlu0 %v15731_v58, %s7829_s27  ;;  %v10161_v42 = vpop.permute.xlu2 %3313 }
 0x2d5   : > { %15732 = vst [vmem:[#allocation330_spill] sm:$0xff] %v10161_v42  ;;  %v15740_v42 = vld [vmem:[#allocation22_spill] sm:$0xff] }
 0x2d6   : > { %v10163_v19 = vpop.permute.xlu0 %3291 }
 0x2d7   : > { %15733 = vst [vmem:[#allocation331_spill] sm:$0xff] %v10163_v19  ;;  %3425 = vrot.lane.b32.xlu1 %v15734_v0, %s7829_s27  ;;  %v10181_v19 = vsel %vm7933_vm2, %v9860_v26, 0  ;;  %v3368_v0 = vrot.slane %v3366_v37, 1 }
 0x2d9   : > { %v10167_v7 = vpop.permute.xlu1 %3293 }
 0x2da   : > { %15735 = vst [vmem:[#allocation332_spill] sm:$0xff] %v10167_v7  ;;  %3433 = vrot.lane.b32.xlu2 %v15736_v22, %s7829_s27  ;;  %v3364_v22 = vshrl.u32 %v9877_v47, 16 }
 0x2dc   : > { %3429 = vrot.lane.b32.xlu0 %v15737_v57, %s7829_s27  ;;  %v10173_v30 = vpop.permute.xlu2 %3319  ;;  %v3371_v57 = vshll.u32 %v10181_v19, 16  ;;  %v3369_v26 = vor.u32 %v3368_v0, %v3364_v22 }
 0x2dd   : > { %15738 = vst [vmem:[#allocation333_spill] sm:$0xff] %v10173_v30  ;;  %v15742_v30 = vld [vmem:[#allocation34_spill] sm:$0xff] }
 0x2de   : > { %v10176_v58 = vpop.permute.xlu0 %3297  ;;  %v3373_v31 = vrot.slane %v3371_v57, 1  ;;  %v15752_v57 = vld [vmem:[#allocation38_spill] sm:$0xff] }
 0x2df   : > { %15739 = vst [vmem:[#allocation334_spill] sm:$0xff] %v10176_v58  ;;  %3431 = vrot.lane.b32.xlu1 %v15740_v42, %s7829_s27  ;;  %v15743_v58 = vld [vmem:[#allocation31_spill] sm:$0xff]  ;;  %v15746_v42 = vld [vmem:[#allocation26_spill] sm:$0xff] }
 0x2e0   : > { %v10200_v13 = vsel %vm1948_vm3, %v3369_v26, %v3373_v31  ;;  %v15754_v31 = vld [vmem:[#allocation45_spill] sm:$0xff]  ;;  %v15755_v26 = vld [vmem:[#allocation42_spill] sm:$0xff] }
 0x2e1   : > { %v10185_v7 = vpop.permute.xlu1 %3299  ;;  %15747 = vst [vmem:[#allocation338_spill] sm:$0xff] %v10200_v13 }
 0x2e2   : > { %15741 = vst [vmem:[#allocation335_spill] sm:$0xff] %v10185_v7  ;;  %3439 = vrot.lane.b32.xlu2 %v15742_v30, %s7829_s27 }
 0x2e4   : > { %3435 = vrot.lane.b32.xlu0 %v15743_v58, %s7829_s27  ;;  %v10193_v55 = vpop.permute.xlu2 %3325 }
 0x2e5   : > { %15744 = vst [vmem:[#allocation336_spill] sm:$0xff] %v10193_v55 }
 0x2e6   : > { %v10195_v20 = vpop.permute.xlu0 %3303 }
 0x2e7   : > { %15745 = vst [vmem:[#allocation337_spill] sm:$0xff] %v10195_v20  ;;  %3437 = vrot.lane.b32.xlu1 %v15746_v42, %s7829_s27  ;;  %v15764_v20 = vld [vmem:[#allocation57_spill] sm:$0xff] }
 0x2e9   : > { %v10202_v37 = vpop.permute.xlu1 %3305 }
 0x2ea   : > { %15748 = vst [vmem:[#allocation339_spill] sm:$0xff] %v10202_v37  ;;  %3445 = vrot.lane.b32.xlu2 %v15749_v62, %s7829_s27 }
 0x2ec   : > { %3441 = vrot.lane.b32.xlu0 %v10200_v13, %s7829_s27  ;;  %v10208_v30 = vpop.permute.xlu2 %3331  ;;  %v15758_v13 = vld [vmem:[#allocation48_spill] sm:$0xff] }
 0x2ed   : > { %15750 = vst [vmem:[#allocation36_spill] sm:$0xff] %v10208_v30 }
 0x2ee   : > { %v10210_v22 = vpop.permute.xlu0 %3309 }
 0x2ef   : > { %15751 = vst [vmem:[#allocation340_spill] sm:$0xff] %v10210_v22  ;;  %3443 = vrot.lane.b32.xlu1 %v15752_v57, %s7829_s27  ;;  %v15760_v22 = vld [vmem:[#allocation54_spill] sm:$0xff]  ;;  %v15761_v57 = vld [vmem:[#allocation51_spill] sm:$0xff] }
 0x2f1   : > { %v10214_v0 = vpop.permute.xlu1 %3311 }
 0x2f2   : > { %15753 = vst [vmem:[#allocation38_spill] sm:$0xff] %v10214_v0  ;;  %3451 = vrot.lane.b32.xlu2 %v15754_v31, %s7829_s27 }
 0x2f4   : > { %3447 = vrot.lane.b32.xlu0 %v15755_v26, %s7829_s27  ;;  %v10220_v55 = vpop.permute.xlu2 %3337 }
 0x2f5   : > { %15756 = vst [vmem:[#allocation42_spill] sm:$0xff] %v10220_v55 }
 0x2f6   : > { %v10222_v42 = vpop.permute.xlu0 %3315 }
 0x2f7   : > { %15757 = vst [vmem:[#allocation341_spill] sm:$0xff] %v10222_v42  ;;  %3449 = vrot.lane.b32.xlu1 %v15758_v13, %s7829_s27  ;;  %v15766_v42 = vld [vmem:[#allocation63_spill] sm:$0xff] }
 0x2f9   : > { %v10226_v58 = vpop.permute.xlu1 %3317 }
 0x2fa   : > { %15759 = vst [vmem:[#allocation48_spill] sm:$0xff] %v10226_v58  ;;  %3457 = vrot.lane.b32.xlu2 %v15760_v22, %s7829_s27  ;;  %v15767_v58 = vld [vmem:[#allocation60_spill] sm:$0xff] }
 0x2fc   : > { %3453 = vrot.lane.b32.xlu0 %v15761_v57, %s7829_s27  ;;  %v10232_v0 = vpop.permute.xlu2 %3343  ;;  %v15770_v57 = vld [vmem:[#allocation66_spill] sm:$0xff] }
 0x2fd   : > { %15762 = vst [vmem:[#allocation342_spill] sm:$0xff] %v10232_v0 }
 0x2fe   : > { %v10234_v37 = vpop.permute.xlu0 %3321 }
 0x2ff   : > { %15763 = vst [vmem:[#allocation343_spill] sm:$0xff] %v10234_v37  ;;  %3455 = vrot.lane.b32.xlu1 %v15764_v20, %s7829_s27  ;;  %v3378_v37 = vshll.u32 %v9963_v9, 16 }
 0x301   : > { %v10238_v55 = vpop.permute.xlu1 %3323 }
 0x302   : > { %15765 = vst [vmem:[#allocation344_spill] sm:$0xff] %v10238_v55  ;;  %3463 = vrot.lane.b32.xlu2 %v15766_v42, %s7829_s27  ;;  %v10256_v55 = vsel %vm7933_vm2, %v9948_v41, 0  ;;  %v15772_v42 = vld [vmem:[#allocation73_spill] sm:$0xff] }
 0x303   : > { %v3383_v20 = vshll.u32 %v10256_v55, 16 }
 0x304   : > { %3459 = vrot.lane.b32.xlu0 %v15767_v58, %s7829_s27  ;;  %v10244_v30 = vpop.permute.xlu2 %3349  ;;  %v15773_v58 = vld [vmem:[#allocation69_spill] sm:$0xff] }
 0x305   : > { %15768 = vst [vmem:[#allocation345_spill] sm:$0xff] %v10244_v30  ;;  %v3385_v38 = vrot.slane %v3383_v20, 1  ;;  %v15784_v20 = vld [vmem:[#allocation94_spill] sm:$0xff] }
 0x306   : > { %v10246_v22 = vpop.permute.xlu0 %3327 }
 0x307   : > { %15769 = vst [vmem:[#allocation346_spill] sm:$0xff] %v10246_v22  ;;  %3461 = vrot.lane.b32.xlu1 %v15770_v57, %s7829_s27  ;;  %v3376_v22 = vshrl.u32 %v9963_v9, 16  ;;  %v3380_v57 = vrot.slane %v3378_v37, 1 }
 0x309   : > { %v10251_v0 = vpop.permute.xlu1 %3329  ;;  %v3381_v41 = vor.u32 %v3380_v57, %v3376_v22 }
 0x30a   : > { %15771 = vst [vmem:[#allocation347_spill] sm:$0xff] %v10251_v0  ;;  %3469 = vrot.lane.b32.xlu2 %v15772_v42, %s7829_s27  ;;  %v15776_v0 = vld [vmem:[#allocation76_spill] sm:$0xff]  ;;  %v15778_v42 = vld [vmem:[#allocation85_spill] sm:$0xff] }
 0x30c   : > { %3465 = vrot.lane.b32.xlu0 %v15773_v58, %s7829_s27  ;;  %v10262_v30 = vpop.permute.xlu2 %3355  ;;  %v15779_v58 = vld [vmem:[#allocation79_spill] sm:$0xff] }
 0x30d   : > { %15774 = vst [vmem:[#allocation348_spill] sm:$0xff] %v10262_v30  ;;  %v10277_v30 = vsel %vm1948_vm3, %v3381_v41, %v3385_v38  ;;  %v15788_v38 = vld [vmem:[#allocation88_spill] sm:$0xff] }
 0x30e   : > { %v10266_v46 = vpop.permute.xlu0 %3333  ;;  %15780 = vst [vmem:[#allocation85_spill] sm:$0xff] %v10277_v30 }
 0x30f   : > { %15775 = vst [vmem:[#allocation349_spill] sm:$0xff] %v10266_v46  ;;  %3467 = vrot.lane.b32.xlu1 %v15776_v0, %s7829_s27  ;;  %v15800_v46 = vld [vmem:[#allocation106_spill] sm:$0xff] }
 0x311   : > { %v10270_v7 = vpop.permute.xlu1 %3335 }
 0x312   : > { %15777 = vst [vmem:[#allocation350_spill] sm:$0xff] %v10270_v7  ;;  %3475 = vrot.lane.b32.xlu2 %v15778_v42, %s7829_s27  ;;  %v15785_v42 = vld [vmem:[#allocation82_spill] sm:$0xff]  ;;  %v15797_v7 = vld [vmem:[#allocation100_spill] sm:$0xff] }
 0x314   : > { %3471 = vrot.lane.b32.xlu0 %v15779_v58, %s7829_s27  ;;  %v10279_v37 = vpop.permute.xlu2 %3361 }
 0x315   : > { %15781 = vst [vmem:[#allocation351_spill] sm:$0xff] %v10279_v37  ;;  %v15790_v37 = vld [vmem:[#allocation103_spill] sm:$0xff] }
 0x316   : > { %v10281_v31 = vpop.permute.xlu0 %3339 }
 0x317   : > { %15782 = vst [vmem:[#allocation352_spill] sm:$0xff] %v10281_v31  ;;  %3473 = vrot.lane.b32.xlu1 %v10277_v30, %s7829_s27  ;;  %v15791_v30 = vld [vmem:[#allocation91_spill] sm:$0xff]  ;;  %v15794_v31 = vld [vmem:[#allocation97_spill] sm:$0xff] }
 0x319   : > { %v10285_v22 = vpop.permute.xlu1 %3341 }
 0x31a   : > { %15783 = vst [vmem:[#allocation353_spill] sm:$0xff] %v10285_v22  ;;  %3481 = vrot.lane.b32.xlu2 %v15784_v20, %s7829_s27 }
 0x31c   : > { %3477 = vrot.lane.b32.xlu0 %v15785_v42, %s7829_s27  ;;  %v10291_v57 = vpop.permute.xlu2 %3415 }
 0x31d   : > { %15786 = vst [vmem:[#allocation94_spill] sm:$0xff] %v10291_v57 }
 0x31e   : > { %v10293_v58 = vpop.permute.xlu0 %3345 }
 0x31f   : > { %15787 = vst [vmem:[#allocation82_spill] sm:$0xff] %v10293_v58  ;;  %3479 = vrot.lane.b32.xlu1 %v15788_v38, %s7829_s27  ;;  %v15796_v58 = vld [vmem:[#allocation112_spill] sm:$0xff] }
 0x321   : > { %v10297_v41 = vpop.permute.xlu1 %3347 }
 0x322   : > { %15789 = vst [vmem:[#allocation88_spill] sm:$0xff] %v10297_v41  ;;  %3487 = vrot.lane.b32.xlu2 %v15790_v37, %s7829_s27  ;;  %v3390_v41 = vshll.u32 %v10046_v52, 16 }
 0x324   : > { %3483 = vrot.lane.b32.xlu0 %v15791_v30, %s7829_s27  ;;  %v10303_v0 = vpop.permute.xlu2 %3421 }
 0x325   : > { %15792 = vst [vmem:[#allocation354_spill] sm:$0xff] %v10303_v0  ;;  %v10321_v0 = vsel %vm7933_vm2, %v10031_v48, 0  ;;  %v15803_v48 = vld [vmem:[#allocation109_spill] sm:$0xff] }
 0x326   : > { %v10305_v22 = vpop.permute.xlu0 %3351 }
 0x327   : > { %15793 = vst [vmem:[#allocation355_spill] sm:$0xff] %v10305_v22  ;;  %3485 = vrot.lane.b32.xlu1 %v15794_v31, %s7829_s27  ;;  %v3395_v31 = vshll.u32 %v10321_v0, 16 }
 0x329   : > { %v10309_v57 = vpop.permute.xlu1 %3353  ;;  %v3397_v63 = vrot.slane %v3395_v31, 1 }
 0x32a   : > { %15795 = vst [vmem:[#allocation356_spill] sm:$0xff] %v10309_v57  ;;  %3493 = vrot.lane.b32.xlu2 %v15796_v58, %s7829_s27  ;;  %v3388_v57 = vshrl.u32 %v10046_v52, 16  ;;  %v3392_v58 = vrot.slane %v3390_v41, 1 }
 0x32c   : > { %3489 = vrot.lane.b32.xlu0 %v15797_v7, %s7829_s27  ;;  %v10316_v37 = vpop.permute.xlu2 %3427  ;;  %v15802_v7 = vld [vmem:[#allocation124_spill] sm:$0xff] }
 0x32d   : > { %15798 = vst [vmem:[#allocation357_spill] sm:$0xff] %v10316_v37  ;;  %v3393_v37 = vor.u32 %v3392_v58, %v3388_v57  ;;  %v15809_v58 = vld [vmem:[#allocation121_spill] sm:$0xff] }
 0x32e   : > { %v10323_v22 = vpop.permute.xlu0 %3357 }
 0x32f   : > { %15799 = vst [vmem:[#allocation358_spill] sm:$0xff] %v10323_v22  ;;  %3491 = vrot.lane.b32.xlu1 %v15800_v46, %s7829_s27  ;;  %v15806_v46 = vld [vmem:[#allocation115_spill] sm:$0xff]  ;;  %v10342_v41 = vsel %vm1948_vm3, %v3393_v37, %v3397_v63  ;;  %v15814_v63 = vld [vmem:[#allocation142_spill] sm:$0xff] }
 0x330   : > { %15807 = vst [vmem:[#allocation362_spill] sm:$0xff] %v10342_v41  ;;  %v15815_v37 = vld [vmem:[#allocation138_spill] sm:$0xff] }
 0x331   : > { %v10329_v15 = vpop.permute.xlu1 %3359 }
 0x332   : > { %15801 = vst [vmem:[#allocation359_spill] sm:$0xff] %v10329_v15  ;;  %3499 = vrot.lane.b32.xlu2 %v15802_v7, %s7829_s27  ;;  %v15812_v15 = vld [vmem:[#allocation126_spill] sm:$0xff] }
 0x334   : > { %3495 = vrot.lane.b32.xlu0 %v15803_v48, %s7829_s27  ;;  %v10335_v30 = vpop.permute.xlu2 %3433 }
 0x335   : > { %15804 = vst [vmem:[#allocation360_spill] sm:$0xff] %v10335_v30 }
 0x336   : > { %v10337_v22 = vpop.permute.xlu0 %3411 }
 0x337   : > { %15805 = vst [vmem:[#allocation361_spill] sm:$0xff] %v10337_v22  ;;  %3497 = vrot.lane.b32.xlu1 %v15806_v46, %s7829_s27  ;;  %v15820_v46 = vld [vmem:[#allocation156_spill] sm:$0xff]  ;;  %v15830_v22 = vld [vmem:[#allocation161_spill] sm:$0xff] }
 0x339   : > { %v10344_v36 = vpop.permute.xlu1 %3413 }
 0x33a   : > { %15808 = vst [vmem:[#allocation363_spill] sm:$0xff] %v10344_v36  ;;  %3505 = vrot.lane.b32.xlu2 %v10342_v41, %s7829_s27 }
 0x33c   : > { %3501 = vrot.lane.b32.xlu0 %v15809_v58, %s7829_s27  ;;  %v10350_v31 = vpop.permute.xlu2 %3439  ;;  %v15818_v58 = vld [vmem:[#allocation134_spill] sm:$0xff] }
 0x33d   : > { %15810 = vst [vmem:[#allocation364_spill] sm:$0xff] %v10350_v31 }
 0x33e   : > { %v10352_v57 = vpop.permute.xlu0 %3417 }
 0x33f   : > { %15811 = vst [vmem:[#allocation365_spill] sm:$0xff] %v10352_v57  ;;  %3503 = vrot.lane.b32.xlu1 %v15812_v15, %s7829_s27  ;;  %v15821_v15 = vld [vmem:[#allocation152_spill] sm:$0xff] }
 0x341   : > { %v10356_v30 = vpop.permute.xlu1 %3419 }
 0x342   : > { %15813 = vst [vmem:[#allocation366_spill] sm:$0xff] %v10356_v30  ;;  %3511 = vrot.lane.b32.xlu2 %v15814_v63, %s7829_s27 }
 0x344   : > { %3507 = vrot.lane.b32.xlu0 %v15815_v37, %s7829_s27  ;;  %v10362_v7 = vpop.permute.xlu2 %3445  ;;  %v15824_v37 = vld [vmem:[#allocation146_spill] sm:$0xff] }
 0x345   : > { %15816 = vst [vmem:[#allocation142_spill] sm:$0xff] %v10362_v7 }
 0x346   : > { %v10364_v41 = vpop.permute.xlu0 %3423 }
 0x347   : > { %15817 = vst [vmem:[#allocation138_spill] sm:$0xff] %v10364_v41  ;;  %3509 = vrot.lane.b32.xlu1 %v15818_v58, %s7829_s27  ;;  %v15826_v41 = vld [vmem:[#allocation169_spill] sm:$0xff] }
 0x349   : > { %v10368_v31 = vpop.permute.xlu1 %3425 }
 0x34a   : > { %15819 = vst [vmem:[#allocation134_spill] sm:$0xff] %v10368_v31  ;;  %3517 = vrot.lane.b32.xlu2 %v15820_v46, %s7829_s27  ;;  %v15827_v31 = vld [vmem:[#allocation165_spill] sm:$0xff] }
 0x34c   : > { %3513 = vrot.lane.b32.xlu0 %v15821_v15, %s7829_s27  ;;  %v10374_v48 = vpop.permute.xlu2 %3451 }
 0x34d   : > { %15822 = vst [vmem:[#allocation152_spill] sm:$0xff] %v10374_v48 }
 0x34e   : > { %v10376_v30 = vpop.permute.xlu0 %3429 }
 0x34f   : > { %15823 = vst [vmem:[#allocation367_spill] sm:$0xff] %v10376_v30  ;;  %3515 = vrot.lane.b32.xlu1 %v15824_v37, %s7829_s27  ;;  %v15832_v30 = vld [vmem:[#allocation182_spill] sm:$0xff] }
 0x351   : > { %v10380_v57 = vpop.permute.xlu1 %3431 }
 0x352   : > { %15825 = vst [vmem:[#allocation368_spill] sm:$0xff] %v10380_v57  ;;  %3523 = vrot.lane.b32.xlu2 %v15826_v41, %s7829_s27  ;;  %v15833_v57 = vld [vmem:[#allocation180_spill] sm:$0xff]  ;;  %v3402_v41 = vshll.u32 %v10117_v6, 16 }
 0x354   : > { %3519 = vrot.lane.b32.xlu0 %v15827_v31, %s7829_s27  ;;  %v10386_v7 = vpop.permute.xlu2 %3457 }
 0x355   : > { %15828 = vst [vmem:[#allocation369_spill] sm:$0xff] %v10386_v7  ;;  %v15836_v7 = vld [vmem:[#allocation176_spill] sm:$0xff] }
 0x356   : > { %v10388_v36 = vpop.permute.xlu0 %3435 }
 0x357   : > { %15829 = vst [vmem:[#allocation370_spill] sm:$0xff] %v10388_v36  ;;  %3521 = vrot.lane.b32.xlu1 %v15830_v22, %s7829_s27  ;;  %v10406_v36 = vsel %vm7933_vm2, %v10100_v35, 0  ;;  %v3404_v22 = vrot.slane %v3402_v41, 1  ;;  %vm4807_vm2 = vcmask 228352  }
 0x359   : > { %v10392_v48 = vpop.permute.xlu1 %3437 }
 0x35a   : > { %15831 = vst [vmem:[#allocation371_spill] sm:$0xff] %v10392_v48  ;;  %3529 = vrot.lane.b32.xlu2 %v15832_v30, %s7829_s27  ;;  %v3400_v30 = vshrl.u32 %v10117_v6, 16 }
 0x35c   : > { %3525 = vrot.lane.b32.xlu0 %v15833_v57, %s7829_s27  ;;  %v10398_v46 = vpop.permute.xlu2 %3463  ;;  %v3407_v57 = vshll.u32 %v10406_v36, 16  ;;  %v3405_v3 = vor.u32 %v3404_v22, %v3400_v30  ;;  %v15848_v22 = vld [vmem:[#allocation194_spill] sm:$0xff] }
 0x35d   : > { %15834 = vst [vmem:[#allocation372_spill] sm:$0xff] %v10398_v46  ;;  %v15838_v46 = vld [vmem:[#allocation195_spill] sm:$0xff] }
 0x35e   : > { %v10401_v31 = vpop.permute.xlu0 %3441  ;;  %v3409_v35 = vrot.slane %v3407_v57, 1 }
 0x35f   : > { %15835 = vst [vmem:[#allocation373_spill] sm:$0xff] %v10401_v31  ;;  %3527 = vrot.lane.b32.xlu1 %v15836_v7, %s7829_s27  ;;  %v15839_v31 = vld [vmem:[#allocation192_spill] sm:$0xff] }
 0x360   : > { %v15842_v7 = vld [vmem:[#allocation188_spill] sm:$0xff] }
 0x361   : > { %v10410_v48 = vpop.permute.xlu1 %3443 }
 0x362   : > { %15837 = vst [vmem:[#allocation374_spill] sm:$0xff] %v10410_v48  ;;  %3535 = vrot.lane.b32.xlu2 %v15838_v46, %s7829_s27  ;;  %v10425_v48 = vsel %vm1948_vm3, %v3405_v3, %v3409_v35  ;;  %v15845_v46 = vld [vmem:[#allocation201_spill] sm:$0xff]  ;;  %v15850_v3 = vld [vmem:[#allocation206_spill] sm:$0xff]  ;;  %vm5083_vm3 = vcmask 293888  }
 0x363   : > { %15843 = vst [vmem:[#allocation377_spill] sm:$0xff] %v10425_v48  ;;  %v15851_v35 = vld [vmem:[#allocation202_spill] sm:$0xff] }
 0x364   : > { %3531 = vrot.lane.b32.xlu0 %v15839_v31, %s7829_s27  ;;  %v10418_v37 = vpop.permute.xlu2 %3469 }
 0x365   : > { %15840 = vst [vmem:[#allocation375_spill] sm:$0xff] %v10418_v37 }
 0x366   : > { %v10420_v16 = vpop.permute.xlu0 %3447 }
 0x367   : > { %15841 = vst [vmem:[#allocation376_spill] sm:$0xff] %v10420_v16  ;;  %3533 = vrot.lane.b32.xlu1 %v15842_v7, %s7829_s27 }
 0x369   : > { %v10427_v41 = vpop.permute.xlu1 %3449 }
 0x36a   : > { %15844 = vst [vmem:[#allocation378_spill] sm:$0xff] %v10427_v41  ;;  %3557 = vrot.lane.b32.xlu2 %v15845_v46, %s7830_s28 }
 0x36c   : > { %3537 = vrot.lane.b32.xlu0 %v10425_v48, %s7829_s27  ;;  %v10433_v37 = vpop.permute.xlu2 %3475  ;;  %v15854_v48 = vld [vmem:[#allocation199_spill] sm:$0xff]  ;;  %s7498_s27 = scalar_lea.sflag [#allocation4], %s302_s23 }
 0x36d   : > { %15846 = vst [vmem:[#allocation201_spill] sm:$0xff] %v10433_v37  ;;  %v15860_v37 = vld [vmem:[#allocation205_spill] sm:$0xff] }
 0x36e   : > { %v10435_v30 = vpop.permute.xlu0 %3453 }
 0x36f   : > { %15847 = vst [vmem:[#allocation379_spill] sm:$0xff] %v10435_v30  ;;  %3555 = vrot.lane.b32.xlu1 %v15848_v22, %s7830_s28  ;;  %v15856_v30 = vld [vmem:[#allocation212_spill] sm:$0xff] }
 0x370   : > { %v15857_v22 = vld [vmem:[#allocation208_spill] sm:$0xff] }
 0x371   : > { %v10439_v57 = vpop.permute.xlu1 %3455 }
 0x372   : > { %15849 = vst [vmem:[#allocation194_spill] sm:$0xff] %v10439_v57  ;;  %3563 = vrot.lane.b32.xlu2 %v15850_v3, %s7830_s28 }
 0x374   : > { %3559 = vrot.lane.b32.xlu0 %v15851_v35, %s7830_s28  ;;  %v10445_v7 = vpop.permute.xlu2 %3481 }
 0x375   : > { %15852 = vst [vmem:[#allocation202_spill] sm:$0xff] %v10445_v7 }
 0x376   : > { %v10447_v31 = vpop.permute.xlu0 %3459 }
 0x377   : > { %15853 = vst [vmem:[#allocation380_spill] sm:$0xff] %v10447_v31  ;;  %3561 = vrot.lane.b32.xlu1 %v15854_v48, %s7830_s28  ;;  %v15862_v31 = vld [vmem:[#allocation216_spill] sm:$0xff] }
 0x379   : > { %v10451_v41 = vpop.permute.xlu1 %3461 }
 0x37a   : > { %15855 = vst [vmem:[#allocation199_spill] sm:$0xff] %v10451_v41  ;;  %3569 = vrot.lane.b32.xlu2 %v15856_v30, %s7830_s28  ;;  %v15863_v41 = vld [vmem:[#allocation213_spill] sm:$0xff] }
 0x37c   : > { %3565 = vrot.lane.b32.xlu0 %v15857_v22, %s7830_s28  ;;  %v10457_v57 = vpop.permute.xlu2 %3487  ;;  %v15866_v22 = vld [vmem:[#allocation209_spill] sm:$0xff] }
 0x37d   : > { %15858 = vst [vmem:[#allocation381_spill] sm:$0xff] %v10457_v57 }
 0x37e   : > { %v10459_v16 = vpop.permute.xlu0 %3465 }
 0x37f   : > { %15859 = vst [vmem:[#allocation382_spill] sm:$0xff] %v10459_v16  ;;  %3567 = vrot.lane.b32.xlu1 %v15860_v37, %s7830_s28  ;;  %v15868_v16 = vld [vmem:[#allocation29_spill] sm:$0xff] }
 0x381   : > { %v10463_v7 = vpop.permute.xlu1 %3467 }
 0x382   : > { %15861 = vst [vmem:[#allocation383_spill] sm:$0xff] %v10463_v7  ;;  %3575 = vrot.lane.b32.xlu2 %v15862_v31, %s7830_s28  ;;  %v15869_v7 = vld [vmem:[#allocation219_spill] sm:$0xff] }
 0x384   : > { %3571 = vrot.lane.b32.xlu0 %v15863_v41, %s7830_s28  ;;  %v10469_v3 = vpop.permute.xlu2 %3493  ;;  %v15872_v41 = vld [vmem:[#allocation215_spill] sm:$0xff] }
 0x385   : > { %15864 = vst [vmem:[#allocation384_spill] sm:$0xff] %v10469_v3  ;;  %v3544_v3 = vrot.slane %v10181_v19, 1  ;;  %v15880_v19 = vld [vmem:[#allocation33_spill] sm:$0xff] }
 0x386   : > { %v10471_v30 = vpop.permute.xlu0 %3471 }
 0x387   : > { %15865 = vst [vmem:[#allocation385_spill] sm:$0xff] %v10471_v30  ;;  %3573 = vrot.lane.b32.xlu1 %v15866_v22, %s7830_s28  ;;  %v3543_v30 = vrot.slane %v9877_v47, 1 }
 0x389   : > { %v10475_v57 = vpop.permute.xlu1 %3473 }
 0x38a   : > { %15867 = vst [vmem:[#allocation386_spill] sm:$0xff] %v10475_v57  ;;  %3581 = vrot.lane.b32.xlu2 %v15868_v16, %s7830_s28  ;;  %v15874_v57 = vld [vmem:[#allocation221_spill] sm:$0xff]  ;;  %v15875_v16 = vld [vmem:[#allocation222_spill] sm:$0xff] }
 0x38c   : > { %3577 = vrot.lane.b32.xlu0 %v15869_v7, %s7830_s28  ;;  %v10481_v37 = vpop.permute.xlu2 %3499  ;;  %v10496_v7 = vsel %vm2925_vm5, %v3543_v30, %v3544_v3  ;;  %v15884_v30 = vld [vmem:[#allocation37_spill] sm:$0xff] }
 0x38d   : > { %15870 = vst [vmem:[#allocation387_spill] sm:$0xff] %v10481_v37 }
 0x38e   : > { %v10483_v31 = vpop.permute.xlu0 %3477  ;;  %15876 = vst [vmem:[#allocation221_spill] sm:$0xff] %v10496_v7 }
 0x38f   : > { %15871 = vst [vmem:[#allocation388_spill] sm:$0xff] %v10483_v31  ;;  %3579 = vrot.lane.b32.xlu1 %v15872_v41, %s7830_s28 }
 0x391   : > { %v10489_v22 = vpop.permute.xlu1 %3479 }
 0x392   : > { %15873 = vst [vmem:[#allocation389_spill] sm:$0xff] %v10489_v22  ;;  %3587 = vrot.lane.b32.xlu2 %v15874_v57, %s7830_s28  ;;  %v15881_v57 = vld [vmem:[#allocation39_spill] sm:$0xff]  ;;  %v15890_v22 = vld [vmem:[#allocation61_spill] sm:$0xff] }
 0x394   : > { %3583 = vrot.lane.b32.xlu0 %v15875_v16, %s7830_s28  ;;  %v10498_v37 = vpop.permute.xlu2 %3505 }
 0x395   : > { %15877 = vst [vmem:[#allocation390_spill] sm:$0xff] %v10498_v37  ;;  %v15886_v37 = vld [vmem:[#allocation224_spill] sm:$0xff] }
 0x396   : > { %v10500_v31 = vpop.permute.xlu0 %3483 }
 0x397   : > { %15878 = vst [vmem:[#allocation391_spill] sm:$0xff] %v10500_v31  ;;  %3585 = vrot.lane.b32.xlu1 %v10496_v7, %s7830_s28  ;;  %v15887_v7 = vld [vmem:[#allocation46_spill] sm:$0xff] }
 0x399   : > { %v10504_v47 = vpop.permute.xlu1 %3485 }
 0x39a   : > { %15879 = vst [vmem:[#allocation392_spill] sm:$0xff] %v10504_v47  ;;  %3593 = vrot.lane.b32.xlu2 %v15880_v19, %s7830_s28 }
 0x39c   : > { %3589 = vrot.lane.b32.xlu0 %v15881_v57, %s7830_s28  ;;  %v10510_v41 = vpop.permute.xlu2 %3511 }
 0x39d   : > { %15882 = vst [vmem:[#allocation33_spill] sm:$0xff] %v10510_v41 }
 0x39e   : > { %v10512_v16 = vpop.permute.xlu0 %3489 }
 0x39f   : > { %15883 = vst [vmem:[#allocation39_spill] sm:$0xff] %v10512_v16  ;;  %3591 = vrot.lane.b32.xlu1 %v15884_v30, %s7830_s28  ;;  %v15892_v16 = vld [vmem:[#allocation49_spill] sm:$0xff] }
 0x3a1   : > { %v10516_v3 = vpop.permute.xlu1 %3491 }
 0x3a2   : > { %15885 = vst [vmem:[#allocation37_spill] sm:$0xff] %v10516_v3  ;;  %3599 = vrot.lane.b32.xlu2 %v15886_v37, %s7830_s28  ;;  %v15893_v3 = vld [vmem:[#allocation227_spill] sm:$0xff] }
 0x3a4   : > { %3595 = vrot.lane.b32.xlu0 %v15887_v7, %s7830_s28  ;;  %v10522_v47 = vpop.permute.xlu2 %3517  ;;  %v15896_v7 = vld [vmem:[#allocation70_spill] sm:$0xff] }
 0x3a5   : > { %15888 = vst [vmem:[#allocation393_spill] sm:$0xff] %v10522_v47 }
 0x3a6   : > { %v10524_v31 = vpop.permute.xlu0 %3495 }
 0x3a7   : > { %15889 = vst [vmem:[#allocation394_spill] sm:$0xff] %v10524_v31  ;;  %3597 = vrot.lane.b32.xlu1 %v15890_v22, %s7830_s28  ;;  %v15898_v31 = vld [vmem:[#allocation58_spill] sm:$0xff]  ;;  %v3547_v22 = vrot.slane %v10256_v55, 1 }
 0x3a8   : > { %v15905_v55 = vld [vmem:[#allocation74_spill] sm:$0xff] }
 0x3a9   : > { %v10528_v41 = vpop.permute.xlu1 %3497 }
 0x3aa   : > { %15891 = vst [vmem:[#allocation395_spill] sm:$0xff] %v10528_v41  ;;  %3605 = vrot.lane.b32.xlu2 %v15892_v16, %s7830_s28  ;;  %v3546_v41 = vrot.slane %v9963_v9, 1  ;;  %v15899_v16 = vld [vmem:[#allocation64_spill] sm:$0xff] }
 0x3ac   : > { %3601 = vrot.lane.b32.xlu0 %v15893_v3, %s7830_s28  ;;  %v10534_v51 = vpop.permute.xlu2 %3523 }
 0x3ad   : > { %15894 = vst [vmem:[#allocation396_spill] sm:$0xff] %v10534_v51 }
 0x3ae   : > { %v10536_v37 = vpop.permute.xlu0 %3501 }
 0x3af   : > { %15895 = vst [vmem:[#allocation397_spill] sm:$0xff] %v10536_v37  ;;  %3603 = vrot.lane.b32.xlu1 %v15896_v7, %s7830_s28  ;;  %v15902_v37 = vld [vmem:[#allocation80_spill] sm:$0xff]  ;;  %v10555_v7 = vsel %vm2925_vm5, %v3546_v41, %v3547_v22  ;;  %v15910_v41 = vld [vmem:[#allocation83_spill] sm:$0xff] }
 0x3b0   : > { %15903 = vst [vmem:[#allocation401_spill] sm:$0xff] %v10555_v7  ;;  %v15911_v22 = vld [vmem:[#allocation231_spill] sm:$0xff] }
 0x3b1   : > { %v10540_v47 = vpop.permute.xlu1 %3503 }
 0x3b2   : > { %15897 = vst [vmem:[#allocation398_spill] sm:$0xff] %v10540_v47  ;;  %3611 = vrot.lane.b32.xlu2 %v15898_v31, %s7830_s28 }
 0x3b4   : > { %3607 = vrot.lane.b32.xlu0 %v15899_v16, %s7830_s28  ;;  %v10548_v3 = vpop.permute.xlu2 %3529 }
 0x3b5   : > { %15900 = vst [vmem:[#allocation399_spill] sm:$0xff] %v10548_v3  ;;  %v15908_v3 = vld [vmem:[#allocation90_spill] sm:$0xff] }
 0x3b6   : > { %v10550_v51 = vpop.permute.xlu0 %3507 }
 0x3b7   : > { %15901 = vst [vmem:[#allocation400_spill] sm:$0xff] %v10550_v51  ;;  %3609 = vrot.lane.b32.xlu1 %v15902_v37, %s7830_s28 }
 0x3b9   : > { %v10557_v47 = vpop.permute.xlu1 %3509 }
 0x3ba   : > { %15904 = vst [vmem:[#allocation402_spill] sm:$0xff] %v10557_v47  ;;  %3617 = vrot.lane.b32.xlu2 %v10555_v7, %s7830_s28 }
 0x3bc   : > { %3613 = vrot.lane.b32.xlu0 %v15905_v55, %s7830_s28  ;;  %v10563_v9 = vpop.permute.xlu2 %3535  ;;  %v15914_v55 = vld [vmem:[#allocation84_spill] sm:$0xff] }
 0x3bd   : > { %15906 = vst [vmem:[#allocation403_spill] sm:$0xff] %v10563_v9 }
 0x3be   : > { %v10565_v31 = vpop.permute.xlu0 %3513 }
 0x3bf   : > { %15907 = vst [vmem:[#allocation404_spill] sm:$0xff] %v10565_v31  ;;  %3615 = vrot.lane.b32.xlu1 %v15908_v3, %s7830_s28  ;;  %v15916_v31 = vld [vmem:[#allocation107_spill] sm:$0xff]  ;;  %v15917_v3 = vld [vmem:[#allocation78_spill] sm:$0xff] }
 0x3c1   : > { %v10569_v16 = vpop.permute.xlu1 %3515 }
 0x3c2   : > { %15909 = vst [vmem:[#allocation405_spill] sm:$0xff] %v10569_v16  ;;  %3623 = vrot.lane.b32.xlu2 %v15910_v41, %s7830_s28 }
 0x3c4   : > { %3619 = vrot.lane.b32.xlu0 %v15911_v22, %s7830_s28  ;;  %v10575_v37 = vpop.permute.xlu2 %3557  ;;  %v15920_v22 = vld [vmem:[#allocation92_spill] sm:$0xff] }
 0x3c5   : > { %15912 = vst [vmem:[#allocation83_spill] sm:$0xff] %v10575_v37 }
 0x3c6   : > { %v10577_v7 = vpop.permute.xlu0 %3519 }
 0x3c7   : > { %15913 = vst [vmem:[#allocation231_spill] sm:$0xff] %v10577_v7  ;;  %3621 = vrot.lane.b32.xlu1 %v15914_v55, %s7830_s28  ;;  %v15922_v7 = vld [vmem:[#allocation237_spill] sm:$0xff] }
 0x3c9   : > { %v10581_v9 = vpop.permute.xlu1 %3521 }
 0x3ca   : > { %15915 = vst [vmem:[#allocation84_spill] sm:$0xff] %v10581_v9  ;;  %3629 = vrot.lane.b32.xlu2 %v15916_v31, %s7830_s28  ;;  %v15923_v9 = vld [vmem:[#allocation233_spill] sm:$0xff] }
 0x3cc   : > { %3625 = vrot.lane.b32.xlu0 %v15917_v3, %s7830_s28  ;;  %v10587_v16 = vpop.permute.xlu2 %3563 }
 0x3cd   : > { %15918 = vst [vmem:[#allocation78_spill] sm:$0xff] %v10587_v16 }
 0x3ce   : > { %v10589_v47 = vpop.permute.xlu0 %3525 }
 0x3cf   : > { %15919 = vst [vmem:[#allocation406_spill] sm:$0xff] %v10589_v47  ;;  %3627 = vrot.lane.b32.xlu1 %v15920_v22, %s7830_s28  ;;  %v15928_v47 = vld [vmem:[#allocation130_spill] sm:$0xff] }
 0x3d1   : > { %v10593_v37 = vpop.permute.xlu1 %3527 }
 0x3d2   : > { %15921 = vst [vmem:[#allocation407_spill] sm:$0xff] %v10593_v37  ;;  %3635 = vrot.lane.b32.xlu2 %v15922_v7, %s7830_s28  ;;  %v15929_v37 = vld [vmem:[#allocation236_spill] sm:$0xff] }
 0x3d4   : > { %3631 = vrot.lane.b32.xlu0 %v15923_v9, %s7830_s28  ;;  %v10599_v51 = vpop.permute.xlu2 %3569  ;;  %v15932_v9 = vld [vmem:[#allocation110_spill] sm:$0xff] }
 0x3d5   : > { %15924 = vst [vmem:[#allocation408_spill] sm:$0xff] %v10599_v51 }
 0x3d6   : > { %v10601_v31 = vpop.permute.xlu0 %3531 }
 0x3d7   : > { %15925 = vst [vmem:[#allocation409_spill] sm:$0xff] %v10601_v31  ;;  %3633 = vrot.lane.b32.xlu1 %v15926_v28, %s7830_s28  ;;  %v15934_v31 = vld [vmem:[#allocation144_spill] sm:$0xff] }
 0x3d9   : > { %v10605_v16 = vpop.permute.xlu1 %3533 }
 0x3da   : > { %15927 = vst [vmem:[#allocation410_spill] sm:$0xff] %v10605_v16  ;;  %3641 = vrot.lane.b32.xlu2 %v15928_v47, %s7830_s28  ;;  %v15935_v16 = vld [vmem:[#allocation104_spill] sm:$0xff]  ;;  %v3549_v47 = vrot.slane %v10046_v52, 1 }
 0x3dc   : > { %3637 = vrot.lane.b32.xlu0 %v15929_v37, %s7830_s28  ;;  %v10611_v22 = vpop.permute.xlu2 %3575  ;;  %v3550_v37 = vrot.slane %v10321_v0, 1  ;;  %v15944_v0 = vld [vmem:[#allocation241_spill] sm:$0xff] }
 0x3dd   : > { %15930 = vst [vmem:[#allocation411_spill] sm:$0xff] %v10611_v22 }
 0x3de   : > { %v10613_v7 = vpop.permute.xlu0 %3537 }
 0x3df   : > { %15931 = vst [vmem:[#allocation412_spill] sm:$0xff] %v10613_v7  ;;  %3639 = vrot.lane.b32.xlu1 %v15932_v9, %s7830_s28  ;;  %v15938_v7 = vld [vmem:[#allocation122_spill] sm:$0xff]  ;;  %v10632_v9 = vsel %vm2925_vm5, %v3549_v47, %v3550_v37  ;;  %v15946_v47 = vld [vmem:[#allocation148_spill] sm:$0xff]  ;;  %v15947_v37 = vld [vmem:[#allocation157_spill] sm:$0xff] }
 0x3e0   : > { %15939 = vst [vmem:[#allocation416_spill] sm:$0xff] %v10632_v9 }
 0x3e1   : > { %v10617_v51 = vpop.permute.xlu1 %3555 }
 0x3e2   : > { %15933 = vst [vmem:[#allocation413_spill] sm:$0xff] %v10617_v51  ;;  %3647 = vrot.lane.b32.xlu2 %v15934_v31, %s7830_s28  ;;  %v15941_v31 = vld [vmem:[#allocation135_spill] sm:$0xff] }
 0x3e4   : > { %3643 = vrot.lane.b32.xlu0 %v15935_v16, %s7830_s28  ;;  %v10623_v28 = vpop.permute.xlu2 %3581 }
 0x3e5   : > { %15936 = vst [vmem:[#allocation414_spill] sm:$0xff] %v10623_v28 }
 0x3e6   : > { %v10627_v22 = vpop.permute.xlu0 %3559 }
 0x3e7   : > { %15937 = vst [vmem:[#allocation415_spill] sm:$0xff] %v10627_v22  ;;  %3645 = vrot.lane.b32.xlu1 %v15938_v7, %s7830_s28 }
 0x3e9   : > { %v10634_v51 = vpop.permute.xlu1 %3561 }
 0x3ea   : > { %15940 = vst [vmem:[#allocation417_spill] sm:$0xff] %v10634_v51  ;;  %3653 = vrot.lane.b32.xlu2 %v15941_v31, %s7830_s28 }
 0x3ec   : > { %3649 = vrot.lane.b32.xlu0 %v10632_v9, %s7830_s28  ;;  %v10640_v28 = vpop.permute.xlu2 %3587  ;;  %v15950_v9 = vld [vmem:[#allocation244_spill] sm:$0xff] }
 0x3ed   : > { %15942 = vst [vmem:[#allocation135_spill] sm:$0xff] %v10640_v28 }
 0x3ee   : > { %v10642_v52 = vpop.permute.xlu0 %3565 }
 0x3ef   : > { %15943 = vst [vmem:[#allocation418_spill] sm:$0xff] %v10642_v52  ;;  %3651 = vrot.lane.b32.xlu1 %v15944_v0, %s7830_s28  ;;  %v15952_v52 = vld [vmem:[#allocation163_spill] sm:$0xff]  ;;  %v15953_v0 = vld [vmem:[#allocation172_spill] sm:$0xff] }
 0x3f1   : > { %v10646_v16 = vpop.permute.xlu1 %3567 }
 0x3f2   : > { %15945 = vst [vmem:[#allocation241_spill] sm:$0xff] %v10646_v16  ;;  %3659 = vrot.lane.b32.xlu2 %v15946_v47, %s7830_s28  ;;  %v15956_v47 = vld [vmem:[#allocation247_spill] sm:$0xff] }
 0x3f4   : > { %3655 = vrot.lane.b32.xlu0 %v15947_v37, %s7830_s28  ;;  %v10652_v7 = vpop.permute.xlu2 %3593 }
 0x3f5   : > { %15948 = vst [vmem:[#allocation157_spill] sm:$0xff] %v10652_v7 }
 0x3f6   : > { %v10654_v51 = vpop.permute.xlu0 %3571 }
 0x3f7   : > { %15949 = vst [vmem:[#allocation419_spill] sm:$0xff] %v10654_v51  ;;  %3657 = vrot.lane.b32.xlu1 %v15950_v9, %s7830_s28 }
 0x3f9   : > { %v10658_v22 = vpop.permute.xlu1 %3573 }
 0x3fa   : > { %15951 = vst [vmem:[#allocation244_spill] sm:$0xff] %v10658_v22  ;;  %3665 = vrot.lane.b32.xlu2 %v15952_v52, %s7830_s28  ;;  %v15960_v52 = vld [vmem:[#allocation250_spill] sm:$0xff] }
 0x3fc   : > { %3661 = vrot.lane.b32.xlu0 %v15953_v0, %s7830_s28  ;;  %v10664_v16 = vpop.permute.xlu2 %3599 }
 0x3fd   : > { %15954 = vst [vmem:[#allocation172_spill] sm:$0xff] %v10664_v16 }
 0x3fe   : > { %v10666_v28 = vpop.permute.xlu0 %3577 }
 0x3ff   : > { %15955 = vst [vmem:[#allocation420_spill] sm:$0xff] %v10666_v28  ;;  %3663 = vrot.lane.b32.xlu1 %v15956_v47, %s7830_s28 }
 0x401   : > { %v10670_v7 = vpop.permute.xlu1 %3579 }
 0x402   : > { %15957 = vst [vmem:[#allocation247_spill] sm:$0xff] %v10670_v7  ;;  %3671 = vrot.lane.b32.xlu2 %v9778_v1, %s7830_s28 }
 0x404   : > { %3667 = vrot.lane.b32.xlu0 %v9762_v23, %s7830_s28  ;;  %v10676_v22 = vpop.permute.xlu2 %3605 }
 0x405   : > { %15958 = vst [vmem:[#allocation421_spill] sm:$0xff] %v10676_v22  ;;  %v3553_v22 = vrot.slane %v10406_v36, 1 }
 0x406   : > { %v10678_v51 = vpop.permute.xlu0 %3583 }
 0x407   : > { %15959 = vst [vmem:[#allocation422_spill] sm:$0xff] %v10678_v51  ;;  %3669 = vrot.lane.b32.xlu1 %v15960_v52, %s7830_s28  ;;  %v3552_v51 = vrot.slane %v10117_v6, 1  ;;  %v15968_v6 = vld [vmem:[#allocation14_spill] sm:$0xff] }
 0x409   : > { %v10682_v16 = vpop.permute.xlu1 %3585 }
 0x40a   : > { %15961 = vst [vmem:[#allocation423_spill] sm:$0xff] %v10682_v16  ;;  %3677 = vrot.lane.b32.xlu2 %v9800_v34, %s7830_s28  ;;  %v15963_v16 = vld [vmem:[#allocation260_spill] sm:$0xff] }
 0x40c   : > { %3673 = vrot.lane.b32.xlu0 %v9787_v29, %s7830_s28  ;;  %v10688_v7 = vpop.permute.xlu2 %3611 }
 0x40d   : > { %15962 = vst [vmem:[#allocation424_spill] sm:$0xff] %v10688_v7  ;;  %v10703_v7 = vsel %vm2925_vm5, %v3552_v51, %v3553_v22  ;;  %v15970_v51 = vld [vmem:[#allocation8_spill] sm:$0xff] }
 0x40e   : > { %v10690_v28 = vpop.permute.xlu0 %3589  ;;  %15964 = vst [vmem:[#allocation425_spill] sm:$0xff] %v10703_v7 }
 0x40f   : > { %3675 = vrot.lane.b32.xlu1 %v9773_v18, %s7830_s28 }
 0x411   : > { %v10696_v1 = vpop.permute.xlu1 %3591 }
 0x412   : > { %3683 = vrot.lane.b32.xlu2 %v8015_v17, %s7831_s11 }
 0x414   : > { %3679 = vrot.lane.b32.xlu0 %v15963_v16, %s7830_s28  ;;  %v10705_v34 = vpop.permute.xlu2 %3617 }
 0x415   : > { %15965 = vst [vmem:[#allocation426_spill] sm:$0xff] %v10705_v34 }
 0x416   : > { %v10707_v29 = vpop.permute.xlu0 %3595 }
 0x417   : > { %15966 = vst [vmem:[#allocation427_spill] sm:$0xff] %v10707_v29  ;;  %3681 = vrot.lane.b32.xlu1 %v10703_v7, %s7830_s28  ;;  %s7835_s28 = smov 64  }
 0x419   : > { %v10711_v36 = vpop.permute.xlu1 %3597 }
 0x41a   : > { %15967 = vst [vmem:[#allocation428_spill] sm:$0xff] %v10711_v36  ;;  %3689 = vrot.lane.b32.xlu2 %v8039_v45, %s7831_s11 }
 0x41c   : > { %3685 = vrot.lane.b32.xlu0 %v15968_v6, %s7831_s11  ;;  %v10717_v18 = vpop.permute.xlu2 %3623 }
 0x41e   : > { %v10719_v16 = vpop.permute.xlu0 %3601 }
 0x41f   : > { %15969 = vst [vmem:[#allocation14_spill] sm:$0xff] %v10719_v16  ;;  %3687 = vrot.lane.b32.xlu1 %v15970_v51, %s7831_s11 }
 0x421   : > { %v10723_v22 = vpop.permute.xlu1 %3603 }
 0x422   : > { %15971 = vst [vmem:[#allocation8_spill] sm:$0xff] %v10723_v22  ;;  %3695 = vrot.lane.b32.xlu2 %v8131_v61, %s7831_s11 }
 0x424   : > { %3691 = vrot.lane.b32.xlu0 %v8120_v39, %s7831_s11  ;;  %v10729_v34 = vpop.permute.xlu2 %3629 }
 0x425   : > { %15972 = vst [vmem:[#allocation429_spill] sm:$0xff] %v10729_v34 }
 0x426   : > { %v10731_v7 = vpop.permute.xlu0 %3607 }
 0x427   : > { %15973 = vst [vmem:[#allocation430_spill] sm:$0xff] %v10731_v7  ;;  %3693 = vrot.lane.b32.xlu1 %v8157_v11, %s7831_s11 }
 0x429   : > { %v10735_v36 = vpop.permute.xlu1 %3609 }
 0x42a   : > { %15974 = vst [vmem:[#allocation431_spill] sm:$0xff] %v10735_v36  ;;  %3701 = vrot.lane.b32.xlu2 %v8214_v56, %s7831_s11 }
 0x42c   : > { %3697 = vrot.lane.b32.xlu0 %v8180_v53, %s7831_s11  ;;  %v10741_v22 = vpop.permute.xlu2 %3635 }
 0x42d   : > { %15975 = vst [vmem:[#allocation432_spill] sm:$0xff] %v10741_v22 }
 0x42e   : > { %v10743_v16 = vpop.permute.xlu0 %3613 }
 0x42f   : > { %15976 = vst [vmem:[#allocation433_spill] sm:$0xff] %v10743_v16  ;;  %3699 = vrot.lane.b32.xlu1 %v8227_v32, %s7831_s11 }
 0x431   : > { %v10747_v34 = vpop.permute.xlu1 %3615 }
 0x432   : > { %15977 = vst [vmem:[#allocation434_spill] sm:$0xff] %v10747_v34  ;;  %3707 = vrot.lane.b32.xlu2 %v8267_v27, %s7831_s11 }
 0x434   : > { %3703 = vrot.lane.b32.xlu0 %v8246_v10, %s7831_s11  ;;  %v10753_v36 = vpop.permute.xlu2 %3641 }
 0x435   : > { %15978 = vst [vmem:[#allocation435_spill] sm:$0xff] %v10753_v36 }
 0x436   : > { %v10755_v7 = vpop.permute.xlu0 %3619 }
 0x437   : > { %3705 = vrot.lane.b32.xlu1 %v8299_v60, %s7831_s11 }
 0x439   : > { %v10759_v22 = vpop.permute.xlu1 %3621 }
 0x43a   : > { %3775 = vrot.lane.b32.xlu2 %v15695_v43, %s7831_s11 }
 0x43c   : > { %3709 = vrot.lane.b32.xlu0 %v8310_v50, %s7831_s11  ;;  %v10765_v34 = vpop.permute.xlu2 %3647 }
 0x43d   : > { %15979 = vst [vmem:[#allocation436_spill] sm:$0xff] %v10765_v34 }
 0x43e   : > { %v10767_v16 = vpop.permute.xlu0 %3625 }
 0x43f   : > { %3745 = vrot.lane.b32.xlu1 %v15525_v49, %s7831_s11 }
 0x441   : > { %v10771_v36 = vpop.permute.xlu1 %3627 }
 0x442   : > { %3989 = vrot.lane.b32.xlu2 %v15914_v55, %s7832_s13 }
 0x444   : > { %3867 = vrot.lane.b32.xlu0 %v15785_v42, %s7833_s14  ;;  %v10777_v29 = vpop.permute.xlu2 %3653 }
 0x446   : > { %v10779_v50 = vpop.permute.xlu0 %3631 }
 0x447   : > { %15980 = vst [vmem:[#allocation437_spill] sm:$0xff] %v10779_v50  ;;  %3897 = vrot.lane.b32.xlu1 %v15818_v58, %s7833_s14 }
 0x449   : > { %v10783_v34 = vpop.permute.xlu1 %3633 }
 0x44a   : > { %15981 = vst [vmem:[#allocation438_spill] sm:$0xff] %v10783_v34  ;;  %3805 = vrot.lane.b32.xlu2 %v15722_v8, %s7833_s14 }
 0x44c   : > { %4019 = vrot.lane.b32.xlu0 %v15941_v31, %s7832_s13  ;;  %v10789_v55 = vpop.permute.xlu2 %3659 }
 0x44e   : > { %v10791_v52 = vpop.permute.xlu0 %3637 }
 0x44f   : > { %15982 = vst [vmem:[#allocation439_spill] sm:$0xff] %v10791_v52  ;;  %3715 = vrot.lane.b32.xlu1 %v15468_v59, %s7831_s11 }
 0x451   : > { %v10795_v42 = vpop.permute.xlu1 %3639 }
 0x452   : > { %15983 = vst [vmem:[#allocation440_spill] sm:$0xff] %v10795_v42  ;;  %3959 = vrot.lane.b32.xlu2 %v15881_v57, %s7832_s13 }
 0x454   : > { %3837 = vrot.lane.b32.xlu0 %v15749_v62, %s7833_s14  ;;  %v10801_v58 = vpop.permute.xlu2 %3665 }
 0x455   : > { %15984 = vst [vmem:[#allocation441_spill] sm:$0xff] %v10801_v58  ;;  %v16006_v58 = vld [vmem:[#allocation282_spill] sm:$0xff] }
 0x456   : > { %v10803_v8 = vpop.permute.xlu0 %3643  ;;  %v584_v34 = vrot.slane %v16006_v58, 4 }
 0x457   : > { %15985 = vst [vmem:[#allocation442_spill] sm:$0xff] %v10803_v8  ;;  %3927 = vrot.lane.b32.xlu1 %v15845_v46, %s7832_s13 }
 0x459   : > { %v10807_v31 = vpop.permute.xlu1 %3645 }
 0x45a   : > { %15986 = vst [vmem:[#allocation443_spill] sm:$0xff] %v10807_v31  ;;  %3869 = vrot.lane.b32.xlu2 %v15788_v38, %s7833_s14 }
 0x45c   : > { %3747 = vrot.lane.b32.xlu0 %v15529_v25, %s7831_s11  ;;  %v10813_v42 = vpop.permute.xlu2 %3671 }
 0x45d   : > { %15987 = vst [vmem:[#allocation444_spill] sm:$0xff] %v10813_v42 }
 0x45e   : > { %v10815_v57 = vpop.permute.xlu0 %3649 }
 0x45f   : > { %15988 = vst [vmem:[#allocation445_spill] sm:$0xff] %v10815_v57  ;;  %3777 = vrot.lane.b32.xlu1 %v15699_v54, %s7831_s11 }
 0x461   : > { %v10819_v62 = vpop.permute.xlu1 %3651 }
 0x462   : > { %4021 = vrot.lane.b32.xlu2 %v15947_v37, %s7832_s13 }
 0x464   : > { %3899 = vrot.lane.b32.xlu0 %v15814_v63, %s7833_s14  ;;  %v10825_v46 = vpop.permute.xlu2 %3677 }
 0x465   : > { %15989 = vst [vmem:[#allocation446_spill] sm:$0xff] %v10825_v46 }
 0x466   : > { %v10827_v38 = vpop.permute.xlu0 %3655 }
 0x467   : > { %3991 = vrot.lane.b32.xlu1 %v15910_v41, %s7832_s13 }
 0x469   : > { %v10831_v31 = vpop.permute.xlu1 %3657 }
 0x46a   : > { %3839 = vrot.lane.b32.xlu2 %v15755_v26, %s7833_s14 }
 0x46c   : > { %3717 = vrot.lane.b32.xlu0 %v15471_v21, %s7831_s11  ;;  %v10837_v57 = vpop.permute.xlu2 %3683 }
 0x46e   : > { %v10839_v37 = vpop.permute.xlu0 %3661 }
 0x46f   : > { %15990 = vst [vmem:[#allocation447_spill] sm:$0xff] %v10839_v37  ;;  %3807 = vrot.lane.b32.xlu1 %v15718_v24, %s7833_s14 }
 0x471   : > { %v10843_v63 = vpop.permute.xlu1 %3663 }
 0x472   : > { %15991 = vst [vmem:[#allocation448_spill] sm:$0xff] %v10843_v63  ;;  %3749 = vrot.lane.b32.xlu2 %v15521_v12, %s7831_s11 }
 0x474   : > { %3929 = vrot.lane.b32.xlu0 %v15851_v35, %s7832_s13  ;;  %v10849_v41 = vpop.permute.xlu2 %3689 }
 0x476   : > { %v10851_v26 = vpop.permute.xlu0 %3667 }
 0x477   : > { %15992 = vst [vmem:[#allocation449_spill] sm:$0xff] %v10851_v26  ;;  %3961 = vrot.lane.b32.xlu1 %v15884_v30, %s7832_s13  ;;  %v16005_v26 = vld [vmem:[#allocation266_spill] sm:$0xff] }
 0x478   : > { %v515_v52 = vrot.slane %v16005_v26, 4 }
 0x479   : > { %v10855_v46 = vpop.permute.xlu1 %3669 }
 0x47a   : > { %15993 = vst [vmem:[#allocation450_spill] sm:$0xff] %v10855_v46  ;;  %3901 = vrot.lane.b32.xlu2 %v15821_v15, %s7833_s14  ;;  %v16004_v46 = vld [vmem:[#allocation87_spill] sm:$0xff] }
 0x47c   : > { %3779 = vrot.lane.b32.xlu0 %v15694_v33, %s7831_s11  ;;  %v10861_v24 = vpop.permute.xlu2 %3695 }
 0x47d   : > { %15994 = vst [vmem:[#allocation451_spill] sm:$0xff] %v10861_v24 }
 0x47e   : > { %v10863_v8 = vpop.permute.xlu0 %3673 }
 0x47f   : > { %15995 = vst [vmem:[#allocation452_spill] sm:$0xff] %v10863_v8  ;;  %3871 = vrot.lane.b32.xlu1 %v15784_v20, %s7833_s14  ;;  %v5063_v20 = vld [vmem:[%s14807_s3 + $0x10] sm:$0x3] }
 0x481   : > { %v10867_v35 = vpop.permute.xlu1 %3675 }
 0x482   : > { %15996 = vst [vmem:[#allocation453_spill] sm:$0xff] %v10867_v35  ;;  %3719 = vrot.lane.b32.xlu2 %v15463_v2, %s7831_s11  ;;  %v5077_v35 = vunpack.c.l.b16 %v5063_v20  ;;  %v16009_v2 = vld [vmem:[#allocation91_spill] sm:$0xff] }
 0x484   : > { %3993 = vrot.lane.b32.xlu0 %v15917_v3, %s7832_s13  ;;  %v10873_v30 = vpop.permute.xlu2 %3701  ;;  %v5080_v8 = vpack.c.b16 %v5077_v35, %v5077_v35  ;;  %v7834_v35 = vmov 256.0  }
 0x485   : > { %15997 = vst [vmem:[#allocation454_spill] sm:$0xff] %v10873_v30  ;;  %7756 = vrcp.f32 %v7834_v35  ;;  %v16003_v30 = vld [vmem:[#allocation128_spill] sm:$0xff] }
 0x486   : > { %v10875_v15 = vpop.permute.xlu0 %3679 }
 0x487   : > { %15998 = vst [vmem:[#allocation455_spill] sm:$0xff] %v10875_v15  ;;  %4023 = vrot.lane.b32.xlu1 %v15950_v9, %s7832_s13  ;;  %v10892_v9 = vsel %vm5212_vm6, %v5080_v8, 0  ;;  %v718_v8 = vsel %vm451_vm4, %v10063_v44, 0.0  ;;  %v10921_v44 = vld [vmem:[%s14807_s3] sm:$0xff]  ;;  %vm5674_vm6 = vcmask 260096  }
 0x488   : > { %7694 = vmatpush.bf16.msra.mxu2 %v10892_v9  ;;  %7695 = vmatpush.bf16.msra.mxu3 %v10892_v9 }
 0x489   : > { %v10879_v42 = vpop.permute.xlu1 %3681  ;;  %7693 = vmatpush.bf16.msra.mxu1 %v10892_v9 }
 0x48a   : > { %15999 = vst [vmem:[#allocation456_spill] sm:$0xff] %v10879_v42  ;;  %3931 = vrot.lane.b32.xlu2 %v15854_v48, %s7832_s13  ;;  %v10900_v48 = vld [vmem:[%s14807_s3 + $0x8] sm:$0xff]  ;;  %v16001_v42 = vld [vmem:[#allocation184_spill] sm:$0xff] }
 0x48c   : > { %3809 = vrot.lane.b32.xlu0 %v15725_v4, %s7833_s14  ;;  %v10888_v3 = vpop.permute.xlu2 %3707  ;;  %7697 = vmatpush.bf16.msra.mxu2 %v10900_v48 }
 0x48d   : > { %16000 = vst [vmem:[#allocation457_spill] sm:$0xff] %v10888_v3  ;;  %7698 = vmatpush.bf16.msra.mxu3 %v10900_v48  ;;  %7696 = vmatpush.bf16.msra.mxu1 %v10900_v48 }
 0x48e   : > { %v10890_v15 = vpop.permute.xlu0 %3685 }
 0x48f   : > { %3841 = vrot.lane.b32.xlu1 %v15758_v13, %s7833_s14  ;;  %v651_v13 = vsel %vm451_vm4, %v9997_v14, 0.0  ;;  %v719_v14 = vadd.f32 %v718_v8, %v16001_v42  ;;  %v7757_v8 = vpop.eup %7756 }
 0x490   : > { %v652_v35 = vadd.f32 %v651_v13, %v9992_v5  ;;  %7700 = vmatpush.bf16.msra.mxu2 %v10921_v44  ;;  %v516_v5 = vadd.f32 %v515_v52, %v16005_v26  ;;  %v16008_v13 = vld [vmem:[#allocation92_spill] sm:$0xff]  ;;  %vm733_vm8 = vweird.f32 %v7757_v8 }
 0x491   : > { %v10904_v4 = vpop.permute.xlu1 %3687  ;;  %7701 = vmatpush.bf16.msra.mxu3 %v10921_v44  ;;  %7699 = vmatpush.bf16.msra.mxu1 %v10921_v44 }
 0x492   : > { %3781 = vrot.lane.b32.xlu2 %v15702_v40, %s7831_s11  ;;  %v653_v24 = vrot.slane %v652_v35, 4  ;;  %v517_v40 = vrot.slane %v516_v5, 2 }
 0x494   : > { %3963 = vrot.lane.b32.xlu0 %v15880_v19, %s7832_s13  ;;  %v10915_v20 = vpop.permute.xlu2 %3775  ;;  %v720_v19 = vsel %vm451_vm4, %v16003_v30, 0.0  ;;  %v585_v30 = vadd.f32 %v584_v34, %v16006_v58  ;;  %v654_v50 = vadd.f32 %v653_v24, %v652_v35  ;;  %v518_v10 = vadd.f32 %v517_v40, %v516_v5  ;;  %v16011_v24 = vld [vmem:[#allocation146_spill] sm:$0xff] }
 0x495   : > { %v721_v42 = vadd.f32 %v720_v19, %v719_v14 }
 0x496   : > { %v10925_v3 = vpop.permute.xlu0 %3691  ;;  %v655_v19 = vrot.slane %v654_v50, 2  ;;  %v519_v35 = vrot.slane %v518_v10, 1 }
 0x497   : > { %16002 = vst [vmem:[#allocation184_spill] sm:$0xff] %v10925_v3  ;;  %3751 = vrot.lane.b32.xlu1 %v16004_v46, %s7831_s11  ;;  %v722_v37 = vrot.slane %v721_v42, 4  ;;  %v729_v3 = vmul.f32 256.0, %v7757_v8  ;;  %v586_v46 = vrot.slane %v585_v30, 2 }
 0x498   : > { %v656_v34 = vadd.f32 %v655_v19, %v654_v50  ;;  %v520_v50 = vadd.f32 %v519_v35, %v518_v10  ;;  %v16018_v35 = vld [vmem:[#allocation46_spill] sm:$0xff] }
 0x499   : > { %v10936_v63 = vpop.permute.xlu1 %3693  ;;  %v730_v60 = vsub.f32 1.0, %v729_v3  ;;  %v587_v52 = vadd.f32 %v586_v46, %v585_v30 }
 0x49a   : > { %16007 = vst [vmem:[#allocation128_spill] sm:$0xff] %v10936_v63  ;;  %3995 = vrot.lane.b32.xlu2 %v16008_v13, %s7832_s13  ;;  %v723_v63 = vadd.f32 %v722_v37, %v721_v42  ;;  %v657_v53 = vrot.slane %v656_v34, 1 }
 0x49b   : > { %v731_v13 = vmul.f32 %v7757_v8, %v730_v60  ;;  %v588_v32 = vrot.slane %v587_v52, 1  ;;  %v16013_v60 = vld [vmem:[#allocation13_spill] sm:$0xff] }
 0x49c   : > { %3873 = vrot.lane.b32.xlu0 %v16009_v2, %s7833_s14  ;;  %v10945_v14 = vpop.permute.xlu2 %3989  ;;  %v724_v58 = vrot.slane %v723_v63, 2  ;;  %v739_v2 = vld [vmem:[%s14805_s1] sm:$0xf]  ;;  %v658_v42 = vadd.f32 %v657_v53, %v656_v34 }
 0x49d   : > { %v732_v3 = vadd.f32 %v7757_v8, %v731_v13  ;;  %7612 = vmatpush.msk.msra.mxu0 %vm756_vm7, %v739_v2  ;;  %v589_v46 = vadd.f32 %v588_v32, %v587_v52 }
 0x49e   : > { %v10947_v26 = vpop.permute.xlu0 %3697  ;;  %v725_v37 = vadd.f32 %v724_v58, %v723_v63  ;;  %v16014_v63 = vld [vmem:[#allocation148_spill] sm:$0xff] }
 0x49f   : > { %16010 = vst [vmem:[#allocation266_spill] sm:$0xff] %v10947_v26  ;;  %3903 = vrot.lane.b32.xlu1 %v16011_v24, %s7833_s14  ;;  %5221 = vmatpush.bf16.msrb.mxu0 %v10892_v9  ;;  %v734_v30 = vsel %vm733_vm8, %v7757_v8, %v732_v3  ;;  %v16016_v9 = vld [vmem:[#allocation41_spill] sm:$0xff]  ;;  %v16214_v26 = vld [vmem:[#allocation95_spill] sm:$0xff]  ;;  %vm780_vm8 = vcmask 76800  }
 0x4a0   : > { %v726_v5 = vrot.slane %v725_v37, 1  ;;  %v735_v19 = vmul.f32 %v734_v30, %v520_v50  ;;  %v736_v24 = vmul.f32 %v734_v30, %v589_v46  ;;  %v737_v2 = vmul.f32 %v734_v30, %v658_v42  ;;  %v16022_v46 = vld [vmem:[#allocation6_spill] sm:$0xff] }
 0x4a1   : > { %v10954_v40 = vpop.permute.xlu1 %3699  ;;  %v16023_v42 = vld [vmem:[#allocation206_spill] sm:$0xff] }
 0x4a2   : > { %16012 = vst [vmem:[#allocation282_spill] sm:$0xff] %v10954_v40  ;;  %3811 = vrot.lane.b32.xlu2 %v16013_v60, %s7833_s14  ;;  %v727_v13 = vadd.f32 %v726_v5, %v725_v37  ;;  %v749_v32 = vsel %vm748_vm9, %v736_v24, %v735_v19  ;;  %v16019_v37 = vld [vmem:[#allocation45_spill] sm:$0xff]  ;;  %v16024_v5 = vld [vmem:[#allocation242_spill] sm:$0xff]  ;;  %v16025_v19 = vld [vmem:[#allocation335_spill] sm:$0xff] }
 0x4a3   : > { %v751_v53 = vsel %vm750_vm10, %v737_v2, %v749_v32  ;;  %5222 = vmatpush.bf16.msrb.mxu0 %v10900_v48  ;;  %v16021_v48 = vld [vmem:[#allocation129_spill] sm:$0xff]  ;;  %v16213_v40 = vld [vmem:[#allocation234_spill] sm:$0xff] }
 0x4a4   : > { %4025 = vrot.lane.b32.xlu0 %v16014_v63, %s7832_s13  ;;  %v10962_v58 = vpop.permute.xlu2 %3805  ;;  %v738_v52 = vmul.f32 %v734_v30, %v727_v13  ;;  %v4050_v60 = vsel %vm451_vm4, %v16022_v46, %v16021_v48  ;;  %v16026_v63 = vld [vmem:[#allocation201_spill] sm:$0xff]  ;;  %v16029_v48 = vld [vmem:[#allocation151_spill] sm:$0xff] }
 0x4a5   : > { %v4173_v30 = vsel %vm4171_vm12, %v4050_v60, %v16024_v5  ;;  %v16027_v2 = vld [vmem:[#allocation97_spill] sm:$0xff]  ;;  %v16030_v60 = vld [vmem:[#allocation36_spill] sm:$0xff]  ;;  %v16199_v46 = vld [vmem:[#allocation327_spill] sm:$0xff] }
 0x4a6   : > { %v10965_v10 = vpop.permute.xlu0 %3703  ;;  %v753_v8 = vsel %vm752_vm11, %v738_v52, %v751_v53  ;;  %v16028_v52 = vld [vmem:[#allocation93_spill] sm:$0xff]  ;;  %v16031_v5 = vld [vmem:[#allocation400_spill] sm:$0xff] }
 0x4a7   : > { %16015 = vst [vmem:[#allocation92_spill] sm:$0xff] %v10965_v10  ;;  %3721 = vrot.lane.b32.xlu1 %v16016_v9, %s7831_s11  ;;  %7613 = vmatmul.msk.f32.vlgmr.msra.gmra.mxu0 %vm451_vm4, %v753_v8 }
 0x4a8   : > { %5223 = vmatpush.bf16.msrb.mxu0 %v10921_v44  ;;  %v4360_v44 = vsel %vm4294_vm13, %v4173_v30, %v16025_v19 }
 0x4a9   : > { %v10972_v34 = vpop.permute.xlu1 %3705  ;;  %v4489_v13 = vsel %vm4423_vm14, %v4360_v44, %v16026_v63 }
 0x4aa   : > { %16017 = vst [vmem:[#allocation91_spill] sm:$0xff] %v10972_v34  ;;  %3965 = vrot.lane.b32.xlu2 %v16018_v35, %s7832_s13  ;;  %v4618_v32 = vsel %vm4552_vm15, %v4489_v13, %v10755_v7  ;;  %v4392_v7 = vsel %vm4294_vm13, %v4173_v30, %v16030_v60  ;;  %v16032_v13 = vld [vmem:[#allocation156_spill] sm:$0xff]  ;;  %v16035_v60 = vld [vmem:[#allocation374_spill] sm:$0xff] }
 0x4ab   : > { %v4521_v19 = vsel %vm4423_vm14, %v4392_v7, %v16031_v5  ;;  %v16036_v7 = vld [vmem:[#allocation51_spill] sm:$0xff] }
 0x4ac   : > { %3843 = vrot.lane.b32.xlu0 %v16019_v37, %s7833_s14  ;;  %v3960_v3 = vpop.permute.xlu2 %3959 }
 0x4ae   : > { %v10980_v50 = vpop.permute.xlu0 %3709 }
 0x4af   : > { %16020 = vst [vmem:[#allocation146_spill] sm:$0xff] %v10980_v50  ;;  %3933 = vrot.lane.b32.xlu1 %v16023_v42, %s7832_s13  ;;  %v16194_v50 = vld [vmem:[#allocation78_spill] sm:$0xff] }
 0x4b1   : > { %v3746_v24 = vpop.permute.xlu1 %3745 }
 0x4b2   : > { %3875 = vrot.lane.b32.xlu2 %v16027_v2, %s7833_s14  ;;  %v4746_v53 = vsel %vm4681_vm0, %v4618_v32, %v3746_v24  ;;  %v4650_v24 = vsel %vm4552_vm15, %v4521_v19, %v10819_v62  ;;  %v16034_v62 = vld [vmem:[#allocation322_spill] sm:$0xff]  ;;  %v16038_v19 = vld [vmem:[#allocation47_spill] sm:$0xff] }
 0x4b3   : > { %v4777_v63 = vsel %vm4681_vm0, %v4650_v24, %v10915_v20 }
 0x4b4   : > { %3753 = vrot.lane.b32.xlu0 %v16028_v52, %s7831_s11  ;;  %v11000_v8 = vpop.permute.xlu2 %3869 }
 0x4b6   : > { %v3868_v35 = vpop.permute.xlu0 %3867 }
 0x4b7   : > { %v4872_v37 = vsel %vm4807_vm2, %v4746_v53, %v3868_v35  ;;  %3783 = vrot.lane.b32.xlu1 %v16029_v48, %s7831_s11  ;;  %v16033_v35 = vld [vmem:[#allocation107_spill] sm:$0xff] }
 0x4b8   : > { %v4998_v42 = vsel %vm4933_vm1, %v4872_v37, %v10945_v14 }
 0x4b9   : > { %7654 = vmatmul.msk.bf16.vlgmr.msra.gmra.mxu2 %vm5083_vm3, %v4998_v42  ;;  %v3898_v44 = vpop.permute.xlu1 %3897  ;;  %v16037_v42 = vld [vmem:[#allocation135_spill] sm:$0xff] }
 0x4ba   : > { %4027 = vrot.lane.b32.xlu2 %v15953_v0, %s7832_s13  ;;  %v4903_v14 = vsel %vm4807_vm2, %v4777_v63, %v3898_v44  ;;  %v4328_v0 = vsel %vm4294_vm13, %v4173_v30, %v16034_v62  ;;  %v16039_v63 = vld [vmem:[#allocation296_spill] sm:$0xff] }
 0x4bb   : > { %v4457_v20 = vsel %vm4423_vm14, %v4328_v0, %v16035_v60  ;;  %v16042_v60 = vld [vmem:[#allocation16_spill] sm:$0xff] }
 0x4bc   : > { %3905 = vrot.lane.b32.xlu0 %v16032_v13, %s7833_s14  ;;  %v4022_v2 = vpop.permute.xlu2 %4021  ;;  %v4586_v5 = vsel %vm4552_vm15, %v4457_v20, %v16037_v42  ;;  %v4296_v13 = vsel %vm4294_vm13, %v4173_v30, %v16039_v63 }
 0x4be   : > { %v4020_v32 = vpop.permute.xlu0 %4019 }
 0x4bf   : > { %v5029_v53 = vsel %vm4933_vm1, %v4903_v14, %v4020_v32  ;;  %3997 = vrot.lane.b32.xlu1 %v16033_v35, %s7832_s13  ;;  %v16040_v14 = vld [vmem:[#allocation361_spill] sm:$0xff] }
 0x4c0   : > { %7670 = vmatmul.msk.bf16.vlgmr.msra.gmra.mxu3 %vm5083_vm3, %v5029_v53  ;;  %v4425_v32 = vsel %vm4423_vm14, %v4296_v13, %v16040_v14  ;;  %v16041_v35 = vld [vmem:[#allocation413_spill] sm:$0xff]  ;;  %v16046_v13 = vld [vmem:[#allocation131_spill] sm:$0xff] }
 0x4c1   : > { %v3716_v37 = vpop.permute.xlu1 %3715  ;;  %v4554_v62 = vsel %vm4552_vm15, %v4425_v32, %v16041_v35  ;;  %v16047_v14 = vld [vmem:[#allocation61_spill] sm:$0xff]  ;;  %v16048_v32 = vld [vmem:[#allocation280_spill] sm:$0xff]  ;;  %v16049_v35 = vld [vmem:[#allocation210_spill] sm:$0xff] }
 0x4c2   : > { %3845 = vrot.lane.b32.xlu2 %v16036_v7, %s7833_s14  ;;  %v4715_v44 = vsel %vm4681_vm0, %v4586_v5, %v3716_v37  ;;  %v4683_v37 = vsel %vm4681_vm0, %v4554_v62, %v10837_v57  ;;  %v16043_v5 = vld [vmem:[#allocation99_spill] sm:$0xff]  ;;  %v16050_v62 = vld [vmem:[#allocation81_spill] sm:$0xff] }
 0x4c3   : > { %v4809_v30 = vsel %vm4807_vm2, %v4683_v37, %v10962_v58 }
 0x4c4   : > { %3723 = vrot.lane.b32.xlu0 %v16038_v19, %s7831_s11  ;;  %v11036_v24 = vpop.permute.xlu2 %3839 }
 0x4c6   : > { %v3838_v53 = vpop.permute.xlu0 %3837 }
 0x4c7   : > { %v4841_v0 = vsel %vm4807_vm2, %v4715_v44, %v3838_v53  ;;  %3813 = vrot.lane.b32.xlu1 %v16042_v60, %s7833_s14  ;;  %v16044_v44 = vld [vmem:[#allocation208_spill] sm:$0xff]  ;;  %v16051_v60 = vld [vmem:[#allocation349_spill] sm:$0xff] }
 0x4c8   : > { %v4967_v20 = vsel %vm4933_vm1, %v4841_v0, %v3960_v3  ;;  %v16045_v3 = vld [vmem:[#allocation229_spill] sm:$0xff]  ;;  %v4112_v0 = vsel %vm451_vm4, %v16050_v62, %v16049_v35 }
 0x4c9   : > { %7638 = vmatmul.msk.bf16.vlgmr.msra.gmra.mxu1 %vm5083_vm3, %v4967_v20  ;;  %v3928_v7 = vpop.permute.xlu1 %3927  ;;  %v4142_v58 = vsel %vm451_vm4, %v16046_v13, %v16045_v3  ;;  %v16054_v3 = vld [vmem:[#allocation165_spill] sm:$0xff]  ;;  %v16055_v13 = vld [vmem:[#allocation15_spill] sm:$0xff] }
 0x4ca   : > { %v4935_v42 = vsel %vm4933_vm1, %v4809_v30, %v3928_v7  ;;  %3755 = vrot.lane.b32.xlu2 %v16043_v5, %s7831_s11  ;;  %v4265_v53 = vsel %vm4171_vm12, %v4142_v58, %v16048_v32  ;;  %v16052_v30 = vld [vmem:[#allocation264_spill] sm:$0xff] }
 0x4cb   : > { %7622 = vmatmul.msk.bf16.vlgmr.msrb.gmra.mxu0 %vm5083_vm3, %v4935_v42  ;;  %v4394_v37 = vsel %vm4294_vm13, %v4265_v53, %v16051_v60  ;;  %v4235_v7 = vsel %vm4171_vm12, %v4112_v0, %v16052_v30  ;;  %v16053_v42 = vld [vmem:[#allocation402_spill] sm:$0xff]  ;;  %v16056_v32 = vld [vmem:[#allocation388_spill] sm:$0xff] }
 0x4cc   : > { %3935 = vrot.lane.b32.xlu0 %v16044_v44, %s7832_s13  ;;  %v11059_v63 = vpop.permute.xlu2 %3749  ;;  %v4523_v44 = vsel %vm4423_vm14, %v4394_v37, %v16053_v42  ;;  %v4362_v58 = vsel %vm4294_vm13, %v4235_v7, %v16055_v13  ;;  %v16057_v53 = vld [vmem:[#allocation160_spill] sm:$0xff] }
 0x4cd   : > { %v4491_v35 = vsel %vm4423_vm14, %v4362_v58, %v16056_v32  ;;  %v16061_v58 = vld [vmem:[#allocation137_spill] sm:$0xff] }
 0x4ce   : > { %v3748_v57 = vpop.permute.xlu0 %3747  ;;  %v4620_v60 = vsel %vm4552_vm15, %v4491_v35, %v10759_v22  ;;  %v16059_v22 = vld [vmem:[#allocation53_spill] sm:$0xff]  ;;  %v16063_v35 = vld [vmem:[#allocation98_spill] sm:$0xff] }
 0x4cf   : > { %3967 = vrot.lane.b32.xlu1 %v16047_v14, %s7832_s13  ;;  %v4652_v14 = vsel %vm4552_vm15, %v4523_v44, %v10777_v29  ;;  %v4748_v37 = vsel %vm4681_vm0, %v4620_v60, %v3748_v57  ;;  %v16058_v29 = vld [vmem:[#allocation103_spill] sm:$0xff]  ;;  %v16060_v57 = vld [vmem:[#allocation233_spill] sm:$0xff] }
 0x4d1   : > { %v3778_v20 = vpop.permute.xlu1 %3777 }
 0x4d2   : > { %3907 = vrot.lane.b32.xlu2 %v16054_v3, %s7833_s14  ;;  %v4779_v62 = vsel %vm4681_vm0, %v4652_v14, %v3778_v20  ;;  %v4874_v20 = vsel %vm4807_vm2, %v4748_v37, %v11000_v8  ;;  %v16065_v37 = vld [vmem:[#allocation173_spill] sm:$0xff] }
 0x4d4   : > { %3785 = vrot.lane.b32.xlu0 %v16057_v53, %s7831_s11  ;;  %v11088_v0 = vpop.permute.xlu2 %3901 }
 0x4d6   : > { %v3900_v30 = vpop.permute.xlu0 %3899 }
 0x4d7   : > { %v4905_v7 = vsel %vm4807_vm2, %v4779_v62, %v3900_v30  ;;  %3877 = vrot.lane.b32.xlu1 %v16058_v29, %s7833_s14  ;;  %v16064_v62 = vld [vmem:[#allocation308_spill] sm:$0xff]  ;;  %v16066_v30 = vld [vmem:[#allocation35_spill] sm:$0xff] }
 0x4d8   : > { %v5031_v42 = vsel %vm4933_vm1, %v4905_v7, %v4022_v2  ;;  %v16062_v2 = vld [vmem:[#allocation9_spill] sm:$0xff]  ;;  %v4082_v7 = vsel %vm451_vm4, %v16066_v30, %v16065_v37  ;;  %v16067_v29 = vld [vmem:[#allocation363_spill] sm:$0xff] }
 0x4d9   : > { %7671 = vmatmul.msk.bf16.gmra.mxu3 %vm5083_vm3, %v5031_v42  ;;  %v3992_v44 = vpop.permute.xlu1 %3991  ;;  %v4052_v14 = vsel %vm451_vm4, %v16062_v2, %v16061_v58  ;;  %v16070_v2 = vld [vmem:[#allocation205_spill] sm:$0xff] }
 0x4da   : > { %v5000_v3 = vsel %vm4933_vm1, %v4874_v20, %v3992_v44  ;;  %3725 = vrot.lane.b32.xlu2 %v16059_v22, %s7831_s11  ;;  %v4175_v8 = vsel %vm4171_vm12, %v4052_v14, %v16063_v35  ;;  %v16068_v20 = vld [vmem:[#allocation246_spill] sm:$0xff] }
 0x4db   : > { %7655 = vmatmul.msk.bf16.gmra.mxu2 %vm5083_vm3, %v5000_v3  ;;  %v4298_v60 = vsel %vm4294_vm13, %v4175_v8, %v16064_v62  ;;  %v4205_v3 = vsel %vm4171_vm12, %v4082_v7, %v16068_v20  ;;  %v16072_v8 = vld [vmem:[#allocation142_spill] sm:$0xff] }
 0x4dc   : > { %3999 = vrot.lane.b32.xlu0 %v16060_v57, %s7832_s13  ;;  %v11106_v13 = vpop.permute.xlu2 %3719  ;;  %v4427_v42 = vsel %vm4423_vm14, %v4298_v60, %v16067_v29  ;;  %v16069_v57 = vld [vmem:[#allocation83_spill] sm:$0xff] }
 0x4dd   : > { %v4556_v58 = vsel %vm4552_vm15, %v4427_v42, %v16069_v57  ;;  %v16073_v60 = vld [vmem:[#allocation19_spill] sm:$0xff] }
 0x4de   : > { %v3718_v32 = vpop.permute.xlu0 %3717  ;;  %v4685_v35 = vsel %vm4681_vm0, %v4556_v58, %v10890_v15  ;;  %v16075_v58 = vld [vmem:[#allocation155_spill] sm:$0xff] }
 0x4df   : > { %4029 = vrot.lane.b32.xlu1 %v15956_v47, %s7832_s13  ;;  %v16071_v47 = vld [vmem:[#allocation324_spill] sm:$0xff] }
 0x4e0   : > { %v4330_v14 = vsel %vm4294_vm13, %v4205_v3, %v16071_v47  ;;  %v16074_v3 = vld [vmem:[#allocation57_spill] sm:$0xff] }
 0x4e1   : > { %v3808_v44 = vpop.permute.xlu1 %3807  ;;  %v4459_v62 = vsel %vm4423_vm14, %v4330_v14, %v16072_v8  ;;  %v16079_v8 = vld [vmem:[#allocation96_spill] sm:$0xff] }
 0x4e2   : > { %3937 = vrot.lane.b32.xlu2 %v16070_v2, %s7832_s13  ;;  %v4811_v37 = vsel %vm4807_vm2, %v4685_v35, %v3808_v44  ;;  %v4588_v7 = vsel %vm4552_vm15, %v4459_v62, %v10690_v28  ;;  %v16076_v28 = vld [vmem:[#allocation224_spill] sm:$0xff]  ;;  %v16077_v2 = vld [vmem:[#allocation190_spill] sm:$0xff]  ;;  %v16080_v62 = vld [vmem:[#allocation337_spill] sm:$0xff] }
 0x4e3   : > { %v4717_v29 = vsel %vm4681_vm0, %v4588_v7, %v3718_v32  ;;  %v4114_v47 = vsel %vm451_vm4, %v15525_v49, %v16077_v2  ;;  %v16078_v35 = vld [vmem:[#allocation278_spill] sm:$0xff] }
 0x4e4   : > { %3815 = vrot.lane.b32.xlu0 %v16073_v60, %s7833_s14  ;;  %v3932_v30 = vpop.permute.xlu2 %3931  ;;  %v4843_v57 = vsel %vm4807_vm2, %v4717_v29, %v11036_v24  ;;  %v4237_v24 = vsel %vm4171_vm12, %v4114_v47, %v16078_v35  ;;  %v16082_v29 = vld [vmem:[#allocation389_spill] sm:$0xff]  ;;  %v16087_v35 = vld [vmem:[#allocation100_spill] sm:$0xff] }
 0x4e5   : > { %v4364_v60 = vsel %vm4294_vm13, %v4237_v24, %v16080_v62 }
 0x4e6   : > { %v3930_v42 = vpop.permute.xlu0 %3929 }
 0x4e7   : > { %v4937_v20 = vsel %vm4933_vm1, %v4811_v37, %v3930_v42  ;;  %3847 = vrot.lane.b32.xlu1 %v16074_v3, %s7833_s14  ;;  %v16081_v37 = vld [vmem:[#allocation223_spill] sm:$0xff]  ;;  %v4493_v42 = vsel %vm4423_vm14, %v4364_v60, %v16082_v29  ;;  %v16083_v3 = vld [vmem:[#allocation293_spill] sm:$0xff] }
 0x4e8   : > { %7623 = vmatmul.msk.bf16.gmra.mxu0 %vm5083_vm3, %v4937_v20  ;;  %v4144_v7 = vsel %vm451_vm4, %v15695_v43, %v16081_v37  ;;  %v16086_v43 = vld [vmem:[#allocation33_spill] sm:$0xff] }
 0x4e9   : > { %v3962_v15 = vpop.permute.xlu1 %3961  ;;  %v4267_v49 = vsel %vm4171_vm12, %v4144_v7, %v16083_v3  ;;  %v16088_v29 = vld [vmem:[#allocation161_spill] sm:$0xff] }
 0x4ea   : > { %v4969_v44 = vsel %vm4933_vm1, %v4843_v57, %v3962_v15  ;;  %3787 = vrot.lane.b32.xlu2 %v16075_v58, %s7831_s11  ;;  %v4622_v15 = vsel %vm4552_vm15, %v4493_v42, %v10717_v18  ;;  %v16084_v57 = vld [vmem:[#allocation101_spill] sm:$0xff] }
 0x4eb   : > { %7639 = vmatmul.msk.bf16.gmra.mxu1 %vm5083_vm3, %v4969_v44  ;;  %v16085_v44 = vld [vmem:[#allocation350_spill] sm:$0xff]  ;;  %v4750_v2 = vsel %vm4681_vm0, %v4622_v15, %v11059_v63  ;;  %v16089_v63 = vld [vmem:[#allocation132_spill] sm:$0xff]  ;;  %v16091_v15 = vld [vmem:[#allocation17_spill] sm:$0xff] }
 0x4ec   : > { %3969 = vrot.lane.b32.xlu0 %v16076_v28, %s7832_s13  ;;  %v11152_v32 = vpop.permute.xlu2 %3781  ;;  %v4396_v28 = vsel %vm4294_vm13, %v4267_v49, %v16085_v44  ;;  %v4054_v42 = vsel %vm451_vm4, %v8015_v17, %v16089_v63  ;;  %v16090_v49 = vld [vmem:[#allocation127_spill] sm:$0xff]  ;;  %v16098_v63 = vld [vmem:[#allocation50_spill] sm:$0xff] }
 0x4ed   : > { %v4525_v47 = vsel %vm4423_vm14, %v4396_v28, %v16086_v43  ;;  %v16093_v28 = vld [vmem:[#allocation94_spill] sm:$0xff]  ;;  %v16095_v43 = vld [vmem:[#allocation415_spill] sm:$0xff] }
 0x4ee   : > { %v3780_v14 = vpop.permute.xlu0 %3779  ;;  %v4654_v18 = vsel %vm4552_vm15, %v4525_v47, %v10827_v38  ;;  %v4177_v38 = vsel %vm4171_vm12, %v4054_v42, %v16090_v49  ;;  %v16099_v42 = vld [vmem:[#allocation147_spill] sm:$0xff]  ;;  %v16100_v49 = vld [vmem:[#allocation376_spill] sm:$0xff] }
 0x4ef   : > { %3757 = vrot.lane.b32.xlu1 %v16079_v8, %s7831_s11  ;;  %v4781_v60 = vsel %vm4681_vm0, %v4654_v18, %v3780_v14 }
 0x4f1   : > { %v3872_v20 = vpop.permute.xlu1 %3871 }
 0x4f2   : > { %4001 = vrot.lane.b32.xlu2 %v16084_v57, %s7832_s13  ;;  %v4876_v24 = vsel %vm4807_vm2, %v4750_v2, %v3872_v20  ;;  %v4907_v20 = vsel %vm4807_vm2, %v4781_v60, %v11088_v0  ;;  %v16092_v57 = vld [vmem:[#allocation309_spill] sm:$0xff]  ;;  %v16094_v2 = vld [vmem:[#allocation163_spill] sm:$0xff] }
 0x4f3   : > { %v4300_v44 = vsel %vm4294_vm13, %v4177_v38, %v16092_v57  ;;  %v16102_v57 = vld [vmem:[#allocation54_spill] sm:$0xff] }
 0x4f4   : > { %3879 = vrot.lane.b32.xlu0 %v16087_v35, %s7833_s14  ;;  %v3996_v62 = vpop.permute.xlu2 %3995  ;;  %v4429_v17 = vsel %vm4423_vm14, %v4300_v44, %v16093_v28  ;;  %v16096_v35 = vld [vmem:[#allocation150_spill] sm:$0xff] }
 0x4f5   : > { %v4558_v47 = vsel %vm4552_vm15, %v4429_v17, %v16095_v43  ;;  %v16103_v17 = vld [vmem:[#allocation214_spill] sm:$0xff] }
 0x4f6   : > { %v3994_v37 = vpop.permute.xlu0 %3993  ;;  %v4687_v18 = vsel %vm4681_vm0, %v4558_v47, %v10904_v4  ;;  %v16105_v47 = vld [vmem:[#allocation279_spill] sm:$0xff] }
 0x4f7   : > { %v5002_v7 = vsel %vm4933_vm1, %v4876_v24, %v3994_v37  ;;  %3909 = vrot.lane.b32.xlu1 %v16088_v29, %s7833_s14  ;;  %v4084_v24 = vsel %vm451_vm4, %v15468_v59, %v16096_v35  ;;  %v16097_v37 = vld [vmem:[#allocation262_spill] sm:$0xff] }
 0x4f8   : > { %7656 = vmatmul.msk.bf16.gmra.mxu2 %vm5083_vm3, %v5002_v7  ;;  %v4207_v7 = vsel %vm4171_vm12, %v4084_v24, %v16097_v37 }
 0x4f9   : > { %v4024_v3 = vpop.permute.xlu1 %4023 }
 0x4fa   : > { %v5033_v14 = vsel %vm4933_vm1, %v4907_v20, %v4024_v3  ;;  %3817 = vrot.lane.b32.xlu2 %v16091_v15, %s7833_s14  ;;  %v4332_v3 = vsel %vm4294_vm13, %v4207_v7, %v16099_v42  ;;  %v16108_v7 = vld [vmem:[#allocation106_spill] sm:$0xff] }
 0x4fb   : > { %7672 = vmatmul.msk.bf16.gmra.mxu3 %vm5083_vm3, %v5033_v14  ;;  %v4461_v59 = vsel %vm4423_vm14, %v4332_v3, %v16100_v49  ;;  %v16101_v14 = vld [vmem:[#allocation227_spill] sm:$0xff] }
 0x4fc   : > { %4031 = vrot.lane.b32.xlu0 %v16094_v2, %s7832_s13  ;;  %v11207_v0 = vpop.permute.xlu2 %3811  ;;  %v4590_v38 = vsel %vm4552_vm15, %v4461_v59, %v10696_v1  ;;  %v4116_v2 = vsel %vm451_vm4, %v15529_v25, %v16103_v17  ;;  %v16104_v1 = vld [vmem:[#allocation212_spill] sm:$0xff] }
 0x4fd   : > { %v4719_v15 = vsel %vm4681_vm0, %v4590_v38, %v11106_v13  ;;  %v4239_v35 = vsel %vm4171_vm12, %v4116_v2, %v16105_v47  ;;  %v16106_v13 = vld [vmem:[#allocation339_spill] sm:$0xff] }
 0x4fe   : > { %v3810_v60 = vpop.permute.xlu0 %3809  ;;  %v4366_v24 = vsel %vm4294_vm13, %v4239_v35, %v16106_v13  ;;  %v16116_v13 = vld [vmem:[#allocation179_spill] sm:$0xff] }
 0x4ff   : > { %v4813_v29 = vsel %vm4807_vm2, %v4687_v18, %v3810_v60  ;;  %3727 = vrot.lane.b32.xlu1 %v16098_v63, %s7831_s11  ;;  %v16107_v60 = vld [vmem:[#allocation202_spill] sm:$0xff] }
 0x500   : > { %v4939_v20 = vsel %vm4933_vm1, %v4813_v29, %v3932_v30  ;;  %v4495_v37 = vsel %vm4423_vm14, %v4366_v24, %v16107_v60  ;;  %v16109_v29 = vld [vmem:[#allocation102_spill] sm:$0xff]  ;;  %v4086_v24 = vsel %vm451_vm4, %v15471_v21, %v16116_v13  ;;  %v16122_v21 = vld [vmem:[#allocation141_spill] sm:$0xff] }
 0x501   : > { %7624 = vmatmul.msk.bf16.gmra.mxu0 %vm5083_vm3, %v4939_v20  ;;  %v3842_v4 = vpop.permute.xlu1 %3841  ;;  %v4624_v25 = vsel %vm4552_vm15, %v4495_v37, %v10767_v16  ;;  %v16110_v20 = vld [vmem:[#allocation67_spill] sm:$0xff]  ;;  %v16113_v16 = vld [vmem:[#allocation42_spill] sm:$0xff] }
 0x502   : > { %3971 = vrot.lane.b32.xlu2 %v16101_v14, %s7832_s13  ;;  %v4845_v30 = vsel %vm4807_vm2, %v4719_v15, %v3842_v4  ;;  %v4146_v49 = vsel %vm451_vm4, %v15699_v54, %v16110_v20  ;;  %v16111_v4 = vld [vmem:[#allocation295_spill] sm:$0xff]  ;;  %v16112_v15 = vld [vmem:[#allocation164_spill] sm:$0xff] }
 0x503   : > { %v4269_v38 = vsel %vm4171_vm12, %v4146_v49, %v16111_v4  ;;  %v16121_v20 = vld [vmem:[#allocation60_spill] sm:$0xff]  ;;  %v4056_v49 = vsel %vm451_vm4, %v15968_v6, %v16122_v21 }
 0x504   : > { %3849 = vrot.lane.b32.xlu0 %v16102_v57, %s7833_s14  ;;  %v3966_v44 = vpop.permute.xlu2 %3965  ;;  %v4398_v57 = vsel %vm4294_vm13, %v4269_v38, %v16113_v16  ;;  %v16124_v38 = vld [vmem:[#allocation245_spill] sm:$0xff]  ;;  %v16125_v16 = vld [vmem:[#allocation56_spill] sm:$0xff] }
 0x506   : > { %v3964_v28 = vpop.permute.xlu0 %3963 }
 0x507   : > { %v4971_v43 = vsel %vm4933_vm1, %v4845_v30, %v3964_v28  ;;  %3939 = vrot.lane.b32.xlu1 %v16104_v1, %s7832_s13  ;;  %v16114_v28 = vld [vmem:[#allocation404_spill] sm:$0xff]  ;;  %v16115_v1 = vld [vmem:[#allocation169_spill] sm:$0xff] }
 0x508   : > { %7640 = vmatmul.msk.bf16.gmra.mxu1 %vm5083_vm3, %v4971_v43  ;;  %v4527_v17 = vsel %vm4423_vm14, %v4398_v57, %v16114_v28  ;;  %v16126_v28 = vld [vmem:[#allocation299_spill] sm:$0xff] }
 0x509   : > { %v3752_v18 = vpop.permute.xlu1 %3751  ;;  %v4656_v2 = vsel %vm4552_vm15, %v4527_v17, %v10831_v31  ;;  %v16117_v31 = vld [vmem:[#allocation237_spill] sm:$0xff] }
 0x50a   : > { %3881 = vrot.lane.b32.xlu2 %v16108_v7, %s7833_s14  ;;  %v4752_v42 = vsel %vm4681_vm0, %v4624_v25, %v3752_v18  ;;  %v4783_v43 = vsel %vm4681_vm0, %v4656_v2, %v11152_v32  ;;  %v16119_v32 = vld [vmem:[#allocation326_spill] sm:$0xff] }
 0x50b   : > { %v16120_v25 = vld [vmem:[#allocation378_spill] sm:$0xff] }
 0x50c   : > { %3759 = vrot.lane.b32.xlu0 %v16109_v29, %s7831_s11  ;;  %v11256_v3 = vpop.permute.xlu2 %3875 }
 0x50e   : > { %v3874_v59 = vpop.permute.xlu0 %3873 }
 0x50f   : > { %v4878_v14 = vsel %vm4807_vm2, %v4752_v42, %v3874_v59  ;;  %3789 = vrot.lane.b32.xlu1 %v16112_v15, %s7831_s11  ;;  %v16123_v59 = vld [vmem:[#allocation157_spill] sm:$0xff] }
 0x510   : > { %v5004_v30 = vsel %vm4933_vm1, %v4878_v14, %v3996_v62  ;;  %v4179_v14 = vsel %vm4171_vm12, %v4056_v49, %v16124_v38  ;;  %v16136_v49 = vld [vmem:[#allocation352_spill] sm:$0xff]  ;;  %v16137_v38 = vld [vmem:[#allocation267_spill] sm:$0xff] }
 0x511   : > { %7657 = vmatmul.msk.bf16.gmra.mxu2 %vm5083_vm3, %v5004_v30  ;;  %v3904_v54 = vpop.permute.xlu1 %3903  ;;  %v4302_v17 = vsel %vm4294_vm13, %v4179_v14, %v16126_v28  ;;  %v16139_v28 = vld [vmem:[#allocation180_spill] sm:$0xff] }
 0x512   : > { %4033 = vrot.lane.b32.xlu2 %v9762_v23, %s7832_s13  ;;  %v4909_v62 = vsel %vm4807_vm2, %v4783_v43, %v3904_v54  ;;  %v16118_v23 = vld [vmem:[#allocation263_spill] sm:$0xff]  ;;  %v16127_v54 = vld [vmem:[#allocation365_spill] sm:$0xff] }
 0x513   : > { %v4209_v60 = vsel %vm4171_vm12, %v4086_v24, %v16118_v23  ;;  %v4431_v2 = vsel %vm4423_vm14, %v4302_v17, %v16127_v54  ;;  %v16128_v43 = vld [vmem:[#allocation417_spill] sm:$0xff]  ;;  %v16140_v17 = vld [vmem:[#allocation10_spill] sm:$0xff] }
 0x514   : > { %3911 = vrot.lane.b32.xlu0 %v16115_v1, %s7833_s14  ;;  %v4028_v47 = vpop.permute.xlu2 %4027  ;;  %v4334_v37 = vsel %vm4294_vm13, %v4209_v60, %v16119_v32  ;;  %v4560_v1 = vsel %vm4552_vm15, %v4431_v2, %v16128_v43  ;;  %v16130_v60 = vld [vmem:[#allocation108_spill] sm:$0xff]  ;;  %v16131_v32 = vld [vmem:[#allocation213_spill] sm:$0xff]  ;;  %v16142_v43 = vld [vmem:[#allocation174_spill] sm:$0xff] }
 0x515   : > { %v4463_v42 = vsel %vm4423_vm14, %v4334_v37, %v16120_v25  ;;  %v4689_v13 = vsel %vm4681_vm0, %v4560_v1, %v10849_v41  ;;  %v16134_v25 = vld [vmem:[#allocation283_spill] sm:$0xff] }
 0x516   : > { %v4026_v35 = vpop.permute.xlu0 %4025  ;;  %v4592_v4 = vsel %vm4552_vm15, %v4463_v42, %v16123_v59 }
 0x517   : > { %v5035_v18 = vsel %vm4933_vm1, %v4909_v62, %v4026_v35  ;;  %4003 = vrot.lane.b32.xlu1 %v16117_v31, %s7832_s13  ;;  %v16129_v35 = vld [vmem:[#allocation20_spill] sm:$0xff] }
 0x518   : > { %7673 = vmatmul.msk.bf16.gmra.mxu3 %vm5083_vm3, %v5035_v18  ;;  %v4815_v18 = vsel %vm4807_vm2, %v4689_v13, %v11207_v0 }
 0x519   : > { %v3722_v7 = vpop.permute.xlu1 %3721 }
 0x51a   : > { %3851 = vrot.lane.b32.xlu2 %v16121_v20, %s7833_s14  ;;  %v4721_v57 = vsel %vm4681_vm0, %v4592_v4, %v3722_v7  ;;  %v16133_v7 = vld [vmem:[#allocation70_spill] sm:$0xff]  ;;  %v16135_v20 = vld [vmem:[#allocation217_spill] sm:$0xff] }
 0x51b   : > { %v4118_v21 = vsel %vm451_vm4, %v15521_v12, %v16135_v20  ;;  %v16141_v12 = vld [vmem:[#allocation391_spill] sm:$0xff] }
 0x51c   : > { %3729 = vrot.lane.b32.xlu0 %v16125_v16, %s7831_s11  ;;  %v11306_v30 = vpop.permute.xlu2 %3845  ;;  %v4241_v14 = vsel %vm4171_vm12, %v4118_v21, %v16137_v38  ;;  %v16150_v21 = vld [vmem:[#allocation145_spill] sm:$0xff]  ;;  %v16153_v38 = vld [vmem:[#allocation18_spill] sm:$0xff] }
 0x51d   : > { %v4368_v54 = vsel %vm4294_vm13, %v4241_v14, %v16140_v17  ;;  %v16154_v14 = vld [vmem:[#allocation159_spill] sm:$0xff] }
 0x51e   : > { %v3844_v6 = vpop.permute.xlu0 %3843  ;;  %v16158_v17 = vld [vmem:[#allocation23_spill] sm:$0xff] }
 0x51f   : > { %v4847_v62 = vsel %vm4807_vm2, %v4721_v57, %v3844_v6  ;;  %3819 = vrot.lane.b32.xlu1 %v16129_v35, %s7833_s14  ;;  %v16138_v57 = vld [vmem:[#allocation405_spill] sm:$0xff]  ;;  %v4497_v6 = vsel %vm4423_vm14, %v4368_v54, %v16141_v12  ;;  %v16159_v54 = vld [vmem:[#allocation236_spill] sm:$0xff]  ;;  %v16160_v12 = vld [vmem:[#allocation167_spill] sm:$0xff] }
 0x520   : > { %v4973_v24 = vsel %vm4933_vm1, %v4847_v62, %v3966_v44  ;;  %v16132_v44 = vld [vmem:[#allocation232_spill] sm:$0xff]  ;;  %v4626_v35 = vsel %vm4552_vm15, %v4497_v6, %v10771_v36  ;;  %v11430_v6 = vsel %vm451_vm4, %v16098_v63, %v16160_v12  ;;  %v16169_v63 = vld [vmem:[#allocation186_spill] sm:$0xff] }
 0x521   : > { %7641 = vmatmul.msk.bf16.gmra.mxu1 %vm5083_vm3, %v4973_v24  ;;  %v3934_v31 = vpop.permute.xlu1 %3933  ;;  %v4148_v0 = vsel %vm451_vm4, %v15694_v33, %v16132_v44  ;;  %v16144_v44 = vld [vmem:[#allocation113_spill] sm:$0xff]  ;;  %v16179_v12 = vld [vmem:[#allocation204_spill] sm:$0xff] }
 0x522   : > { %v4941_v23 = vsel %vm4933_vm1, %v4815_v18, %v3934_v31  ;;  %3761 = vrot.lane.b32.xlu2 %v16130_v60, %s7831_s11  ;;  %v4271_v42 = vsel %vm4171_vm12, %v4148_v0, %v16134_v25  ;;  %v4058_v36 = vsel %vm451_vm4, %v15970_v51, %v16144_v44  ;;  %v16145_v0 = vld [vmem:[#allocation119_spill] sm:$0xff]  ;;  %v16168_v44 = vld [vmem:[#allocation44_spill] sm:$0xff] }
 0x523   : > { %7625 = vmatmul.msk.bf16.gmra.mxu0 %vm5083_vm3, %v4941_v23  ;;  %v4400_v59 = vsel %vm4294_vm13, %v4271_v42, %v16136_v49  ;;  %v16147_v42 = vld [vmem:[#allocation62_spill] sm:$0xff]  ;;  %v16149_v51 = vld [vmem:[#allocation143_spill] sm:$0xff]  ;;  %v16151_v49 = vld [vmem:[#allocation149_spill] sm:$0xff] }
 0x524   : > { %3941 = vrot.lane.b32.xlu0 %v16131_v32, %s7832_s13  ;;  %v11329_v37 = vpop.permute.xlu2 %3755  ;;  %v4529_v33 = vsel %vm4423_vm14, %v4400_v59, %v16138_v57  ;;  %v4064_v59 = vsel %vm451_vm4, %v8157_v11, %v16151_v49  ;;  %v16155_v57 = vld [vmem:[#allocation158_spill] sm:$0xff] }
 0x525   : > { %v4658_v2 = vsel %vm4552_vm15, %v4529_v33, %v10789_v55  ;;  %v16143_v55 = vld [vmem:[#allocation112_spill] sm:$0xff]  ;;  %v16156_v33 = vld [vmem:[#allocation21_spill] sm:$0xff] }
 0x526   : > { %v3754_v41 = vpop.permute.xlu0 %3753 }
 0x527   : > { %3973 = vrot.lane.b32.xlu1 %v16133_v7, %s7832_s13  ;;  %v4754_v13 = vsel %vm4681_vm0, %v4626_v35, %v3754_v41  ;;  %v11376_v41 = vsel %vm451_vm4, %v8039_v45, %v16145_v0  ;;  %v16146_v7 = vld [vmem:[#allocation125_spill] sm:$0xff]  ;;  %v11394_v45 = vsel %vm451_vm4, %v8267_v27, %v16149_v51  ;;  %v11413_v27 = vsel %vm451_vm4, %v16016_v9, %v16154_v14  ;;  %v16161_v9 = vld [vmem:[#allocation166_spill] sm:$0xff] }
 0x528   : > { %v4880_v32 = vsel %vm4807_vm2, %v4754_v13, %v11256_v3  ;;  %v11381_v25 = vsel %vm451_vm4, %v8131_v61, %v16146_v7  ;;  %v16148_v3 = vld [vmem:[#allocation133_spill] sm:$0xff]  ;;  %v11399_v61 = vsel %vm451_vm4, %v8120_v39, %v16150_v21  ;;  %v4070_v39 = vsel %vm451_vm4, %v16156_v33, %v16155_v57  ;;  %v16163_v13 = vld [vmem:[#allocation175_spill] sm:$0xff]  ;;  %v16174_v57 = vld [vmem:[#allocation196_spill] sm:$0xff] }
 0x529   : > { %v3784_v4 = vpop.permute.xlu1 %3783  ;;  %v11389_v20 = vsel %vm451_vm4, %v8214_v56, %v16148_v3  ;;  %v11451_v7 = vsel %vm451_vm4, %v16038_v19, %v16169_v63  ;;  %v16171_v51 = vld [vmem:[#allocation193_spill] sm:$0xff]  ;;  %v4100_v19 = vsel %vm451_vm4, %v16147_v42, %v16174_v57  ;;  %v16175_v33 = vld [vmem:[#allocation200_spill] sm:$0xff]  ;;  %v16188_v57 = vld [vmem:[#allocation43_spill] sm:$0xff] }
 0x52a   : > { %3913 = vrot.lane.b32.xlu2 %v16139_v28, %s7833_s14  ;;  %v4785_v1 = vsel %vm4681_vm0, %v4658_v2, %v3784_v4  ;;  %v16152_v4 = vld [vmem:[#allocation153_spill] sm:$0xff]  ;;  %v16157_v28 = vld [vmem:[#allocation162_spill] sm:$0xff]  ;;  %v11459_v21 = vsel %vm451_vm4, %v16125_v16, %v16171_v51  ;;  %v16184_v63 = vld [vmem:[#allocation312_spill] sm:$0xff] }
 0x52b   : > { %v11408_v56 = vsel %vm451_vm4, %v16153_v38, %v16152_v4  ;;  %v11421_v11 = vsel %vm451_vm4, %v16158_v17, %v16157_v28  ;;  %v16172_v4 = vld [vmem:[#allocation198_spill] sm:$0xff]  ;;  %v16173_v38 = vld [vmem:[#allocation87_spill] sm:$0xff]  ;;  %v16176_v28 = vld [vmem:[#allocation65_spill] sm:$0xff] }
 0x52c   : > { %3791 = vrot.lane.b32.xlu0 %v16142_v43, %s7831_s11  ;;  %v11358_v62 = vpop.permute.xlu2 %3907  ;;  %v11464_v14 = vsel %vm451_vm4, %v16173_v38, %v16172_v4  ;;  %v11472_v17 = vsel %vm451_vm4, %v16176_v28, %v16175_v33  ;;  %v16178_v16 = vld [vmem:[#allocation250_spill] sm:$0xff]  ;;  %v16186_v51 = vld [vmem:[#allocation116_spill] sm:$0xff]  ;;  %v4124_v33 = vsel %vm451_vm4, %v16043_v5, %v16188_v57  ;;  %v16195_v57 = vld [vmem:[#allocation209_spill] sm:$0xff] }
 0x52d   : > { %v16187_v38 = vld [vmem:[#allocation220_spill] sm:$0xff] }
 0x52e   : > { %v3906_v24 = vpop.permute.xlu0 %3905 }
 0x52f   : > { %v4911_v18 = vsel %vm4807_vm2, %v4785_v1, %v3906_v24  ;;  %3883 = vrot.lane.b32.xlu1 %v16143_v55, %s7833_s14  ;;  %v16162_v1 = vld [vmem:[#allocation28_spill] sm:$0xff]  ;;  %v16164_v24 = vld [vmem:[#allocation59_spill] sm:$0xff] }
 0x530   : > { %v5037_v31 = vsel %vm4933_vm1, %v4911_v18, %v4028_v47  ;;  %v4076_v35 = vsel %vm451_vm4, %v16162_v1, %v16161_v9  ;;  %v11438_v18 = vsel %vm451_vm4, %v16164_v24, %v16163_v13  ;;  %v16165_v55 = vld [vmem:[#allocation183_spill] sm:$0xff]  ;;  %v11481_v9 = vsel %vm451_vm4, %v16079_v8, %v16179_v12  ;;  %v16181_v13 = vld [vmem:[#allocation72_spill] sm:$0xff] }
 0x531   : > { %7674 = vmatmul.msk.bf16.gmra.mxu3 %vm5083_vm3, %v5037_v31  ;;  %v3998_v23 = vpop.permute.xlu1 %3997  ;;  %v16166_v31 = vld [vmem:[#allocation68_spill] sm:$0xff]  ;;  %v16180_v1 = vld [vmem:[#allocation203_spill] sm:$0xff]  ;;  %v11501_v8 = vsel %vm451_vm4, %v16028_v52, %v16187_v38  ;;  %v16193_v52 = vld [vmem:[#allocation249_spill] sm:$0xff] }
 0x532   : > { %v5006_v47 = vsel %vm4933_vm1, %v4880_v32, %v3998_v23  ;;  %3731 = vrot.lane.b32.xlu2 %v16147_v42, %s7831_s11  ;;  %v11443_v23 = vsel %vm451_vm4, %v16166_v31, %v16165_v55  ;;  %v16167_v32 = vld [vmem:[#allocation181_spill] sm:$0xff]  ;;  %v4106_v42 = vsel %vm451_vm4, %v16181_v13, %v16180_v1  ;;  %v16182_v55 = vld [vmem:[#allocation211_spill] sm:$0xff]  ;;  %v16190_v1 = vld [vmem:[#allocation32_spill] sm:$0xff] }
 0x533   : > { %7658 = vmatmul.msk.bf16.gmra.mxu2 %vm5083_vm3, %v5006_v47  ;;  %v4088_v0 = vsel %vm451_vm4, %v16168_v44, %v16167_v32  ;;  %v16170_v47 = vld [vmem:[#allocation189_spill] sm:$0xff] }
 0x534   : > { %4005 = vrot.lane.b32.xlu0 %v16159_v54, %s7832_s13  ;;  %v11425_v2 = vpop.permute.xlu2 %3725  ;;  %v4094_v3 = vsel %vm451_vm4, %v16059_v22, %v16170_v47  ;;  %v16177_v22 = vld [vmem:[#allocation235_spill] sm:$0xff]  ;;  %v16183_v32 = vld [vmem:[#allocation105_spill] sm:$0xff]  ;;  %v16185_v47 = vld [vmem:[#allocation218_spill] sm:$0xff]  ;;  %v4211_v38 = vsel %vm4171_vm12, %v4088_v0, %v16193_v52 }
 0x535   : > { %v4181_v54 = vsel %vm4171_vm12, %v4058_v36, %v16177_v22  ;;  %v11489_v44 = vsel %vm451_vm4, %v16183_v32, %v16182_v55  ;;  %v11496_v4 = vsel %vm451_vm4, %v16186_v51, %v16185_v47  ;;  %v16189_v22 = vld [vmem:[#allocation366_spill] sm:$0xff]  ;;  %v16191_v55 = vld [vmem:[#allocation40_spill] sm:$0xff]  ;;  %v16201_v52 = vld [vmem:[#allocation55_spill] sm:$0xff] }
 0x536   : > { %v3724_v49 = vpop.permute.xlu0 %3723  ;;  %v4304_v36 = vsel %vm4294_vm13, %v4181_v54, %v16184_v63  ;;  %v11511_v54 = vsel %vm451_vm4, %v16109_v29, %v16190_v1  ;;  %v16192_v63 = vld [vmem:[#allocation140_spill] sm:$0xff]  ;;  %v16197_v29 = vld [vmem:[#allocation225_spill] sm:$0xff]  ;;  %v16198_v1 = vld [vmem:[#allocation111_spill] sm:$0xff] }
 0x537   : > { %4035 = vrot.lane.b32.xlu1 %v16178_v16, %s7832_s13  ;;  %v4433_v16 = vsel %vm4423_vm14, %v4304_v36, %v16189_v22  ;;  %v11516_v47 = vsel %vm451_vm4, %v16192_v63, %v16191_v55  ;;  %v16196_v36 = vld [vmem:[#allocation52_spill] sm:$0xff]  ;;  %v4134_v34 = vsel %vm451_vm4, %v16198_v1, %v16197_v29  ;;  %v4336_v55 = vsel %vm4294_vm13, %v4211_v38, %v16199_v46  ;;  %v16211_v51 = vld [vmem:[#allocation89_spill] sm:$0xff] }
 0x538   : > { %v4562_v5 = vsel %vm4552_vm15, %v4433_v16, %v16194_v50  ;;  %v4130_v22 = vsel %vm451_vm4, %v16130_v60, %v16196_v36  ;;  %v16200_v63 = vld [vmem:[#allocation184_spill] sm:$0xff]  ;;  %v11537_v50 = vsel %vm451_vm4, %v16075_v58, %v16201_v52  ;;  %v16202_v16 = vld [vmem:[#allocation226_spill] sm:$0xff]  ;;  %v16208_v58 = vld [vmem:[#allocation77_spill] sm:$0xff] }
 0x539   : > { %v3814_v12 = vpop.permute.xlu1 %3813  ;;  %v4691_v0 = vsel %vm4681_vm0, %v4562_v5, %v16200_v63  ;;  %v16204_v60 = vld [vmem:[#allocation152_spill] sm:$0xff]  ;;  %v16206_v5 = vld [vmem:[#allocation230_spill] sm:$0xff]  ;;  %v16207_v63 = vld [vmem:[#allocation171_spill] sm:$0xff]  ;;  %v4152_v52 = vsel %vm451_vm4, %v16029_v48, %v16208_v58  ;;  %v4160_v48 = vsel %vm451_vm4, %v16142_v43, %v16214_v26 }
 0x53a   : > { %3943 = vrot.lane.b32.xlu2 %v16195_v57, %s7832_s13  ;;  %v16203_v57 = vld [vmem:[#allocation120_spill] sm:$0xff]  ;;  %v4465_v36 = vsel %vm4423_vm14, %v4336_v55, %v16204_v60  ;;  %v4817_v46 = vsel %vm4807_vm2, %v4691_v0, %v3814_v12  ;;  %v11552_v31 = vsel %vm451_vm4, %v16207_v63, %v16206_v5  ;;  %v16210_v60 = vld [vmem:[#allocation427_spill] sm:$0xff]  ;;  %v16212_v12 = vld [vmem:[#allocation185_spill] sm:$0xff]  ;;  %v4158_v5 = vsel %vm451_vm4, %v16112_v15, %v16213_v40 }
 0x53b   : > { %v4136_v10 = vsel %vm451_vm4, %v16203_v57, %v16202_v16  ;;  %v16205_v29 = vld [vmem:[#allocation24_spill] sm:$0xff]  ;;  %v16209_v16 = vld [vmem:[#allocation86_spill] sm:$0xff]  ;;  %v11565_v0 = vsel %vm451_vm4, %v16212_v12, %v16211_v51  ;;  %v16218_v57 = vld [vmem:[#allocation187_spill] sm:$0xff] }
 0x53c   : > { %3821 = vrot.lane.b32.xlu0 %v16205_v29, %s7833_s14  ;;  %v11547_v38 = vpop.permute.xlu2 %3937  ;;  %v4154_v55 = vsel %vm451_vm4, %v16057_v53, %v16209_v16  ;;  %v4594_v29 = vsel %vm4552_vm15, %v4465_v36, %v16210_v60  ;;  %v16215_v53 = vld [vmem:[#allocation118_spill] sm:$0xff]  ;;  %v16217_v60 = vld [vmem:[#allocation239_spill] sm:$0xff]  ;;  %v16221_v26 = vld [vmem:[#allocation240_spill] sm:$0xff] }
 0x53d   : > { %v4723_v58 = vsel %vm4681_vm0, %v4594_v29, %v3724_v49  ;;  %v16216_v16 = vld [vmem:[#allocation178_spill] sm:$0xff]  ;;  %v4166_v51 = vsel %vm451_vm4, %v16218_v57, %v16217_v60  ;;  %v11589_v43 = vsel %vm4171_vm12, %v4070_v39, %v16221_v26  ;;  %v16222_v49 = vld [vmem:[#allocation243_spill] sm:$0xff]  ;;  %v16224_v57 = vld [vmem:[#allocation248_spill] sm:$0xff] }
 0x53e   : > { %v3936_v13 = vpop.permute.xlu0 %3935  ;;  %v4164_v36 = vsel %vm451_vm4, %v16216_v16, %v16215_v53  ;;  %v16219_v12 = vld [vmem:[#allocation238_spill] sm:$0xff]  ;;  %v11593_v29 = vsel %vm4171_vm12, %v4076_v35, %v16222_v49  ;;  %v16223_v53 = vld [vmem:[#allocation139_spill] sm:$0xff]  ;;  %v4849_v26 = vsel %vm4807_vm2, %v4723_v58, %v11306_v30  ;;  %v16230_v49 = vld [vmem:[#allocation256_spill] sm:$0xff] }
 0x53f   : > { %v11582_v28 = vsel %vm4171_vm12, %v4064_v59, %v16219_v12  ;;  %v4943_v40 = vsel %vm4933_vm1, %v4817_v46, %v3936_v13  ;;  %v16220_v15 = vld [vmem:[#allocation66_spill] sm:$0xff]  ;;  %v4183_v60 = vsel %vm4171_vm12, %v11376_v41, %v16223_v53  ;;  %v4185_v59 = vsel %vm4171_vm12, %v11399_v61, %v16224_v57  ;;  %v16226_v39 = vld [vmem:[#allocation251_spill] sm:$0xff]  ;;  %v16227_v12 = vld [vmem:[#allocation252_spill] sm:$0xff] }
 0x540   : > { %3853 = vrot.lane.b32.xlu1 %v16220_v15, %s7833_s14  ;;  %7626 = vmatmul.msk.bf16.gmra.mxu0 %vm5083_vm3, %v4943_v40  ;;  %v16225_v13 = vld [vmem:[#allocation154_spill] sm:$0xff]  ;;  %v4191_v35 = vsel %vm4171_vm12, %v11408_v56, %v16226_v39  ;;  %v11612_v15 = vsel %vm4171_vm12, %v4094_v3, %v16227_v12  ;;  %v16228_v61 = vld [vmem:[#allocation168_spill] sm:$0xff]  ;;  %v11626_v56 = vsel %vm4171_vm12, %v4100_v19, %v16230_v49  ;;  %v16232_v53 = vld [vmem:[#allocation257_spill] sm:$0xff] }
 0x541   : > { %v11605_v46 = vsel %vm4171_vm12, %v11381_v25, %v16225_v13  ;;  %v3968_v41 = vpop.permute.xlu1 %3967  ;;  %v11619_v57 = vsel %vm4171_vm12, %v11389_v20, %v16228_v61  ;;  %v16229_v40 = vld [vmem:[#allocation254_spill] sm:$0xff]  ;;  %16231 = vst [vmem:[#allocation13_spill] sm:$0xff] %v11626_v56  ;;  %v11634_v30 = vsel %vm4171_vm12, %v11394_v45, %v16232_v53  ;;  %v16233_v20 = vld [vmem:[#allocation261_spill] sm:$0xff]  ;;  %v16236_v19 = vld [vmem:[#allocation27_spill] sm:$0xff] }
 0x542   : > { %v4197_v25 = vsel %vm4171_vm12, %v11421_v11, %v16229_v40  ;;  %v4975_v3 = vsel %vm4933_vm1, %v4849_v26, %v3968_v41  ;;  %3793 = vrot.lane.b32.xlu2 %v16207_v63, %s7831_s11  ;;  %v11638_v58 = vsel %vm4171_vm12, %v4106_v42, %v16233_v20  ;;  %v16235_v13 = vld [vmem:[#allocation265_spill] sm:$0xff]  ;;  %v11646_v39 = vsel %vm4171_vm12, %v11451_v7, %v16236_v19  ;;  %v16237_v63 = vld [vmem:[#allocation268_spill] sm:$0xff]  ;;  %v16239_v41 = vld [vmem:[#allocation271_spill] sm:$0xff] }
 0x543   : > { %16234 = vst [vmem:[#allocation148_spill] sm:$0xff] %v11638_v58  ;;  %v4213_v11 = vsel %vm4171_vm12, %v11413_v27, %v16235_v13  ;;  %7642 = vmatmul.msk.bf16.gmra.mxu1 %vm5083_vm3, %v4975_v3  ;;  %v4219_v45 = vsel %vm4171_vm12, %v11430_v6, %v16237_v63  ;;  %v16238_v12 = vld [vmem:[#allocation269_spill] sm:$0xff]  ;;  %v4225_v27 = vsel %vm4171_vm12, %v11438_v18, %v16239_v41  ;;  %v16240_v26 = vld [vmem:[#allocation270_spill] sm:$0xff]  ;;  %v16242_v49 = vld [vmem:[#allocation272_spill] sm:$0xff] }
 0x544   : > { %v11655_v42 = vsel %vm4171_vm12, %v11459_v21, %v16238_v12  ;;  %v4247_v61 = vsel %vm4171_vm12, %v4124_v33, %v16240_v26  ;;  %v16241_v7 = vld [vmem:[#allocation49_spill] sm:$0xff]  ;;  %v11664_v40 = vpop.permute.xlu2 %3787  ;;  %v11669_v6 = vsel %vm4171_vm12, %v11472_v17, %v16242_v49  ;;  %v16244_v3 = vld [vmem:[#allocation274_spill] sm:$0xff]  ;;  %v16251_v63 = vld [vmem:[#allocation71_spill] sm:$0xff] }
 0x545   : > { %3975 = vrot.lane.b32.xlu0 %v16241_v7, %s7832_s13  ;;  %16243 = vst [vmem:[#allocation41_spill] sm:$0xff] %v11669_v6  ;;  %v11674_v21 = vsel %vm4171_vm12, %v11443_v23, %v16244_v3  ;;  %v16246_v53 = vld [vmem:[#allocation273_spill] sm:$0xff]  ;;  %v4245_v17 = vsel %vm4171_vm12, %v11501_v8, %v16251_v63  ;;  %v16252_v12 = vld [vmem:[#allocation284_spill] sm:$0xff]  ;;  %v16254_v7 = vld [vmem:[#allocation287_spill] sm:$0xff] }
 0x546   : > { %16245 = vst [vmem:[#allocation46_spill] sm:$0xff] %v11674_v21  ;;  %v11678_v18 = vsel %vm4171_vm12, %v4130_v22, %v16246_v53  ;;  %v16248_v33 = vld [vmem:[#allocation277_spill] sm:$0xff]  ;;  %v4249_v23 = vsel %vm4171_vm12, %v11481_v9, %v16252_v12  ;;  %v3786_v26 = vpop.permute.xlu0 %3785  ;;  %v16256_v49 = vld [vmem:[#allocation288_spill] sm:$0xff]  ;;  %v16258_v3 = vld [vmem:[#allocation286_spill] sm:$0xff] }
 0x547   : > { %16247 = vst [vmem:[#allocation45_spill] sm:$0xff] %v11678_v18  ;;  %v11682_v20 = vsel %vm4171_vm12, %v4136_v10, %v16248_v33  ;;  %v16250_v13 = vld [vmem:[#allocation281_spill] sm:$0xff]  ;;  %v11699_v10 = vsel %vm4171_vm12, %v11489_v44, %v16254_v7  ;;  %v4277_v8 = vsel %vm4171_vm12, %v4154_v55, %v16258_v3  ;;  %v11711_v33 = vpop.f32.mrf.mxu0  ;;  %v11731_v7 = vpop.f32.mrf.mxu3 }
 0x548   : > { %16249 = vst [vmem:[#allocation129_spill] sm:$0xff] %v11682_v20  ;;  %v4243_v19 = vsel %vm4171_vm12, %v11464_v14, %v16250_v13  ;;  %v16253_v41 = vld [vmem:[#allocation285_spill] sm:$0xff]  ;;  %v11703_v14 = vsel %vm4171_vm12, %v4134_v34, %v16256_v49  ;;  %3763 = vrot.lane.b32.xlu1 %v16183_v32, %s7831_s11  ;;  %v16264_v13 = vld [vmem:[#allocation292_spill] sm:$0xff]  ;;  %v16268_v32 = vld [vmem:[#allocation298_spill] sm:$0xff] }
 0x549   : > { %v4251_v22 = vsel %vm4171_vm12, %v11511_v54, %v16253_v41  ;;  %16255 = vst [vmem:[#allocation206_spill] sm:$0xff] %v11699_v10  ;;  %v16259_v53 = vld [vmem:[#allocation289_spill] sm:$0xff]  ;;  %v16262_v54 = vld [vmem:[#allocation290_spill] sm:$0xff]  ;;  %v11722_v34 = vsel %vm4171_vm12, %v4166_v51, %v16264_v13  ;;  %v11729_v41 = vpop.f32.mrf.mxu2  ;;  %v4275_v49 = vsel %vm4171_vm12, %v4152_v52, %v16268_v32  ;;  %v3878_v13 = vpop.permute.xlu1 %3877 }
 0x54a   : > { %16257 = vst [vmem:[#allocation242_spill] sm:$0xff] %v11703_v14  ;;  %v11709_v9 = vsel %vm4171_vm12, %v4160_v48, %v16259_v53  ;;  %v11718_v44 = vsel %vm4171_vm12, %v11496_v4, %v16262_v54  ;;  %v16266_v63 = vld [vmem:[#allocation297_spill] sm:$0xff]  ;;  %v16267_v48 = vld [vmem:[#allocation340_spill] sm:$0xff] }
 0x54b   : > { %16260 = vst [vmem:[#allocation335_spill] sm:$0xff] %v11709_v9  ;;  %v4273_v55 = vsel %vm4171_vm12, %v11516_v47, %v16266_v63  ;;  %v4370_v12 = vsel %vm4294_vm13, %v4243_v19, %v16267_v48  ;;  %v16269_v4 = vld [vmem:[#allocation300_spill] sm:$0xff]  ;;  %v16270_v51 = vld [vmem:[#allocation117_spill] sm:$0xff]  ;;  %v16272_v63 = vld [vmem:[#allocation302_spill] sm:$0xff] }
 0x54c   : > { %16261 = vst [vmem:[#allocation201_spill] sm:$0xff] %v11711_v33  ;;  %v4279_v3 = vsel %vm4171_vm12, %v11537_v50, %v16269_v4  ;;  %v4281_v53 = vsel %vm4171_vm12, %v4158_v5, %v16270_v51  ;;  %v16271_v54 = vld [vmem:[#allocation392_spill] sm:$0xff]  ;;  %v11745_v19 = vsel %vm4171_vm12, %v11552_v31, %v16272_v63  ;;  %v16274_v48 = vld [vmem:[#allocation303_spill] sm:$0xff]  ;;  %v16276_v52 = vld [vmem:[#allocation301_spill] sm:$0xff] }
 0x54d   : > { %16263 = vst [vmem:[#allocation97_spill] sm:$0xff] %v11718_v44  ;;  %v4499_v47 = vsel %vm4423_vm14, %v4370_v12, %v16271_v54  ;;  %v11749_v33 = vsel %vm4171_vm12, %v4164_v36, %v16274_v48  ;;  %v4308_v32 = vsel %vm4294_vm13, %v4185_v59, %v16276_v52  ;;  %v16277_v50 = vld [vmem:[#allocation429_spill] sm:$0xff]  ;;  %v16278_v5 = vld [vmem:[#allocation110_spill] sm:$0xff]  ;;  %v16281_v31 = vld [vmem:[#allocation304_spill] sm:$0xff] }
 0x54e   : > { %16265 = vst [vmem:[#allocation93_spill] sm:$0xff] %v11722_v34  ;;  %v4628_v4 = vsel %vm4552_vm15, %v4499_v47, %v16277_v50  ;;  %4007 = vrot.lane.b32.xlu2 %v16278_v5, %s7832_s13  ;;  %v16279_v12 = vld [vmem:[#allocation305_spill] sm:$0xff]  ;;  %v4314_v54 = vsel %vm4294_vm13, %v4191_v35, %v16281_v31  ;;  %v16283_v48 = vld [vmem:[#allocation307_spill] sm:$0xff]  ;;  %v11779_v31 = vpop.permute.xlu2 %4001 }
 0x54f   : > { %16273 = vst [vmem:[#allocation151_spill] sm:$0xff] %v11745_v19  ;;  %v11760_v51 = vsel %vm4171_vm12, %v11565_v0, %v16279_v12  ;;  %v16282_v63 = vld [vmem:[#allocation353_spill] sm:$0xff]  ;;  %v4756_v59 = vsel %vm4681_vm0, %v4628_v4, %v11329_v37  ;;  %v11770_v47 = vsel %vm4294_vm13, %v4197_v25, %v16283_v48  ;;  %v16289_v4 = vld [vmem:[#allocation136_spill] sm:$0xff]  ;;  %v16291_v48 = vld [vmem:[#allocation447_spill] sm:$0xff] }
 0x550   : > { %16275 = vst [vmem:[#allocation36_spill] sm:$0xff] %v11749_v33  ;;  %v4402_v36 = vsel %vm4294_vm13, %v4273_v55, %v16282_v63  ;;  %v16285_v52 = vld [vmem:[#allocation313_spill] sm:$0xff]  ;;  %v4882_v35 = vsel %vm4807_vm2, %v4756_v59, %v3878_v13  ;;  %v16288_v55 = vld [vmem:[#allocation314_spill] sm:$0xff]  ;;  %v4312_v25 = vsel %vm4294_vm13, %v11605_v46, %v16289_v4  ;;  %v16290_v63 = vld [vmem:[#allocation315_spill] sm:$0xff] }
 0x551   : > { %16280 = vst [vmem:[#allocation400_spill] sm:$0xff] %v11760_v51  ;;  %v4306_v50 = vsel %vm4294_vm13, %v4183_v60, %v16285_v52  ;;  %v16286_v5 = vld [vmem:[#allocation393_spill] sm:$0xff]  ;;  %v4310_v37 = vsel %vm4294_vm13, %v11582_v28, %v16288_v55  ;;  %v4338_v60 = vsel %vm4294_vm13, %v4213_v11, %v16290_v63  ;;  %v16292_v52 = vld [vmem:[#allocation316_spill] sm:$0xff]  ;;  %v16296_v28 = vld [vmem:[#allocation318_spill] sm:$0xff]  ;;  %v4000_v55 = vpop.permute.xlu0 %3999 }
 0x552   : > { %16284 = vst [vmem:[#allocation156_spill] sm:$0xff] %v11770_v47  ;;  %v4531_v0 = vsel %vm4423_vm14, %v4402_v36, %v16286_v5  ;;  %v16287_v12 = vld [vmem:[#allocation109_spill] sm:$0xff]  ;;  %v11794_v13 = vsel %vm4294_vm13, %v11589_v43, %v16292_v52  ;;  %v16297_v11 = vld [vmem:[#allocation319_spill] sm:$0xff]  ;;  %v16299_v4 = vld [vmem:[#allocation320_spill] sm:$0xff] }
 0x553   : > { %3885 = vrot.lane.b32.xlu0 %v16287_v12, %s7833_s14  ;;  %v4660_v36 = vsel %vm4552_vm15, %v4531_v0, %v16291_v48  ;;  %16293 = vst [vmem:[#allocation107_spill] sm:$0xff] %v11794_v13  ;;  %v16294_v59 = vld [vmem:[#allocation317_spill] sm:$0xff]  ;;  %v4344_v12 = vsel %vm4294_vm13, %v4219_v45, %v16296_v28  ;;  %v11807_v0 = vsel %vm4294_vm13, %v11593_v29, %v16297_v11  ;;  %v16303_v45 = vld [vmem:[#allocation176_spill] sm:$0xff]  ;;  %v16305_v29 = vld [vmem:[#allocation11_spill] sm:$0xff] }
 0x554   : > { %v11799_v5 = vsel %vm4294_vm13, %v11619_v57, %v16294_v59  ;;  %v4787_v46 = vsel %vm4681_vm0, %v4660_v36, %v3786_v26  ;;  %16298 = vst [vmem:[#allocation374_spill] sm:$0xff] %v11807_v0  ;;  %v11812_v43 = vsel %vm4294_vm13, %v11634_v30, %v16299_v4  ;;  %v16301_v63 = vld [vmem:[#allocation321_spill] sm:$0xff]  ;;  %v5008_v48 = vsel %vm4933_vm1, %v4882_v35, %v4000_v55  ;;  %v16304_v26 = vld [vmem:[#allocation12_spill] sm:$0xff]  ;;  %v16307_v28 = vld [vmem:[#allocation330_spill] sm:$0xff] }
 0x555   : > { %16295 = vst [vmem:[#allocation322_spill] sm:$0xff] %v11799_v5  ;;  %v11816_v57 = vsel %vm4294_vm13, %v4225_v27, %v16301_v63  ;;  %3915 = vrot.lane.b32.xlu1 %v16303_v45, %s7833_s14  ;;  %v4340_v36 = vsel %vm4294_vm13, %v11646_v39, %v16304_v26  ;;  %v4342_v52 = vsel %vm4294_vm13, %v11612_v15, %v16305_v29  ;;  %v16306_v59 = vld [vmem:[#allocation328_spill] sm:$0xff]  ;;  %v16308_v55 = vld [vmem:[#allocation38_spill] sm:$0xff]  ;;  %v16309_v11 = vld [vmem:[#allocation341_spill] sm:$0xff]  ;;  %v4030_v45 = vpop.permute.xlu1 %4029 }
 0x556   : > { %16300 = vst [vmem:[#allocation51_spill] sm:$0xff] %v11812_v43  ;;  %v4346_v30 = vsel %vm4294_vm13, %v11655_v42, %v16306_v59  ;;  %v4374_v27 = vsel %vm4294_vm13, %v4247_v61, %v16307_v28  ;;  %v11835_v35 = vld [vmem:[%s14808_s4] ss:$0 sm:$0xff]  ;;  %7659 = vmatmul.msk.bf16.gmra.mxu2 %vm5083_vm3, %v5008_v48  ;;  %v4372_v39 = vsel %vm4294_vm13, %v4245_v17, %v16308_v55  ;;  %v11844_v42 = vpop.f32.mrf.mxu0  ;;  %v16311_v26 = vld [vmem:[#allocation342_spill] sm:$0xff]  ;;  %v16312_v59 = vld [vmem:[#allocation345_spill] sm:$0xff]  ;;  %v5387_v55 = vpop.f32.mrf.mxu2 }
 0x557   : > { %16302 = vst [vmem:[#allocation135_spill] sm:$0xff] %v11816_v57  ;;  %v4376_v15 = vsel %vm4294_vm13, %v4249_v23, %v16309_v11  ;;  %v16310_v4 = vld [vmem:[#allocation48_spill] sm:$0xff]  ;;  %v4913_v61 = vsel %vm4807_vm2, %v4787_v46, %v11358_v62  ;;  %v4404_v29 = vsel %vm4294_vm13, %v4275_v49, %v16311_v26  ;;  %v4410_v48 = vsel %vm4294_vm13, %v4281_v53, %v16312_v59  ;;  %v16313_v28 = vld [vmem:[#allocation82_spill] sm:$0xff]  ;;  %v5467_v23 = vpop.f32.mrf.mxu3  ;;  %v16317_v49 = vld [vmem:[#allocation357_spill] sm:$0xff] }
 0x558   : > { %v4378_v63 = vsel %vm4294_vm13, %v4251_v22, %v16310_v4  ;;  %v4406_v17 = vsel %vm4294_vm13, %v4277_v8, %v16313_v28  ;;  %v5039_v11 = vsel %vm4933_vm1, %v4913_v61, %v4030_v45  ;;  %v16314_v22 = vld [vmem:[#allocation22_spill] sm:$0xff]  ;;  %v16315_v4 = vld [vmem:[#allocation88_spill] sm:$0xff]  ;;  %v11863_v26 = vsel %vm4423_vm14, %v4312_v25, %v16317_v49  ;;  %v16320_v59 = vld [vmem:[#allocation367_spill] sm:$0xff] }
 0x559   : > { %3823 = vrot.lane.b32.xlu2 %v16314_v22, %s7833_s14  ;;  %v4408_v0 = vsel %vm4294_vm13, %v4279_v3, %v16315_v4  ;;  %v16316_v62 = vld [vmem:[#allocation354_spill] sm:$0xff]  ;;  %7675 = vmatmul.msk.bf16.gmra.mxu3 %vm5083_vm3, %v5039_v11  ;;  %v11874_v28 = vsel %vm4423_vm14, %v4314_v54, %v16320_v59  ;;  %v16321_v3 = vld [vmem:[#allocation369_spill] sm:$0xff]  ;;  %v5386_v25 = vadd.f32 %v11835_v35, %v11729_v41  ;;  %v16323_v11 = vld [vmem:[#allocation379_spill] sm:$0xff] }
 0x55a   : > { %v4435_v46 = vsel %vm4423_vm14, %v4306_v50, %v16316_v62  ;;  %v16318_v53 = vld [vmem:[#allocation138_spill] sm:$0xff]  ;;  %v11878_v50 = vsel %vm4423_vm14, %v4342_v52, %v16321_v3  ;;  %v16322_v22 = vld [vmem:[#allocation177_spill] sm:$0xff]  ;;  %v4467_v4 = vsel %vm4423_vm14, %v4338_v60, %v16323_v11  ;;  %v5388_v54 = vadd.f32 %v11835_v35, %v5387_v55  ;;  %v16326_v41 = vld [vmem:[#allocation380_spill] sm:$0xff] }
 0x55b   : > { %v11867_v8 = vsel %vm4423_vm14, %v4308_v32, %v16318_v53  ;;  %v16319_v45 = vld [vmem:[#allocation134_spill] sm:$0xff]  ;;  %4037 = vrot.lane.b32.xlu0 %v16322_v22, %s7832_s13  ;;  %v11884_v32 = vpop.permute.xlu2 %3817  ;;  %v5468_v49 = vadd.f32 %v11835_v35, %v5467_v23  ;;  %v16327_v59 = vld [vmem:[#allocation128_spill] sm:$0xff]  ;;  %v11904_v60 = vadd.f32 %v11835_v35, %v11731_v7  ;;  %v3816_v22 = vpop.permute.xlu0 %3815  ;;  %v16328_v55 = vld [vmem:[#allocation199_spill] sm:$0xff] }
 0x55c   : > { %v4439_v61 = vsel %vm4423_vm14, %v4310_v37, %v16319_v45  ;;  %v16324_v37 = vld [vmem:[#allocation418_spill] sm:$0xff]  ;;  %v11898_v45 = vsel %vm4423_vm14, %v4344_v12, %v16326_v41  ;;  %v11908_v23 = vsel %vm4423_vm14, %v4346_v30, %v16328_v55  ;;  %v16329_v11 = vld [vmem:[#allocation381_spill] sm:$0xff]  ;;  %v16331_v7 = vld [vmem:[#allocation39_spill] sm:$0xff] }
 0x55d   : > { %v4564_v62 = vsel %vm4552_vm15, %v4435_v46, %v16324_v37  ;;  %v16325_v52 = vld [vmem:[#allocation194_spill] sm:$0xff]  ;;  %v5305_v46 = vpop.f32.mrf.mxu1  ;;  %v16330_v37 = vld [vmem:[#allocation384_spill] sm:$0xff]  ;;  %3733 = vrot.lane.b32.xlu1 %v16164_v24, %s7831_s11  ;;  %v16332_v41 = vld [vmem:[#allocation37_spill] sm:$0xff]  ;;  %v5610_v24 = vmax.f32 %v5388_v54, 0.0 }
 0x55e   : > { %v11894_v53 = vsel %vm4423_vm14, %v4340_v36, %v16325_v52  ;;  %v4693_v3 = vsel %vm4681_vm0, %v4564_v62, %v16327_v59  ;;  %v4501_v36 = vsel %vm4423_vm14, %v4372_v39, %v16329_v11  ;;  %v11914_v12 = vsel %vm4423_vm14, %v4378_v63, %v16330_v37  ;;  %v16333_v55 = vld [vmem:[#allocation396_spill] sm:$0xff] }
 0x55f   : > { %v4819_v52 = vsel %vm4807_vm2, %v4693_v3, %v3816_v22  ;;  %v11921_v62 = vsel %vm4423_vm14, %v4374_v27, %v16331_v7  ;;  %v11925_v30 = vsel %vm4423_vm14, %v4376_v15, %v16332_v41  ;;  %v5609_v59 = vmax.f32 %v5386_v25, 0.0  ;;  %v16334_v3 = vld [vmem:[#allocation231_spill] sm:$0xff]  ;;  %v3848_v27 = vpop.permute.xlu1 %3847  ;;  %v16335_v37 = vld [vmem:[#allocation84_spill] sm:$0xff]  ;;  %v16340_v41 = vld [vmem:[#allocation437_spill] sm:$0xff] }
 0x560   : > { %v4945_v39 = vsel %vm4933_vm1, %v4819_v52, %v11547_v38  ;;  %v11931_v63 = vsel %vm4423_vm14, %v4408_v0, %v16333_v55  ;;  %v4533_v22 = vsel %vm4423_vm14, %v4404_v29, %v16334_v3  ;;  %v11935_v11 = vmax.f32 %v5468_v49, 0.0  ;;  %v16336_v25 = vld [vmem:[#allocation428_spill] sm:$0xff]  ;;  %v16338_v29 = vld [vmem:[#allocation406_spill] sm:$0xff] }
 0x561   : > { %7627 = vmatmul.msk.bf16.gmra.mxu0 %vm5083_vm3, %v4945_v39  ;;  %v11940_v15 = vsel %vm4423_vm14, %v4406_v17, %v16335_v37  ;;  %v4596_v38 = vsel %vm4552_vm15, %v4467_v4, %v16336_v25  ;;  %v5641_v52 = vmax.f32 %v11904_v60, 0.0  ;;  %v16337_v0 = vld [vmem:[#allocation64_spill] sm:$0xff]  ;;  %v11949_v54 = vsel %vm4423_vm14, %v4410_v48, %v16338_v29  ;;  %v5227_v39 = vpop.f32.mrf.mxu0  ;;  %v16342_v48 = vld [vmem:[#allocation63_spill] sm:$0xff] }
 0x562   : > { %3977 = vrot.lane.b32.xlu2 %v16337_v0, %s7832_s13  ;;  %v16339_v49 = vld [vmem:[#allocation408_spill] sm:$0xff]  ;;  %v4630_v17 = vsel %vm4552_vm15, %v4501_v36, %v16340_v41  ;;  %v4725_v4 = vsel %vm4681_vm0, %v4596_v38, %v11425_v2  ;;  %v5804_v3 = vsel %vm4933_vm1, %v5609_v59, 0.0  ;;  %v11963_v37 = vadd.f32 %v11835_v35, %v5305_v46 }
 0x563   : > { %v11953_v7 = vsel %vm4552_vm15, %v4439_v61, %v16339_v49  ;;  %v16341_v60 = vld [vmem:[#allocation448_spill] sm:$0xff]  ;;  %3855 = vrot.lane.b32.xlu0 %v16342_v48, %s7833_s14  ;;  %v5470_v61 = vpop.f32.mrf.mxu3  ;;  %v4851_v25 = vsel %vm4807_vm2, %v4725_v4, %v3848_v27  ;;  %v11968_v0 = vpop.permute.xlu2 %3971  ;;  %v5805_v36 = vsel %vm5674_vm6, %v5610_v24, 0.0  ;;  %v5870_v2 = vsel %vm5674_vm6, %v11935_v11, 0.0 }
 0x564   : > { %v4662_v55 = vsel %vm4552_vm15, %v4533_v22, %v16341_v60  ;;  %v6084_v22 = vsel %vm4933_vm1, %v11935_v11, 0.0  ;;  %v5471_v38 = vadd.f32 %v11835_v35, %v5470_v61  ;;  %v6345_v46 = vrot.slane %v5609_v59, 1  ;;  %v3970_v27 = vpop.permute.xlu0 %3969  ;;  %v5390_v4 = vpop.f32.mrf.mxu2  ;;  %v16343_v47 = vld [vmem:[#allocation216_spill] sm:$0xff] }
 0x565   : > { %v5869_v29 = vsel %vm4933_vm1, %v5641_v52, 0.0  ;;  %v6034_v49 = vsel %vm4933_vm1, %v5610_v24, 0.0  ;;  %v5228_v41 = vadd.f32 %v11835_v35, %v5227_v39  ;;  %v6346_v60 = vrot.slane %v5610_v24, 1  ;;  %3945 = vrot.lane.b32.xlu1 %v16343_v47, %s7832_s13  ;;  %v5307_v44 = vpop.f32.mrf.mxu1 }
 0x566   : > { %v5643_v48 = vmax.f32 %v5471_v38, 0.0  ;;  %v4977_v43 = vsel %vm4933_vm1, %v4851_v25, %v3970_v27  ;;  %v11981_v51 = vadd.f32 %v11835_v35, %v5390_v4  ;;  %v5806_v61 = vadd.f32 %v5805_v36, %v5804_v3 }
 0x567   : > { %v5577_v59 = vmax.f32 %v11963_v37, 0.0  ;;  %v5871_v34 = vadd.f32 %v5870_v2, %v5869_v29  ;;  %v6085_v33 = vadd.f32 %v6084_v22, %v5869_v29  ;;  %7643 = vmatmul.msk.bf16.gmra.mxu1 %vm5083_vm3, %v4977_v43  ;;  %v6391_v39 = vrot.slane %v11935_v11, 1  ;;  %v3758_v47 = vpop.permute.xlu1 %3757  ;;  %v16344_v11 = vld [vmem:[#allocation115_spill] sm:$0xff] }
 0x568   : > { %v11990_v24 = vadd.f32 %v11835_v35, %v11844_v42  ;;  %v11993_v25 = vsel %vm4933_vm1, %v5643_v48, 0.0  ;;  %v15222_v38 = vmax.f32 %v11981_v51, 0.0  ;;  %v6035_v36 = vadd.f32 %v6034_v49, %v5804_v3 }
 0x569   : > { %v11996_v27 = vmax.f32 %v5228_v41, 0.0  ;;  %v11999_v37 = vadd.f32 %v11993_v25, %v5871_v34  ;;  %v12002_v43 = vadd.f32 %v6085_v33, %v11993_v25  ;;  %v6390_v42 = vrot.slane %v5641_v52, 1 }
 0x56a   : > { %3887 = vrot.lane.b32.xlu2 %v16344_v11, %s7833_s14  ;;  %v6347_v2 = vsel %vm2925_vm5, %v6345_v46, %v6346_v60  ;;  %v12009_v22 = vsel %vm4681_vm0, %v4662_v55, %v11664_v40  ;;  %v12014_v3 = vsel %vm4933_vm1, %v15222_v38, 0.0  ;;  %v6686_v34 = vsel %vm5674_vm6, %v6346_v60, 0.0  ;;  %v5230_v60 = vpop.f32.mrf.mxu0 }
 0x56b   : > { %v12018_v33 = vadd.f32 %v12014_v3, %v5806_v61  ;;  %v12021_v29 = vadd.f32 %v6035_v36, %v12014_v3  ;;  %3765 = vrot.lane.b32.xlu0 %v16198_v1, %s7831_s11  ;;  %v5472_v52 = vpop.f32.mrf.mxu3  ;;  %v4758_v40 = vsel %vm4681_vm0, %v4630_v17, %v3758_v47  ;;  %v12026_v55 = vpop.permute.xlu2 %3881  ;;  %v6392_v46 = vsel %vm2925_vm5, %v6390_v42, %v6391_v39 }
 0x56c   : > { %v5545_v49 = vmax.f32 %v11990_v24, 0.0  ;;  %v5308_v41 = vadd.f32 %v11835_v35, %v5307_v44  ;;  %v5473_v4 = vadd.f32 %v11835_v35, %v5472_v52  ;;  %v6685_v61 = vsel %vm4933_vm1, %v6347_v2, 0.0  ;;  %v3880_v11 = vpop.permute.xlu0 %3879  ;;  %v5392_v47 = vpop.f32.mrf.mxu2 }
 0x56d   : > { %v5739_v36 = vsel %vm4933_vm1, %v5577_v59, 0.0  ;;  %v5675_v1 = vsel %vm5674_vm6, %v11996_v27, 0.0  ;;  %v12037_v17 = vadd.f32 %v11835_v35, %v5230_v60  ;;  %v5934_v24 = vsel %vm4933_vm1, %v11996_v27, 0.0  ;;  %3795 = vrot.lane.b32.xlu1 %v16216_v16, %s7831_s11  ;;  %v5310_v58 = vpop.f32.mrf.mxu1  ;;  %v16345_v60 = vld [vmem:[#allocation255_spill] sm:$0xff] }
 0x56e   : > { %v12041_v42 = vmax.f32 %v5473_v4, 0.0  ;;  %v4884_v44 = vsel %vm4807_vm2, %v4758_v40, %v3880_v11  ;;  %v5393_v52 = vadd.f32 %v11835_v35, %v5392_v47  ;;  %v6750_v2 = vsel %vm4933_vm1, %v6392_v46, 0.0 }
 0x56f   : > { %v6751_v38 = vsel %vm5674_vm6, %v6391_v39, 0.0  ;;  %v5010_v20 = vsel %vm4933_vm1, %v4884_v44, %v11779_v31  ;;  %v5673_v4 = vsel %vm4933_vm1, %v5545_v49, 0.0  ;;  %v12053_v6 = vmax.f32 %v5308_v41, 0.0  ;;  %v3910_v16 = vpop.permute.xlu1 %3909 }
 0x570   : > { %v6393_v40 = vrot.slane %v5643_v48, 1  ;;  %v6394_v11 = vrot.slane %v12041_v42, 1  ;;  %7660 = vmatmul.msk.bf16.gmra.mxu2 %vm5083_vm3, %v5010_v20  ;;  %v6300_v47 = vrot.slane %v5577_v59, 1  ;;  %v5676_v46 = vadd.f32 %v5675_v1, %v5673_v4 }
 0x571   : > { %v5935_v21 = vadd.f32 %v5934_v24, %v5673_v4  ;;  %v12057_v39 = vmax.f32 %v5393_v52, 0.0  ;;  %v6752_v31 = vadd.f32 %v6751_v38, %v6750_v2  ;;  %v16346_v48 = vmax.f32 %v12037_v17, 0.0  ;;  %v16347_v38 = vld [vmem:[#allocation182_spill] sm:$0xff] }
 0x572   : > { %4039 = vrot.lane.b32.xlu2 %v16345_v60, %s7832_s13  ;;  %v6395_v44 = vsel %vm2925_vm5, %v6393_v40, %v6394_v11  ;;  %v12063_v41 = vsel %vm5674_vm6, %v6394_v11, 0.0  ;;  %v6687_v20 = vadd.f32 %v6686_v34, %v6685_v61  ;;  %v5740_v2 = vsel %vm5674_vm6, %v12053_v6, 0.0  ;;  %v5232_v61 = vpop.f32.mrf.mxu0 }
 0x573   : > { %v12068_v57 = vsel %vm4933_vm1, %v16346_v48, 0.0  ;;  %v6753_v59 = vsel %vm4933_vm1, %v6395_v44, 0.0  ;;  %3917 = vrot.lane.b32.xlu0 %v16347_v38, %s7833_s14  ;;  %v12079_v52 = vpop.permute.xlu2 %4033  ;;  %v6256_v60 = vrot.slane %v11996_v27, 1  ;;  %v6255_v40 = vrot.slane %v5545_v49, 1  ;;  %v16349_v49 = vld [vmem:[#allocation130_spill] sm:$0xff] }
 0x574   : > { %v12072_v1 = vadd.f32 %v12068_v57, %v5676_v46  ;;  %v12075_v24 = vadd.f32 %v5935_v21, %v12068_v57  ;;  %v12084_v4 = vadd.f32 %v6753_v59, %v6752_v31  ;;  %v12087_v34 = vadd.f32 %v12063_v41, %v6753_v59  ;;  %v4032_v48 = vpop.permute.xlu0 %4031 }
 0x575   : > { %v5984_v21 = vsel %vm4933_vm1, %v12053_v6, 0.0  ;;  %v16348_v11 = vmax.f32 %v11981_v51, 0.0  ;;  %v6349_v44 = vrot.slane %v12057_v39, 1  ;;  %v6301_v38 = vrot.slane %v12053_v6, 1  ;;  %4009 = vrot.lane.b32.xlu1 %v16349_v49, %s7832_s13  ;;  %v5312_v14 = vpop.f32.mrf.mxu1 }
 0x576   : > { %v5311_v27 = vadd.f32 %v11835_v35, %v5310_v58  ;;  %v4915_v31 = vsel %vm4807_vm2, %v12009_v22, %v3910_v16  ;;  %v5233_v59 = vadd.f32 %v11835_v35, %v5232_v61  ;;  %v5741_v5 = vadd.f32 %v5740_v2, %v5739_v36 }
 0x577   : > { %v6348_v46 = vrot.slane %v16348_v11, 1  ;;  %v12103_v51 = vsel %vm5674_vm6, %v6349_v44, 0.0  ;;  %v5041_v11 = vsel %vm4933_vm1, %v4915_v31, %v4032_v48  ;;  %v6257_v6 = vsel %vm2925_vm5, %v6255_v40, %v6256_v60  ;;  %v3728_v16 = vpop.permute.xlu1 %3727  ;;  %v16350_v48 = vld [vmem:[#allocation69_spill] sm:$0xff] }
 0x578   : > { %v5579_v13 = vmax.f32 %v5311_v27, 0.0  ;;  %v12108_v22 = vmax.f32 %v5233_v59, 0.0  ;;  %7676 = vmatmul.msk.bf16.gmra.mxu3 %vm5083_vm3, %v5041_v11  ;;  %v5985_v61 = vadd.f32 %v5984_v21, %v5739_v36  ;;  %v16351_v40 = vld [vmem:[#allocation241_spill] sm:$0xff]  ;;  %v16352_v27 = vld [vmem:[#allocation172_spill] sm:$0xff]  ;;  %v6302_v36 = vsel %vm2925_vm5, %v6300_v47, %v6301_v38 }
 0x579   : > { %v6350_v19 = vsel %vm2925_vm5, %v6348_v46, %v6349_v44  ;;  %v5313_v44 = vadd.f32 %v11835_v35, %v5312_v14  ;;  %v4598_v31 = vsel %vm4552_vm15, %v11894_v53, %v16352_v27  ;;  %v6555_v21 = vsel %vm4933_vm1, %v6257_v6, 0.0  ;;  %v16354_v53 = vld [vmem:[#allocation419_spill] sm:$0xff] }
 0x57a   : > { %v6688_v58 = vsel %vm4933_vm1, %v6350_v19, 0.0  ;;  %3857 = vrot.lane.b32.xlu2 %v16350_v48, %s7833_s14  ;;  %v4566_v19 = vsel %vm4552_vm15, %v11867_v8, %v16351_v40  ;;  %v6556_v14 = vsel %vm5674_vm6, %v6256_v60, 0.0  ;;  %v16353_v8 = vld [vmem:[#allocation65_spill] sm:$0xff]  ;;  %v12144_v47 = vsel %vm4552_vm15, %v11863_v26, %v16354_v53  ;;  %v16356_v48 = vld [vmem:[#allocation451_spill] sm:$0xff] }
 0x57b   : > { %v12111_v2 = vadd.f32 %v6688_v58, %v6687_v20  ;;  %v12114_v46 = vadd.f32 %v12103_v51, %v6688_v58  ;;  %v12127_v20 = vsel %vm4933_vm1, %v5579_v13, 0.0  ;;  %3735 = vrot.lane.b32.xlu0 %v16353_v8, %s7831_s11  ;;  %v12139_v11 = vpop.permute.xlu2 %3851  ;;  %v16355_v6 = vmax.f32 %v12037_v17, 0.0 }
 0x57c   : > { %v12132_v59 = vadd.f32 %v12127_v20, %v5741_v5  ;;  %v12135_v49 = vadd.f32 %v5985_v61, %v12127_v20  ;;  %v6259_v60 = vrot.slane %v12108_v22, 1  ;;  %v4727_v5 = vsel %vm4681_vm0, %v4598_v31, %v3728_v16  ;;  %v3850_v9 = vpop.permute.xlu0 %3849  ;;  %v16357_v16 = vld [vmem:[#allocation25_spill] sm:$0xff] }
 0x57d   : > { %v6258_v58 = vrot.slane %v16355_v6, 1  ;;  %v4695_v61 = vsel %vm4681_vm0, %v4566_v19, %v16356_v48  ;;  %v6620_v40 = vsel %vm4933_vm1, %v6302_v36, 0.0  ;;  %v6621_v27 = vsel %vm5674_vm6, %v6301_v38, 0.0  ;;  %3825 = vrot.lane.b32.xlu1 %v16357_v16, %s7833_s14  ;;  %v16359_v16 = vld [vmem:[#allocation219_spill] sm:$0xff] }
 0x57e   : > { %v12154_v8 = vmax.f32 %v5313_v44, 0.0  ;;  %v6557_v10 = vadd.f32 %v6556_v14, %v6555_v21  ;;  %v4821_v26 = vsel %vm4807_vm2, %v4695_v61, %v11884_v32  ;;  %v12160_v53 = vsel %vm5674_vm6, %v6259_v60, 0.0 }
 0x57f   : > { %v6260_v17 = vsel %vm2925_vm5, %v6258_v58, %v6259_v60  ;;  %v6303_v19 = vrot.slane %v5579_v13, 1  ;;  %v4853_v44 = vsel %vm4807_vm2, %v4727_v5, %v3850_v9  ;;  %v6622_v36 = vadd.f32 %v6621_v27, %v6620_v40  ;;  %v3940_v6 = vpop.permute.xlu1 %3939  ;;  %v16358_v5 = vld [vmem:[#allocation120_spill] sm:$0xff] }
 0x580   : > { %v6558_v31 = vsel %vm4933_vm1, %v6260_v17, 0.0  ;;  %v6304_v38 = vrot.slane %v12154_v8, 1  ;;  %v5874_v21 = vsel %vm5674_vm6, %v12041_v42, 0.0  ;;  %v6087_v58 = vsel %vm4933_vm1, %v12041_v42, 0.0  ;;  %v5395_v42 = vpop.f32.mrf.mxu2 }
 0x581   : > { %v12169_v32 = vadd.f32 %v6558_v31, %v6557_v10  ;;  %v12172_v14 = vadd.f32 %v12160_v53, %v6558_v31  ;;  %v5809_v13 = vsel %vm5674_vm6, %v12057_v39, 0.0  ;;  %v6037_v10 = vsel %vm4933_vm1, %v12057_v39, 0.0  ;;  %v16360_v31 = vld [vmem:[#allocation244_spill] sm:$0xff] }
 0x582   : > { %v6305_v60 = vsel %vm2925_vm5, %v6303_v19, %v6304_v38  ;;  %v12180_v9 = vsel %vm5674_vm6, %v6304_v38, 0.0  ;;  %3767 = vrot.lane.b32.xlu2 %v16358_v5, %s7831_s11  ;;  %v4979_v61 = vsel %vm4933_vm1, %v4853_v44, %v11968_v0  ;;  %v4947_v40 = vsel %vm4933_vm1, %v4821_v26, %v3940_v6  ;;  %v16361_v26 = vld [vmem:[#allocation438_spill] sm:$0xff]  ;;  %v16362_v44 = vld [vmem:[#allocation441_spill] sm:$0xff] }
 0x583   : > { %v6623_v48 = vsel %vm4933_vm1, %v6305_v60, 0.0  ;;  %7644 = vmatmul.msk.bf16.gmra.mxu1 %vm5083_vm3, %v4979_v61  ;;  %3947 = vrot.lane.b32.xlu0 %v16359_v16, %s7832_s13  ;;  %v12199_v39 = vadd.f32 %v11835_v35, %v5395_v42  ;;  %v12201_v19 = vpop.permute.xlu2 %3761  ;;  %v12206_v0 = vsel %vm4552_vm15, %v11874_v28, %v16360_v31  ;;  %v4632_v38 = vsel %vm4552_vm15, %v11921_v62, %v16361_v26  ;;  %v5235_v42 = vpop.f32.mrf.mxu0 }
 0x584   : > { %v12190_v27 = vadd.f32 %v6623_v48, %v6622_v36  ;;  %v12193_v17 = vadd.f32 %v12180_v9, %v6623_v48  ;;  %v4664_v36 = vsel %vm4552_vm15, %v11940_v15, %v16362_v44  ;;  %v5875_v6 = vadd.f32 %v5874_v21, %v11999_v37  ;;  %7628 = vmatmul.msk.bf16.gmra.mxu0 %vm5083_vm3, %v4947_v40  ;;  %v3760_v61 = vpop.permute.xlu0 %3759  ;;  %v5475_v40 = vpop.f32.mrf.mxu3 }
 0x585   : > { %v6088_v60 = vadd.f32 %v6087_v58, %v12002_v43  ;;  %v5810_v5 = vadd.f32 %v5809_v13, %v12018_v33  ;;  %v6038_v48 = vadd.f32 %v6037_v10, %v12021_v29  ;;  %v15223_v28 = vmax.f32 %v12199_v39, 0.0  ;;  %v16363_v43 = vld [vmem:[#allocation80_spill] sm:$0xff] }
 0x586   : > { %v7029_v62 = vadd.f32 %v5809_v13, %v12014_v3  ;;  %v7169_v16 = vadd.f32 %v6037_v10, %v12014_v3  ;;  %v5679_v15 = vsel %vm5674_vm6, %v12108_v22, 0.0  ;;  %v12225_v37 = vadd.f32 %v11835_v35, %v5235_v42  ;;  %3979 = vrot.lane.b32.xlu1 %v16363_v43, %s7832_s13 }
 0x587   : > { %v7064_v33 = vadd.f32 %v5874_v21, %v11993_v25  ;;  %v5937_v29 = vsel %vm4933_vm1, %v12108_v22, 0.0  ;;  %v5811_v13 = vsel %vm4933_vm1, %v15223_v28, 0.0  ;;  %v12236_v3 = vadd.f32 %v11835_v35, %v5475_v40  ;;  %v3790_v42 = vpop.permute.xlu1 %3789  ;;  %v16364_v40 = vld [vmem:[#allocation192_spill] sm:$0xff] }
 0x588   : > { %v12238_v10 = vadd.f32 %v5811_v13, %v5810_v5  ;;  %v12240_v31 = vadd.f32 %v6038_v48, %v5811_v13  ;;  %v12242_v26 = vadd.f32 %v7029_v62, %v5811_v13  ;;  %v12244_v44 = vadd.f32 %v7169_v16, %v5811_v13  ;;  %v16365_v13 = vld [vmem:[#allocation187_spill] sm:$0xff] }
 0x589   : > { %v7204_v21 = vadd.f32 %v6087_v58, %v11993_v25  ;;  %v5680_v22 = vadd.f32 %v5679_v15, %v12072_v1  ;;  %v15224_v43 = vmax.f32 %v12225_v37, 0.0  ;;  %v15225_v28 = vmax.f32 %v12236_v3, 0.0 }
 0x58a   : > { %3919 = vrot.lane.b32.xlu2 %v16364_v40, %s7833_s14  ;;  %v5938_v5 = vadd.f32 %v5937_v29, %v12075_v24  ;;  %v6959_v48 = vadd.f32 %v5679_v15, %v12068_v57  ;;  %v7099_v62 = vadd.f32 %v5937_v29, %v12068_v57  ;;  %v5744_v16 = vsel %vm5674_vm6, %v12154_v8, 0.0  ;;  %v5397_v24 = vpop.f32.mrf.mxu2 }
 0x58b   : > { %v4760_v25 = vsel %vm4681_vm0, %v4632_v38, %v3760_v61  ;;  %v5681_v1 = vsel %vm4933_vm1, %v15224_v43, 0.0  ;;  %v5876_v58 = vsel %vm4933_vm1, %v15225_v28, 0.0  ;;  %3797 = vrot.lane.b32.xlu0 %v16365_v13, %s7831_s11  ;;  %v4791_v15 = vsel %vm4681_vm0, %v4664_v36, %v3790_v42  ;;  %v12267_v57 = vpop.permute.xlu2 %3913  ;;  %v5315_v43 = vpop.f32.mrf.mxu1 }
 0x58c   : > { %v12269_v29 = vadd.f32 %v5681_v1, %v5680_v22  ;;  %v12271_v40 = vadd.f32 %v5938_v5, %v5681_v1  ;;  %v12273_v38 = vadd.f32 %v6959_v48, %v5681_v1  ;;  %v12275_v61 = vadd.f32 %v7099_v62, %v5681_v1  ;;  %v3912_v36 = vpop.permute.xlu0 %3911  ;;  %v5237_v42 = vpop.f32.mrf.mxu0 }
 0x58d   : > { %v12277_v18 = vadd.f32 %v5876_v58, %v5875_v6  ;;  %v12279_v28 = vadd.f32 %v6088_v60, %v5876_v58  ;;  %v12281_v56 = vadd.f32 %v7064_v33, %v5876_v58  ;;  %v12283_v13 = vadd.f32 %v7204_v21, %v5876_v58  ;;  %v16366_v6 = vld [vmem:[#allocation124_spill] sm:$0xff]  ;;  %v16367_v60 = vld [vmem:[#allocation421_spill] sm:$0xff]  ;;  %v16368_v21 = vld [vmem:[#allocation14_spill] sm:$0xff]  ;;  %v5477_v58 = vpop.f32.mrf.mxu3 }
 0x58e   : > { %v5987_v22 = vsel %vm4933_vm1, %v12154_v8, 0.0  ;;  %v5398_v5 = vadd.f32 %v11835_v35, %v5397_v24  ;;  %v12289_v48 = vadd.f32 %v11835_v35, %v5315_v43  ;;  %v4917_v62 = vsel %vm4807_vm2, %v4791_v15, %v3912_v36  ;;  %3889 = vrot.lane.b32.xlu1 %v16366_v6, %s7833_s14  ;;  %v16369_v24 = vld [vmem:[#allocation8_spill] sm:$0xff] }
 0x58f   : > { %v12297_v33 = vsel %vm4552_vm15, %v11908_v23, %v16367_v60  ;;  %v12302_v1 = vsel %vm4552_vm15, %v11878_v50, %v16368_v21  ;;  %v5238_v8 = vadd.f32 %v11835_v35, %v5237_v42  ;;  %v5043_v43 = vsel %vm4933_vm1, %v4917_v62, %v12079_v52  ;;  %v4004_v6 = vpop.permute.xlu1 %4003  ;;  %v16370_v60 = vld [vmem:[#allocation432_spill] sm:$0xff] }
 0x590   : > { %v12310_v15 = vsel %vm4552_vm15, %v11898_v45, %v16369_v24  ;;  %v5614_v36 = vmax.f32 %v5398_v5, 0.0  ;;  %v5581_v23 = vmax.f32 %v12289_v48, 0.0  ;;  %7677 = vmatmul.msk.bf16.gmra.mxu3 %vm5083_vm3, %v5043_v43  ;;  %v4886_v50 = vsel %vm4807_vm2, %v4760_v25, %v12026_v55  ;;  %v16371_v5 = vld [vmem:[#allocation72_spill] sm:$0xff] }
 0x591   : > { %v4634_v42 = vsel %vm4552_vm15, %v11925_v30, %v16370_v60  ;;  %v5745_v52 = vadd.f32 %v5744_v16, %v12132_v59  ;;  %v5988_v62 = vadd.f32 %v5987_v22, %v12135_v49  ;;  %v5012_v45 = vsel %vm4933_vm1, %v4886_v50, %v4004_v6  ;;  %v16373_v30 = vld [vmem:[#allocation439_spill] sm:$0xff]  ;;  %v16374_v50 = vld [vmem:[#allocation104_spill] sm:$0xff] }
 0x592   : > { %3737 = vrot.lane.b32.xlu2 %v16371_v5, %s7831_s11  ;;  %v16372_v21 = vmax.f32 %v12199_v39, 0.0  ;;  %v6352_v24 = vrot.slane %v5614_v36, 1  ;;  %v5746_v55 = vsel %vm4933_vm1, %v5581_v23, 0.0  ;;  %v5478_v25 = vadd.f32 %v11835_v35, %v5477_v58  ;;  %7661 = vmatmul.msk.bf16.gmra.mxu2 %vm5083_vm3, %v5012_v45 }
 0x593   : > { %v12334_v59 = vsel %vm4552_vm15, %v11914_v12, %v16373_v30  ;;  %v6994_v49 = vadd.f32 %v5744_v16, %v12127_v20  ;;  %v7134_v6 = vadd.f32 %v5987_v22, %v12127_v20  ;;  %v12338_v39 = vmax.f32 %v5238_v8, 0.0  ;;  %4011 = vrot.lane.b32.xlu0 %v16374_v50, %s7832_s13  ;;  %v12342_v60 = vpop.permute.xlu2 %3731  ;;  %v16376_v50 = vld [vmem:[#allocation450_spill] sm:$0xff] }
 0x594   : > { %v6351_v43 = vrot.slane %v16372_v21, 1  ;;  %v6691_v58 = vadd.f32 %v12103_v51, %v12111_v2  ;;  %v12347_v5 = vadd.f32 %v5746_v55, %v5745_v52  ;;  %v12349_v12 = vadd.f32 %v5988_v62, %v5746_v55  ;;  %v16375_v21 = vld [vmem:[#allocation449_spill] sm:$0xff]  ;;  %v3730_v30 = vpop.permute.xlu0 %3729 }
 0x595   : > { %v12354_v20 = vsel %vm4552_vm15, %v11931_v63, %v16375_v21  ;;  %v12357_v22 = vadd.f32 %v6994_v49, %v5746_v55  ;;  %v12359_v8 = vadd.f32 %v7134_v6, %v5746_v55  ;;  %v12364_v51 = vsel %vm4552_vm15, %v11949_v54, %v16376_v50  ;;  %v16377_v63 = vld [vmem:[#allocation253_spill] sm:$0xff] }
 0x596   : > { %v6353_v45 = vsel %vm2925_vm5, %v6351_v43, %v6352_v24  ;;  %v5646_v62 = vmax.f32 %v5478_v25, 0.0  ;;  %4041 = vrot.lane.b32.xlu1 %v16377_v63, %s7832_s13  ;;  %v16378_v43 = vld [vmem:[#allocation454_spill] sm:$0xff]  ;;  %v16379_v55 = vmax.f32 %v12225_v37, 0.0  ;;  %v6262_v54 = vrot.slane %v12338_v39, 1 }
 0x597   : > { %v6692_v16 = vsel %vm4933_vm1, %v6353_v45, 0.0  ;;  %v12374_v49 = vsel %vm4681_vm0, %v12206_v0, %v16378_v43  ;;  %v12379_v45 = vsel %vm5674_vm6, %v6352_v24, 0.0  ;;  %v16381_v25 = vld [vmem:[#allocation282_spill] sm:$0xff]  ;;  %v6756_v0 = vadd.f32 %v12063_v41, %v12084_v4  ;;  %v3820_v24 = vpop.permute.xlu1 %3819  ;;  %v16382_v43 = vld [vmem:[#allocation215_spill] sm:$0xff] }
 0x598   : > { %v12366_v2 = vadd.f32 %v6692_v16, %v6691_v58  ;;  %v7310_v52 = vadd.f32 %v12114_v46, %v6692_v16  ;;  %v6261_v6 = vrot.slane %v16379_v55, 1  ;;  %v16380_v58 = vld [vmem:[#allocation266_spill] sm:$0xff]  ;;  %v12388_v21 = vsel %vm4681_vm0, %v12144_v47, %v16381_v25  ;;  %v5317_v16 = vpop.f32.mrf.mxu1  ;;  %v5400_v25 = vpop.f32.mrf.mxu2 }
 0x599   : > { %v4697_v46 = vsel %vm4681_vm0, %v11953_v7, %v16380_v58  ;;  %v6561_v50 = vadd.f32 %v12160_v53, %v12169_v32  ;;  %v5813_v63 = vsel %vm5674_vm6, %v5614_v36, 0.0  ;;  %v12400_v7 = vsel %vm4681_vm0, %v4634_v42, %v12201_v19 }
 0x59a   : > { %v12393_v37 = vadd.f32 %v7310_v52, %v12379_v45  ;;  %v6263_v47 = vsel %vm2925_vm5, %v6261_v6, %v6262_v54  ;;  %3949 = vrot.lane.b32.xlu2 %v16382_v43, %s7832_s13  ;;  %v16383_v41 = vmax.f32 %v12236_v3, 0.0  ;;  %v6040_v52 = vsel %vm4933_vm1, %v5614_v36, 0.0  ;;  %v16384_v6 = vld [vmem:[#allocation31_spill] sm:$0xff] }
 0x59b   : > { %v6562_v55 = vsel %vm4933_vm1, %v6263_v47, 0.0  ;;  %v6397_v58 = vrot.slane %v5646_v62, 1  ;;  %v6626_v53 = vadd.f32 %v12180_v9, %v12190_v27  ;;  %v5318_v42 = vadd.f32 %v11835_v35, %v5317_v16  ;;  %3827 = vrot.lane.b32.xlu0 %v16384_v6, %s7833_s14  ;;  %v12417_v3 = vpop.permute.xlu2 %3943  ;;  %v16385_v6 = vld [vmem:[#allocation76_spill] sm:$0xff] }
 0x59c   : > { %v6396_v4 = vrot.slane %v16383_v41, 1  ;;  %v12411_v32 = vadd.f32 %v6562_v55, %v6561_v50  ;;  %v7240_v19 = vadd.f32 %v12172_v14, %v6562_v55  ;;  %v5814_v36 = vadd.f32 %v5813_v63, %v12238_v10  ;;  %v3942_v41 = vpop.permute.xlu0 %3941 }
 0x59d   : > { %v12421_v47 = vsel %vm5674_vm6, %v6262_v54, 0.0  ;;  %v12425_v9 = vadd.f32 %v11835_v35, %v5400_v25  ;;  %v6041_v14 = vadd.f32 %v6040_v52, %v12240_v31  ;;  %v5582_v50 = vmax.f32 %v5318_v42, 0.0 }
 0x59e   : > { %v6398_v43 = vsel %vm2925_vm5, %v6396_v4, %v6397_v58  ;;  %v12429_v27 = vadd.f32 %v7240_v19, %v12421_v47  ;;  %v7031_v55 = vadd.f32 %v12242_v26, %v5813_v63  ;;  %3859 = vrot.lane.b32.xlu1 %v16385_v6, %s7833_s14  ;;  %v6306_v31 = vrot.slane %v5581_v23, 1 }
 0x59f   : > { %v6757_v16 = vsel %vm4933_vm1, %v6398_v43, 0.0  ;;  %v5615_v4 = vmax.f32 %v12425_v9, 0.0  ;;  %v12442_v19 = vsel %vm5674_vm6, %v6397_v58, 0.0  ;;  %v6307_v25 = vrot.slane %v5582_v50, 1  ;;  %v3974_v43 = vpop.permute.xlu1 %3973 }
 0x5a0   : > { %v12433_v10 = vadd.f32 %v6757_v16, %v6756_v0  ;;  %v7345_v54 = vadd.f32 %v12087_v34, %v6757_v16  ;;  %v4823_v42 = vsel %vm4807_vm2, %v4697_v46, %v3820_v24  ;;  %v7171_v26 = vadd.f32 %v12244_v44, %v6040_v52  ;;  %v16386_v44 = vld [vmem:[#allocation185_spill] sm:$0xff]  ;;  %v5480_v16 = vpop.f32.mrf.mxu3 }
 0x5a1   : > { %v5683_v0 = vsel %vm5674_vm6, %v12338_v39, 0.0  ;;  %v5940_v34 = vsel %vm4933_vm1, %v12338_v39, 0.0  ;;  %v5878_v48 = vsel %vm5674_vm6, %v5646_v62, 0.0  ;;  %v6090_v23 = vsel %vm4933_vm1, %v5646_v62, 0.0 }
 0x5a2   : > { %v12451_v63 = vadd.f32 %v7345_v54, %v12442_v19  ;;  %v6308_v58 = vsel %vm2925_vm5, %v6306_v31, %v6307_v25  ;;  %v4729_v46 = vsel %vm4681_vm0, %v12302_v1, %v3730_v30  ;;  %3799 = vrot.lane.b32.xlu2 %v16386_v44, %s7831_s11  ;;  %v12462_v39 = vsel %vm5674_vm6, %v6307_v25, 0.0  ;;  %v5402_v30 = vpop.f32.mrf.mxu2  ;;  %v5320_v44 = vpop.f32.mrf.mxu1 }
 0x5a3   : > { %v6627_v24 = vsel %vm4933_vm1, %v6308_v58, 0.0  ;;  %v5815_v52 = vsel %vm4933_vm1, %v5615_v4, 0.0  ;;  %v4949_v9 = vsel %vm4933_vm1, %v4823_v42, %v3942_v41  ;;  %v12474_v31 = vpop.permute.xlu2 %3793  ;;  %v16387_v41 = vld [vmem:[#allocation58_spill] sm:$0xff]  ;;  %v5879_v42 = vadd.f32 %v5878_v48, %v12277_v18 }
 0x5a4   : > { %v12466_v54 = vadd.f32 %v6627_v24, %v6626_v53  ;;  %v7275_v62 = vadd.f32 %v12193_v17, %v6627_v24  ;;  %v12469_v6 = vadd.f32 %v5815_v52, %v5814_v36  ;;  %v12471_v1 = vadd.f32 %v6041_v14, %v5815_v52  ;;  %7629 = vmatmul.msk.bf16.gmra.mxu0 %vm5083_vm3, %v4949_v9 }
 0x5a5   : > { %v12476_v25 = vadd.f32 %v7031_v55, %v5815_v52  ;;  %v12478_v58 = vadd.f32 %v7171_v26, %v5815_v52  ;;  %3981 = vrot.lane.b32.xlu0 %v16387_v41, %s7832_s13  ;;  %v12483_v53 = vadd.f32 %v11835_v35, %v5480_v16  ;;  %v5403_v17 = vadd.f32 %v11835_v35, %v5402_v30  ;;  %v3792_v26 = vpop.permute.xlu0 %3791  ;;  %v16388_v16 = vld [vmem:[#allocation116_spill] sm:$0xff] }
 0x5a6   : > { %v12487_v36 = vadd.f32 %v5683_v0, %v12269_v29  ;;  %v12490_v14 = vadd.f32 %v5940_v34, %v12271_v40  ;;  %v12494_v55 = vadd.f32 %v7275_v62, %v12462_v39  ;;  %v6091_v24 = vadd.f32 %v6090_v23, %v12279_v28  ;;  %3769 = vrot.lane.b32.xlu1 %v16388_v16, %s7831_s11  ;;  %v5240_v28 = vpop.f32.mrf.mxu0 }
 0x5a7   : > { %v5647_v52 = vmax.f32 %v12483_v53, 0.0  ;;  %v12498_v9 = vmax.f32 %v5403_v17, 0.0  ;;  %v4855_v29 = vsel %vm4807_vm2, %v4729_v46, %v12139_v11  ;;  %v7066_v40 = vadd.f32 %v12281_v56, %v5878_v48  ;;  %v3884_v56 = vpop.permute.xlu1 %3883 }
 0x5a8   : > { %v7206_v18 = vadd.f32 %v12283_v13, %v6090_v23  ;;  %v12507_v62 = vadd.f32 %v11835_v35, %v5320_v44  ;;  %v4981_v30 = vsel %vm4933_vm1, %v4855_v29, %v3974_v43  ;;  %v12511_v41 = vadd.f32 %v12273_v38, %v5683_v0  ;;  %v16389_v38 = vld [vmem:[#allocation122_spill] sm:$0xff]  ;;  %v5482_v29 = vpop.f32.mrf.mxu3 }
 0x5a9   : > { %v5748_v53 = vsel %vm5674_vm6, %v5582_v50, 0.0  ;;  %v5990_v11 = vsel %vm4933_vm1, %v5582_v50, 0.0  ;;  %v5880_v46 = vsel %vm4933_vm1, %v5647_v52, 0.0  ;;  %7645 = vmatmul.msk.bf16.gmra.mxu1 %vm5083_vm3, %v4981_v30  ;;  %v6695_v0 = vadd.f32 %v12379_v45, %v12366_v2 }
 0x5aa   : > { %v12517_v48 = vadd.f32 %v5880_v46, %v5879_v42  ;;  %v12519_v13 = vadd.f32 %v6091_v24, %v5880_v46  ;;  %v12521_v23 = vadd.f32 %v7066_v40, %v5880_v46  ;;  %v12523_v43 = vadd.f32 %v7206_v18, %v5880_v46  ;;  %4013 = vrot.lane.b32.xlu2 %v16389_v38, %s7832_s13 }
 0x5ab   : > { %v7101_v50 = vadd.f32 %v12275_v61, %v5940_v34  ;;  %v6354_v17 = vrot.slane %v5615_v4, 1  ;;  %v6355_v44 = vrot.slane %v12498_v9, 1  ;;  %v5749_v42 = vadd.f32 %v5748_v53, %v12347_v5  ;;  %v12535_v18 = vpop.permute.xlu2 %4007  ;;  %v16390_v4 = vld [vmem:[#allocation121_spill] sm:$0xff] }
 0x5ac   : > { %v5991_v24 = vadd.f32 %v5990_v11, %v12349_v12  ;;  %v5583_v16 = vmax.f32 %v12507_v62, 0.0  ;;  %v5483_v40 = vadd.f32 %v11835_v35, %v5482_v29  ;;  %v6996_v30 = vadd.f32 %v12357_v22, %v5748_v53 }
 0x5ad   : > { %v7136_v2 = vadd.f32 %v12359_v8, %v5990_v11  ;;  %v6356_v61 = vsel %vm2925_vm5, %v6354_v17, %v6355_v44  ;;  %v4793_v45 = vsel %vm4681_vm0, %v12354_v20, %v3792_v26  ;;  %3891 = vrot.lane.b32.xlu0 %v16390_v4, %s7833_s14  ;;  %v5241_v46 = vadd.f32 %v11835_v35, %v5240_v28  ;;  %v4006_v22 = vpop.permute.xlu0 %4005  ;;  %v16391_v20 = vld [vmem:[#allocation188_spill] sm:$0xff] }
 0x5ae   : > { %v6696_v5 = vsel %vm4933_vm1, %v6356_v61, 0.0  ;;  %v5750_v12 = vsel %vm4933_vm1, %v5583_v16, 0.0  ;;  %v5648_v34 = vmax.f32 %v5483_v40, 0.0  ;;  %3921 = vrot.lane.b32.xlu1 %v16391_v20, %s7833_s14  ;;  %v6698_v26 = vsel %vm5674_vm6, %v6355_v44, 0.0  ;;  %v5322_v40 = vpop.f32.mrf.mxu1 }
 0x5af   : > { %v6697_v53 = vadd.f32 %v6696_v5, %v6695_v0  ;;  %v7312_v8 = vadd.f32 %v12393_v37, %v6696_v5  ;;  %v12550_v11 = vadd.f32 %v5750_v12, %v5749_v42  ;;  %v12552_v38 = vadd.f32 %v5991_v24, %v5750_v12  ;;  %v5242_v0 = vpop.f32.mrf.mxu0 }
 0x5b0   : > { %v12557_v17 = vadd.f32 %v6996_v30, %v5750_v12  ;;  %v12559_v29 = vadd.f32 %v7136_v2, %v5750_v12  ;;  %v4888_v28 = vsel %vm4807_vm2, %v12400_v7, %v3884_v56  ;;  %v12565_v37 = vadd.f32 %v12421_v47, %v12411_v32  ;;  %v4036_v30 = vpop.permute.xlu1 %4035  ;;  %v16392_v32 = vld [vmem:[#allocation26_spill] sm:$0xff] }
 0x5b1   : > { %v6760_v42 = vadd.f32 %v12442_v19, %v12433_v10  ;;  %v12572_v44 = vsel %vm4681_vm0, %v12310_v15, %v12342_v60  ;;  %v12574_v24 = vadd.f32 %v7312_v8, %v6698_v26  ;;  %v6399_v2 = vrot.slane %v5647_v52, 1 }
 0x5b2   : > { %v6400_v61 = vrot.slane %v5648_v34, 1  ;;  %v5551_v7 = vmax.f32 %v5241_v46, 0.0  ;;  %v4919_v56 = vsel %vm4807_vm2, %v4793_v45, %v12267_v57  ;;  %3829 = vrot.lane.b32.xlu2 %v16392_v32, %s7833_s14  ;;  %v5323_v47 = vadd.f32 %v11835_v35, %v5322_v40  ;;  %v16393_v46 = vld [vmem:[#allocation258_spill] sm:$0xff] }
 0x5b3   : > { %v5014_v10 = vsel %vm4933_vm1, %v4888_v28, %v4006_v22  ;;  %v5243_v19 = vadd.f32 %v11835_v35, %v5242_v0  ;;  %v5045_v15 = vsel %vm4933_vm1, %v4919_v56, %v4036_v30  ;;  %v5817_v60 = vsel %vm5674_vm6, %v12498_v9, 0.0  ;;  %v12592_v45 = vpop.permute.xlu2 %3823 }
 0x5b4   : > { %v6043_v52 = vsel %vm4933_vm1, %v12498_v9, 0.0  ;;  %v6401_v4 = vsel %vm2925_vm5, %v6399_v2, %v6400_v61  ;;  %v5685_v57 = vsel %vm4933_vm1, %v5551_v7, 0.0  ;;  %7662 = vmatmul.msk.bf16.gmra.mxu2 %vm5083_vm3, %v5014_v10  ;;  %7678 = vmatmul.msk.bf16.gmra.mxu3 %vm5083_vm3, %v5045_v15  ;;  %v5584_v28 = vmax.f32 %v5323_v47, 0.0  ;;  %v16395_v47 = vld [vmem:[#allocation74_spill] sm:$0xff] }
 0x5b5   : > { %v6761_v35 = vsel %vm4933_vm1, %v6401_v4, 0.0  ;;  %v12596_v5 = vadd.f32 %v5685_v57, %v12487_v36  ;;  %v12599_v12 = vadd.f32 %v12490_v14, %v5685_v57  ;;  %v12602_v9 = vadd.f32 %v12511_v41, %v5685_v57  ;;  %4043 = vrot.lane.b32.xlu0 %v16393_v46, %s7832_s13  ;;  %v3822_v40 = vpop.permute.xlu0 %3821 }
 0x5b6   : > { %v6762_v22 = vadd.f32 %v6761_v35, %v6760_v42  ;;  %v7347_v8 = vadd.f32 %v12451_v63, %v6761_v35  ;;  %v12607_v20 = vadd.f32 %v7101_v50, %v5685_v57  ;;  %v6630_v36 = vadd.f32 %v12462_v39, %v12466_v54  ;;  %v16394_v42 = vld [vmem:[#allocation68_spill] sm:$0xff] }
 0x5b7   : > { %v6763_v0 = vsel %vm5674_vm6, %v6400_v61, 0.0  ;;  %v12615_v14 = vsel %vm4681_vm0, %v12364_v51, %v12474_v31  ;;  %v12617_v41 = vmax.f32 %v5243_v19, 0.0  ;;  %3739 = vrot.lane.b32.xlu1 %v16394_v42, %s7831_s11  ;;  %v12622_v63 = vadd.f32 %v5817_v60, %v12469_v6  ;;  %v12671_v35 = vld [vmem:[%s14808_s4] ss:$0 sm:$0xff] }
 0x5b8   : > { %v5882_v50 = vsel %vm5674_vm6, %v5648_v34, 0.0  ;;  %v6093_v30 = vsel %vm4933_vm1, %v5648_v34, 0.0  ;;  %v12626_v39 = vadd.f32 %v7347_v8, %v6763_v0  ;;  %v12629_v54 = vadd.f32 %v6043_v52, %v12471_v1  ;;  %v3854_v61 = vpop.permute.xlu1 %3853  ;;  %v5405_v8 = vpop.f32.mrf.mxu2 }
 0x5b9   : > { %v12632_v51 = vadd.f32 %v12476_v25, %v5817_v60  ;;  %v6309_v31 = vrot.slane %v5583_v16, 1  ;;  %v6310_v2 = vrot.slane %v5584_v28, 1  ;;  %v12636_v56 = vadd.f32 %v6698_v26, %v6697_v53  ;;  %v16396_v60 = vld [vmem:[#allocation73_spill] sm:$0xff] }
 0x5ba   : > { %v7173_v6 = vadd.f32 %v12478_v58, %v6043_v52  ;;  %v6264_v32 = vrot.slane %v5551_v7, 1  ;;  %v6265_v34 = vrot.slane %v12617_v41, 1  ;;  %3983 = vrot.lane.b32.xlu2 %v16395_v47, %s7832_s13  ;;  %v5883_v1 = vadd.f32 %v5882_v50, %v12517_v48  ;;  %v5485_v7 = vpop.f32.mrf.mxu3 }
 0x5bb   : > { %v6094_v25 = vadd.f32 %v6093_v30, %v12519_v13  ;;  %v6311_v10 = vsel %vm2925_vm5, %v6309_v31, %v6310_v2  ;;  %v4825_v62 = vsel %vm4807_vm2, %v12388_v21, %v3822_v40  ;;  %v5752_v16 = vsel %vm5674_vm6, %v5584_v28, 0.0 }
 0x5bc   : > { %v5993_v53 = vsel %vm4933_vm1, %v5584_v28, 0.0  ;;  %v6631_v58 = vsel %vm4933_vm1, %v6311_v10, 0.0  ;;  %v6266_v26 = vsel %vm2925_vm5, %v6264_v32, %v6265_v34  ;;  %v12651_v19 = vpop.permute.xlu2 %3977  ;;  %v12656_v48 = vsel %vm5674_vm6, %v6310_v2, 0.0  ;;  %v16397_v2 = vld [vmem:[#allocation29_spill] sm:$0xff] }
 0x5bd   : > { %v12653_v15 = vadd.f32 %v6631_v58, %v6630_v36  ;;  %v7277_v13 = vadd.f32 %v12494_v55, %v6631_v58  ;;  %v6566_v21 = vsel %vm4933_vm1, %v6266_v26, 0.0  ;;  %3861 = vrot.lane.b32.xlu0 %v16396_v60, %s7833_s14  ;;  %v4951_v57 = vsel %vm4933_vm1, %v4825_v62, %v12417_v3  ;;  %v3976_v46 = vpop.permute.xlu0 %3975 }
 0x5be   : > { %v12663_v52 = vadd.f32 %v6566_v21, %v12565_v37  ;;  %v7242_v4 = vadd.f32 %v12429_v27, %v6566_v21  ;;  %v5486_v55 = vadd.f32 %v12671_v35, %v5485_v7  ;;  %v12678_v37 = vsel %vm5674_vm6, %v6265_v34, 0.0  ;;  %7630 = vmatmul.msk.bf16.gmra.mxu0 %vm5083_vm3, %v4951_v57  ;;  %v16399_v21 = vld [vmem:[#allocation123_spill] sm:$0xff] }
 0x5bf   : > { %v12675_v28 = vadd.f32 %v7277_v13, %v12656_v48  ;;  %v4857_v3 = vsel %vm4807_vm2, %v12572_v44, %v3854_v61  ;;  %v5406_v27 = vadd.f32 %v12671_v35, %v5405_v8  ;;  %v7068_v40 = vadd.f32 %v12521_v23, %v5882_v50  ;;  %3951 = vrot.lane.b32.xlu1 %v16397_v2, %s7832_s13  ;;  %v16400_v8 = vld [vmem:[#allocation191_spill] sm:$0xff] }
 0x5c0   : > { %v12686_v36 = vadd.f32 %v7242_v4, %v12678_v37  ;;  %v5649_v42 = vmax.f32 %v5486_v55, 0.0  ;;  %v4983_v31 = vsel %vm4933_vm1, %v4857_v3, %v3976_v46  ;;  %v12691_v32 = vadd.f32 %v6763_v0, %v6762_v22  ;;  %v3764_v50 = vpop.permute.xlu1 %3763  ;;  %v16398_v0 = vld [vmem:[#allocation126_spill] sm:$0xff]  ;;  %v5325_v3 = vpop.f32.mrf.mxu1 }
 0x5c1   : > { %v7208_v34 = vadd.f32 %v12523_v43, %v6093_v30  ;;  %v12697_v44 = vsel %vm4807_vm2, %v12374_v49, %v12592_v45  ;;  %7646 = vmatmul.msk.bf16.gmra.mxu1 %vm5083_vm3, %v4983_v31  ;;  %v5617_v23 = vmax.f32 %v5406_v27, 0.0  ;;  %v12701_v61 = vadd.f32 %v5752_v16, %v12550_v11 }
 0x5c2   : > { %v12704_v47 = vadd.f32 %v5993_v53, %v12552_v38  ;;  %v5687_v22 = vsel %vm5674_vm6, %v12617_v41, 0.0  ;;  %v5884_v43 = vsel %vm4933_vm1, %v5649_v42, 0.0  ;;  %3893 = vrot.lane.b32.xlu2 %v16398_v0, %s7833_s14  ;;  %v12712_v62 = vadd.f32 %v12557_v17, %v5752_v16  ;;  %v5487_v58 = vpop.f32.mrf.mxu3  ;;  %v5245_v17 = vpop.f32.mrf.mxu0 }
 0x5c3   : > { %v5885_v49 = vadd.f32 %v5884_v43, %v5883_v1  ;;  %v6095_v45 = vadd.f32 %v6094_v25, %v5884_v43  ;;  %v7069_v30 = vadd.f32 %v7068_v40, %v5884_v43  ;;  %v7209_v10 = vadd.f32 %v7208_v34, %v5884_v43 }
 0x5c4   : > { %v5943_v11 = vsel %vm4933_vm1, %v12617_v41, 0.0  ;;  %v5819_v38 = vsel %vm4933_vm1, %v5617_v23, 0.0  ;;  %v4764_v26 = vsel %vm4681_vm0, %v12334_v59, %v3764_v50  ;;  %v12724_v16 = vpop.permute.xlu2 %3887  ;;  %v12727_v41 = vadd.f32 %v12559_v29, %v5993_v53  ;;  %v16401_v50 = vld [vmem:[#allocation260_spill] sm:$0xff] }
 0x5c5   : > { %v5820_v7 = vadd.f32 %v5819_v38, %v12622_v63  ;;  %v6045_v13 = vadd.f32 %v12629_v54, %v5819_v38  ;;  %v7034_v1 = vadd.f32 %v12632_v51, %v5819_v38  ;;  %v7174_v25 = vadd.f32 %v7173_v6, %v5819_v38  ;;  %3771 = vrot.lane.b32.xlu0 %v16399_v21, %s7831_s11  ;;  %v3886_v4 = vpop.permute.xlu0 %3885  ;;  %v5407_v54 = vpop.f32.mrf.mxu2 }
 0x5c6   : > { %v5688_v60 = vadd.f32 %v5687_v22, %v12596_v5  ;;  %v5488_v59 = vadd.f32 %v12671_v35, %v5487_v58  ;;  %v12732_v63 = vadd.f32 %v12671_v35, %v5245_v17  ;;  %v5944_v51 = vadd.f32 %v5943_v11, %v12599_v12 }
 0x5c7   : > { %v6963_v6 = vadd.f32 %v12602_v9, %v5687_v22  ;;  %v4890_v57 = vsel %vm4807_vm2, %v4764_v26, %v3886_v4  ;;  %v5408_v55 = vadd.f32 %v12671_v35, %v5407_v54  ;;  %v7103_v29 = vadd.f32 %v12607_v20, %v5943_v11  ;;  %3801 = vrot.lane.b32.xlu1 %v16400_v8, %s7831_s11 }
 0x5c8   : > { %v5650_v53 = vmax.f32 %v5488_v59, 0.0  ;;  %v5553_v5 = vmax.f32 %v12732_v63, 0.0  ;;  %v5016_v46 = vsel %vm4933_vm1, %v4890_v57, %v12535_v18  ;;  %v12746_v12 = vadd.f32 %v12656_v48, %v12653_v15  ;;  %v3916_v20 = vpop.permute.xlu1 %3915 }
 0x5c9   : > { %v6402_v9 = vrot.slane %v5649_v42, 1  ;;  %v6357_v27 = vrot.slane %v5617_v23, 1  ;;  %7663 = vmatmul.msk.bf16.gmra.mxu2 %vm5083_vm3, %v5016_v46  ;;  %v5618_v40 = vmax.f32 %v5408_v55, 0.0  ;;  %v5326_v11 = vadd.f32 %v12671_v35, %v5325_v3 }
 0x5ca   : > { %v5886_v31 = vsel %vm5674_vm6, %v5650_v53, 0.0  ;;  %v6096_v2 = vsel %vm4933_vm1, %v5650_v53, 0.0  ;;  %v6403_v34 = vrot.slane %v5650_v53, 1  ;;  %v5689_v18 = vsel %vm4933_vm1, %v5553_v5, 0.0  ;;  %4045 = vrot.lane.b32.xlu2 %v16401_v50, %s7832_s13  ;;  %v5247_v4 = vpop.f32.mrf.mxu0  ;;  %v16403_v53 = vld [vmem:[#allocation144_spill] sm:$0xff] }
 0x5cb   : > { %v12756_v15 = vadd.f32 %v5886_v31, %v5885_v49  ;;  %v12758_v48 = vadd.f32 %v6096_v2, %v6095_v45  ;;  %v12760_v42 = vadd.f32 %v7069_v30, %v5886_v31  ;;  %v12762_v23 = vadd.f32 %v7209_v10, %v6096_v2  ;;  %v16402_v49 = vld [vmem:[#allocation195_spill] sm:$0xff] }
 0x5cc   : > { %v6404_v22 = vsel %vm2925_vm5, %v6402_v9, %v6403_v34  ;;  %v5690_v43 = vadd.f32 %v5689_v18, %v5688_v60  ;;  %v5945_v0 = vadd.f32 %v5944_v51, %v5689_v18  ;;  %v6767_v58 = vsel %vm5674_vm6, %v6403_v34, 0.0  ;;  %v12788_v46 = vpop.permute.xlu2 %4039  ;;  %v5327_v9 = vpop.f32.mrf.mxu1 }
 0x5cd   : > { %v6765_v38 = vsel %vm4933_vm1, %v6404_v22, 0.0  ;;  %v6964_v26 = vadd.f32 %v6963_v6, %v5689_v18  ;;  %v7104_v17 = vadd.f32 %v7103_v29, %v5689_v18  ;;  %3923 = vrot.lane.b32.xlu0 %v16402_v49, %s7833_s14  ;;  %v5821_v10 = vsel %vm5674_vm6, %v5618_v40, 0.0  ;;  %v4038_v59 = vpop.permute.xlu0 %4037  ;;  %v16404_v18 = vld [vmem:[#allocation79_spill] sm:$0xff] }
 0x5ce   : > { %v6766_v45 = vadd.f32 %v6765_v38, %v12691_v32  ;;  %v7349_v30 = vadd.f32 %v12626_v39, %v6765_v38  ;;  %v6046_v60 = vsel %vm4933_vm1, %v5618_v40, 0.0  ;;  %v12774_v54 = vadd.f32 %v5821_v10, %v5820_v7 }
 0x5cf   : > { %v12776_v51 = vadd.f32 %v6046_v60, %v6045_v13  ;;  %v6358_v57 = vrot.slane %v5618_v40, 1  ;;  %v12778_v6 = vadd.f32 %v7034_v1, %v5821_v10  ;;  %v12784_v32 = vadd.f32 %v7174_v25, %v6046_v60  ;;  %4015 = vrot.lane.b32.xlu1 %v16403_v53, %s7832_s13 }
 0x5d0   : > { %v12780_v55 = vadd.f32 %v6767_v58, %v6766_v45  ;;  %v12782_v29 = vadd.f32 %v7349_v30, %v6767_v58  ;;  %v5585_v39 = vmax.f32 %v5326_v11, 0.0  ;;  %v6569_v7 = vadd.f32 %v12678_v37, %v12663_v52  ;;  %v3734_v40 = vpop.permute.xlu1 %3733 }
 0x5d1   : > { %v6359_v13 = vsel %vm2925_vm5, %v6357_v27, %v6358_v57  ;;  %v4921_v1 = vsel %vm4807_vm2, %v12615_v14, %v3916_v20  ;;  %v5248_v3 = vadd.f32 %v12671_v35, %v5247_v4  ;;  %v6702_v31 = vsel %vm5674_vm6, %v6358_v57, 0.0 }
 0x5d2   : > { %v6700_v25 = vsel %vm4933_vm1, %v6359_v13, 0.0  ;;  %v5754_v2 = vsel %vm4933_vm1, %v5585_v39, 0.0  ;;  %v5047_v34 = vsel %vm4933_vm1, %v4921_v1, %v4038_v59  ;;  %3863 = vrot.lane.b32.xlu2 %v16404_v18, %s7833_s14  ;;  %v5328_v11 = vadd.f32 %v12671_v35, %v5327_v9 }
 0x5d3   : > { %v6701_v52 = vadd.f32 %v6700_v25, %v12636_v56  ;;  %v7314_v37 = vadd.f32 %v12574_v24, %v6700_v25  ;;  %v5755_v14 = vadd.f32 %v5754_v2, %v12701_v61  ;;  %v5995_v27 = vadd.f32 %v12704_v47, %v5754_v2  ;;  %7679 = vmatmul.msk.bf16.gmra.mxu3 %vm5083_vm3, %v5047_v34  ;;  %v16405_v61 = vld [vmem:[#allocation75_spill] sm:$0xff] }
 0x5d4   : > { %v6999_v20 = vadd.f32 %v12712_v62, %v5754_v2  ;;  %v7139_v50 = vadd.f32 %v12727_v41, %v5754_v2  ;;  %v5554_v22 = vmax.f32 %v5248_v3, 0.0  ;;  %v6267_v38 = vrot.slane %v5553_v5, 1  ;;  %v12845_v25 = vpop.permute.xlu2 %3857 }
 0x5d5   : > { %v12812_v58 = vadd.f32 %v6702_v31, %v6701_v52  ;;  %v12814_v56 = vadd.f32 %v7314_v37, %v6702_v31  ;;  %v6312_v24 = vrot.slane %v5585_v39, 1  ;;  %3741 = vrot.lane.b32.xlu0 %v16405_v61, %s7831_s11  ;;  %v5586_v41 = vmax.f32 %v5328_v11, 0.0  ;;  %v3856_v45 = vpop.permute.xlu0 %3855  ;;  %v16406_v39 = vld [vmem:[#allocation34_spill] sm:$0xff] }
 0x5d6   : > { %v5691_v47 = vsel %vm5674_vm6, %v5554_v22, 0.0  ;;  %v5946_v62 = vsel %vm4933_vm1, %v5554_v22, 0.0  ;;  %v6268_v49 = vrot.slane %v5554_v22, 1  ;;  %v4733_v57 = vsel %vm4681_vm0, %v12297_v33, %v3734_v40  ;;  %v16407_v33 = vld [vmem:[#allocation310_spill] sm:$0xff]  ;;  %v16410_v22 = vld [vmem:[#allocation13_spill] sm:$0xff] }
 0x5d7   : > { %v12820_v30 = vadd.f32 %v5691_v47, %v5690_v43  ;;  %v12822_v10 = vadd.f32 %v5946_v62, %v5945_v0  ;;  %v12824_v63 = vadd.f32 %v6964_v26, %v5691_v47  ;;  %v12826_v5 = vadd.f32 %v7104_v17, %v5946_v62  ;;  %3831 = vrot.lane.b32.xlu1 %v16406_v39, %s7833_s14  ;;  %v16413_v47 = vld [vmem:[#allocation343_spill] sm:$0xff]  ;;  %v16414_v62 = vld [vmem:[#allocation206_spill] sm:$0xff] }
 0x5d8   : > { %v6269_v60 = vsel %vm2925_vm5, %v6267_v38, %v6268_v49  ;;  %v5756_v59 = vsel %vm5674_vm6, %v5586_v41, 0.0  ;;  %v5996_v4 = vsel %vm4933_vm1, %v5586_v41, 0.0  ;;  %v6313_v17 = vrot.slane %v5586_v41, 1  ;;  %v3946_v53 = vpop.permute.xlu1 %3945  ;;  %v16411_v38 = vld [vmem:[#allocation333_spill] sm:$0xff] }
 0x5d9   : > { %v6570_v43 = vsel %vm4933_vm1, %v6269_v60, 0.0  ;;  %v12836_v0 = vadd.f32 %v5756_v59, %v5755_v14  ;;  %v12838_v26 = vadd.f32 %v5996_v4, %v5995_v27  ;;  %v12841_v3 = vadd.f32 %v6999_v20, %v5756_v59  ;;  %v5410_v34 = vpop.f32.mrf.mxu2  ;;  %v16408_v20 = vld [vmem:[#allocation222_spill] sm:$0xff] }
 0x5da   : > { %v6571_v13 = vadd.f32 %v6570_v43, %v6569_v7  ;;  %v7244_v1 = vadd.f32 %v12686_v36, %v6570_v43  ;;  %v12843_v9 = vadd.f32 %v7139_v50, %v5996_v4  ;;  %3773 = vrot.lane.b32.xlu2 %v16407_v33, %s7831_s11  ;;  %v6572_v40 = vsel %vm5674_vm6, %v6268_v49, 0.0  ;;  %v16409_v50 = vld [vmem:[#allocation329_spill] sm:$0xff]  ;;  %v16416_v43 = vld [vmem:[#allocation355_spill] sm:$0xff] }
 0x5db   : > { %v6314_v31 = vsel %vm2925_vm5, %v6312_v24, %v6313_v17  ;;  %v4859_v2 = vsel %vm4807_vm2, %v4733_v57, %v3856_v45  ;;  %v4953_v7 = vsel %vm4933_vm1, %v12697_v44, %v3946_v53  ;;  %v5411_v44 = vadd.f32 %v12671_v35, %v5410_v34  ;;  %v16412_v24 = vld [vmem:[#allocation45_spill] sm:$0xff]  ;;  %v16415_v45 = vld [vmem:[#allocation394_spill] sm:$0xff]  ;;  %v16417_v53 = vld [vmem:[#allocation335_spill] sm:$0xff] }
 0x5dc   : > { %v12854_v36 = vadd.f32 %v6572_v40, %v6571_v13  ;;  %v12856_v18 = vadd.f32 %v7244_v1, %v6572_v40  ;;  %v6635_v52 = vsel %vm4933_vm1, %v6314_v31, 0.0  ;;  %v4985_v37 = vsel %vm4933_vm1, %v4859_v2, %v12651_v19  ;;  %7631 = vmatmul.msk.bf16.gmra.mxu0 %vm5083_vm3, %v4953_v7  ;;  %v5490_v39 = vpop.f32.mrf.mxu3  ;;  %v16418_v1 = vld [vmem:[#allocation440_spill] sm:$0xff]  ;;  %v16419_v31 = vld [vmem:[#allocation90_spill] sm:$0xff]  ;;  %v16421_v34 = vld [vmem:[#allocation107_spill] sm:$0xff] }
 0x5dd   : > { %v6636_v14 = vadd.f32 %v6635_v52, %v12746_v12  ;;  %v7279_v27 = vadd.f32 %v12675_v28, %v6635_v52  ;;  %7647 = vmatmul.msk.bf16.gmra.mxu1 %vm5083_vm3, %v4985_v37  ;;  %3953 = vrot.lane.b32.xlu0 %v16408_v20, %s7832_s13  ;;  %v4348_v11 = vsel %vm4294_vm13, %v16410_v22, %v16409_v50  ;;  %v6637_v28 = vsel %vm5674_vm6, %v6313_v17, 0.0  ;;  %v3766_v49 = vpop.permute.xlu0 %3765  ;;  %v16420_v2 = vld [vmem:[#allocation368_spill] sm:$0xff] }
 0x5de   : > { %v4380_v19 = vsel %vm4294_vm13, %v16412_v24, %v16411_v38  ;;  %v12877_v12 = vsel %vm4294_vm13, %v16414_v62, %v16413_v47  ;;  %v5250_v41 = vpop.f32.mrf.mxu0  ;;  %v5619_v57 = vmax.f32 %v5411_v44, 0.0  ;;  %v4412_v13 = vsel %vm4294_vm13, %v16417_v53, %v16416_v43  ;;  %v16422_v52 = vld [vmem:[#allocation372_spill] sm:$0xff]  ;;  %v16423_v24 = vld [vmem:[#allocation377_spill] sm:$0xff]  ;;  %v12923_v43 = vpop.permute.xlu2 %3767 }
 0x5df   : > { %v4509_v60 = vsel %vm4423_vm14, %v4380_v19, %v16415_v45  ;;  %v12882_v59 = vadd.f32 %v6637_v28, %v6636_v14  ;;  %v12884_v4 = vadd.f32 %v7279_v27, %v6637_v28  ;;  %v5251_v17 = vadd.f32 %v12671_v35, %v5250_v41  ;;  %3985 = vrot.lane.b32.xlu1 %v16419_v31, %s7832_s13  ;;  %v16424_v19 = vld [vmem:[#allocation407_spill] sm:$0xff]  ;;  %v16426_v45 = vld [vmem:[#allocation430_spill] sm:$0xff] }
 0x5e0   : > { %v4638_v33 = vsel %vm4552_vm15, %v4509_v60, %v16418_v1  ;;  %v5491_v40 = vadd.f32 %v12671_v35, %v5490_v39  ;;  %v4445_v7 = vsel %vm4423_vm14, %v16421_v34, %v16420_v2  ;;  %v4477_v37 = vsel %vm4423_vm14, %v4348_v11, %v16422_v52  ;;  %v3796_v20 = vpop.permute.xlu1 %3795  ;;  %v16425_v11 = vld [vmem:[#allocation411_spill] sm:$0xff] }
 0x5e1   : > { %v5823_v14 = vsel %vm4933_vm1, %v5619_v57, 0.0  ;;  %v4766_v27 = vsel %vm4681_vm0, %v4638_v33, %v3766_v49  ;;  %v4541_v47 = vsel %vm4423_vm14, %v4412_v13, %v16424_v19  ;;  %v4574_v62 = vsel %vm4552_vm15, %v4445_v7, %v16425_v11  ;;  %v5412_v41 = vpop.f32.mrf.mxu2  ;;  %v16429_v1 = vld [vmem:[#allocation323_spill] sm:$0xff]  ;;  %v16430_v19 = vld [vmem:[#allocation362_spill] sm:$0xff] }
 0x5e2   : > { %v5824_v44 = vadd.f32 %v5823_v14, %v12774_v54  ;;  %v6048_v50 = vadd.f32 %v12776_v51, %v5823_v14  ;;  %v7036_v22 = vadd.f32 %v12778_v6, %v5823_v14  ;;  %v7176_v38 = vadd.f32 %v12784_v32, %v5823_v14  ;;  %3925 = vrot.lane.b32.xlu2 %v16423_v24, %s7833_s14  ;;  %v16427_v51 = vld [vmem:[#allocation444_spill] sm:$0xff] }
 0x5e3   : > { %v5555_v28 = vmax.f32 %v5251_v17, 0.0  ;;  %v5651_v49 = vmax.f32 %v5491_v40, 0.0  ;;  %v12914_v54 = vsel %vm4552_vm15, %v4477_v37, %v16426_v45  ;;  %v4670_v6 = vsel %vm4552_vm15, %v4541_v47, %v16427_v51  ;;  %v16428_v32 = vld [vmem:[#allocation92_spill] sm:$0xff]  ;;  %v16431_v45 = vld [vmem:[#allocation275_spill] sm:$0xff] }
 0x5e4   : > { %v12920_v60 = vsel %vm4681_vm0, %v4574_v62, %v16428_v32  ;;  %v5413_v39 = vadd.f32 %v12671_v35, %v5412_v41  ;;  %v4797_v33 = vsel %vm4681_vm0, %v4670_v6, %v3796_v20  ;;  %v5330_v17 = vpop.f32.mrf.mxu1  ;;  %v4892_v40 = vsel %vm4807_vm2, %v4766_v27, %v12724_v16 }
 0x5e5   : > { %v5693_v53 = vsel %vm4933_vm1, %v5555_v28, 0.0  ;;  %v5888_v13 = vsel %vm4933_vm1, %v5651_v49, 0.0  ;;  %3803 = vrot.lane.b32.xlu0 %v16429_v1, %s7831_s11  ;;  %v3918_v52 = vpop.permute.xlu0 %3917  ;;  %v6360_v27 = vrot.slane %v5619_v57, 1  ;;  %v6405_v32 = vrot.slane %v5651_v49, 1 }
 0x5e6   : > { %v5694_v31 = vadd.f32 %v5693_v53, %v12820_v30  ;;  %v5948_v2 = vadd.f32 %v12822_v10, %v5693_v53  ;;  %v6966_v34 = vadd.f32 %v12824_v63, %v5693_v53  ;;  %v7106_v7 = vadd.f32 %v12826_v5, %v5693_v53  ;;  %v5252_v37 = vpop.f32.mrf.mxu0  ;;  %v5492_v30 = vpop.f32.mrf.mxu3 }
 0x5e7   : > { %v12937_v14 = vadd.f32 %v5888_v13, %v12756_v15  ;;  %v6098_v24 = vadd.f32 %v12758_v48, %v5888_v13  ;;  %v12941_v20 = vadd.f32 %v12760_v42, %v5888_v13  ;;  %v12944_v16 = vadd.f32 %v12762_v23, %v5888_v13  ;;  %3895 = vrot.lane.b32.xlu1 %v16430_v19, %s7833_s14 }
 0x5e8   : > { %v5620_v10 = vmax.f32 %v5413_v39, 0.0  ;;  %v5331_v63 = vadd.f32 %v12671_v35, %v5330_v17  ;;  %v4923_v5 = vsel %vm4807_vm2, %v4797_v33, %v3918_v52  ;;  %v6270_v15 = vrot.slane %v5555_v28, 1  ;;  %v4010_v23 = vpop.permute.xlu1 %4009 }
 0x5e9   : > { %v5253_v47 = vadd.f32 %v12671_v35, %v5252_v37  ;;  %v5049_v48 = vsel %vm4933_vm1, %v4923_v5, %v12788_v46  ;;  %v5493_v42 = vadd.f32 %v12671_v35, %v5492_v30  ;;  %v12979_v30 = vpop.permute.xlu2 %3919 }
 0x5ea   : > { %v5825_v11 = vsel %vm5674_vm6, %v5620_v10, 0.0  ;;  %v6049_v57 = vsel %vm4933_vm1, %v5620_v10, 0.0  ;;  %v6361_v62 = vrot.slane %v5620_v10, 1  ;;  %v5587_v41 = vmax.f32 %v5331_v63, 0.0  ;;  %7680 = vmatmul.msk.bf16.gmra.mxu3 %vm5083_vm3, %v5049_v48  ;;  %3711 = vrot.lane.b32.xlu2 %v16431_v45, %s7831_s11 }
 0x5eb   : > { %v12959_v28 = vadd.f32 %v5825_v11, %v5824_v44  ;;  %v12961_v51 = vadd.f32 %v6049_v57, %v6048_v50  ;;  %v12963_v6 = vadd.f32 %v7036_v22, %v5825_v11  ;;  %v12965_v46 = vadd.f32 %v7176_v38, %v6049_v57  ;;  %v16432_v22 = vld [vmem:[#allocation416_spill] sm:$0xff] }
 0x5ec   : > { %v6362_v39 = vsel %vm2925_vm5, %v6360_v27, %v6361_v62  ;;  %v6706_v53 = vsel %vm5674_vm6, %v6361_v62, 0.0  ;;  %v5758_v13 = vsel %vm4933_vm1, %v5587_v41, 0.0  ;;  %v5332_v38 = vpop.f32.mrf.mxu1  ;;  %v5556_v37 = vmax.f32 %v5253_v47, 0.0 }
 0x5ed   : > { %v6704_v1 = vsel %vm4933_vm1, %v6362_v39, 0.0  ;;  %v5759_v33 = vadd.f32 %v5758_v13, %v12836_v0  ;;  %v5998_v44 = vadd.f32 %v12838_v26, %v5758_v13  ;;  %v7001_v50 = vadd.f32 %v12841_v3, %v5758_v13  ;;  %4017 = vrot.lane.b32.xlu0 %v16432_v22, %s7832_s13  ;;  %v3736_v27 = vpop.permute.xlu0 %3735 }
 0x5ee   : > { %v6705_v49 = vadd.f32 %v6704_v1, %v12812_v58  ;;  %v7316_v17 = vadd.f32 %v12814_v56, %v6704_v1  ;;  %v7141_v52 = vadd.f32 %v12843_v9, %v5758_v13  ;;  %v6315_v10 = vrot.slane %v5587_v41, 1  ;;  %v16433_v9 = vld [vmem:[#allocation425_spill] sm:$0xff] }
 0x5ef   : > { %v5652_v0 = vmax.f32 %v5493_v42, 0.0  ;;  %v5333_v26 = vadd.f32 %v12671_v35, %v5332_v38  ;;  %v5018_v3 = vsel %vm4933_vm1, %v4892_v40, %v4010_v23  ;;  %v5695_v58 = vsel %vm5674_vm6, %v5556_v37, 0.0  ;;  %4047 = vrot.lane.b32.xlu1 %v16433_v9, %s7832_s13  ;;  %v16434_v41 = vld [vmem:[#allocation85_spill] sm:$0xff] }
 0x5f0   : > { %v12983_v63 = vadd.f32 %v6706_v53, %v6705_v49  ;;  %v12985_v5 = vadd.f32 %v7316_v17, %v6706_v53  ;;  %v5949_v56 = vsel %vm4933_vm1, %v5556_v37, 0.0  ;;  %7664 = vmatmul.msk.bf16.gmra.mxu2 %vm5083_vm3, %v5018_v3  ;;  %v12992_v19 = vadd.f32 %v5695_v58, %v5694_v31  ;;  %v3826_v40 = vpop.permute.xlu1 %3825  ;;  %v16436_v3 = vld [vmem:[#allocation338_spill] sm:$0xff] }
 0x5f1   : > { %v12994_v47 = vadd.f32 %v5949_v56, %v5948_v2  ;;  %v6271_v48 = vrot.slane %v5556_v37, 1  ;;  %v12996_v42 = vadd.f32 %v6966_v34, %v5695_v58  ;;  %v12998_v23 = vadd.f32 %v7106_v7, %v5949_v56 }
 0x5f2   : > { %v5890_v11 = vsel %vm5674_vm6, %v5652_v0, 0.0  ;;  %v6099_v57 = vsel %vm4933_vm1, %v5652_v0, 0.0  ;;  %v6406_v62 = vrot.slane %v5652_v0, 1  ;;  %3865 = vrot.lane.b32.xlu2 %v16434_v41, %s7833_s14  ;;  %v4735_v34 = vsel %vm4681_vm0, %v12914_v54, %v3736_v27  ;;  %v16435_v54 = vld [vmem:[#allocation294_spill] sm:$0xff] }
 0x5f3   : > { %v6272_v45 = vsel %vm2925_vm5, %v6270_v15, %v6271_v48  ;;  %v13006_v31 = vadd.f32 %v5890_v11, %v12937_v14  ;;  %v13008_v2 = vadd.f32 %v6099_v57, %v6098_v24  ;;  %v6576_v39 = vsel %vm5674_vm6, %v6271_v48, 0.0  ;;  %v5415_v1 = vpop.f32.mrf.mxu2  ;;  %v16437_v41 = vld [vmem:[#allocation6_spill] sm:$0xff] }
 0x5f4   : > { %v6574_v7 = vsel %vm4933_vm1, %v6272_v45, 0.0  ;;  %v6407_v53 = vsel %vm2925_vm5, %v6405_v32, %v6406_v62  ;;  %v13016_v13 = vadd.f32 %v12941_v20, %v5890_v11  ;;  %v13022_v22 = vadd.f32 %v12944_v16, %v6099_v57  ;;  %v16438_v45 = vld [vmem:[#allocation344_spill] sm:$0xff] }
 0x5f5   : > { %v6575_v15 = vadd.f32 %v6574_v7, %v12854_v36  ;;  %v7246_v14 = vadd.f32 %v12856_v18, %v6574_v7  ;;  %v6769_v24 = vsel %vm4933_vm1, %v6407_v53, 0.0  ;;  %3743 = vrot.lane.b32.xlu0 %v16435_v54, %s7831_s11  ;;  %v5588_v49 = vmax.f32 %v5333_v26, 0.0  ;;  %v3948_v17 = vpop.permute.xlu0 %3947  ;;  %v13042_v26 = vpop.permute.xlu2 %3737  ;;  %v16440_v7 = vld [vmem:[#allocation356_spill] sm:$0xff] }
 0x5f6   : > { %v6770_v38 = vadd.f32 %v6769_v24, %v12780_v55  ;;  %v7351_v32 = vadd.f32 %v12782_v29, %v6769_v24  ;;  %v5416_v20 = vadd.f32 %v12671_v35, %v5415_v1  ;;  %v6771_v18 = vsel %vm5674_vm6, %v6406_v62, 0.0  ;;  %v16442_v1 = vld [vmem:[#allocation360_spill] sm:$0xff] }
 0x5f7   : > { %v13029_v37 = vadd.f32 %v6576_v39, %v6575_v15  ;;  %v13031_v36 = vadd.f32 %v7246_v14, %v6576_v39  ;;  %v4829_v16 = vsel %vm4807_vm2, %v12920_v60, %v3826_v40  ;;  %v5760_v55 = vsel %vm5674_vm6, %v5588_v49, 0.0  ;;  %3833 = vrot.lane.b32.xlu1 %v16436_v3, %s7833_s14 }
 0x5f8   : > { %v13036_v27 = vadd.f32 %v6771_v18, %v6770_v38  ;;  %v13038_v0 = vadd.f32 %v7351_v32, %v6771_v18  ;;  %v5999_v29 = vsel %vm4933_vm1, %v5588_v49, 0.0  ;;  %v13046_v58 = vadd.f32 %v5760_v55, %v5759_v33  ;;  %v3980_v60 = vpop.permute.xlu1 %3979  ;;  %v16439_v33 = vld [vmem:[#allocation242_spill] sm:$0xff] }
 0x5f9   : > { %v13048_v56 = vadd.f32 %v5999_v29, %v5998_v44  ;;  %v6316_v9 = vrot.slane %v5588_v49, 1  ;;  %v13050_v48 = vadd.f32 %v7001_v50, %v5760_v55  ;;  %v13052_v40 = vadd.f32 %v7141_v52, %v5999_v29  ;;  %v16441_v50 = vld [vmem:[#allocation151_spill] sm:$0xff] }
 0x5fa   : > { %v5621_v11 = vmax.f32 %v5416_v20, 0.0  ;;  %v4955_v57 = vsel %vm4933_vm1, %v4829_v16, %v3948_v17  ;;  %v4861_v62 = vsel %vm4807_vm2, %v4735_v34, %v12845_v25  ;;  %3713 = vrot.lane.b32.xlu2 %v16437_v41, %s7831_s11  ;;  %v13062_v44 = vsel %vm4294_vm13, %v16439_v33, %v16438_v45  ;;  %v16443_v25 = vld [vmem:[#allocation322_spill] sm:$0xff]  ;;  %v16444_v17 = vld [vmem:[#allocation221_spill] sm:$0xff] }
 0x5fb   : > { %v4414_v39 = vsel %vm4294_vm13, %v16441_v50, %v16440_v7  ;;  %v6317_v52 = vsel %vm2925_vm5, %v6315_v10, %v6316_v9  ;;  %7632 = vmatmul.msk.bf16.gmra.mxu0 %vm5083_vm3, %v4955_v57  ;;  %v4987_v53 = vsel %vm4933_vm1, %v4861_v62, %v3980_v60  ;;  %v4447_v34 = vsel %vm4423_vm14, %v16443_v25, %v16442_v1  ;;  %v5495_v54 = vpop.f32.mrf.mxu3  ;;  %v5417_v38 = vpop.f32.mrf.mxu2  ;;  %v16447_v60 = vld [vmem:[#allocation395_spill] sm:$0xff]  ;;  %v16450_v7 = vld [vmem:[#allocation401_spill] sm:$0xff]  ;;  %v16451_v50 = vld [vmem:[#allocation420_spill] sm:$0xff] }
 0x5fc   : > { %v6639_v15 = vsel %vm4933_vm1, %v6317_v52, 0.0  ;;  %v6641_v14 = vsel %vm5674_vm6, %v6316_v9, 0.0  ;;  %v5827_v24 = vsel %vm4933_vm1, %v5621_v11, 0.0  ;;  %7648 = vmatmul.msk.bf16.gmra.mxu1 %vm5083_vm3, %v4987_v53  ;;  %v5496_v55 = vadd.f32 %v12671_v35, %v5495_v54  ;;  %v16445_v9 = vld [vmem:[#allocation382_spill] sm:$0xff]  ;;  %v16449_v62 = vld [vmem:[#allocation435_spill] sm:$0xff]  ;;  %v16453_v1 = vld [vmem:[#allocation452_spill] sm:$0xff] }
 0x5fd   : > { %v6640_v10 = vadd.f32 %v6639_v15, %v12882_v59  ;;  %v7281_v32 = vadd.f32 %v12884_v4, %v6639_v15  ;;  %v5828_v49 = vadd.f32 %v5827_v24, %v12959_v28  ;;  %v6051_v20 = vadd.f32 %v12961_v51, %v5827_v24  ;;  %3955 = vrot.lane.b32.xlu0 %v16444_v17, %s7832_s13  ;;  %v3798_v3 = vpop.permute.xlu0 %3797  ;;  %v16446_v59 = vld [vmem:[#allocation135_spill] sm:$0xff] }
 0x5fe   : > { %v7038_v18 = vadd.f32 %v12963_v6, %v5827_v24  ;;  %v7178_v16 = vadd.f32 %v12965_v46, %v5827_v24  ;;  %v5418_v29 = vadd.f32 %v12671_v35, %v5417_v38  ;;  %v4479_v4 = vsel %vm4423_vm14, %v16446_v59, %v16445_v9  ;;  %v16448_v6 = vld [vmem:[#allocation399_spill] sm:$0xff] }
 0x5ff   : > { %v4511_v28 = vsel %vm4423_vm14, %v12877_v12, %v16447_v60  ;;  %v13093_v51 = vadd.f32 %v6641_v14, %v6640_v10  ;;  %v13095_v57 = vadd.f32 %v7281_v32, %v6641_v14  ;;  %v4543_v46 = vsel %vm4423_vm14, %v4414_v39, %v16448_v6  ;;  %3987 = vrot.lane.b32.xlu1 %v16450_v7, %s7832_s13  ;;  %v16452_v53 = vld [vmem:[#allocation431_spill] sm:$0xff]  ;;  %v13114_v32 = vpop.permute.xlu2 %3949 }
 0x600   : > { %v4640_v41 = vsel %vm4552_vm15, %v4511_v28, %v16449_v62  ;;  %v5653_v45 = vmax.f32 %v5496_v55, 0.0  ;;  %v5622_v33 = vmax.f32 %v5418_v29, 0.0  ;;  %v4576_v52 = vsel %vm4552_vm15, %v4447_v34, %v16451_v50  ;;  %v5335_v15 = vpop.f32.mrf.mxu1  ;;  %v3890_v14 = vpop.permute.xlu1 %3889 }
 0x601   : > { %v4608_v12 = vsel %vm4552_vm15, %v4479_v4, %v16452_v53  ;;  %v4672_v25 = vsel %vm4552_vm15, %v4543_v46, %v16453_v1  ;;  %v4768_v39 = vsel %vm4681_vm0, %v4640_v41, %v12923_v43  ;;  %v6363_v24 = vrot.slane %v5621_v11, 1  ;;  %v5255_v34 = vpop.f32.mrf.mxu0 }
 0x602   : > { %v5892_v54 = vsel %vm4933_vm1, %v5653_v45, 0.0  ;;  %v5829_v38 = vsel %vm5674_vm6, %v5622_v33, 0.0  ;;  %v6052_v10 = vsel %vm4933_vm1, %v5622_v33, 0.0  ;;  %v6364_v59 = vrot.slane %v5622_v33, 1 }
 0x603   : > { %v5893_v17 = vadd.f32 %v5892_v54, %v13006_v31  ;;  %v6101_v55 = vadd.f32 %v13008_v2, %v5892_v54  ;;  %v7073_v29 = vadd.f32 %v13016_v13, %v5892_v54  ;;  %v7213_v43 = vadd.f32 %v13022_v22, %v5892_v54  ;;  %v5497_v60 = vpop.f32.mrf.mxu3  ;;  %v16454_v31 = vld [vmem:[#allocation7_spill] sm:$0xff] }
 0x604   : > { %v13120_v9 = vadd.f32 %v5829_v38, %v5828_v49  ;;  %v13122_v11 = vadd.f32 %v6052_v10, %v6051_v20  ;;  %v13124_v4 = vadd.f32 %v7038_v18, %v5829_v38  ;;  %v13126_v28 = vadd.f32 %v7178_v16, %v6052_v10  ;;  %v16455_v22 = vld [vmem:[#allocation91_spill] sm:$0xff] }
 0x605   : > { %v5336_v6 = vadd.f32 %v12671_v35, %v5335_v15  ;;  %3835 = vrot.lane.b32.xlu0 %v16454_v31, %s7833_s14  ;;  %v5498_v2 = vadd.f32 %v12671_v35, %v5497_v60  ;;  %v5256_v13 = vadd.f32 %v12671_v35, %v5255_v34  ;;  %v4705_v49 = vsel %vm4681_vm0, %v4576_v52, %v16455_v22  ;;  %v4012_v16 = vpop.permute.xlu0 %4011  ;;  %v16456_v52 = vld [vmem:[#allocation197_spill] sm:$0xff] }
 0x606   : > { %v6365_v20 = vsel %vm2925_vm5, %v6363_v24, %v6364_v59  ;;  %v4799_v18 = vsel %vm4681_vm0, %v4672_v25, %v3798_v3  ;;  %v4894_v46 = vsel %vm4807_vm2, %v4768_v39, %v3890_v14  ;;  %v6408_v62 = vrot.slane %v5653_v45, 1 }
 0x607   : > { %v6708_v41 = vsel %vm4933_vm1, %v6365_v20, 0.0  ;;  %v5589_v33 = vmax.f32 %v5336_v6, 0.0  ;;  %v5654_v7 = vmax.f32 %v5498_v2, 0.0  ;;  %v5557_v1 = vmax.f32 %v5256_v13, 0.0  ;;  %3957 = vrot.lane.b32.xlu1 %v16456_v52, %s7832_s13  ;;  %v13166_v22 = vpop.permute.xlu2 %3799 }
 0x608   : > { %v6709_v50 = vadd.f32 %v6708_v41, %v12983_v63  ;;  %v7318_v53 = vadd.f32 %v12985_v5, %v6708_v41  ;;  %v5020_v15 = vsel %vm4933_vm1, %v4894_v46, %v4012_v16  ;;  %v6710_v3 = vsel %vm5674_vm6, %v6364_v59, 0.0  ;;  %v4042_v14 = vpop.permute.xlu1 %4041  ;;  %v5337_v60 = vpop.f32.mrf.mxu1 }
 0x609   : > { %v5762_v25 = vsel %vm4933_vm1, %v5589_v33, 0.0  ;;  %v5894_v45 = vsel %vm5674_vm6, %v5654_v7, 0.0  ;;  %v6102_v39 = vsel %vm4933_vm1, %v5654_v7, 0.0  ;;  %7665 = vmatmul.msk.bf16.gmra.mxu2 %vm5083_vm3, %v5020_v15  ;;  %v6409_v6 = vrot.slane %v5654_v7, 1 }
 0x60a   : > { %v13149_v63 = vadd.f32 %v6710_v3, %v6709_v50  ;;  %v13151_v5 = vadd.f32 %v7318_v53, %v6710_v3  ;;  %v5763_v24 = vadd.f32 %v5762_v25, %v13046_v58  ;;  %v6001_v54 = vadd.f32 %v13048_v56, %v5762_v25  ;;  %v5257_v58 = vpop.f32.mrf.mxu0 }
 0x60b   : > { %v7003_v38 = vadd.f32 %v13050_v48, %v5762_v25  ;;  %v7143_v10 = vadd.f32 %v13052_v40, %v5762_v25  ;;  %v13157_v34 = vadd.f32 %v5894_v45, %v5893_v17  ;;  %v13159_v59 = vadd.f32 %v6102_v39, %v6101_v55 }
 0x60c   : > { %v13161_v31 = vadd.f32 %v7073_v29, %v5894_v45  ;;  %v13163_v2 = vadd.f32 %v7213_v43, %v6102_v39  ;;  %v5697_v13 = vsel %vm4933_vm1, %v5557_v1, 0.0  ;;  %v4737_v56 = vsel %vm4681_vm0, %v4608_v12, %v13042_v26 }
 0x60d   : > { %v5698_v48 = vadd.f32 %v5697_v13, %v12992_v19  ;;  %v5951_v40 = vadd.f32 %v12994_v47, %v5697_v13  ;;  %v6968_v17 = vadd.f32 %v12996_v42, %v5697_v13  ;;  %v6410_v55 = vsel %vm2925_vm5, %v6408_v62, %v6409_v6  ;;  %v3828_v20 = vpop.permute.xlu0 %3827 }
 0x60e   : > { %v7108_v29 = vadd.f32 %v12998_v23, %v5697_v13  ;;  %v5338_v43 = vadd.f32 %v12671_v35, %v5337_v60  ;;  %v4925_v46 = vsel %vm4807_vm2, %v4799_v18, %v12979_v30  ;;  %v6773_v16 = vsel %vm4933_vm1, %v6410_v55, 0.0 }
 0x60f   : > { %v5258_v26 = vadd.f32 %v12671_v35, %v5257_v58  ;;  %v4831_v19 = vsel %vm4807_vm2, %v4705_v49, %v3828_v20  ;;  %v5051_v47 = vsel %vm4933_vm1, %v4925_v46, %v4042_v14  ;;  %v6774_v42 = vadd.f32 %v6773_v16, %v13036_v27  ;;  %v4014_v58 = vpop.permute.xlu2 %4013 }
 0x610   : > { %v7353_v12 = vadd.f32 %v13038_v0, %v6773_v16  ;;  %v5590_v62 = vmax.f32 %v5338_v43, 0.0  ;;  %7681 = vmatmul.msk.bf16.gmra.mxu3 %vm5083_vm3, %v5051_v47  ;;  %v4957_v23 = vsel %vm4933_vm1, %v4831_v19, %v13114_v32  ;;  %v6318_v41 = vrot.slane %v5589_v33, 1  ;;  %v3860_v49 = vpop.permute.xlu1 %3859 }
 0x611   : > { %v6775_v30 = vsel %vm5674_vm6, %v6409_v6, 0.0  ;;  %v6273_v18 = vrot.slane %v5557_v1, 1  ;;  %v5558_v7 = vmax.f32 %v5258_v26, 0.0  ;;  %7633 = vmatmul.msk.bf16.gmra.mxu0 %vm5083_vm3, %v4957_v23 }
 0x612   : > { %v13189_v50 = vadd.f32 %v6775_v30, %v6774_v42  ;;  %v13191_v53 = vadd.f32 %v7353_v12, %v6775_v30  ;;  %v5764_v27 = vsel %vm5674_vm6, %v5590_v62, 0.0  ;;  %v6002_v0 = vsel %vm4933_vm1, %v5590_v62, 0.0 }
 0x613   : > { %v13195_v15 = vadd.f32 %v5764_v27, %v5763_v24  ;;  %v13197_v52 = vadd.f32 %v6002_v0, %v6001_v54  ;;  %v6319_v32 = vrot.slane %v5590_v62, 1  ;;  %v13199_v33 = vadd.f32 %v7003_v38, %v5764_v27  ;;  %v5500_v39 = vpop.f32.mrf.mxu3  ;;  %v16462_v27 = vld [vmem:[#allocation442_spill] sm:$0xff] }
 0x614   : > { %v13201_v1 = vadd.f32 %v7143_v10, %v6002_v0  ;;  %v5699_v3 = vsel %vm5674_vm6, %v5558_v7, 0.0  ;;  %v5952_v25 = vsel %vm4933_vm1, %v5558_v7, 0.0  ;;  %v6274_v45 = vrot.slane %v5558_v7, 1  ;;  %v16461_v7 = vld [vmem:[#allocation41_spill] sm:$0xff] }
 0x615   : > { %v6320_v14 = vsel %vm2925_vm5, %v6318_v41, %v6319_v32  ;;  %v6645_v60 = vsel %vm5674_vm6, %v6319_v32, 0.0  ;;  %v13207_v6 = vadd.f32 %v5699_v3, %v5698_v48  ;;  %v13209_v24 = vadd.f32 %v5952_v25, %v5951_v40  ;;  %v5420_v55 = vpop.f32.mrf.mxu2  ;;  %v16459_v41 = vld [vmem:[#allocation46_spill] sm:$0xff]  ;;  %v16463_v32 = vld [vmem:[#allocation332_spill] sm:$0xff] }
 0x616   : > { %v6643_v54 = vsel %vm4933_vm1, %v6320_v14, 0.0  ;;  %v6275_v38 = vsel %vm2925_vm5, %v6273_v18, %v6274_v45  ;;  %v6580_v10 = vsel %vm5674_vm6, %v6274_v45, 0.0  ;;  %v13214_v13 = vadd.f32 %v6968_v17, %v5699_v3  ;;  %v16460_v18 = vld [vmem:[#allocation331_spill] sm:$0xff]  ;;  %v16464_v3 = vld [vmem:[#allocation148_spill] sm:$0xff] }
 0x617   : > { %v6644_v43 = vadd.f32 %v6643_v54, %v13093_v51  ;;  %v7283_v20 = vadd.f32 %v13095_v57, %v6643_v54  ;;  %v6578_v46 = vsel %vm4933_vm1, %v6275_v38, 0.0  ;;  %v13219_v48 = vadd.f32 %v7108_v29, %v5952_v25  ;;  %v3982_v40 = vpop.permute.xlu0 %3981  ;;  %v16457_v29 = vld [vmem:[#allocation387_spill] sm:$0xff]  ;;  %v16465_v45 = vld [vmem:[#allocation336_spill] sm:$0xff] }
 0x618   : > { %v6579_v16 = vadd.f32 %v6578_v46, %v13029_v37  ;;  %v7248_v26 = vadd.f32 %v13031_v36, %v6578_v46  ;;  %v5501_v19 = vadd.f32 %v12671_v35, %v5500_v39  ;;  %v4863_v17 = vsel %vm4807_vm2, %v4737_v56, %v3860_v49  ;;  %v3770_v12 = vpop.permute.xlu1 %3769  ;;  %v16458_v56 = vld [vmem:[#allocation325_spill] sm:$0xff]  ;;  %v16467_v46 = vld [vmem:[#allocation346_spill] sm:$0xff] }
 0x619   : > { %v13225_v47 = vadd.f32 %v6645_v60, %v6644_v43  ;;  %v13227_v42 = vadd.f32 %v7283_v20, %v6645_v60  ;;  %v4989_v51 = vsel %vm4933_vm1, %v4863_v17, %v3982_v40  ;;  %v5421_v57 = vadd.f32 %v12671_v35, %v5420_v55  ;;  %v16466_v39 = vld [vmem:[#allocation129_spill] sm:$0xff] }
 0x61a   : > { %v4513_v62 = vsel %vm4423_vm14, %v13062_v44, %v16457_v29  ;;  %v13234_v37 = vadd.f32 %v6580_v10, %v6579_v16  ;;  %v13236_v36 = vadd.f32 %v7248_v26, %v6580_v10  ;;  %v5655_v23 = vmax.f32 %v5501_v19, 0.0  ;;  %7649 = vmatmul.msk.bf16.gmra.mxu1 %vm5083_vm3, %v4989_v51  ;;  %v16468_v40 = vld [vmem:[#allocation97_spill] sm:$0xff]  ;;  %v16469_v26 = vld [vmem:[#allocation348_spill] sm:$0xff] }
 0x61b   : > { %v13242_v30 = vsel %vm4294_vm13, %v16459_v41, %v16458_v56  ;;  %v13247_v49 = vsel %vm4294_vm13, %v16461_v7, %v16460_v18  ;;  %v4642_v44 = vsel %vm4552_vm15, %v4513_v62, %v16462_v27  ;;  %v5623_v0 = vmax.f32 %v5421_v57, 0.0  ;;  %v5502_v54 = vpop.f32.mrf.mxu3  ;;  %v16470_v19 = vld [vmem:[#allocation36_spill] sm:$0xff]  ;;  %v16471_v62 = vld [vmem:[#allocation358_spill] sm:$0xff]  ;;  %v16472_v56 = vld [vmem:[#allocation93_spill] sm:$0xff]  ;;  %v13286_v18 = vpop.permute.xlu2 %3829 }
 0x61c   : > { %v13254_v25 = vsel %vm4294_vm13, %v16464_v3, %v16463_v32  ;;  %v13259_v14 = vsel %vm4294_vm13, %v16466_v39, %v16465_v45  ;;  %v5896_v60 = vsel %vm4933_vm1, %v5655_v23, 0.0  ;;  %v4770_v38 = vsel %vm4681_vm0, %v4642_v44, %v3770_v12  ;;  %v16474_v32 = vld [vmem:[#allocation156_spill] sm:$0xff] }
 0x61d   : > { %v5897_v10 = vadd.f32 %v5896_v60, %v13157_v34  ;;  %v6104_v55 = vadd.f32 %v13159_v59, %v5896_v60  ;;  %v7075_v43 = vadd.f32 %v13161_v31, %v5896_v60  ;;  %v7215_v20 = vadd.f32 %v13163_v2, %v5896_v60  ;;  %v5422_v34 = vpop.f32.mrf.mxu2 }
 0x61e   : > { %v13270_v16 = vsel %vm4294_vm13, %v16468_v40, %v16467_v46  ;;  %v4416_v17 = vsel %vm4294_vm13, %v16470_v19, %v16469_v26  ;;  %v5831_v51 = vsel %vm4933_vm1, %v5623_v0, 0.0  ;;  %v5503_v57 = vadd.f32 %v12671_v35, %v5502_v54 }
 0x61f   : > { %v5832_v59 = vadd.f32 %v5831_v51, %v13120_v9  ;;  %v6054_v31 = vadd.f32 %v13122_v11, %v5831_v51  ;;  %v7040_v2 = vadd.f32 %v13124_v4, %v5831_v51  ;;  %v7180_v12 = vadd.f32 %v13126_v28, %v5831_v51  ;;  %v3892_v29 = vpop.permute.xlu0 %3891  ;;  %v16473_v9 = vld [vmem:[#allocation370_spill] sm:$0xff]  ;;  %v16475_v4 = vld [vmem:[#allocation409_spill] sm:$0xff] }
 0x620   : > { %v13284_v41 = vsel %vm4294_vm13, %v16472_v56, %v16471_v62  ;;  %v5656_v7 = vmax.f32 %v5503_v57, 0.0  ;;  %v4896_v27 = vsel %vm4807_vm2, %v4770_v38, %v3892_v29  ;;  %v5423_v44 = vadd.f32 %v12671_v35, %v5422_v34  ;;  %v3922_v60 = vpop.permute.xlu1 %3921 }
 0x621   : > { %v4449_v11 = vsel %vm4423_vm14, %v16474_v32, %v16473_v9  ;;  %v4545_v28 = vsel %vm4423_vm14, %v4416_v17, %v16475_v4  ;;  %v6411_v3 = vrot.slane %v5655_v23, 1  ;;  %v5260_v45 = vpop.f32.mrf.mxu0  ;;  %v5022_v39 = vsel %vm4933_vm1, %v4896_v27, %v4014_v58  ;;  %v16476_v17 = vld [vmem:[#allocation453_spill] sm:$0xff] }
 0x622   : > { %v5898_v54 = vsel %vm5674_vm6, %v5656_v7, 0.0  ;;  %v6105_v46 = vsel %vm4933_vm1, %v5656_v7, 0.0  ;;  %v6412_v40 = vrot.slane %v5656_v7, 1  ;;  %v5261_v38 = vadd.f32 %v12671_v35, %v5260_v45  ;;  %7666 = vmatmul.msk.bf16.gmra.mxu2 %vm5083_vm3, %v5022_v39 }
 0x623   : > { %v13300_v26 = vadd.f32 %v5898_v54, %v5897_v10  ;;  %v13302_v19 = vadd.f32 %v6105_v46, %v6104_v55  ;;  %v13304_v51 = vadd.f32 %v7075_v43, %v5898_v54  ;;  %v13306_v23 = vadd.f32 %v7215_v20, %v6105_v46  ;;  %v13340_v54 = vld [vmem:[%s14808_s4] ss:$0 sm:$0xff] }
 0x624   : > { %v4674_v58 = vsel %vm4552_vm15, %v4545_v28, %v16476_v17  ;;  %v6413_v57 = vsel %vm2925_vm5, %v6411_v3, %v6412_v40  ;;  %v5559_v34 = vmax.f32 %v5261_v38, 0.0  ;;  %v5624_v29 = vmax.f32 %v5423_v44, 0.0  ;;  %v16478_v38 = vld [vmem:[#allocation400_spill] sm:$0xff]  ;;  %v16479_v17 = vld [vmem:[#allocation383_spill] sm:$0xff] }
 0x625   : > { %v4801_v35 = vsel %vm4681_vm0, %v4674_v58, %v13166_v22  ;;  %v6366_v62 = vrot.slane %v5623_v0, 1  ;;  %v6777_v10 = vsel %vm4933_vm1, %v6413_v57, 0.0  ;;  %v6779_v55 = vsel %vm5674_vm6, %v6412_v40, 0.0  ;;  %v16477_v40 = vld [vmem:[#allocation359_spill] sm:$0xff] }
 0x626   : > { %v6778_v43 = vadd.f32 %v6777_v10, %v13189_v50  ;;  %v7355_v20 = vadd.f32 %v13191_v53, %v6777_v10  ;;  %v5701_v56 = vsel %vm4933_vm1, %v5559_v34, 0.0  ;;  %v5340_v7 = vpop.f32.mrf.mxu1  ;;  %v4927_v27 = vsel %vm4807_vm2, %v4801_v35, %v3922_v60  ;;  %v3984_v60 = vpop.permute.xlu2 %3983  ;;  %v16480_v58 = vld [vmem:[#allocation247_spill] sm:$0xff]  ;;  %v16481_v35 = vld [vmem:[#allocation424_spill] sm:$0xff] }
 0x627   : > { %v5702_v9 = vadd.f32 %v5701_v56, %v13207_v6  ;;  %v5954_v44 = vadd.f32 %v13209_v24, %v5701_v56  ;;  %v6970_v22 = vadd.f32 %v13214_v13, %v5701_v56  ;;  %v7110_v0 = vadd.f32 %v13219_v48, %v5701_v56  ;;  %v4044_v32 = vpop.permute.xlu0 %4043 }
 0x628   : > { %v13323_v4 = vadd.f32 %v6779_v55, %v6778_v43  ;;  %v13325_v28 = vadd.f32 %v7355_v20, %v6779_v55  ;;  %v5833_v50 = vsel %vm5674_vm6, %v5624_v29, 0.0  ;;  %v6055_v53 = vsel %vm4933_vm1, %v5624_v29, 0.0 }
 0x629   : > { %v13329_v3 = vadd.f32 %v5833_v50, %v5832_v59  ;;  %v13331_v45 = vadd.f32 %v6055_v53, %v6054_v31  ;;  %v6367_v6 = vrot.slane %v5624_v29, 1  ;;  %v13333_v39 = vadd.f32 %v7040_v2, %v5833_v50  ;;  %v5262_v24 = vpop.f32.mrf.mxu0  ;;  %v3740_v13 = vpop.permute.xlu1 %3739 }
 0x62a   : > { %v13335_v48 = vadd.f32 %v7180_v12, %v6055_v53  ;;  %v5341_v46 = vadd.f32 %v13340_v54, %v5340_v7  ;;  %v5053_v59 = vsel %vm4933_vm1, %v4927_v27, %v4044_v32  ;;  %v5263_v31 = vadd.f32 %v13340_v54, %v5262_v24 }
 0x62b   : > { %v13348_v2 = vsel %vm4294_vm13, %v16478_v38, %v16477_v40  ;;  %v4481_v12 = vsel %vm4423_vm14, %v13247_v49, %v16479_v17  ;;  %v4578_v57 = vsel %vm4552_vm15, %v4449_v11, %v16480_v58  ;;  %v6368_v29 = vsel %vm2925_vm5, %v6366_v62, %v6367_v6  ;;  %7682 = vmatmul.msk.bf16.gmra.mxu3 %vm5083_vm3, %v5053_v59  ;;  %v16482_v58 = vld [vmem:[#allocation364_spill] sm:$0xff] }
 0x62c   : > { %v4610_v10 = vsel %vm4552_vm15, %v4481_v12, %v16481_v35  ;;  %v6712_v55 = vsel %vm4933_vm1, %v6368_v29, 0.0  ;;  %v5591_v43 = vmax.f32 %v5341_v46, 0.0  ;;  %v5560_v20 = vmax.f32 %v5263_v31, 0.0  ;;  %v16484_v29 = vld [vmem:[#allocation371_spill] sm:$0xff] }
 0x62d   : > { %v6276_v56 = vrot.slane %v5559_v34, 1  ;;  %v6713_v7 = vadd.f32 %v6712_v55, %v13149_v63  ;;  %v6714_v27 = vsel %vm5674_vm6, %v6367_v6, 0.0  ;;  %v7320_v49 = vadd.f32 %v13151_v5, %v6712_v55 }
 0x62e   : > { %v5766_v11 = vsel %vm4933_vm1, %v5591_v43, 0.0  ;;  %v5703_v62 = vsel %vm5674_vm6, %v5560_v20, 0.0  ;;  %v5955_v32 = vsel %vm4933_vm1, %v5560_v20, 0.0  ;;  %v5342_v50 = vpop.f32.mrf.mxu1  ;;  %v4739_v53 = vsel %vm4681_vm0, %v4610_v10, %v3740_v13 }
 0x62f   : > { %v13367_v24 = vadd.f32 %v6714_v27, %v6713_v7  ;;  %v13369_v46 = vadd.f32 %v7320_v49, %v6714_v27  ;;  %v5767_v34 = vadd.f32 %v5766_v11, %v13195_v15  ;;  %v6004_v63 = vadd.f32 %v13197_v52, %v5766_v11  ;;  %v3862_v6 = vpop.permute.xlu0 %3861  ;;  %v16483_v15 = vld [vmem:[#allocation51_spill] sm:$0xff]  ;;  %v13399_v27 = vpop.permute.xlu2 %3893 }
 0x630   : > { %v7005_v5 = vadd.f32 %v13199_v33, %v5766_v11  ;;  %v7145_v59 = vadd.f32 %v13201_v1, %v5766_v11  ;;  %v13375_v31 = vadd.f32 %v5703_v62, %v5702_v9  ;;  %v13377_v40 = vadd.f32 %v5955_v32, %v5954_v44  ;;  %v16485_v33 = vld [vmem:[#allocation374_spill] sm:$0xff]  ;;  %v16486_v9 = vld [vmem:[#allocation457_spill] sm:$0xff] }
 0x631   : > { %v6277_v38 = vrot.slane %v5560_v20, 1  ;;  %v13379_v17 = vadd.f32 %v6970_v22, %v5703_v62  ;;  %v13381_v13 = vadd.f32 %v7110_v0, %v5955_v32  ;;  %v5343_v12 = vadd.f32 %v13340_v54, %v5342_v50  ;;  %v3952_v22 = vpop.permute.xlu1 %3951 }
 0x632   : > { %v13387_v52 = vsel %vm4423_vm14, %v16483_v15, %v16482_v58  ;;  %v4451_v1 = vsel %vm4423_vm14, %v16485_v33, %v16484_v29  ;;  %v4707_v44 = vsel %vm4681_vm0, %v4578_v57, %v16486_v9  ;;  %v4865_v35 = vsel %vm4807_vm2, %v4739_v53, %v3862_v6  ;;  %v16487_v6 = vld [vmem:[#allocation375_spill] sm:$0xff]  ;;  %v16488_v29 = vld [vmem:[#allocation385_spill] sm:$0xff] }
 0x633   : > { %v4833_v0 = vsel %vm4807_vm2, %v4707_v44, %v13286_v18  ;;  %v6278_v10 = vsel %vm2925_vm5, %v6276_v56, %v6277_v38  ;;  %v5592_v55 = vmax.f32 %v5343_v12, 0.0  ;;  %v4991_v20 = vsel %vm4933_vm1, %v4865_v35, %v3984_v60  ;;  %v16490_v44 = vld [vmem:[#allocation398_spill] sm:$0xff] }
 0x634   : > { %v6321_v7 = vrot.slane %v5591_v43, 1  ;;  %v6582_v49 = vsel %vm4933_vm1, %v6278_v10, 0.0  ;;  %v6584_v11 = vsel %vm5674_vm6, %v6277_v38, 0.0  ;;  %7650 = vmatmul.msk.bf16.gmra.mxu1 %vm5083_vm3, %v4991_v20  ;;  %v4959_v57 = vsel %vm4933_vm1, %v4833_v0, %v3952_v22  ;;  %v16491_v35 = vld [vmem:[#allocation410_spill] sm:$0xff] }
 0x635   : > { %v6583_v62 = vadd.f32 %v6582_v49, %v13234_v37  ;;  %v7250_v18 = vadd.f32 %v13236_v36, %v6582_v49  ;;  %v5768_v56 = vsel %vm5674_vm6, %v5592_v55, 0.0  ;;  %v6005_v32 = vsel %vm4933_vm1, %v5592_v55, 0.0  ;;  %7634 = vmatmul.msk.bf16.gmra.mxu0 %vm5083_vm3, %v4959_v57  ;;  %v16492_v10 = vld [vmem:[#allocation414_spill] sm:$0xff] }
 0x636   : > { %v13410_v60 = vadd.f32 %v5768_v56, %v5767_v34  ;;  %v13412_v43 = vadd.f32 %v6005_v32, %v6004_v63  ;;  %v6322_v50 = vrot.slane %v5592_v55, 1  ;;  %v13414_v53 = vadd.f32 %v7005_v5, %v5768_v56  ;;  %v16489_v63 = vld [vmem:[#allocation397_spill] sm:$0xff]  ;;  %v16494_v57 = vld [vmem:[#allocation446_spill] sm:$0xff] }
 0x637   : > { %v4483_v38 = vsel %vm4423_vm14, %v13254_v25, %v16487_v6  ;;  %v13419_v37 = vadd.f32 %v6584_v11, %v6583_v62  ;;  %v13421_v36 = vadd.f32 %v7250_v18, %v6584_v11  ;;  %v13423_v12 = vadd.f32 %v7145_v59, %v6005_v32  ;;  %v5425_v58 = vpop.f32.mrf.mxu2  ;;  %v3772_v15 = vpop.permute.xlu0 %3771  ;;  %v16493_v11 = vld [vmem:[#allocation443_spill] sm:$0xff] }
 0x638   : > { %v13428_v34 = vsel %vm4423_vm14, %v13242_v30, %v16488_v29  ;;  %v4515_v5 = vsel %vm4423_vm14, %v13259_v14, %v16489_v63  ;;  %v6323_v33 = vsel %vm2925_vm5, %v6321_v7, %v6322_v50  ;;  %v5426_v25 = vadd.f32 %v13340_v54, %v5425_v58  ;;  %v5505_v9 = vpop.f32.mrf.mxu3 }
 0x639   : > { %v13438_v59 = vsel %vm4423_vm14, %v13270_v16, %v16490_v44  ;;  %v4547_v22 = vsel %vm4423_vm14, %v13284_v41, %v16491_v35  ;;  %v6647_v30 = vsel %vm4933_vm1, %v6323_v33, 0.0  ;;  %v5506_v0 = vadd.f32 %v13340_v54, %v5505_v9  ;;  %v3802_v49 = vpop.permute.xlu1 %3801  ;;  %v4046_v33 = vpop.permute.xlu2 %4045 }
 0x63a   : > { %v4580_v14 = vsel %vm4552_vm15, %v4451_v1, %v16492_v10  ;;  %v6648_v55 = vadd.f32 %v6647_v30, %v13225_v47  ;;  %v7285_v20 = vadd.f32 %v13227_v42, %v6647_v30  ;;  %v5625_v7 = vmax.f32 %v5426_v25, 0.0 }
 0x63b   : > { %v4644_v16 = vsel %vm4552_vm15, %v4515_v5, %v16493_v11  ;;  %v4676_v62 = vsel %vm4552_vm15, %v4547_v22, %v16494_v57  ;;  %v6649_v41 = vsel %vm5674_vm6, %v6322_v50, 0.0  ;;  %v5657_v18 = vmax.f32 %v5506_v0, 0.0  ;;  %v5265_v47 = vpop.f32.mrf.mxu0  ;;  %v16495_v5 = vld [vmem:[#allocation433_spill] sm:$0xff] }
 0x63c   : > { %v13454_v56 = vadd.f32 %v6649_v41, %v6648_v55  ;;  %v13456_v32 = vadd.f32 %v7285_v20, %v6649_v41  ;;  %v5835_v1 = vsel %vm4933_vm1, %v5625_v7, 0.0  ;;  %v4803_v42 = vsel %vm4681_vm0, %v4676_v62, %v3802_v49  ;;  %v16496_v20 = vld [vmem:[#allocation146_spill] sm:$0xff] }
 0x63d   : > { %v5836_v6 = vadd.f32 %v5835_v1, %v13329_v3  ;;  %v6057_v58 = vadd.f32 %v13331_v45, %v5835_v1  ;;  %v7042_v29 = vadd.f32 %v13333_v39, %v5835_v1  ;;  %v7182_v63 = vadd.f32 %v13335_v48, %v5835_v1 }
 0x63e   : > { %v13466_v50 = vsel %vm4552_vm15, %v4483_v38, %v16495_v5  ;;  %v4772_v25 = vsel %vm4681_vm0, %v4644_v16, %v3772_v15  ;;  %v5266_v9 = vadd.f32 %v13340_v54, %v5265_v47  ;;  %v5900_v44 = vsel %vm4933_vm1, %v5657_v18, 0.0  ;;  %v5345_v35 = vpop.f32.mrf.mxu1 }
 0x63f   : > { %v5901_v3 = vadd.f32 %v5900_v44, %v13300_v26  ;;  %v13473_v45 = vadd.f32 %v13302_v19, %v5900_v44  ;;  %v7077_v39 = vadd.f32 %v13304_v51, %v5900_v44  ;;  %v13477_v48 = vadd.f32 %v13306_v23, %v5900_v44  ;;  %v5427_v38 = vpop.f32.mrf.mxu2  ;;  %v3924_v22 = vpop.permute.xlu0 %3923 }
 0x640   : > { %v5561_v30 = vmax.f32 %v5266_v9, 0.0  ;;  %v5428_v15 = vadd.f32 %v13340_v54, %v5427_v38  ;;  %v5346_v0 = vadd.f32 %v13340_v54, %v5345_v35  ;;  %v4929_v10 = vsel %vm4807_vm2, %v4803_v42, %v3924_v22  ;;  %v5507_v55 = vpop.f32.mrf.mxu3 }
 0x641   : > { %v13484_v26 = vsel %vm4681_vm0, %v4580_v14, %v16496_v20  ;;  %v6369_v19 = vrot.slane %v5625_v7, 1  ;;  %v5055_v51 = vsel %vm4933_vm1, %v4929_v10, %v4046_v33  ;;  %v4898_v23 = vsel %vm4807_vm2, %v4772_v25, %v13399_v27  ;;  %v4016_v62 = vpop.permute.xlu1 %4015 }
 0x642   : > { %v5705_v49 = vsel %vm4933_vm1, %v5561_v30, 0.0  ;;  %v5626_v11 = vmax.f32 %v5428_v15, 0.0  ;;  %v5593_v16 = vmax.f32 %v5346_v0, 0.0  ;;  %7683 = vmatmul.msk.bf16.gmra.mxu3 %vm5083_vm3, %v5055_v51  ;;  %v5508_v57 = vadd.f32 %v13340_v54, %v5507_v55  ;;  %v13513_v0 = vpop.permute.xlu2 %3863 }
 0x643   : > { %v5706_v41 = vadd.f32 %v5705_v49, %v13375_v31  ;;  %v5957_v14 = vadd.f32 %v13377_v40, %v5705_v49  ;;  %v6972_v7 = vadd.f32 %v13379_v17, %v5705_v49  ;;  %v7112_v1 = vadd.f32 %v13381_v13, %v5705_v49  ;;  %v5267_v40 = vpop.f32.mrf.mxu0 }
 0x644   : > { %v5837_v47 = vsel %vm5674_vm6, %v5626_v11, 0.0  ;;  %v6058_v27 = vsel %vm4933_vm1, %v5626_v11, 0.0  ;;  %v6370_v42 = vrot.slane %v5626_v11, 1  ;;  %v5770_v5 = vsel %vm4933_vm1, %v5593_v16, 0.0 }
 0x645   : > { %v13499_v33 = vadd.f32 %v5837_v47, %v5836_v6  ;;  %v13501_v25 = vadd.f32 %v6058_v27, %v6057_v58  ;;  %v13503_v9 = vadd.f32 %v7042_v29, %v5837_v47  ;;  %v13505_v31 = vadd.f32 %v7182_v63, %v6058_v27 }
 0x646   : > { %v6414_v44 = vrot.slane %v5657_v18, 1  ;;  %v6371_v17 = vsel %vm2925_vm5, %v6369_v19, %v6370_v42  ;;  %v5771_v13 = vadd.f32 %v5770_v5, %v13410_v60  ;;  %v6007_v35 = vadd.f32 %v13412_v43, %v5770_v5  ;;  %v5347_v38 = vpop.f32.mrf.mxu1 }
 0x647   : > { %v6279_v22 = vrot.slane %v5561_v30, 1  ;;  %v6716_v15 = vsel %vm4933_vm1, %v6371_v17, 0.0  ;;  %v7007_v6 = vadd.f32 %v13414_v53, %v5770_v5  ;;  %v7147_v58 = vadd.f32 %v13423_v12, %v5770_v5  ;;  %v3742_v29 = vpop.permute.xlu0 %3741 }
 0x648   : > { %v6717_v63 = vadd.f32 %v6716_v15, %v13367_v24  ;;  %v7322_v18 = vadd.f32 %v13369_v46, %v6716_v15  ;;  %v5268_v10 = vadd.f32 %v13340_v54, %v5267_v40  ;;  %v5658_v60 = vmax.f32 %v5508_v57, 0.0 }
 0x649   : > { %v6718_v43 = vsel %vm5674_vm6, %v6370_v42, 0.0  ;;  %v6324_v55 = vrot.slane %v5593_v16, 1  ;;  %v5024_v30 = vsel %vm4933_vm1, %v4898_v23, %v4016_v62  ;;  %v5348_v20 = vadd.f32 %v13340_v54, %v5347_v38  ;;  %v3832_v24 = vpop.permute.xlu1 %3831 }
 0x64a   : > { %v13521_v53 = vadd.f32 %v6718_v43, %v6717_v63  ;;  %v13523_v12 = vadd.f32 %v7322_v18, %v6718_v43  ;;  %v5562_v19 = vmax.f32 %v5268_v10, 0.0  ;;  %v5902_v51 = vsel %vm5674_vm6, %v5658_v60, 0.0  ;;  %7667 = vmatmul.msk.bf16.gmra.mxu2 %vm5083_vm3, %v5024_v30 }
 0x64b   : > { %v13527_v46 = vadd.f32 %v5902_v51, %v5901_v3  ;;  %v6108_v49 = vsel %vm4933_vm1, %v5658_v60, 0.0  ;;  %v6415_v11 = vrot.slane %v5658_v60, 1  ;;  %v13530_v16 = vadd.f32 %v7077_v39, %v5902_v51 }
 0x64c   : > { %v5707_v23 = vsel %vm5674_vm6, %v5562_v19, 0.0  ;;  %v5958_v57 = vsel %vm4933_vm1, %v5562_v19, 0.0  ;;  %v6280_v62 = vrot.slane %v5562_v19, 1  ;;  %v13535_v47 = vadd.f32 %v6108_v49, %v13473_v45  ;;  %v5430_v27 = vpop.f32.mrf.mxu2  ;;  %v3774_v19 = vpop.permute.xlu2 %3773 }
 0x64d   : > { %v13537_v42 = vadd.f32 %v5707_v23, %v5706_v41  ;;  %v13539_v5 = vadd.f32 %v5958_v57, %v5957_v14  ;;  %v13541_v3 = vadd.f32 %v6972_v7, %v5707_v23  ;;  %v13543_v40 = vadd.f32 %v7112_v1, %v5958_v57 }
 0x64e   : > { %v6281_v39 = vsel %vm2925_vm5, %v6279_v22, %v6280_v62  ;;  %v6588_v17 = vsel %vm5674_vm6, %v6280_v62, 0.0  ;;  %v6416_v38 = vsel %vm2925_vm5, %v6414_v44, %v6415_v11  ;;  %v6783_v15 = vsel %vm5674_vm6, %v6415_v11, 0.0 }
 0x64f   : > { %v6586_v45 = vsel %vm4933_vm1, %v6281_v39, 0.0  ;;  %v6781_v63 = vsel %vm4933_vm1, %v6416_v38, 0.0  ;;  %v13552_v41 = vadd.f32 %v13477_v48, %v6108_v49  ;;  %v5594_v14 = vmax.f32 %v5348_v20, 0.0  ;;  %v3954_v7 = vpop.permute.xlu0 %3953 }
 0x650   : > { %v6587_v1 = vadd.f32 %v6586_v45, %v13419_v37  ;;  %v7252_v18 = vadd.f32 %v13421_v36, %v6586_v45  ;;  %v6782_v22 = vadd.f32 %v6781_v63, %v13323_v4  ;;  %v7357_v10 = vadd.f32 %v13325_v28, %v6781_v63 }
 0x651   : > { %v5772_v44 = vsel %vm5674_vm6, %v5594_v14, 0.0  ;;  %v6008_v60 = vsel %vm4933_vm1, %v5594_v14, 0.0  ;;  %v6325_v43 = vrot.slane %v5594_v14, 1  ;;  %v5431_v30 = vadd.f32 %v13340_v54, %v5430_v27  ;;  %v3986_v36 = vpop.permute.xlu1 %3985 }
 0x652   : > { %v13561_v48 = vadd.f32 %v6588_v17, %v6587_v1  ;;  %v13563_v20 = vadd.f32 %v7252_v18, %v6588_v17  ;;  %v13565_v51 = vadd.f32 %v6783_v15, %v6782_v22  ;;  %v13567_v37 = vadd.f32 %v7357_v10, %v6783_v15  ;;  %v16497_v1 = vld [vmem:[#allocation403_spill] sm:$0xff]  ;;  %v16498_v18 = vld [vmem:[#allocation436_spill] sm:$0xff] }
 0x653   : > { %v13569_v4 = vadd.f32 %v5772_v44, %v5771_v13  ;;  %v13571_v28 = vadd.f32 %v6008_v60, %v6007_v35  ;;  %v6326_v49 = vsel %vm2925_vm5, %v6324_v55, %v6325_v43  ;;  %v4741_v11 = vsel %vm4681_vm0, %v13466_v50, %v3742_v29 }
 0x654   : > { %v6651_v23 = vsel %vm4933_vm1, %v6326_v49, 0.0  ;;  %v13577_v57 = vadd.f32 %v7007_v6, %v5772_v44  ;;  %v13579_v62 = vadd.f32 %v7147_v58, %v6008_v60  ;;  %v5627_v27 = vmax.f32 %v5431_v30, 0.0  ;;  %v5432_v39 = vpop.f32.mrf.mxu2 }
 0x655   : > { %v6652_v17 = vadd.f32 %v6651_v23, %v13454_v56  ;;  %v7287_v13 = vadd.f32 %v13456_v32, %v6651_v23  ;;  %v4835_v35 = vsel %vm4807_vm2, %v13484_v26, %v3832_v24  ;;  %v5433_v55 = vadd.f32 %v13340_v54, %v5432_v39  ;;  %v3926_v39 = vpop.permute.xlu2 %3925 }
 0x656   : > { %v6653_v38 = vsel %vm5674_vm6, %v6325_v43, 0.0  ;;  %v5839_v50 = vsel %vm4933_vm1, %v5627_v27, 0.0  ;;  %v4961_v6 = vsel %vm4933_vm1, %v4835_v35, %v3954_v7  ;;  %v5510_v29 = vpop.f32.mrf.mxu3  ;;  %v4867_v58 = vsel %vm4807_vm2, %v4741_v11, %v13513_v0  ;;  %v7754_v35 = vld [vmem:[%s14806_s2] ss:$0 sm:$0xff] }
 0x657   : > { %v13591_v15 = vadd.f32 %v6653_v38, %v6652_v17  ;;  %v13593_v56 = vadd.f32 %v7287_v13, %v6653_v38  ;;  %v5840_v32 = vadd.f32 %v5839_v50, %v13499_v33  ;;  %v6060_v26 = vadd.f32 %v13501_v25, %v5839_v50  ;;  %7635 = vmatmul.msk.bf16.gmra.mxu0 %vm5083_vm3, %v4961_v6  ;;  %v3804_v24 = vpop.permute.xlu0 %3803 }
 0x658   : > { %v7044_v45 = vadd.f32 %v13503_v9, %v5839_v50  ;;  %v7184_v63 = vadd.f32 %v13505_v31, %v5839_v50  ;;  %v5511_v14 = vadd.f32 %v13340_v54, %v5510_v29  ;;  %v5628_v7 = vmax.f32 %v5433_v55, 0.0 }
 0x659   : > { %v4549_v0 = vsel %vm4423_vm14, %v13348_v2, %v16497_v1  ;;  %v4646_v33 = vsel %vm4552_vm15, %v13438_v59, %v16498_v18  ;;  %v6372_v22 = vrot.slane %v5627_v27, 1  ;;  %v4993_v25 = vsel %vm4933_vm1, %v4867_v58, %v3986_v36  ;;  %v5270_v10 = vpop.f32.mrf.mxu0  ;;  %v3896_v30 = vpop.permute.xlu1 %3895  ;;  %v16499_v36 = vld [vmem:[#allocation422_spill] sm:$0xff]  ;;  %v16501_v18 = vld [vmem:[#allocation201_spill] sm:$0xff] }
 0x65a   : > { %v5659_v44 = vmax.f32 %v5511_v14, 0.0  ;;  %v5841_v9 = vsel %vm5674_vm6, %v5628_v7, 0.0  ;;  %v6061_v31 = vsel %vm4933_vm1, %v5628_v7, 0.0  ;;  %v6373_v60 = vrot.slane %v5628_v7, 1  ;;  %v5350_v43 = vpop.f32.mrf.mxu1  ;;  %7651 = vmatmul.msk.bf16.gmra.mxu1 %vm5083_vm3, %v4993_v25 }
 0x65b   : > { %v13611_v49 = vadd.f32 %v5841_v9, %v5840_v32  ;;  %v13613_v2 = vadd.f32 %v6061_v31, %v6060_v26  ;;  %v13615_v11 = vadd.f32 %v7044_v45, %v5841_v9  ;;  %v13617_v59 = vadd.f32 %v7184_v63, %v6061_v31  ;;  %v16500_v26 = vld [vmem:[#allocation455_spill] sm:$0xff] }
 0x65c   : > { %v13622_v23 = vsel %vm4552_vm15, %v13387_v52, %v16499_v36  ;;  %v4774_v27 = vsel %vm4681_vm0, %v4646_v33, %v3774_v19  ;;  %v5904_v17 = vsel %vm4933_vm1, %v5659_v44, 0.0  ;;  %v6374_v13 = vsel %vm2925_vm5, %v6372_v22, %v6373_v60 }
 0x65d   : > { %v5905_v55 = vadd.f32 %v5904_v17, %v13527_v46  ;;  %v6110_v38 = vadd.f32 %v13535_v47, %v5904_v17  ;;  %v7079_v50 = vadd.f32 %v13530_v16, %v5904_v17  ;;  %v7219_v52 = vadd.f32 %v13552_v41, %v5904_v17 }
 0x65e   : > { %v6720_v6 = vsel %vm4933_vm1, %v6374_v13, 0.0  ;;  %v5351_v19 = vadd.f32 %v13340_v54, %v5350_v43  ;;  %v5512_v29 = vpop.f32.mrf.mxu3  ;;  %v13637_v58 = vadd.f32 %v13340_v54, %v5270_v10  ;;  %v4900_v32 = vsel %vm4807_vm2, %v4774_v27, %v3896_v30 }
 0x65f   : > { %v4678_v46 = vsel %vm4552_vm15, %v4549_v0, %v16500_v26  ;;  %v6721_v47 = vadd.f32 %v6720_v6, %v13521_v53  ;;  %v7324_v16 = vadd.f32 %v13523_v12, %v6720_v6  ;;  %v5513_v41 = vadd.f32 %v13340_v54, %v5512_v29  ;;  %v4018_v45 = vpop.permute.xlu0 %4017  ;;  %v16502_v26 = vld [vmem:[#allocation434_spill] sm:$0xff] }
 0x660   : > { %v6722_v63 = vsel %vm5674_vm6, %v6373_v60, 0.0  ;;  %v5595_v14 = vmax.f32 %v5351_v19, 0.0  ;;  %v5563_v7 = vmax.f32 %v13637_v58, 0.0  ;;  %v5026_v1 = vsel %vm4933_vm1, %v4900_v32, %v4018_v45 }
 0x661   : > { %v778_v33 = vadd.f32 %v7754_v35, %v16501_v18  ;;  %v13649_v22 = vadd.f32 %v6722_v63, %v6721_v47  ;;  %v13651_v25 = vadd.f32 %v7324_v16, %v6722_v63  ;;  %v5660_v0 = vmax.f32 %v5513_v41, 0.0  ;;  %7668 = vmatmul.msk.bf16.gmra.mxu2 %vm5083_vm3, %v5026_v1  ;;  %v4048_v31 = vpop.permute.xlu1 %4047  ;;  %v5272_v35 = vpop.f32.mrf.mxu0 }
 0x662   : > { %v6417_v53 = vrot.slane %v5659_v44, 1  ;;  %v4805_v12 = vsel %vm4681_vm0, %v4678_v46, %v3804_v24  ;;  %v5774_v10 = vsel %vm4933_vm1, %v5595_v14, 0.0  ;;  %v5709_v9 = vsel %vm4933_vm1, %v5563_v7, 0.0  ;;  %v5352_v13 = vpop.f32.mrf.mxu1 }
 0x663   : > { %v5775_v60 = vadd.f32 %v5774_v10, %v13569_v4  ;;  %v6010_v43 = vadd.f32 %v13571_v28, %v5774_v10  ;;  %v7009_v30 = vadd.f32 %v13577_v57, %v5774_v10  ;;  %v7149_v36 = vadd.f32 %v13579_v62, %v5774_v10  ;;  %v3712_v62 = vpop.permute.xlu2 %3711  ;;  %781 = vst.msk [vmem:[%s304_s25] sm:$0xf] %vm780_vm8, %v778_v33 }
 0x664   : > { %v5906_v27 = vsel %vm5674_vm6, %v5660_v0, 0.0  ;;  %v6111_v17 = vsel %vm4933_vm1, %v5660_v0, 0.0  ;;  %v6418_v44 = vrot.slane %v5660_v0, 1  ;;  %v5710_v24 = vadd.f32 %v5709_v9, %v13537_v42 }
 0x665   : > { %v13669_v6 = vadd.f32 %v5906_v27, %v5905_v55  ;;  %v13671_v4 = vadd.f32 %v6111_v17, %v6110_v38  ;;  %v13673_v28 = vadd.f32 %v7079_v50, %v5906_v27  ;;  %v13675_v57 = vadd.f32 %v7219_v52, %v6111_v17 }
 0x666   : > { %v6419_v19 = vsel %vm2925_vm5, %v6417_v53, %v6418_v44  ;;  %v5960_v29 = vadd.f32 %v13539_v5, %v5709_v9  ;;  %v6974_v42 = vadd.f32 %v13541_v3, %v5709_v9  ;;  %v4931_v58 = vsel %vm4807_vm2, %v4805_v12, %v3926_v39 }
 0x667   : > { %v6785_v32 = vsel %vm4933_vm1, %v6419_v19, 0.0  ;;  %v7114_v55 = vadd.f32 %v13543_v40, %v5709_v9  ;;  %v5353_v38 = vadd.f32 %v13340_v54, %v5352_v13  ;;  %v5273_v50 = vadd.f32 %v13340_v54, %v5272_v35  ;;  %v3744_v52 = vpop.permute.xlu0 %3743 }
 0x668   : > { %v4614_v46 = vsel %vm4552_vm15, %v13428_v34, %v16502_v26  ;;  %v6786_v5 = vadd.f32 %v6785_v32, %v13565_v51  ;;  %v7359_v3 = vadd.f32 %v13567_v37, %v6785_v32  ;;  %v5057_v39 = vsel %vm4933_vm1, %v4931_v58, %v4048_v31 }
 0x669   : > { %v6787_v47 = vsel %vm5674_vm6, %v6418_v44, 0.0  ;;  %v5596_v40 = vmax.f32 %v5353_v38, 0.0  ;;  %v5564_v16 = vmax.f32 %v5273_v50, 0.0  ;;  %7684 = vmatmul.msk.bf16.gmra.mxu3 %vm5083_vm3, %v5057_v39  ;;  %v4711_v41 = vsel %vm4681_vm0, %v13622_v23, %v3712_v62  ;;  %v3834_v51 = vpop.permute.xlu1 %3833  ;;  %v16503_v39 = vld [vmem:[#allocation170_spill] sm:$0xff] }
 0x66a   : > { %v6327_v45 = vrot.slane %v5595_v14, 1  ;;  %v13695_v63 = vadd.f32 %v6787_v47, %v6786_v5  ;;  %v13697_v34 = vadd.f32 %v7359_v3, %v6787_v47  ;;  %v6282_v10 = vrot.slane %v5563_v7, 1  ;;  %v16504_v47 = vld [vmem:[#allocation30_spill] sm:$0xff] }
 0x66b   : > { %v5776_v37 = vsel %vm5674_vm6, %v5596_v40, 0.0  ;;  %v6011_v1 = vsel %vm4933_vm1, %v5596_v40, 0.0  ;;  %v6328_v18 = vrot.slane %v5596_v40, 1  ;;  %v5711_v0 = vsel %vm5674_vm6, %v5564_v16, 0.0  ;;  %v3866_v35 = vpop.permute.xlu2 %3865 }
 0x66c   : > { %v13705_v53 = vadd.f32 %v5776_v37, %v5775_v60  ;;  %v13707_v12 = vadd.f32 %v6011_v1, %v6010_v43  ;;  %v13709_v23 = vadd.f32 %v7009_v30, %v5776_v37  ;;  %v13711_v14 = vadd.f32 %v7149_v36, %v6011_v1  ;;  %v16507_v1 = vld [vmem:[#allocation114_spill] sm:$0xff] }
 0x66d   : > { %v6329_v9 = vsel %vm2925_vm5, %v6327_v45, %v6328_v18  ;;  %v13714_v31 = vadd.f32 %v5711_v0, %v5710_v24  ;;  %v5961_v33 = vsel %vm4933_vm1, %v5564_v16, 0.0  ;;  %v5515_v27 = vpop.f32.mrf.mxu3  ;;  %v6283_v60 = vrot.slane %v5564_v16, 1 }
 0x66e   : > { %v6655_v17 = vsel %vm4933_vm1, %v6329_v9, 0.0  ;;  %v13718_v44 = vadd.f32 %v5961_v33, %v5960_v29  ;;  %v13720_v13 = vadd.f32 %v6974_v42, %v5711_v0  ;;  %v13724_v36 = vadd.f32 %v7114_v55, %v5961_v33  ;;  %v16509_v33 = vld [vmem:[#allocation276_spill] sm:$0xff] }
 0x66f   : > { %v6656_v43 = vadd.f32 %v6655_v17, %v13591_v15  ;;  %v7289_v30 = vadd.f32 %v13593_v56, %v6655_v17  ;;  %v4743_v7 = vsel %vm4681_vm0, %v4614_v46, %v3744_v52  ;;  %v3956_v24 = vpop.permute.xlu0 %3955  ;;  %v6657_v62 = vsel %vm5674_vm6, %v6328_v18, 0.0  ;;  %v16510_v17 = vld [vmem:[#allocation291_spill] sm:$0xff] }
 0x670   : > { %v6284_v19 = vsel %vm2925_vm5, %v6282_v10, %v6283_v60  ;;  %v4837_v29 = vsel %vm4807_vm2, %v4711_v41, %v3834_v51  ;;  %v4869_v50 = vsel %vm4807_vm2, %v4743_v7, %v3866_v35  ;;  %v6592_v52 = vsel %vm5674_vm6, %v6283_v60, 0.0  ;;  %v16505_v41 = vld [vmem:[#allocation207_spill] sm:$0xff]  ;;  %v16506_v51 = vld [vmem:[#allocation228_spill] sm:$0xff] }
 0x671   : > { %v13730_v58 = vadd.f32 %v6657_v62, %v6656_v43  ;;  %v13732_v42 = vadd.f32 %v7289_v30, %v6657_v62  ;;  %v6590_v15 = vsel %vm4933_vm1, %v6284_v19, 0.0  ;;  %v4963_v55 = vsel %vm4933_vm1, %v4837_v29, %v3956_v24  ;;  %v3988_v38 = vpop.permute.xlu1 %3987  ;;  %v16508_v10 = vld [vmem:[#allocation259_spill] sm:$0xff]  ;;  %v16511_v30 = vld [vmem:[#allocation306_spill] sm:$0xff] }
 0x672   : > { %v6591_v56 = vadd.f32 %v6590_v15, %v13561_v48  ;;  %v7254_v32 = vadd.f32 %v13563_v20, %v6590_v15  ;;  %v13741_v26 = vadd.f32 %v13340_v54, %v5515_v27  ;;  %7636 = vmatmul.msk.bf16.gmra.mxu0 %vm5083_vm3, %v4963_v55  ;;  %v4995_v5 = vsel %vm4933_vm1, %v4869_v50, %v3988_v38  ;;  %v16512_v7 = vld [vmem:[#allocation311_spill] sm:$0xff]  ;;  %v16513_v24 = vld [vmem:[#allocation334_spill] sm:$0xff] }
 0x673   : > { %v5435_v46 = vpop.f32.mrf.mxu2  ;;  %7652 = vmatmul.msk.bf16.gmra.mxu1 %vm5083_vm3, %v4995_v5  ;;  %v4080_v40 = vsel %vm451_vm4, %v16504_v47, %v16503_v39  ;;  %v4110_v45 = vsel %vm451_vm4, %v16405_v61, %v16505_v41  ;;  %v4140_v37 = vsel %vm451_vm4, %v16399_v21, %v16506_v51  ;;  %v4170_v18 = vsel %vm451_vm4, %v16400_v8, %v16507_v1  ;;  %v16514_v62 = vld [vmem:[#allocation347_spill] sm:$0xff]  ;;  %v16517_v38 = vld [vmem:[#allocation386_spill] sm:$0xff]  ;;  %v16519_v47 = vld [vmem:[#allocation412_spill] sm:$0xff] }
 0x674   : > { %v13745_v3 = vadd.f32 %v6592_v52, %v6591_v56  ;;  %v13747_v48 = vadd.f32 %v7254_v32, %v6592_v52  ;;  %v5661_v0 = vmax.f32 %v13741_v26, 0.0  ;;  %v4203_v9 = vsel %vm4171_vm12, %v4080_v40, %v16508_v10  ;;  %v16515_v15 = vld [vmem:[#allocation351_spill] sm:$0xff]  ;;  %v16516_v32 = vld [vmem:[#allocation373_spill] sm:$0xff]  ;;  %v3714_v52 = vpop.permute.xlu2 %3713  ;;  %v16521_v1 = vld [vmem:[#allocation426_spill] sm:$0xff] }
 0x675   : > { %v5517_v20 = vpop.f32.mrf.mxu3  ;;  %v4233_v27 = vsel %vm4171_vm12, %v4110_v45, %v16509_v33  ;;  %v4263_v60 = vsel %vm4171_vm12, %v4140_v37, %v16510_v17  ;;  %v4293_v21 = vsel %vm4171_vm12, %v4170_v18, %v16511_v30  ;;  %v4326_v8 = vsel %vm4294_vm13, %v4203_v9, %v16512_v7  ;;  %v16520_v51 = vld [vmem:[#allocation423_spill] sm:$0xff]  ;;  %v16523_v9 = vld [vmem:[#allocation456_spill] sm:$0xff] }
 0x676   : > { %v5518_v16 = vadd.f32 %v13340_v54, %v5517_v20  ;;  %v4358_v35 = vsel %vm4294_vm13, %v4233_v27, %v16513_v24  ;;  %v4390_v19 = vsel %vm4294_vm13, %v4263_v60, %v16514_v62  ;;  %v4422_v56 = vsel %vm4294_vm13, %v4293_v21, %v16515_v15  ;;  %v16518_v20 = vld [vmem:[#allocation390_spill] sm:$0xff] }
 0x677   : > { %v4455_v55 = vsel %vm4423_vm14, %v4326_v8, %v16516_v32  ;;  %v4487_v50 = vsel %vm4423_vm14, %v4358_v35, %v16517_v38  ;;  %v13787_v5 = vadd.f32 %v13340_v54, %v5435_v46  ;;  %v4519_v39 = vsel %vm4423_vm14, %v4390_v19, %v16518_v20  ;;  %v3836_v45 = vpop.permute.xlu0 %3835  ;;  %v16522_v46 = vld [vmem:[#allocation445_spill] sm:$0xff] }
 0x678   : > { %v13770_v61 = vmax.f32 %v5518_v16, 0.0  ;;  %v5275_v43 = vpop.f32.mrf.mxu0  ;;  %v4551_v40 = vsel %vm4423_vm14, %v4422_v56, %v16519_v47  ;;  %v6420_v16 = vrot.slane %v5661_v0, 1  ;;  %v4584_v37 = vsel %vm4552_vm15, %v4455_v55, %v16520_v51 }
 0x679   : > { %v5355_v29 = vpop.f32.mrf.mxu1  ;;  %v4616_v18 = vsel %vm4552_vm15, %v4487_v50, %v16521_v1  ;;  %v4648_v10 = vsel %vm4552_vm15, %v4519_v39, %v16522_v46  ;;  %v4680_v33 = vsel %vm4552_vm15, %v4551_v40, %v16523_v9  ;;  %v4713_v17 = vsel %vm4681_vm0, %v4584_v37, %v3714_v52  ;;  %v3958_v7 = vpop.permute.xlu1 %3957 }
 0x67a   : > { %v6421_v41 = vrot.slane %v13770_v61, 1  ;;  %v4775_v60 = vsel %vm4681_vm0, %v4648_v10, %v3714_v52  ;;  %v4806_v30 = vsel %vm4681_vm0, %v4680_v33, %v3714_v52  ;;  %v5629_v8 = vmax.f32 %v13787_v5, 0.0 }
 0x67b   : > { %v5437_v27 = vpop.f32.mrf.mxu2  ;;  %v4901_v35 = vsel %vm4807_vm2, %v4775_v60, %v3836_v45  ;;  %v4932_v62 = vsel %vm4807_vm2, %v4806_v30, %v3836_v45  ;;  %v13817_v15 = vadd.f32 %v13340_v54, %v5275_v43  ;;  %v4839_v32 = vsel %vm4807_vm2, %v4713_v17, %v3836_v45 }
 0x67c   : > { %v6422_v21 = vsel %vm2925_vm5, %v6420_v16, %v6421_v41  ;;  %v5438_v56 = vadd.f32 %v13340_v54, %v5437_v27  ;;  %v13822_v55 = vsel %vm5674_vm6, %v6421_v41, 0.0  ;;  %v5027_v50 = vsel %vm4933_vm1, %v4901_v35, %v3958_v7 }
 0x67d   : > { %v13810_v24 = vsel %vm4933_vm1, %v6422_v21, 0.0  ;;  %v5058_v20 = vsel %vm4933_vm1, %v4932_v62, %v3958_v7  ;;  %v4965_v39 = vsel %vm4933_vm1, %v4839_v32, %v3958_v7  ;;  %v4744_v47 = vsel %vm4681_vm0, %v4616_v18, %v3714_v52  ;;  %7669 = vmatmul.msk.bf16.gmra.mxu2 %vm5083_vm3, %v5027_v50 }
 0x67e   : > { %v7361_v19 = vadd.f32 %v13697_v34, %v13810_v24  ;;  %v13831_v43 = vmax.f32 %v5438_v56, 0.0  ;;  %7685 = vmatmul.msk.bf16.gmra.mxu3 %vm5083_vm3, %v5058_v20  ;;  %v4870_v16 = vsel %vm4807_vm2, %v4744_v47, %v3836_v45  ;;  %v6375_v41 = vrot.slane %v5629_v8, 1 }
 0x67f   : > { %v4996_v37 = vsel %vm4933_vm1, %v4870_v16, %v3958_v7  ;;  %v5565_v1 = vmax.f32 %v13817_v15, 0.0  ;;  %v13848_v45 = vadd.f32 %v13340_v54, %v5355_v29  ;;  %vm7464_vm4 = vcmask 523264  }
 0x680   : > { %v5277_v38 = vpop.f32.mrf.mxu0  ;;  %v13829_v34 = vadd.f32 %v7361_v19, %v13822_v55  ;;  %v6376_v51 = vrot.slane %v13831_v43, 1 }
 0x681   : > { %v5278_v40 = vadd.f32 %v13340_v54, %v5277_v38  ;;  %v5357_v52 = vpop.f32.mrf.mxu1  ;;  %v6285_v27 = vrot.slane %v5565_v1, 1  ;;  %v15228_v29 = vmax.f32 %v13848_v45, 0.0 }
 0x682   : > { %7637 = vmatmul.msk.bf16.gmra.mxu0 %vm5083_vm3, %v4965_v39  ;;  %v6377_v46 = vsel %vm2925_vm5, %v6375_v41, %v6376_v51  ;;  %v5358_v9 = vadd.f32 %v13340_v54, %v5357_v52  ;;  %v13859_v17 = vsel %vm5674_vm6, %v6376_v51, 0.0 }
 0x683   : > { %v13843_v18 = vmax.f32 %v5278_v40, 0.0  ;;  %7653 = vmatmul.msk.bf16.gmra.mxu1 %vm5083_vm3, %v4996_v37  ;;  %v13851_v10 = vsel %vm4933_vm1, %v6377_v46, 0.0  ;;  %v6330_v19 = vrot.slane %v15228_v29, 1 }
 0x684   : > { %v7326_v33 = vadd.f32 %v13651_v25, %v13851_v10  ;;  %v13865_v7 = vmax.f32 %v5358_v9, 0.0 }
 0x685   : > { %v6286_v60 = vrot.slane %v13843_v18, 1 }
 0x686   : > { %v7327_v30 = vadd.f32 %v7326_v33, %v13859_v17  ;;  %v6331_v32 = vrot.slane %v13865_v7, 1 }
 0x687   : > { %v6287_v21 = vsel %vm2925_vm5, %v6285_v27, %v6286_v60  ;;  %v13875_v56 = vsel %vm5674_vm6, %v6286_v60, 0.0 }
 0x688   : > { %v13868_v35 = vsel %vm4933_vm1, %v6287_v21, 0.0  ;;  %v6332_v20 = vsel %vm2925_vm5, %v6330_v19, %v6331_v32  ;;  %v13886_v47 = vsel %vm5674_vm6, %v6331_v32, 0.0 }
 0x689   : > { %v7256_v25 = vadd.f32 %v13747_v48, %v13868_v35  ;;  %v13881_v39 = vsel %vm4933_vm1, %v6332_v20, 0.0 }
 0x68a   : > { %v7291_v48 = vadd.f32 %v13732_v42, %v13881_v39 }
 0x68b   : > { %v7257_v38 = vadd.f32 %v7256_v25, %v13875_v56 }
 0x68c   : > { %v5440_v62 = vpop.f32.mrf.mxu2  ;;  %v13889_v40 = vadd.f32 %v7291_v48, %v13886_v47 }
 0x68d   : > { %v13892_v16 = vadd.f32 %v13340_v54, %v5440_v62 }
 0x68e   : > { %v5280_v50 = vpop.f32.mrf.mxu0 }
 0x68f   : > { %v13895_v52 = vadd.f32 %v13340_v54, %v5280_v50  ;;  %v15227_v33 = vmax.f32 %v13892_v16, 0.0 }
 0x691   : > { %v15226_v60 = vmax.f32 %v13895_v52, 0.0  ;;  %v6378_v25 = vrot.slane %v15227_v33, 1 }
 0x693   : > { %v5520_v41 = vpop.f32.mrf.mxu3  ;;  %v6288_v19 = vrot.slane %v15226_v60, 1 }
 0x694   : > { %v5442_v51 = vpop.f32.mrf.mxu2  ;;  %v13913_v48 = vadd.f32 %v13340_v54, %v5520_v41  ;;  %v5843_v41 = vsel %vm4933_vm1, %v5629_v8, 0.0 }
 0x695   : > { %v5443_v37 = vadd.f32 %v13340_v54, %v5442_v51  ;;  %v7046_v29 = vadd.f32 %v13615_v11, %v5843_v41  ;;  %v6790_v11 = vadd.f32 %v13810_v24, %v13695_v63 }
 0x696   : > { %v5282_v46 = vpop.f32.mrf.mxu0 }
 0x697   : > { %v5283_v9 = vadd.f32 %v13340_v54, %v5282_v46  ;;  %v5360_v42 = vpop.f32.mrf.mxu1  ;;  %v13900_v27 = vmax.f32 %v5443_v37, 0.0 }
 0x699   : > { %v13903_v21 = vmax.f32 %v5283_v9, 0.0  ;;  %v6379_v62 = vrot.slane %v13900_v27, 1  ;;  %v5908_v9 = vsel %vm4933_vm1, %v5661_v0, 0.0 }
 0x69a   : > { %v5909_v8 = vadd.f32 %v5908_v9, %v13669_v6  ;;  %v6114_v6 = vsel %vm4933_vm1, %v13770_v61, 0.0 }
 0x69b   : > { %v6289_v32 = vrot.slane %v13903_v21, 1  ;;  %v6380_v50 = vsel %vm2925_vm5, %v6378_v25, %v6379_v62  ;;  %v5522_v20 = vpop.f32.mrf.mxu3  ;;  %v13930_v25 = vsel %vm5674_vm6, %v6379_v62, 0.0  ;;  %v15229_v62 = vmax.f32 %v13913_v48, 0.0 }
 0x69c   : > { %v13916_v51 = vsel %vm4933_vm1, %v6380_v50, 0.0 }
 0x69d   : > { %v6290_v37 = vsel %vm2925_vm5, %v6288_v19, %v6289_v32  ;;  %v7328_v60 = vadd.f32 %v7327_v30, %v13916_v51  ;;  %v5523_v19 = vadd.f32 %v13340_v54, %v5522_v20  ;;  %v13938_v0 = vsel %vm5674_vm6, %v6289_v32, 0.0 }
 0x69e   : > { %v13924_v33 = vsel %vm4933_vm1, %v6290_v37, 0.0  ;;  %v13941_v30 = vadd.f32 %v13340_v54, %v5360_v42  ;;  %v7221_v20 = vadd.f32 %v13675_v57, %v5908_v9  ;;  %v5910_v32 = vsel %vm5674_vm6, %v13770_v61, 0.0 }
 0x69f   : > { %v5362_v46 = vpop.f32.mrf.mxu1  ;;  %v7258_v50 = vadd.f32 %v7257_v38, %v13924_v33  ;;  %v13935_v26 = vadd.f32 %v7328_v60, %v13930_v25  ;;  %v6113_v38 = vadd.f32 %v13671_v4, %v5908_v9  ;;  %v7081_v60 = vadd.f32 %v13673_v28, %v5908_v9 }
 0x6a0   : > { %v5363_v5 = vadd.f32 %v13340_v54, %v5362_v46  ;;  %v5844_v42 = vadd.f32 %v5843_v41, %v13611_v49  ;;  %v6063_v54 = vadd.f32 %v13613_v2, %v5843_v41  ;;  %v13958_v46 = vmax.f32 %v5523_v19, 0.0 }
 0x6a1   : > { %v13947_v37 = vadd.f32 %v7258_v50, %v13938_v0  ;;  %v5713_v4 = vsel %vm4933_vm1, %v5565_v1, 0.0  ;;  %v15230_v28 = vmax.f32 %v13941_v30, 0.0  ;;  %v7186_v49 = vadd.f32 %v13617_v59, %v5843_v41 }
 0x6a2   : > { %v13965_v57 = vmax.f32 %v5363_v5, 0.0  ;;  %v13968_v9 = vadd.f32 %v5910_v32, %v5909_v8  ;;  %v6423_v2 = vrot.slane %v15229_v62, 1  ;;  %v6424_v61 = vrot.slane %v13958_v46, 1 }
 0x6a3   : > { %v13973_v19 = vadd.f32 %v6114_v6, %v6113_v38  ;;  %v13977_v15 = vadd.f32 %v7081_v60, %v5910_v32  ;;  %v13979_v1 = vadd.f32 %v7221_v20, %v6114_v6  ;;  %v5714_v5 = vadd.f32 %v5713_v4, %v13714_v31 }
 0x6a4   : > { %v5963_v59 = vadd.f32 %v13718_v44, %v5713_v4  ;;  %v5845_v41 = vsel %vm5674_vm6, %v13831_v43, 0.0  ;;  %v6425_v8 = vsel %vm2925_vm5, %v6423_v2, %v6424_v61  ;;  %v6064_v38 = vsel %vm4933_vm1, %v13831_v43, 0.0 }
 0x6a5   : > { %v5445_v50 = vpop.f32.mrf.mxu2  ;;  %v6333_v62 = vrot.slane %v15230_v28, 1  ;;  %v13991_v63 = vsel %vm4933_vm1, %v6425_v8, 0.0  ;;  %v6334_v24 = vrot.slane %v13965_v57, 1  ;;  %v6976_v31 = vadd.f32 %v13720_v13, %v5713_v4 }
 0x6a6   : > { %v7116_v44 = vadd.f32 %v13724_v36, %v5713_v4  ;;  %v16524_v60 = vmax.f32 %v13848_v45, 0.0  ;;  %v7363_v32 = vadd.f32 %v13829_v34, %v13991_v63  ;;  %v14002_v43 = vadd.f32 %v13822_v55, %v6790_v11  ;;  %v14017_v34 = vld [vmem:[%s14808_s4] ss:$0 sm:$0xff] }
 0x6a7   : > { %v5846_v6 = vadd.f32 %v5845_v41, %v5844_v42  ;;  %v14005_v2 = vsel %vm5674_vm6, %v6424_v61, 0.0  ;;  %v6335_v8 = vsel %vm2925_vm5, %v6333_v62, %v6334_v24  ;;  %v6065_v28 = vadd.f32 %v6064_v38, %v6063_v54 }
 0x6a8   : > { %v5778_v20 = vsel %vm4933_vm1, %v16524_v60, 0.0  ;;  %16525 = vst [vmem:[#allocation47_spill] sm:$0xff] %v14005_v2  ;;  %v14009_v13 = vadd.f32 %v7363_v32, %v14005_v2  ;;  %v14012_v36 = vsel %vm4933_vm1, %v6335_v8, 0.0  ;;  %v14020_v55 = vadd.f32 %v14017_v34, %v5445_v50 }
 0x6a9   : > { %v7047_v42 = vadd.f32 %v7046_v29, %v5845_v41  ;;  %v7187_v4 = vadd.f32 %v7186_v49, %v6064_v38  ;;  %v5779_v62 = vadd.f32 %v5778_v20, %v13705_v53  ;;  %v7293_v54 = vadd.f32 %v13889_v40, %v14012_v36 }
 0x6aa   : > { %v6725_v11 = vadd.f32 %v13851_v10, %v13649_v22  ;;  %v6013_v60 = vadd.f32 %v13707_v12, %v5778_v20  ;;  %v5715_v32 = vsel %vm5674_vm6, %v13843_v18, 0.0  ;;  %v14031_v50 = vsel %vm5674_vm6, %v6334_v24, 0.0 }
 0x6ab   : > { %16526 = vst [vmem:[#allocation296_spill] sm:$0xff] %v14031_v50  ;;  %v7011_v29 = vadd.f32 %v13709_v23, %v5778_v20  ;;  %v5964_v53 = vsel %vm4933_vm1, %v13843_v18, 0.0  ;;  %v14037_v49 = vadd.f32 %v7293_v54, %v14031_v50  ;;  %v7151_v22 = vadd.f32 %v13711_v14, %v5778_v20 }
 0x6ac   : > { %v5780_v12 = vsel %vm5674_vm6, %v13865_v7, 0.0  ;;  %v6014_v10 = vsel %vm4933_vm1, %v13865_v7, 0.0  ;;  %v5716_v23 = vadd.f32 %v5715_v32, %v5714_v5  ;;  %v6595_v18 = vadd.f32 %v13868_v35, %v13745_v3 }
 0x6ad   : > { %v5447_v45 = vpop.f32.mrf.mxu2  ;;  %v6660_v24 = vadd.f32 %v13881_v39, %v13730_v58  ;;  %v6727_v14 = vadd.f32 %v13859_v17, %v6725_v11  ;;  %v5965_v20 = vadd.f32 %v5964_v53, %v5963_v59  ;;  %v6977_v54 = vadd.f32 %v6976_v31, %v5715_v32 }
 0x6ae   : > { %v5525_v61 = vpop.f32.mrf.mxu3  ;;  %v5448_v40 = vadd.f32 %v14017_v34, %v5447_v45  ;;  %v16527_v50 = vmax.f32 %v13892_v16, 0.0  ;;  %v7117_v41 = vadd.f32 %v7116_v44, %v5964_v53  ;;  %v14056_v2 = vadd.f32 %v5780_v12, %v5779_v62 }
 0x6af   : > { %v14058_v5 = vadd.f32 %v6014_v10, %v6013_v60  ;;  %v14060_v3 = vadd.f32 %v7011_v29, %v5780_v12  ;;  %v16528_v58 = vmax.f32 %v13895_v52, 0.0  ;;  %v16529_v39 = vmax.f32 %v14020_v55, 0.0 }
 0x6b0   : > { %v14050_v8 = vmax.f32 %v5448_v40, 0.0  ;;  %v5847_v7 = vsel %vm4933_vm1, %v16527_v50, 0.0  ;;  %v14068_v59 = vadd.f32 %v14017_v34, %v5525_v61  ;;  %v6597_v31 = vadd.f32 %v13875_v56, %v6595_v18 }
 0x6b1   : > { %v5365_v38 = vpop.f32.mrf.mxu1  ;;  %v5717_v35 = vsel %vm4933_vm1, %v16528_v58, 0.0  ;;  %v6381_v17 = vrot.slane %v16529_v39, 1  ;;  %v14073_v44 = vadd.f32 %v13886_v47, %v6660_v24  ;;  %v14075_v62 = vadd.f32 %v7151_v22, %v6014_v10 }
 0x6b2   : > { %v5285_v45 = vpop.f32.mrf.mxu0  ;;  %v6382_v16 = vrot.slane %v14050_v8, 1  ;;  %v5848_v11 = vadd.f32 %v5847_v7, %v5846_v6  ;;  %v6066_v52 = vadd.f32 %v6065_v28, %v5847_v7  ;;  %v7048_v32 = vadd.f32 %v7047_v42, %v5847_v7 }
 0x6b3   : > { %v7188_v50 = vadd.f32 %v7187_v4, %v5847_v7  ;;  %v5718_v53 = vadd.f32 %v5717_v35, %v5716_v23  ;;  %v5966_v40 = vadd.f32 %v5965_v20, %v5717_v35  ;;  %v6978_v61 = vadd.f32 %v6977_v54, %v5717_v35 }
 0x6b4   : > { %v6383_v29 = vsel %vm2925_vm5, %v6381_v17, %v6382_v16  ;;  %v16530_v56 = vmax.f32 %v13913_v48, 0.0  ;;  %v5665_v22 = vmax.f32 %v14068_v59, 0.0  ;;  %v5849_v4 = vsel %vm5674_vm6, %v13900_v27, 0.0 }
 0x6b5   : > { %v14079_v12 = vsel %vm4933_vm1, %v6383_v29, 0.0  ;;  %v14091_v10 = vsel %vm5674_vm6, %v6382_v16, 0.0  ;;  %v14094_v23 = vadd.f32 %v14017_v34, %v5365_v38  ;;  %v7118_v18 = vadd.f32 %v7117_v41, %v5717_v35 }
 0x6b6   : > { %v5527_v60 = vpop.f32.mrf.mxu3  ;;  %v5912_v47 = vsel %vm4933_vm1, %v16530_v56, 0.0  ;;  %v7330_v6 = vadd.f32 %v13935_v26, %v14079_v12  ;;  %v6067_v24 = vsel %vm4933_vm1, %v13900_v27, 0.0  ;;  %v14108_v17 = vadd.f32 %v5849_v4, %v5848_v11 }
 0x6b7   : > { %v5528_v28 = vadd.f32 %v14017_v34, %v5527_v60  ;;  %v5913_v7 = vadd.f32 %v5912_v47, %v13968_v9  ;;  %v6116_v58 = vadd.f32 %v13973_v19, %v5912_v47  ;;  %v7083_v39 = vadd.f32 %v13977_v15, %v5912_v47 }
 0x6b8   : > { %v14100_v26 = vadd.f32 %v7330_v6, %v14091_v10  ;;  %v7223_v38 = vadd.f32 %v13979_v1, %v5912_v47  ;;  %v6426_v41 = vrot.slane %v5665_v22, 1  ;;  %v14114_v35 = vadd.f32 %v14017_v34, %v5285_v45 }
 0x6b9   : > { %v5367_v42 = vpop.f32.mrf.mxu1  ;;  %v14102_v20 = vmax.f32 %v5528_v28, 0.0  ;;  %v5719_v16 = vsel %vm5674_vm6, %v13903_v21, 0.0  ;;  %v5601_v9 = vmax.f32 %v14094_v23, 0.0  ;;  %v6068_v1 = vadd.f32 %v6067_v24, %v6066_v52 }
 0x6ba   : > { %v5368_v48 = vadd.f32 %v14017_v34, %v5367_v42  ;;  %v5287_v54 = vpop.f32.mrf.mxu0  ;;  %v7049_v11 = vadd.f32 %v7048_v32, %v5849_v4  ;;  %v7189_v60 = vadd.f32 %v7188_v50, %v6067_v24  ;;  %v6729_v56 = vadd.f32 %v13916_v51, %v6727_v14 }
 0x6bb   : > { %v6427_v27 = vrot.slane %v14102_v20, 1  ;;  %v5288_v15 = vadd.f32 %v14017_v34, %v5287_v54  ;;  %v5967_v45 = vsel %vm4933_vm1, %v13903_v21, 0.0  ;;  %v6599_v47 = vadd.f32 %v13924_v33, %v6597_v31 }
 0x6bc   : > { %v14119_v19 = vmax.f32 %v5368_v48, 0.0  ;;  %v14130_v28 = vadd.f32 %v5719_v16, %v5718_v53  ;;  %v16531_v42 = vmax.f32 %v13941_v30, 0.0  ;;  %v5569_v50 = vmax.f32 %v14114_v35, 0.0 }
 0x6bd   : > { %v6428_v29 = vsel %vm2925_vm5, %v6426_v41, %v6427_v27  ;;  %v6336_v51 = vrot.slane %v5601_v9, 1  ;;  %v14141_v21 = vsel %vm5674_vm6, %v6427_v27, 0.0  ;;  %v14144_v14 = vmax.f32 %v5288_v15, 0.0 }
 0x6be   : > { %v14128_v6 = vsel %vm4933_vm1, %v6428_v29, 0.0  ;;  %v5782_v52 = vsel %vm4933_vm1, %v16531_v42, 0.0  ;;  %v6337_v33 = vrot.slane %v14119_v19, 1  ;;  %v14146_v31 = vadd.f32 %v5967_v45, %v5966_v40 }
 0x6bf   : > { %v7365_v32 = vadd.f32 %v14009_v13, %v14128_v6  ;;  %v14148_v30 = vadd.f32 %v6978_v61, %v5719_v16  ;;  %v14150_v53 = vadd.f32 %v7118_v18, %v5967_v45  ;;  %v6731_v4 = vadd.f32 %v13930_v25, %v6729_v56 }
 0x6c0   : > { %v14157_v48 = vadd.f32 %v13938_v0, %v6599_v47  ;;  %v5783_v24 = vadd.f32 %v5782_v52, %v14056_v2  ;;  %v6338_v54 = vsel %vm2925_vm5, %v6336_v51, %v6337_v33  ;;  %v6016_v41 = vadd.f32 %v14058_v5, %v5782_v52 }
 0x6c1   : > { %v14153_v13 = vadd.f32 %v7365_v32, %v14141_v21  ;;  %v6291_v40 = vrot.slane %v5569_v50, 1  ;;  %v14165_v61 = vsel %vm4933_vm1, %v6338_v54, 0.0  ;;  %v6292_v18 = vrot.slane %v14144_v14, 1 }
 0x6c2   : > { %v7013_v25 = vadd.f32 %v14060_v3, %v5782_v52  ;;  %v5914_v0 = vsel %vm5674_vm6, %v13958_v46, 0.0  ;;  %v6117_v2 = vsel %vm4933_vm1, %v13958_v46, 0.0  ;;  %v7295_v5 = vadd.f32 %v14037_v49, %v14165_v61 }
 0x6c3   : > { %v7153_v16 = vadd.f32 %v14075_v62, %v5782_v52  ;;  %v5784_v15 = vsel %vm5674_vm6, %v13965_v57, 0.0  ;;  %v14179_v29 = vsel %vm5674_vm6, %v6337_v33, 0.0  ;;  %v6293_v56 = vsel %vm2925_vm5, %v6291_v40, %v6292_v18 }
 0x6c4   : > { %v6794_v3 = vadd.f32 %v13991_v63, %v14002_v43  ;;  %v6017_v45 = vsel %vm4933_vm1, %v13965_v57, 0.0  ;;  %v14187_v46 = vadd.f32 %v7295_v5, %v14179_v29  ;;  %v14190_v49 = vsel %vm4933_vm1, %v6293_v56, 0.0 }
 0x6c5   : > { %v5530_v27 = vpop.f32.mrf.mxu3  ;;  %v5915_v62 = vadd.f32 %v5914_v0, %v5913_v7  ;;  %v6118_v47 = vadd.f32 %v6117_v2, %v6116_v58  ;;  %v7084_v42 = vadd.f32 %v7083_v39, %v5914_v0  ;;  %v7260_v52 = vadd.f32 %v13947_v37, %v14190_v49  ;;  %v16533_v58 = vld [vmem:[#allocation47_spill] sm:$0xff]  ;;  %v16534_v0 = vld [vmem:[#allocation296_spill] sm:$0xff] }
 0x6c6   : > { %v7224_v32 = vadd.f32 %v7223_v38, %v6117_v2  ;;  %v6664_v51 = vadd.f32 %v14012_v36, %v14073_v44  ;;  %v16532_v63 = vmax.f32 %v14020_v55, 0.0  ;;  %v14200_v43 = vsel %vm5674_vm6, %v6292_v18, 0.0 }
 0x6c7   : > { %v5785_v33 = vadd.f32 %v5784_v15, %v5783_v24  ;;  %v6018_v54 = vadd.f32 %v6017_v45, %v6016_v41  ;;  %v7014_v40 = vadd.f32 %v7013_v25, %v5784_v15  ;;  %v14203_v7 = vadd.f32 %v7260_v52, %v14200_v43 }
 0x6c8   : > { %v5851_v57 = vsel %vm4933_vm1, %v16532_v63, 0.0  ;;  %v6796_v39 = vadd.f32 %v16533_v58, %v6794_v3  ;;  %v7154_v37 = vadd.f32 %v7153_v16, %v6017_v45  ;;  %v5916_v36 = vsel %vm4933_vm1, %v5665_v22, 0.0 }
 0x6c9   : > { %v14210_v55 = vadd.f32 %v14017_v34, %v5530_v27  ;;  %v5852_v44 = vadd.f32 %v5851_v57, %v14108_v17  ;;  %v6069_v38 = vadd.f32 %v6068_v1, %v5851_v57  ;;  %v7050_v18 = vadd.f32 %v7049_v11, %v5851_v57 }
 0x6ca   : > { %v7190_v24 = vadd.f32 %v7189_v60, %v5851_v57  ;;  %v6666_v2 = vadd.f32 %v16534_v0, %v6664_v51  ;;  %v5853_v5 = vsel %vm5674_vm6, %v14050_v8, 0.0  ;;  %v6070_v59 = vsel %vm4933_vm1, %v14050_v8, 0.0 }
 0x6cb   : > { %v5917_v16 = vadd.f32 %v5916_v36, %v5915_v62  ;;  %v6119_v27 = vadd.f32 %v6118_v47, %v5916_v36  ;;  %v6733_v15 = vadd.f32 %v14079_v12, %v6731_v4  ;;  %v5786_v17 = vsel %vm4933_vm1, %v5601_v9, 0.0 }
 0x6cc   : > { %v7085_v1 = vadd.f32 %v7084_v42, %v5916_v36  ;;  %v7225_v11 = vadd.f32 %v7224_v32, %v5916_v36  ;;  %v5667_v60 = vmax.f32 %v14210_v55, 0.0  ;;  %v14226_v3 = vadd.f32 %v5853_v5, %v5852_v44 }
 0x6cd   : > { %v5450_v41 = vpop.f32.mrf.mxu2  ;;  %v5532_v25 = vpop.f32.mrf.mxu3  ;;  %v14228_v45 = vadd.f32 %v6070_v59, %v6069_v38  ;;  %v14230_v8 = vadd.f32 %v7050_v18, %v5853_v5  ;;  %v5721_v12 = vsel %vm4933_vm1, %v5569_v50, 0.0  ;;  %v14235_v4 = vadd.f32 %v7190_v24, %v6070_v59 }
 0x6ce   : > { %v5533_v22 = vadd.f32 %v14017_v34, %v5532_v25  ;;  %v5787_v23 = vadd.f32 %v5786_v17, %v5785_v33  ;;  %v5918_v9 = vsel %vm5674_vm6, %v14102_v20, 0.0  ;;  %v6120_v62 = vsel %vm4933_vm1, %v14102_v20, 0.0 }
 0x6cf   : > { %v14242_v47 = vadd.f32 %v14091_v10, %v6733_v15  ;;  %v6019_v42 = vadd.f32 %v6018_v54, %v5786_v17  ;;  %v7015_v52 = vadd.f32 %v7014_v40, %v5786_v17  ;;  %v7155_v32 = vadd.f32 %v7154_v37, %v5786_v17 }
 0x6d0   : > { %v14224_v56 = vmax.f32 %v5533_v22, 0.0  ;;  %v5722_v51 = vadd.f32 %v5721_v12, %v14130_v28  ;;  %v6429_v35 = vrot.slane %v5667_v60, 1  ;;  %v5451_v50 = vadd.f32 %v14017_v34, %v5450_v41 }
 0x6d1   : > { %v5919_v33 = vadd.f32 %v5918_v9, %v5917_v16  ;;  %v6121_v58 = vadd.f32 %v6120_v62, %v6119_v27  ;;  %v7086_v36 = vadd.f32 %v7085_v1, %v5918_v9  ;;  %v7226_v55 = vadd.f32 %v7225_v11, %v6120_v62 }
 0x6d2   : > { %v6430_v63 = vrot.slane %v14224_v56, 1  ;;  %v5788_v10 = vsel %vm5674_vm6, %v14119_v19, 0.0  ;;  %v6020_v20 = vsel %vm4933_vm1, %v14119_v19, 0.0  ;;  %v5969_v40 = vadd.f32 %v14146_v31, %v5721_v12 }
 0x6d3   : > { %v6980_v37 = vadd.f32 %v14148_v30, %v5721_v12  ;;  %v7120_v38 = vadd.f32 %v14150_v53, %v5721_v12  ;;  %v6798_v41 = vadd.f32 %v14128_v6, %v6796_v39  ;;  %v5635_v25 = vmax.f32 %v5451_v50, 0.0 }
 0x6d4   : > { %v5290_v57 = vpop.f32.mrf.mxu0  ;;  %v6431_v54 = vsel %vm2925_vm5, %v6429_v35, %v6430_v63  ;;  %v14261_v19 = vadd.f32 %v5788_v10, %v5787_v23  ;;  %v14263_v59 = vadd.f32 %v6020_v20, %v6019_v42  ;;  %v5723_v31 = vsel %vm5674_vm6, %v14144_v14, 0.0 }
 0x6d5   : > { %v5452_v44 = vpop.f32.mrf.mxu2  ;;  %v6801_v18 = vsel %vm4933_vm1, %v6431_v54, 0.0  ;;  %v6803_v30 = vsel %vm5674_vm6, %v6430_v63, 0.0  ;;  %v6668_v53 = vadd.f32 %v14165_v61, %v6666_v2  ;;  %v5970_v22 = vsel %vm4933_vm1, %v14144_v14, 0.0 }
 0x6d6   : > { %v5453_v28 = vadd.f32 %v14017_v34, %v5452_v44  ;;  %v7367_v0 = vadd.f32 %v14153_v13, %v6801_v18  ;;  %v6603_v6 = vadd.f32 %v14190_v49, %v14157_v48  ;;  %v14275_v39 = vadd.f32 %v7015_v52, %v5788_v10 }
 0x6d7   : > { %v5370_v24 = vpop.f32.mrf.mxu1  ;;  %v14277_v16 = vadd.f32 %v7155_v32, %v6020_v20  ;;  %v5920_v27 = vsel %vm4933_vm1, %v5667_v60, 0.0  ;;  %v5291_v15 = vadd.f32 %v14017_v34, %v5290_v57  ;;  %v6800_v17 = vadd.f32 %v14141_v21, %v6798_v41 }
 0x6d8   : > { %v14259_v5 = vmax.f32 %v5453_v28, 0.0  ;;  %v14273_v13 = vadd.f32 %v7367_v0, %v6803_v30  ;;  %v5724_v1 = vadd.f32 %v5723_v31, %v5722_v51  ;;  %v6384_v61 = vrot.slane %v5635_v25, 1 }
 0x6d9   : > { %v5971_v11 = vadd.f32 %v5970_v22, %v5969_v40  ;;  %v6981_v12 = vadd.f32 %v6980_v37, %v5723_v31  ;;  %v7121_v48 = vadd.f32 %v7120_v38, %v5970_v22  ;;  %v14285_v23 = vadd.f32 %v14179_v29, %v6668_v53 }
 0x6da   : > { %v6385_v2 = vrot.slane %v14259_v5, 1  ;;  %v14288_v9 = vadd.f32 %v14200_v43, %v6603_v6  ;;  %v5921_v60 = vadd.f32 %v5920_v27, %v5919_v33  ;;  %v5855_v21 = vsel %vm4933_vm1, %v5635_v25, 0.0 }
 0x6db   : > { %v5571_v42 = vmax.f32 %v5291_v15, 0.0  ;;  %v6122_v51 = vadd.f32 %v6121_v58, %v5920_v27  ;;  %v7087_v35 = vadd.f32 %v7086_v36, %v5920_v27  ;;  %v5371_v63 = vadd.f32 %v14017_v34, %v5370_v24 }
 0x6dc   : > { %v5292_v14 = vpop.f32.mrf.mxu0  ;;  %v6386_v62 = vsel %vm2925_vm5, %v6384_v61, %v6385_v2  ;;  %v7227_v57 = vadd.f32 %v7226_v55, %v5920_v27  ;;  %v5922_v43 = vsel %vm5674_vm6, %v14224_v56, 0.0  ;;  %v6123_v33 = vsel %vm4933_vm1, %v14224_v56, 0.0 }
 0x6dd   : > { %v5293_v49 = vadd.f32 %v14017_v34, %v5292_v14  ;;  %v6736_v52 = vsel %vm4933_vm1, %v6386_v62, 0.0  ;;  %v6738_v44 = vsel %vm5674_vm6, %v6385_v2, 0.0  ;;  %v5856_v10 = vadd.f32 %v5855_v21, %v14226_v3 }
 0x6de   : > { %v7332_v50 = vadd.f32 %v14100_v26, %v6736_v52  ;;  %v6072_v20 = vadd.f32 %v14228_v45, %v5855_v21  ;;  %v6802_v58 = vadd.f32 %v6801_v18, %v6800_v17  ;;  %v7052_v26 = vadd.f32 %v14230_v8, %v5855_v21 }
 0x6df   : > { %v5572_v32 = vmax.f32 %v5293_v49, 0.0  ;;  %v5372_v29 = vpop.f32.mrf.mxu1  ;;  %v6294_v54 = vrot.slane %v5571_v42, 1  ;;  %v7192_v40 = vadd.f32 %v14235_v4, %v5855_v21  ;;  %v14307_v37 = vadd.f32 %v5922_v43, %v5921_v60 }
 0x6e0   : > { %v14302_v36 = vadd.f32 %v7332_v50, %v6738_v44  ;;  %v5373_v55 = vadd.f32 %v14017_v34, %v5372_v29  ;;  %v5725_v56 = vsel %vm4933_vm1, %v5571_v42, 0.0  ;;  %v5603_v38 = vmax.f32 %v5371_v63, 0.0 }
 0x6e1   : > { %v6295_v28 = vrot.slane %v5572_v32, 1  ;;  %v14310_v3 = vadd.f32 %v6123_v33, %v6122_v51  ;;  %v14312_v45 = vadd.f32 %v7087_v35, %v5922_v43  ;;  %v14315_v8 = vadd.f32 %v6803_v30, %v6802_v58 }
 0x6e2   : > { %v5604_v41 = vmax.f32 %v5373_v55, 0.0  ;;  %v14317_v25 = vadd.f32 %v7227_v57, %v6123_v33  ;;  %v5726_v31 = vadd.f32 %v5725_v56, %v5724_v1  ;;  %v5972_v53 = vadd.f32 %v5971_v11, %v5725_v56 }
 0x6e3   : > { %v6296_v18 = vsel %vm2925_vm5, %v6294_v54, %v6295_v28  ;;  %v5857_v22 = vsel %vm5674_vm6, %v14259_v5, 0.0  ;;  %v6073_v27 = vsel %vm4933_vm1, %v14259_v5, 0.0  ;;  %v6339_v15 = vrot.slane %v5603_v38, 1 }
 0x6e4   : > { %v5455_v24 = vpop.f32.mrf.mxu2  ;;  %v6606_v0 = vsel %vm4933_vm1, %v6296_v18, 0.0  ;;  %v6608_v30 = vsel %vm5674_vm6, %v6295_v28, 0.0  ;;  %v6340_v17 = vrot.slane %v5604_v41, 1  ;;  %v6982_v61 = vadd.f32 %v6981_v12, %v5725_v56 }
 0x6e5   : > { %v5456_v4 = vadd.f32 %v14017_v34, %v5455_v24  ;;  %v7262_v6 = vadd.f32 %v14203_v7, %v6606_v0  ;;  %v7122_v2 = vadd.f32 %v7121_v48, %v5725_v56  ;;  %v5790_v14 = vsel %vm4933_vm1, %v5603_v38, 0.0 }
 0x6e6   : > { %v5858_v1 = vadd.f32 %v5857_v22, %v5856_v10  ;;  %v6737_v11 = vadd.f32 %v6736_v52, %v14242_v47  ;;  %v6341_v60 = vsel %vm2925_vm5, %v6339_v15, %v6340_v17  ;;  %v6074_v7 = vadd.f32 %v6073_v27, %v6072_v20 }
 0x6e7   : > { %v14328_v49 = vadd.f32 %v7262_v6, %v6608_v30  ;;  %v5637_v62 = vmax.f32 %v5456_v4, 0.0  ;;  %v7053_v21 = vadd.f32 %v7052_v26, %v5857_v22  ;;  %v7193_v42 = vadd.f32 %v7192_v40, %v6073_v27 }
 0x6e8   : > { %v6671_v5 = vsel %vm4933_vm1, %v6341_v60, 0.0  ;;  %v5791_v51 = vadd.f32 %v5790_v14, %v14261_v19  ;;  %v6022_v12 = vadd.f32 %v14263_v59, %v5790_v14  ;;  %v7017_v48 = vadd.f32 %v14275_v39, %v5790_v14 }
 0x6e9   : > { %v7297_v35 = vadd.f32 %v14187_v46, %v6671_v5  ;;  %v5727_v47 = vsel %vm5674_vm6, %v5572_v32, 0.0  ;;  %v5973_v52 = vsel %vm4933_vm1, %v5572_v32, 0.0  ;;  %v6673_v29 = vsel %vm5674_vm6, %v6340_v17, 0.0 }
 0x6ea   : > { %v6739_v43 = vadd.f32 %v6738_v44, %v6737_v11  ;;  %v7157_v33 = vadd.f32 %v14277_v16, %v5790_v14  ;;  %v5859_v59 = vsel %vm4933_vm1, %v5637_v62, 0.0  ;;  %v5792_v39 = vsel %vm5674_vm6, %v5604_v41, 0.0 }
 0x6eb   : > { %v14342_v19 = vadd.f32 %v7297_v35, %v6673_v29  ;;  %v6023_v46 = vsel %vm4933_vm1, %v5604_v41, 0.0  ;;  %v14348_v58 = vadd.f32 %v5727_v47, %v5726_v31  ;;  %v14350_v32 = vadd.f32 %v5973_v52, %v5972_v53 }
 0x6ec   : > { %v5535_v50 = vpop.f32.mrf.mxu3  ;;  %v5457_v63 = vpop.f32.mrf.mxu2  ;;  %v6607_v26 = vadd.f32 %v6606_v0, %v14288_v9  ;;  %v14353_v44 = vadd.f32 %v6982_v61, %v5727_v47  ;;  %v5860_v54 = vadd.f32 %v5859_v59, %v5858_v1  ;;  %v6075_v28 = vadd.f32 %v6074_v7, %v5859_v59 }
 0x6ed   : > { %v5458_v57 = vadd.f32 %v14017_v34, %v5457_v63  ;;  %v5536_v10 = vadd.f32 %v14017_v34, %v5535_v50  ;;  %v7123_v56 = vadd.f32 %v7122_v2, %v5973_v52  ;;  %v14357_v38 = vadd.f32 %v5792_v39, %v5791_v51 }
 0x6ee   : > { %v14359_v24 = vadd.f32 %v6023_v46, %v6022_v12  ;;  %v6387_v18 = vrot.slane %v5637_v62, 1  ;;  %v14365_v53 = vadd.f32 %v6608_v30, %v6607_v26  ;;  %v6672_v22 = vadd.f32 %v6671_v5, %v14285_v23 }
 0x6ef   : > { %v5638_v20 = vmax.f32 %v5458_v57, 0.0  ;;  %v5295_v16 = vpop.f32.mrf.mxu0  ;;  %v5669_v4 = vmax.f32 %v5536_v10, 0.0  ;;  %v14368_v6 = vadd.f32 %v7017_v48, %v5792_v39  ;;  %v14371_v17 = vadd.f32 %v7157_v33, %v6023_v46 }
 0x6f0   : > { %v5375_v41 = vpop.f32.mrf.mxu1  ;;  %v5296_v27 = vadd.f32 %v14017_v34, %v5295_v16  ;;  %v7054_v1 = vadd.f32 %v7053_v21, %v5859_v59  ;;  %v14381_v51 = vadd.f32 %v6673_v29, %v6672_v22  ;;  %v7194_v12 = vadd.f32 %v7193_v42, %v5859_v59 }
 0x6f1   : > { %v5861_v55 = vsel %vm5674_vm6, %v5638_v20, 0.0  ;;  %v6076_v40 = vsel %vm4933_vm1, %v5638_v20, 0.0  ;;  %v6388_v0 = vrot.slane %v5638_v20, 1  ;;  %v5376_v14 = vadd.f32 %v14017_v34, %v5375_v41 }
 0x6f2   : > { %v14361_v31 = vadd.f32 %v5861_v55, %v5860_v54  ;;  %v14363_v9 = vadd.f32 %v6076_v40, %v6075_v28  ;;  %v5924_v60 = vsel %vm4933_vm1, %v5669_v4, 0.0  ;;  %v5573_v5 = vmax.f32 %v5296_v27, 0.0 }
 0x6f3   : > { %v6389_v2 = vsel %vm2925_vm5, %v6387_v18, %v6388_v0  ;;  %v6742_v48 = vsel %vm5674_vm6, %v6388_v0, 0.0  ;;  %v6432_v50 = vrot.slane %v5669_v4, 1  ;;  %v5605_v47 = vmax.f32 %v5376_v14, 0.0 }
 0x6f4   : > { %v5537_v15 = vpop.f32.mrf.mxu3  ;;  %v5863_v61 = vrot.slane %v14361_v31, 4  ;;  %v6078_v11 = vrot.slane %v14363_v9, 4  ;;  %v6740_v30 = vsel %vm4933_vm1, %v6389_v2, 0.0  ;;  %v5925_v57 = vadd.f32 %v5924_v60, %v14307_v37 }
 0x6f5   : > { %v5538_v23 = vadd.f32 %v14017_v34, %v5537_v15  ;;  %v6741_v62 = vadd.f32 %v6740_v30, %v6739_v43  ;;  %v7334_v7 = vadd.f32 %v14302_v36, %v6740_v30  ;;  %v6125_v43 = vadd.f32 %v14310_v3, %v5924_v60 }
 0x6f6   : > { %v14385_v21 = vadd.f32 %v5863_v61, %v14361_v31  ;;  %v14392_v36 = vadd.f32 %v6078_v11, %v14363_v9  ;;  %v7089_v42 = vadd.f32 %v14312_v45, %v5924_v60  ;;  %v7229_v33 = vadd.f32 %v14317_v25, %v5924_v60 }
 0x6f7   : > { %v5670_v35 = vmax.f32 %v5538_v23, 0.0  ;;  %v14387_v63 = vadd.f32 %v7334_v7, %v6742_v48  ;;  %v5297_v52 = vpop.f32.mrf.mxu0  ;;  %v14394_v29 = vadd.f32 %v6742_v48, %v6741_v62  ;;  %v5729_v59 = vsel %vm4933_vm1, %v5573_v5, 0.0 }
 0x6f8   : > { %16535 = vst [vmem:[#allocation361_spill] sm:$0xff] %v14385_v21  ;;  %v14399_v46 = vadd.f32 %v7054_v1, %v5861_v55  ;;  %v14401_v10 = vadd.f32 %v7194_v12, %v6076_v40  ;;  %v5377_v20 = vpop.f32.mrf.mxu1  ;;  %v6297_v16 = vrot.slane %v5573_v5, 1  ;;  %v5794_v45 = vsel %vm4933_vm1, %v5605_v47, 0.0 }
 0x6f9   : > { %v6433_v39 = vrot.slane %v5670_v35, 1  ;;  %v5926_v37 = vsel %vm5674_vm6, %v5670_v35, 0.0  ;;  %v6126_v3 = vsel %vm4933_vm1, %v5670_v35, 0.0  ;;  %v6744_v28 = vrot.slane %v14394_v29, 4 }
 0x6fa   : > { %v5730_v55 = vadd.f32 %v5729_v59, %v14348_v58  ;;  %v5975_v18 = vadd.f32 %v14350_v32, %v5729_v59  ;;  %v14413_v41 = vadd.f32 %v5926_v37, %v5925_v57  ;;  %v14415_v4 = vadd.f32 %v6126_v3, %v6125_v43 }
 0x6fb   : > { %v6434_v54 = vsel %vm2925_vm5, %v6432_v50, %v6433_v39  ;;  %v14419_v22 = vadd.f32 %v14353_v44, %v5729_v59  ;;  %v14421_v27 = vadd.f32 %v7123_v56, %v5729_v59  ;;  %v6807_v15 = vsel %vm5674_vm6, %v6433_v39, 0.0 }
 0x6fc   : > { %v6805_v40 = vsel %vm4933_vm1, %v6434_v54, 0.0  ;;  %v5298_v61 = vadd.f32 %v14017_v34, %v5297_v52  ;;  %v14426_v2 = vadd.f32 %v7089_v42, %v5926_v37  ;;  %v5378_v14 = vadd.f32 %v14017_v34, %v5377_v20 }
 0x6fd   : > { %v7369_v0 = vadd.f32 %v14273_v13, %v6805_v40  ;;  %v6806_v58 = vadd.f32 %v6805_v40, %v14315_v8  ;;  %v14432_v1 = vadd.f32 %v6744_v28, %v14394_v29  ;;  %v14434_v13 = vadd.f32 %v7229_v33, %v6126_v3 }
 0x6fe   : > { %v5795_v44 = vadd.f32 %v5794_v45, %v14357_v38  ;;  %v5574_v56 = vmax.f32 %v5298_v61, 0.0  ;;  %v5928_v11 = vrot.slane %v14413_v41, 4  ;;  %v6128_v30 = vrot.slane %v14415_v4, 4 }
 0x6ff   : > { %v14428_v32 = vadd.f32 %v7369_v0, %v6807_v15  ;;  %16536 = vst [vmem:[#allocation413_spill] sm:$0xff] %v14432_v1  ;;  %v6025_v8 = vadd.f32 %v14359_v24, %v5794_v45  ;;  %v5606_v23 = vmax.f32 %v5378_v14, 0.0  ;;  %v5300_v60 = vpop.f32.mrf.mxu0  ;;  %v6342_v62 = vrot.slane %v5605_v47, 1 }
 0x700   : > { %v5731_v7 = vsel %vm5674_vm6, %v5574_v56, 0.0  ;;  %v5976_v5 = vsel %vm4933_vm1, %v5574_v56, 0.0  ;;  %v6298_v12 = vrot.slane %v5574_v56, 1  ;;  %v14442_v48 = vadd.f32 %v6807_v15, %v6806_v58  ;;  %v5380_v43 = vpop.f32.mrf.mxu1  ;;  %v5460_v14 = vpop.f32.mrf.mxu2 }
 0x701   : > { %v7019_v35 = vadd.f32 %v14368_v6, %v5794_v45  ;;  %v14445_v38 = vadd.f32 %v5731_v7, %v5730_v55  ;;  %v5977_v50 = vadd.f32 %v5976_v5, %v5975_v18  ;;  %v5796_v57 = vsel %vm5674_vm6, %v5606_v23, 0.0 }
 0x702   : > { %v6299_v52 = vsel %vm2925_vm5, %v6297_v16, %v6298_v12  ;;  %v6026_v24 = vsel %vm4933_vm1, %v5606_v23, 0.0  ;;  %v5301_v47 = vadd.f32 %v14017_v34, %v5300_v60  ;;  %v14453_v39 = vadd.f32 %v5796_v57, %v5795_v44 }
 0x703   : > { %v5733_v42 = vrot.slane %v14445_v38, 4  ;;  %v5978_v33 = vrot.slane %v5977_v50, 4  ;;  %v6610_v59 = vsel %vm4933_vm1, %v6299_v52, 0.0  ;;  %v6027_v3 = vadd.f32 %v6026_v24, %v6025_v8 }
 0x704   : > { %v6611_v6 = vadd.f32 %v6610_v59, %v14365_v53  ;;  %v7264_v37 = vadd.f32 %v14328_v49, %v6610_v59  ;;  %v6343_v20 = vrot.slane %v5606_v23, 1  ;;  %v6612_v54 = vsel %vm5674_vm6, %v6298_v12, 0.0 }
 0x705   : > { %v5734_v16 = vadd.f32 %v5733_v42, %v14445_v38  ;;  %v5798_v28 = vrot.slane %v14453_v39, 4  ;;  %v5381_v55 = vadd.f32 %v14017_v34, %v5380_v43  ;;  %v6028_v0 = vrot.slane %v6027_v3, 4 }
 0x706   : > { %v14461_v40 = vadd.f32 %v6612_v54, %v6611_v6  ;;  %v14463_v18 = vadd.f32 %v7264_v37, %v6612_v54  ;;  %v6344_v15 = vsel %vm2925_vm5, %v6342_v62, %v6343_v20  ;;  %v5979_v53 = vadd.f32 %v5978_v33, %v5977_v50 }
 0x707   : > { %v5799_v49 = vadd.f32 %v5798_v28, %v14453_v39  ;;  %v6675_v61 = vsel %vm4933_vm1, %v6344_v15, 0.0  ;;  %v5575_v58 = vmax.f32 %v5301_v47, 0.0  ;;  %v14469_v44 = vadd.f32 %v5928_v11, %v14413_v41 }
 0x708   : > { %v14472_v56 = vadd.f32 %v6128_v30, %v14415_v4  ;;  %v7159_v8 = vadd.f32 %v14371_v17, %v5794_v45  ;;  %v6676_v23 = vadd.f32 %v6675_v61, %v14381_v51  ;;  %v6614_v62 = vrot.slane %v14461_v40, 4  ;;  %v5540_v51 = vpop.f32.mrf.mxu3 }
 0x709   : > { %16537 = vst [vmem:[#allocation16_spill] sm:$0xff] %v14469_v44  ;;  %v6029_v12 = vadd.f32 %v6028_v0, %v6027_v3  ;;  %v6677_v52 = vsel %vm5674_vm6, %v6343_v20, 0.0  ;;  %v5735_v43 = vrot.slane %v5734_v16, 2  ;;  %v7299_v11 = vadd.f32 %v14342_v19, %v6675_v61 }
 0x70a   : > { %v14479_v47 = vadd.f32 %v6677_v52, %v6676_v23  ;;  %v5607_v42 = vmax.f32 %v5381_v55, 0.0  ;;  %v5980_v33 = vrot.slane %v5979_v53, 2  ;;  %v5800_v30 = vrot.slane %v5799_v49, 2  ;;  %v5302_v23 = vpop.f32.mrf.mxu0 }
 0x70b   : > { %v6815_v59 = vsel %vm4933_vm1, %v5575_v58, 0.0  ;;  %v5461_v17 = vadd.f32 %v14017_v34, %v5460_v14  ;;  %v6985_v45 = vadd.f32 %v14419_v22, %v5731_v7  ;;  %v7125_v6 = vadd.f32 %v14421_v27, %v5976_v5 }
 0x70c   : > { %v6679_v37 = vrot.slane %v14479_v47, 4  ;;  %v14487_v20 = vadd.f32 %v7299_v11, %v6677_v52  ;;  %v14490_v54 = vadd.f32 %v6614_v62, %v14461_v40  ;;  %v6030_v19 = vrot.slane %v6029_v12, 2 }
 0x70d   : > { %v7020_v28 = vadd.f32 %v7019_v35, %v5796_v57  ;;  %v6855_v55 = vadd.f32 %v6815_v59, %v5977_v50  ;;  %v14492_v0 = vadd.f32 %v5735_v43, %v5734_v16  ;;  %v5639_v15 = vmax.f32 %v5461_v17, 0.0 }
 0x70e   : > { %v5541_v61 = vadd.f32 %v14017_v34, %v5540_v51  ;;  %v14496_v14 = vsel %vm4933_vm1, %v5607_v42, 0.0  ;;  %v14498_v22 = vadd.f32 %v5980_v33, %v5979_v53  ;;  %v14500_v27 = vadd.f32 %v5800_v30, %v5799_v49  ;;  %v5462_v49 = vpop.f32.mrf.mxu2 }
 0x70f   : > { %16538 = vst [vmem:[#allocation99_spill] sm:$0xff] %v14492_v0  ;;  %v14502_v7 = vadd.f32 %v7159_v8, %v6026_v24  ;;  %v14505_v5 = vadd.f32 %v14496_v14, %v6027_v3  ;;  %v14508_v35 = vadd.f32 %v6679_v37, %v14479_v47  ;;  %v6899_v50 = vrot.slane %v5575_v58, 1 }
 0x710   : > { %16539 = vst [vmem:[#allocation208_spill] sm:$0xff] %v14500_v27  ;;  %v6835_v57 = vsel %vm4933_vm1, %v5639_v15, 0.0  ;;  %v5671_v16 = vmax.f32 %v5541_v61, 0.0  ;;  %v14512_v52 = vadd.f32 %v6030_v19, %v6029_v12  ;;  %v6816_v53 = vadd.f32 %v6815_v59, %v14445_v38 }
 0x711   : > { %16540 = vst [vmem:[#allocation229_spill] sm:$0xff] %v14508_v35  ;;  %v6873_v24 = vadd.f32 %v6835_v57, %v14363_v9  ;;  %v6986_v8 = vadd.f32 %v6985_v45, %v6815_v59  ;;  %v7126_v3 = vadd.f32 %v7125_v6, %v6815_v59  ;;  %v5303_v11 = vadd.f32 %v14017_v34, %v5302_v23  ;;  %v5382_v35 = vpop.f32.mrf.mxu1 }
 0x712   : > { %v6845_v43 = vsel %vm4933_vm1, %v5671_v16, 0.0  ;;  %v14523_v33 = vadd.f32 %v14496_v14, %v14453_v39  ;;  %v14525_v12 = vrot.slane %v5607_v42, 1  ;;  %v14528_v38 = vadd.f32 %v7020_v28, %v14496_v14 }
 0x713   : > { %v14519_v58 = vadd.f32 %v6845_v43, %v14415_v4  ;;  %v14531_v30 = vrot.slane %v5639_v15, 1  ;;  %v5576_v59 = vmax.f32 %v5303_v11, 0.0  ;;  %v5463_v17 = vadd.f32 %v14017_v34, %v5462_v49 }
 0x714   : > { %v6836_v51 = vadd.f32 %v6835_v57, %v14361_v31  ;;  %v7056_v4 = vadd.f32 %v14399_v46, %v6835_v57  ;;  %v7196_v45 = vadd.f32 %v14401_v10, %v6835_v57  ;;  %v14537_v39 = vrot.slane %v5671_v16, 1 }
 0x715   : > { %v6817_v42 = vsel %vm5674_vm6, %v5576_v59, 0.0  ;;  %v6856_v6 = vsel %vm4933_vm1, %v5576_v59, 0.0  ;;  %v6900_v37 = vrot.slane %v5576_v59, 1  ;;  %v14541_v19 = vmax.f32 %v5463_v17, 0.0 }
 0x716   : > { %v6818_v28 = vadd.f32 %v6817_v42, %v6816_v53  ;;  %v6857_v15 = vadd.f32 %v6856_v6, %v6855_v55  ;;  %v6987_v61 = vadd.f32 %v6986_v8, %v6817_v42  ;;  %v7127_v23 = vadd.f32 %v7126_v3, %v6856_v6 }
 0x717   : > { %v6901_v49 = vsel %vm2925_vm5, %v6899_v50, %v6900_v37  ;;  %v6921_v31 = vsel %vm5674_vm6, %v6900_v37, 0.0  ;;  %v6837_v46 = vsel %vm5674_vm6, %v14541_v19, 0.0  ;;  %v6874_v10 = vsel %vm4933_vm1, %v14541_v19, 0.0 }
 0x718   : > { %v6819_v57 = vrot.slane %v6818_v28, 4  ;;  %v6858_v16 = vrot.slane %v6857_v15, 4  ;;  %v6919_v11 = vsel %vm4933_vm1, %v6901_v49, 0.0  ;;  %v6988_v59 = vrot.slane %v6987_v61, 4  ;;  %v5542_v49 = vpop.f32.mrf.mxu3 }
 0x719   : > { %v6920_v53 = vadd.f32 %v6919_v11, %v14461_v40  ;;  %v7128_v55 = vrot.slane %v7127_v23, 4  ;;  %v7266_v8 = vadd.f32 %v14463_v18, %v6919_v11  ;;  %v6838_v3 = vadd.f32 %v6837_v46, %v6836_v51 }
 0x71a   : > { %v6820_v50 = vadd.f32 %v6819_v57, %v6818_v28  ;;  %v6859_v17 = vadd.f32 %v6858_v16, %v6857_v15  ;;  %v6989_v42 = vadd.f32 %v6988_v59, %v6987_v61  ;;  %v6875_v6 = vadd.f32 %v6874_v10, %v6873_v24 }
 0x71b   : > { %v6922_v37 = vadd.f32 %v6921_v31, %v6920_v53  ;;  %v7129_v26 = vadd.f32 %v7128_v55, %v7127_v23  ;;  %v7267_v60 = vadd.f32 %v7266_v8, %v6921_v31  ;;  %v6839_v9 = vrot.slane %v6838_v3, 4 }
 0x71c   : > { %v6821_v62 = vrot.slane %v6820_v50, 2  ;;  %v6860_v25 = vrot.slane %v6859_v17, 2  ;;  %v6990_v0 = vrot.slane %v6989_v42, 2  ;;  %v6876_v44 = vrot.slane %v6875_v6, 4 }
 0x71d   : > { %v6923_v21 = vrot.slane %v6922_v37, 4  ;;  %v7130_v27 = vrot.slane %v7129_v26, 2  ;;  %v7268_v40 = vrot.slane %v7267_v60, 4  ;;  %v6840_v1 = vadd.f32 %v6839_v9, %v6838_v3 }
 0x71e   : > { %v6846_v18 = vadd.f32 %v6845_v43, %v14413_v41  ;;  %v14555_v51 = vadd.f32 %v14502_v7, %v14496_v14  ;;  %v14557_v24 = vadd.f32 %v6821_v62, %v6820_v50  ;;  %v14559_v28 = vadd.f32 %v6860_v25, %v6859_v17 }
 0x71f   : > { %v7091_v15 = vadd.f32 %v14426_v2, %v6845_v43  ;;  %v14562_v61 = vadd.f32 %v6990_v0, %v6989_v42  ;;  %v6877_v23 = vadd.f32 %v6876_v44, %v6875_v6  ;;  %v5543_v31 = vadd.f32 %v14017_v34, %v5542_v49 }
 0x720   : > { %v7231_v9 = vadd.f32 %v14434_v13, %v6845_v43  ;;  %v6924_v57 = vadd.f32 %v6923_v21, %v6922_v37  ;;  %v14566_v16 = vadd.f32 %v7130_v27, %v7129_v26  ;;  %v5383_v41 = vadd.f32 %v14017_v34, %v5382_v35 }
 0x721   : > { %v7269_v14 = vadd.f32 %v7268_v40, %v7267_v60  ;;  %v6841_v7 = vrot.slane %v6840_v1, 2  ;;  %v5982_v62 = vrot.slane %v14498_v22, 1  ;;  %v16541_v25 = vrot.slane %v14392_v36, 2 }
 0x722   : > { %v6823_v44 = vrot.slane %v14557_v24, 1  ;;  %v6862_v0 = vrot.slane %v14559_v28, 1  ;;  %v6906_v13 = vrot.slane %v14541_v19, 1  ;;  %v7057_v21 = vadd.f32 %v7056_v4, %v6837_v46 }
 0x723   : > { %v14573_v2 = vadd.f32 %v16541_v25, %v14392_v36  ;;  %v6992_v26 = vrot.slane %v14562_v61, 1  ;;  %v6878_v27 = vrot.slane %v6877_v23, 2  ;;  %v7197_v34 = vadd.f32 %v7196_v45, %v6874_v10 }
 0x724   : > { %v5672_v60 = vmax.f32 %v5543_v31, 0.0  ;;  %v6925_v35 = vrot.slane %v6924_v57, 2  ;;  %v7132_v43 = vrot.slane %v14566_v16, 1  ;;  %v6907_v11 = vsel %vm2925_vm5, %v14531_v30, %v6906_v13 }
 0x725   : > { %v7058_v36 = vrot.slane %v7057_v21, 4  ;;  %v7270_v59 = vrot.slane %v7269_v14, 2  ;;  %v6939_v53 = vsel %vm4933_vm1, %v6907_v11, 0.0  ;;  %v7198_v55 = vrot.slane %v7197_v34, 4 }
 0x726   : > { %v6847_v8 = vsel %vm5674_vm6, %v5672_v60, 0.0  ;;  %v6940_v4 = vadd.f32 %v6939_v53, %v14394_v29  ;;  %v7336_v46 = vadd.f32 %v14387_v63, %v6939_v53  ;;  %v6941_v10 = vsel %vm5674_vm6, %v6906_v13, 0.0 }
 0x727   : > { %v7059_v19 = vadd.f32 %v7058_v36, %v7057_v21  ;;  %v6848_v45 = vadd.f32 %v6847_v8, %v6846_v18  ;;  %v7199_v3 = vadd.f32 %v7198_v55, %v7197_v34  ;;  %v6883_v50 = vsel %vm4933_vm1, %v5672_v60, 0.0 }
 0x728   : > { %v6909_v17 = vrot.slane %v5672_v60, 1  ;;  %v14588_v30 = vadd.f32 %v6841_v7, %v6840_v1  ;;  %v14590_v42 = vadd.f32 %v6878_v27, %v6877_v23  ;;  %v6942_v6 = vadd.f32 %v6941_v10, %v6940_v4 }
 0x729   : > { %v7337_v37 = vadd.f32 %v7336_v46, %v6941_v10  ;;  %v14592_v49 = vadd.f32 %v6925_v35, %v6924_v57  ;;  %v6849_v40 = vrot.slane %v6848_v45, 4  ;;  %v6884_v29 = vadd.f32 %v6883_v50, %v14519_v58 }
 0x72a   : > { %v6910_v63 = vsel %vm2925_vm5, %v14537_v39, %v6909_v17  ;;  %v14597_v18 = vadd.f32 %v7270_v59, %v7269_v14  ;;  %v6943_v31 = vrot.slane %v6942_v6, 4  ;;  %v7060_v25 = vrot.slane %v7059_v19, 2 }
 0x72b   : > { %v7338_v13 = vrot.slane %v7337_v37, 4  ;;  %v7200_v21 = vrot.slane %v7199_v3, 2  ;;  %v6885_v1 = vrot.slane %v6884_v29, 4  ;;  %v6949_v23 = vsel %vm4933_vm1, %v6910_v63, 0.0 }
 0x72c   : > { %v7092_v7 = vadd.f32 %v7091_v15, %v6847_v8  ;;  %v6880_v27 = vrot.slane %v14590_v42, 1  ;;  %v6950_v34 = vadd.f32 %v6949_v23, %v14442_v48  ;;  %v6951_v58 = vsel %vm5674_vm6, %v6909_v17, 0.0 }
 0x72d   : > { %v7339_v57 = vadd.f32 %v7338_v13, %v7337_v37  ;;  %v14603_v60 = vadd.f32 %v6849_v40, %v6848_v45  ;;  %v7232_v14 = vadd.f32 %v7231_v9, %v6883_v50  ;;  %v7371_v35 = vadd.f32 %v14428_v32, %v6949_v23 }
 0x72e   : > { %v7093_v39 = vrot.slane %v7092_v7, 4  ;;  %v14606_v11 = vadd.f32 %v6943_v31, %v6942_v6  ;;  %v14608_v36 = vadd.f32 %v6885_v1, %v6884_v29  ;;  %v6952_v59 = vadd.f32 %v6951_v58, %v6950_v34 }
 0x72f   : > { %v5608_v53 = vmax.f32 %v5383_v41, 0.0  ;;  %v14610_v15 = vadd.f32 %v7060_v25, %v7059_v19  ;;  %v14612_v55 = vadd.f32 %v7200_v21, %v7199_v3  ;;  %v7340_v8 = vrot.slane %v7339_v57, 2 }
 0x730   : > { %v7372_v4 = vadd.f32 %v7371_v35, %v6951_v58  ;;  %v14614_v46 = vadd.f32 %v7093_v39, %v7092_v7  ;;  %v7233_v45 = vrot.slane %v7232_v14, 4  ;;  %v6851_v32 = vrot.slane %v14603_v60, 2 }
 0x731   : > { %v6827_v10 = vsel %vm5674_vm6, %v5608_v53, 0.0  ;;  %v6865_v9 = vsel %vm4933_vm1, %v5608_v53, 0.0  ;;  %v6953_v50 = vrot.slane %v6952_v59, 4  ;;  %v6945_v41 = vrot.slane %v14606_v11, 2 }
 0x732   : > { %v7373_v17 = vrot.slane %v7372_v4, 4  ;;  %v6828_v6 = vadd.f32 %v6827_v10, %v14523_v33  ;;  %v6887_v19 = vrot.slane %v14608_v36, 2  ;;  %v6866_v3 = vadd.f32 %v6865_v9, %v14505_v5 }
 0x733   : > { %v6903_v37 = vrot.slane %v5608_v53, 1  ;;  %v14623_v40 = vadd.f32 %v7340_v8, %v7339_v57  ;;  %v7022_v31 = vadd.f32 %v14528_v38, %v6827_v10  ;;  %v7095_v25 = vrot.slane %v14614_v46, 2 }
 0x734   : > { %v7374_v29 = vadd.f32 %v7373_v17, %v7372_v4  ;;  %v6829_v63 = vrot.slane %v6828_v6, 4  ;;  %v14627_v13 = vadd.f32 %v7233_v45, %v7232_v14  ;;  %v6867_v21 = vrot.slane %v6866_v3, 4 }
 0x735   : > { %v6904_v33 = vsel %vm2925_vm5, %v14525_v12, %v6903_v37  ;;  %v14631_v1 = vadd.f32 %v6953_v50, %v6952_v59  ;;  %v7023_v7 = vrot.slane %v7022_v31, 4  ;;  %v7162_v58 = vadd.f32 %v14555_v51, %v6865_v9 }
 0x736   : > { %v6830_v23 = vadd.f32 %v6829_v63, %v6828_v6  ;;  %v6929_v5 = vsel %vm4933_vm1, %v6904_v33, 0.0  ;;  %v6868_v57 = vadd.f32 %v6867_v21, %v6866_v3  ;;  %v7375_v39 = vrot.slane %v7374_v29, 2 }
 0x737   : > { %v6930_v34 = vadd.f32 %v6929_v5, %v14479_v47  ;;  %v7301_v38 = vadd.f32 %v14487_v20, %v6929_v5  ;;  %v6931_v35 = vsel %vm5674_vm6, %v6903_v37, 0.0  ;;  %v7024_v53 = vadd.f32 %v7023_v7, %v7022_v31 }
 0x738   : > { %v6831_v14 = vrot.slane %v6830_v23, 2  ;;  %v6869_v8 = vrot.slane %v6868_v57, 2  ;;  %v7163_v59 = vrot.slane %v7162_v58, 4  ;;  %v6032_v50 = vrot.slane %v14512_v52, 1 }
 0x739   : > { %v6932_v12 = vadd.f32 %v6931_v35, %v6930_v34  ;;  %v7302_v4 = vadd.f32 %v7301_v38, %v6931_v35  ;;  %v7025_v10 = vrot.slane %v7024_v53, 2  ;;  %v6082_v47 = vrot.slane %v14573_v2, 1 }
 0x73a   : > { %v14638_v45 = vadd.f32 %v6831_v14, %v6830_v23  ;;  %v14642_v17 = vadd.f32 %v6869_v8, %v6868_v57  ;;  %v7164_v20 = vadd.f32 %v7163_v59, %v7162_v58  ;;  %v7235_v6 = vrot.slane %v14627_v13, 2 }
 0x73b   : > { %v6933_v51 = vrot.slane %v6932_v12, 4  ;;  %v7303_v9 = vrot.slane %v7302_v4, 4  ;;  %v14645_v3 = vadd.f32 %v7375_v39, %v7374_v29  ;;  %v5983_v37 = vadd.f32 %v5982_v62, %v14498_v22 }
 0x73c   : > { %v6033_v63 = vadd.f32 %v6032_v50, %v14512_v52  ;;  %v7026_v21 = vadd.f32 %v7025_v10, %v7024_v53  ;;  %v7165_v33 = vrot.slane %v7164_v20, 2  ;;  %v6083_v5 = vadd.f32 %v6082_v47, %v14573_v2  ;;  %v16543_v2 = vld [vmem:[#allocation229_spill] sm:$0xff] }
 0x73d   : > { %v6934_v31 = vadd.f32 %v6933_v51, %v6932_v12  ;;  %v7304_v23 = vadd.f32 %v7303_v9, %v7302_v4  ;;  %v6130_v7 = vrot.slane %v14472_v56, 2  ;;  %v16542_v29 = vrot.slane %v14490_v54, 2  ;;  %v16545_v4 = vld [vmem:[#allocation413_spill] sm:$0xff] }
 0x73e   : > { %v7391_v57 = vsel %vm748_vm9, %v6033_v63, %v5983_v37  ;;  %v6833_v58 = vrot.slane %v14638_v45, 1  ;;  %v6871_v22 = vrot.slane %v14642_v17, 1  ;;  %v7166_v52 = vadd.f32 %v7165_v33, %v7164_v20 }
 0x73f   : > { %v6617_v34 = vadd.f32 %v16542_v29, %v14490_v54  ;;  %v6935_v62 = vrot.slane %v6934_v31, 2  ;;  %v6131_v38 = vadd.f32 %v6130_v7, %v14472_v56  ;;  %v7392_v39 = vsel %vm750_vm10, %v6083_v5, %v7391_v57 }
 0x740   : > { %v16544_v35 = vrot.slane %v16543_v2, 2  ;;  %v7027_v8 = vrot.slane %v7026_v21, 1  ;;  %v7167_v12 = vrot.slane %v7166_v52, 1  ;;  %v7305_v59 = vrot.slane %v7304_v23, 2 }
 0x741   : > { %v6618_v14 = vrot.slane %v6617_v34, 1  ;;  %v6746_v54 = vrot.slane %v16545_v4, 2  ;;  %v6936_v10 = vadd.f32 %v6935_v62, %v6934_v31  ;;  %v6132_v50 = vrot.slane %v6131_v38, 1 }
 0x742   : > { %v6682_v53 = vadd.f32 %v16544_v35, %v16543_v2  ;;  %v16546_v51 = vrot.slane %v14442_v48, 4  ;;  %v7133_v37 = vadd.f32 %v7132_v43, %v14566_v16  ;;  %v7168_v63 = vadd.f32 %v7167_v12, %v7166_v52 }
 0x743   : > { %v6619_v56 = vadd.f32 %v6618_v14, %v6617_v34  ;;  %v6747_v9 = vadd.f32 %v6746_v54, %v16545_v4  ;;  %v6133_v33 = vadd.f32 %v6132_v50, %v6131_v38  ;;  %v7202_v57 = vrot.slane %v14612_v55, 1 }
 0x744   : > { %v6683_v47 = vrot.slane %v6682_v53, 1  ;;  %v6810_v20 = vadd.f32 %v16546_v51, %v14442_v48  ;;  %v14673_v31 = vadd.f32 %v7305_v59, %v7304_v23  ;;  %v7236_v62 = vadd.f32 %v7235_v6, %v14627_v13 }
 0x745   : > { %v6748_v29 = vrot.slane %v6747_v9, 1  ;;  %v7449_v48 = vsel %vm748_vm9, %v7168_v63, %v7133_v37  ;;  %v7393_v34 = vsel %vm752_vm11, %v6133_v33, %v7392_v39  ;;  %v7203_v16 = vadd.f32 %v7202_v57, %v14612_v55 }
 0x746   : > { %v6684_v5 = vadd.f32 %v6683_v47, %v6682_v53  ;;  %v6811_v7 = vrot.slane %v6810_v20, 2  ;;  %7394 = vrot.lane.b32.xlu2 %v7393_v34, %s7832_s13  ;;  %v7237_v52 = vrot.slane %v7236_v62, 1  ;;  %v6993_v23 = vadd.f32 %v6992_v26, %v14562_v61 }
 0x747   : > { %v6749_v43 = vadd.f32 %v6748_v29, %v6747_v9  ;;  %v7028_v38 = vadd.f32 %v7027_v8, %v7026_v21  ;;  %v7450_v13 = vsel %vm750_vm10, %v7203_v16, %v7449_v48  ;;  %v7062_v6 = vrot.slane %v14610_v15, 1  ;;  %v16550_v29 = vld [vmem:[#allocation16_spill] sm:$0xff] }
 0x748   : > { %v6812_v14 = vadd.f32 %v6811_v7, %v6810_v20  ;;  %v7401_v2 = vsel %vm748_vm9, %v6684_v5, %v6619_v56  ;;  %v7096_v39 = vadd.f32 %v7095_v25, %v14614_v46  ;;  %v7238_v53 = vadd.f32 %v7237_v52, %v7236_v62  ;;  %v16547_v5 = vld [vmem:[#allocation208_spill] sm:$0xff] }
 0x749   : > { %v7402_v55 = vsel %vm750_vm10, %v6749_v43, %v7401_v2  ;;  %v7439_v12 = vsel %vm748_vm9, %v7028_v38, %v6993_v23  ;;  %v6927_v59 = vrot.slane %v14592_v49, 1  ;;  %v7063_v61 = vadd.f32 %v7062_v6, %v14610_v15 }
 0x74a   : > { %v6813_v35 = vrot.slane %v6812_v14, 1  ;;  %v7097_v26 = vrot.slane %v7096_v39, 1  ;;  %v6937_v21 = vrot.slane %v6936_v10, 1  ;;  %v7451_v8 = vsel %vm752_vm11, %v7238_v53, %v7450_v13 }
 0x74b   : > { %v6928_v54 = vadd.f32 %v6927_v59, %v14592_v49  ;;  %v6946_v46 = vadd.f32 %v6945_v41, %v14606_v11  ;;  %v6955_v25 = vrot.slane %v14631_v1, 2  ;;  %v7440_v51 = vsel %vm750_vm10, %v7063_v61, %v7439_v12 }
 0x74c   : > { %v6814_v4 = vadd.f32 %v6813_v35, %v6812_v14  ;;  %v7098_v47 = vadd.f32 %v7097_v26, %v7096_v39  ;;  %v6938_v20 = vadd.f32 %v6937_v21, %v6936_v10  ;;  %v6824_v49 = vadd.f32 %v6823_v44, %v14557_v24 }
 0x74d   : > { %v6947_v15 = vrot.slane %v6946_v46, 1  ;;  %v6956_v56 = vadd.f32 %v6955_v25, %v14631_v1  ;;  %v6834_v9 = vadd.f32 %v6833_v58, %v14638_v45  ;;  %v6843_v37 = vrot.slane %v14588_v30, 1  ;;  %v16548_v45 = vld [vmem:[#allocation361_spill] sm:$0xff] }
 0x74e   : > { %v7403_v50 = vsel %vm752_vm11, %v6814_v4, %v7402_v55  ;;  %v7441_v11 = vsel %vm752_vm11, %v7098_v47, %v7440_v51  ;;  %v7429_v41 = vsel %vm748_vm9, %v6938_v20, %v6928_v54  ;;  %v6852_v10 = vadd.f32 %v6851_v32, %v14603_v60  ;;  %v16551_v32 = vld [vmem:[#allocation99_spill] sm:$0xff] }
 0x74f   : > { %7404 = vrot.lane.b32.xlu1 %v7403_v50, %s7835_s28  ;;  %7442 = vrot.lane.b32.xlu2 %v7441_v11, %s7835_s28  ;;  %v6948_v63 = vadd.f32 %v6947_v15, %v6946_v46  ;;  %v6957_v33 = vrot.slane %v6956_v56, 1  ;;  %v7411_v1 = vsel %vm748_vm9, %v6834_v9, %v6824_v49  ;;  %v5802_v7 = vrot.slane %v16547_v5, 1  ;;  %s7775_s28 = sshra.s32 %s7517_s26, 4  ;;  %s7776_s28 = int_to_ptr.hbm [resolvable:$true] %s7775_s28 }
 0x750   : > { %v6844_v24 = vadd.f32 %v6843_v37, %v14588_v30  ;;  %v6853_v44 = vrot.slane %v6852_v10, 1  ;;  %v16549_v58 = vrot.slane %v16548_v45, 2  ;;  %v5930_v62 = vrot.slane %v16550_v29, 2  ;;  %p7782_p0 = scmp.lt.s32.totalorder %s7776_s28, %s14811_s7 }
 0x751   : > { %v6958_v48 = vadd.f32 %v6957_v33, %v6956_v56  ;;  %v7430_v34 = vsel %vm750_vm10, %v6948_v63, %v7429_v41  ;;  %v5803_v60 = vadd.f32 %v5802_v7, %v16547_v5  ;;  %v5737_v14 = vrot.slane %v16551_v32, 1 }
 0x752   : > { %v5866_v57 = vadd.f32 %v16549_v58, %v16548_v45  ;;  %v6854_v2 = vadd.f32 %v6853_v44, %v6852_v10  ;;  %v7412_v16 = vsel %vm750_vm10, %v6844_v24, %v7411_v1  ;;  %v5931_v30 = vadd.f32 %v5930_v62, %v16550_v29 }
 0x753   : > { %v6872_v52 = vadd.f32 %v6871_v22, %v14642_v17  ;;  %v7431_v23 = vsel %vm752_vm11, %v6958_v48, %v7430_v34  ;;  %v5738_v38 = vadd.f32 %v5737_v14, %v16551_v32  ;;  %v6888_v35 = vadd.f32 %v6887_v19, %v14608_v36 }
 0x754   : > { %v5867_v43 = vrot.slane %v5866_v57, 1  ;;  %v7307_v13 = vrot.slane %v14673_v31, 1  ;;  %7432 = vrot.lane.b32.xlu0 %v7431_v23, %s7832_s13  ;;  %v7413_v6 = vsel %vm752_vm11, %v6854_v2, %v7412_v16  ;;  %v5932_v55 = vrot.slane %v5931_v30, 1 }
 0x755   : > { %v6863_v17 = vadd.f32 %v6862_v0, %v14559_v28  ;;  %v7383_v22 = vsel %vm748_vm9, %v5803_v60, %v5738_v38  ;;  %v6889_v53 = vrot.slane %v6888_v35, 1  ;;  %v7272_v12 = vrot.slane %v14597_v18, 1 }
 0x756   : > { %v5868_v39 = vadd.f32 %v5867_v43, %v5866_v57  ;;  %v5933_v36 = vadd.f32 %v5932_v55, %v5931_v30  ;;  %v6881_v59 = vadd.f32 %v6880_v27, %v14590_v42  ;;  %v7342_v4 = vrot.slane %v14623_v40, 1 }
 0x757   : > { %7452 = vrot.lane.b32.xlu1 %v7451_v8, %s7836_s19  ;;  %v6890_v61 = vadd.f32 %v6889_v53, %v6888_v35  ;;  %v7421_v26 = vsel %vm748_vm9, %v6872_v52, %v6863_v17  ;;  %v7308_v28 = vadd.f32 %v7307_v13, %v14673_v31  ;;  %v7377_v8 = vrot.slane %v14645_v3, 1 }
 0x758   : > { %v7384_v19 = vsel %vm750_vm10, %v5868_v39, %v7383_v22  ;;  %v7422_v21 = vsel %vm750_vm10, %v6881_v59, %v7421_v26  ;;  %v7273_v46 = vadd.f32 %v7272_v12, %v14597_v18  ;;  %v7343_v25 = vadd.f32 %v7342_v4, %v14623_v40  ;;  %v7471_v40 = vld [vmem:[%s14809_s5] sm:$0x7] }
 0x759   : > { %v7385_v0 = vsel %vm752_vm11, %v5933_v36, %v7384_v19  ;;  %v7423_v54 = vsel %vm752_vm11, %v6890_v61, %v7422_v21  ;;  %v7378_v42 = vadd.f32 %v7377_v8, %v14645_v3  ;;  %vm7466_vm5 = vcmask 785408  }
 0x75a   : > { %v7459_v27 = vsel %vm748_vm9, %v7308_v28, %v7273_v46  ;;  %v7474_v49 = vperm.slane %v7471_v40, 1  ;;  %v7473_v11 = vperm.slane %v7471_v40, 0  ;;  %v7475_v41 = vperm.slane %v7471_v40, 2 }
 0x75b   : > { %v7460_v50 = vsel %vm750_vm10, %v7343_v25, %v7459_v27 }
 0x75c   : > { %7414 = vrot.lane.b32.xlu0 %v7413_v6, %s7836_s19  ;;  %v7461_v31 = vsel %vm752_vm11, %v7378_v42, %v7460_v50  ;;  %s7777_s19 = scalar_lea.hbm %s7776_s28, 4 }
 0x75d   : > { %v7481_v7 = vmul.f32 %v7475_v41, %v7461_v31  ;;  %p7778_p11 = scmp.ne.s32.totalorder %s7776_s28, %s7777_s19  ;;  %p7783_p1 = scmp.lt.s32.totalorder %s7781_s24, %s7777_s19 }
 0x75f   : > { %p7779_p12 = pnand %p7778_p11, %p7923_p5  ;;  %p7784_p2 = por %p7783_p1, %p7782_p0 }
 0x761   : > { %p7780_p13 = pneg %p7779_p12 }
 0x763   : > { %p7785_p3 = pnand %p7784_p2, %p7780_p13 }
 0x7a0   : > { %v7395_v47 = vpop.permute.xlu2 %7394 }
 0x7a1   : > { %v7463_v37 = vsel %vm4933_vm1, %v7385_v0, %v7395_v47 }
 0x7a9   : > { %v7443_v15 = vpop.permute.xlu2 %7442 }
 0x7c1   : > { %v7405_v51 = vpop.permute.xlu1 %7404 }
 0x7c2   : > { %v7465_v10 = vsel %vm7464_vm4, %v7463_v37, %v7405_v51 }
 0x7c6   : > { %v7433_v20 = vpop.permute.xlu0 %7432 }
 0x7c7   : > { %v7468_v18 = vsel %vm4933_vm1, %v7423_v54, %v7433_v20 }
 0x7c8   : > { %v7469_v56 = vsel %vm7464_vm4, %v7468_v18, %v7443_v15 }
 0x7c9   : > { %v7453_v3 = vpop.permute.xlu1 %7452 }
 0x7ca   : > { %v7470_v9 = vsel %vm7466_vm5, %v7469_v56, %v7453_v3 }
 0x7cb   : > { %v7480_v63 = vmul.f32 %v7474_v49, %v7470_v9 }
 0x7ce   : > { %v7415_v33 = vpop.permute.xlu0 %7414 }
 0x7cf   : > { %v7467_v1 = vsel %vm7466_vm5, %v7465_v10, %v7415_v33 }
 0x7d0   : > { %v7479_v5 = vmul.f32 %v7473_v11, %v7467_v1 }
 0x7d1   : > { %7788 = shalt.err (!%p7785_p3)
}
 0x7d2   : > { %7702 = dma.vmem_to_hbm [thread:$0]  (%p7923_p5), %s7515_s22, 64, %s7517_s26, %s7498_s27   ;;  %vm7485_vm9 = vcmask 257024   ;;  %v7483_v24 = vsel %vm756_vm7, %v7480_v63, 0.0  ;;  %v7482_v44 = vsel %vm756_vm7, %v7479_v5, 0.0  ;;  %v7755_v29 = vld [vmem:[#allocation2] ss:$0 sm:$0xff] }
 0x7d3   : > { %v7484_v45 = vadd.f32 %v7483_v24, %v7482_v44  ;;  %v7486_v58 = vsel %vm7485_vm9, %v7481_v7, 0.0  ;;  %p318_p4 = scmp.lt.s32.totalorder %s7906_s6, 1  ;;  %vm7495_vm10 = vcmask 3072  }
 0x7d5   : > { %v7487_v57 = vadd.f32 %v7486_v58, %v7484_v45  ;;  %s16557_s6 = smov (!%p318_p4, %s7906_s6), 1 }
 0x7d6   : > { %s7611_s23 = sshll.u32 %s16557_s6, 2 }
 0x7d7   : > { %7488 = vadd.xlane.f32.xlu2 %v7487_v57  ;;  %s321_s16 = scalar_lea.vmem %s14812_s8, %s7611_s23 }
 0x84a   : > { %v7489_v62 = vpop.xlane.xlu2 %7488 }
 0x84b   : > { %v7494_v48 = vadd.f32 %v7755_v29, %v7489_v62 }
 0x84d   : > { %7496 = vst.msk [vmem:[%s321_s16] sm:$0xf] %vm7495_vm10, %v7494_v48 }
 0x84e PF: > { %p7708_p5 = scmp.ge.s32.totalorder %s7823_s10, 2  ;;  %s7531_s21 = sand.u32 1, %s7811_s29  }
 0x84f   : > { %s7532_s22 = scalar_lea.sflag [#allocation4], %s7531_s21 }
 0x850   : > { %p7705_p7 = pnand %p7708_p5, %p7927_p6 }
 0x852   : > { %p7706_p8 = pneg %p7705_p7 }
 0x854   : > { %7806 = dma.done.wait (%p7706_p8), %s7532_s22, 64  }
 0x855   : > { %7808 = vsyncadd (%p7706_p8), %s7532_s22, 4294967232  ;;  %p21_p9 = scmp.ge.s32.totalorder %s7910_s12, 4   ;;  %s16552_s29 = smov %s7815_s30 }
 0x856   : > { %s16553_s30 = smov %s7819_s9  ;;  %s16554_s9 = smov %s7921_s15 }
 0x857   : > { %s16555_s10 = smov %s7910_s12  ;;  %23 = sbr.rel (!%p21_p9) target bundleno = 6 (0x6), region = 95 }
 0x85c   :  { %7545 = vsyncpa [#allocation4], 1 }
 0x85d   :  { %7547 = vsyncpa [#allocation4 + $0x1], 1 }

</bundles_post_ra>
